<compile_context>
chip_gen: v7x
topology: tpu7x:2x2x1
jax: 0.10.0
libtpu: 0.0.40
codegen_flags: <defaults>
</compile_context>

<pallas_src>
import functools

import numpy as np
import jax
import jax.numpy as jnp
from jax.experimental import pallas as pl
from jax.experimental.pallas import tpu as pltpu

EPS = 1e-5  # torch.nn.BatchNorm2d default eps

# (kernel_size, padding) of the three stride-2 ConvTranspose2d layers in conv_generator.
CT_LAYERS = ((3, 1), (4, 1), (4, 1))


def _vmem():
    return pl.BlockSpec(memory_space=pltpu.MemorySpace.VMEM)


# --------------------------- Pallas kernels ---------------------------

def linear_relu_kernel(x_ref, w_ref, b_ref, o_ref):
    # nn.Linear + nn.ReLU; output stored bf16 (feeds bf16 conv patches).
    y = jnp.dot(x_ref[...], w_ref[...], preferred_element_type=jnp.float32) + b_ref[...]
    o_ref[...] = jnp.maximum(y, 0.0).astype(o_ref.dtype)


def conv_block_kernel(*refs, fuse_head):
    """Stride-2 ConvTranspose2d (4 sub-pixel phases, each one 2-D bf16 MXU matmul)
    + BatchNorm2d (training batch stats, one-pass sum/sumsq, folded scale/shift)
    + ReLU; optionally fused with the final 1x1 Conv2d + Tanh head (VPU weighted sum).
    """
    if fuse_head:
        p_refs, w_refs = refs[0:4], refs[4:8]
        b_ref, g_ref, beta_ref, cw_ref, cb_ref = refs[8:13]
        o_refs = refs[13:17]
    else:
        p_refs, w_refs = refs[0:4], refs[4:8]
        b_ref, g_ref, beta_ref = refs[8:11]
        o_refs = refs[11:15]

    bias = b_ref[...]
    # One MXU matmul per phase: (rows_p, T*Cin) bf16 @ (T*Cin, Cout) bf16 -> f32.
    ys = [jnp.dot(p[...], w[...], preferred_element_type=jnp.float32) + bias
          for p, w in zip(p_refs, w_refs)]

    # Joint BatchNorm statistics over all (N, H, W) rows of all four phases — one pass.
    n = float(sum(y.shape[0] for y in ys))
    s = ys[0].sum(axis=0, keepdims=True)
    ss = jnp.square(ys[0]).sum(axis=0, keepdims=True)
    for y in ys[1:]:
        s = s + y.sum(axis=0, keepdims=True)
        ss = ss + jnp.square(y).sum(axis=0, keepdims=True)
    mu = s * (1.0 / n)
    var = ss * (1.0 / n) - mu * mu                     # biased var (torch training mode)
    scale = g_ref[...] * jax.lax.rsqrt(var + EPS)      # folded gamma * rsqrt(var+eps)
    shift = beta_ref[...] - mu * scale

    for y, o in zip(ys, o_refs):
        r = jnp.maximum(y * scale + shift, 0.0)        # BN + ReLU: one FMA + max per elem
        if fuse_head:
            # 1x1 Conv2d(c -> channels) + Tanh as a VPU multiply + lane reduction
            # (the 1-wide output does not justify an MXU pass).
            cols = []
            for j in range(cw_ref.shape[0]):
                wj = cw_ref[j:j + 1, :]                                  # (1, C)
                cols.append(jnp.sum(r * wj, axis=1, keepdims=True)
                            + cb_ref[:, j:j + 1])
            img = cols[0] if len(cols) == 1 else jnp.concatenate(cols, axis=1)
            o[...] = jnp.tanh(img)
        else:
            o[...] = r.astype(o.dtype)


# ------------------- sub-pixel phase decomposition (static) -------------------

def _phase_taps(K, pad, phase):
    """Taps k (and input offsets d) contributing to outputs o with o % 2 == phase for a
    stride-2 ConvTranspose: o = 2*i - pad + k  =>  i = u + d,  d = (phase + pad - k)//2."""
    return [(k, (phase + pad - k) // 2) for k in range(K) if (phase + pad - k) % 2 == 0]


def _phase_geometry(K, pad, H, W):
    """Static geometry of the 4 output phases of a stride-2 ConvTranspose2d layer."""
    OH = (H - 1) * 2 - 2 * pad + K
    OW = (W - 1) * 2 - 2 * pad + K
    phases = []
    for py in range(2):
        for px in range(2):
            U = (OH - py + 1) // 2                    # output rows in this phase
            V = (OW - px + 1) // 2                    # output cols in this phase
            taps = [((ky, dy), (kx, dx))
                    for (ky, dy) in _phase_taps(K, pad, py)
                    for (kx, dx) in _phase_taps(K, pad, px)]
            for (ky, dy), (kx, dx) in taps:           # slabs must fit in the pad-by-1 input
                assert 0 <= 1 + dy and 1 + dy + U <= H + 2
                assert 0 <= 1 + dx and 1 + dx + V <= W + 2
            phases.append((py, px, U, V, taps))
    return OH, OW, phases


def _build_phase_patches(x, phases):
    """x: (B,H,W,C) NHWC activation -> list of 4 bf16 2-D patch matrices (B*U*V, T*C)."""
    B, H, W, C = x.shape
    xp = jnp.pad(x, ((0, 0), (1, 1), (1, 1), (0, 0)))    # zero pad handles edge taps
    mats = []
    for (py, px, U, V, taps) in phases:
        slabs = [xp[:, 1 + dy:1 + dy + U, 1 + dx:1 + dx + V, :]
                 for (ky, dy), (kx, dx) in taps]
        pm = jnp.concatenate(slabs, axis=-1).reshape(B * U * V, len(taps) * C)
        mats.append(pm.astype(jnp.bfloat16))
    return mats


def _pack_ct_weights(w, phases):
    """Torch ConvTranspose2d weight (Cin, Cout, K, K) -> per-phase (T*Cin, Cout) bf16
    matmul matrices whose row order matches the patch column order (tap-major, ci-minor)."""
    mats = []
    for (py, px, U, V, taps) in phases:
        blocks = [w[:, :, ky, kx] for (ky, dy), (kx, dx) in taps]     # each (Cin, Cout)
        mats.append(jnp.concatenate(blocks, axis=0).astype(jnp.bfloat16))
    return mats


def _assemble_phases(vals, phases, B, OH, OW, C, dtype):
    """Interleave the 4 phase outputs back into a full-resolution NHWC tensor (XLA glue)."""
    out = jnp.zeros((B, OH, OW, C), dtype)
    for val, (py, px, U, V, taps) in zip(vals, phases):
        out = out.at[:, py::2, px::2, :].set(val.reshape(B, U, V, C).astype(dtype))
    return out


# ------------------------------ parameters ------------------------------

def _uniform(key, shape, bound):
    return jax.random.uniform(key, shape, jnp.float32, -bound, bound)


def init_params(key, noise_dim=10, channels=1, n_hidden=32, k=2):
    """Torch-layout params, matching a freshly constructed module:
    kaiming_uniform(a=sqrt(5)) == U(+-1/sqrt(fan_in)); for ConvTranspose2d weights of
    shape (C_in, C_out, kH, kW) PyTorch's fan_in is C_out*kH*kW (same bound for bias)."""
    c = n_hidden
    c3, c2, c1 = c * k ** 3, c * k ** 2, c * k
    ks = jax.random.split(key, 10)
    p = {}
    p["fc_w"] = _uniform(ks[0], (c3 * 16, noise_dim), 1.0 / noise_dim ** 0.5)  # (out, in)
    p["fc_b"] = _uniform(ks[1], (c3 * 16,), 1.0 / noise_dim ** 0.5)
    p["ct1_w"] = _uniform(ks[2], (c3, c2, 3, 3), 1.0 / (c2 * 9) ** 0.5)
    p["ct1_b"] = _uniform(ks[3], (c2,), 1.0 / (c2 * 9) ** 0.5)
    p["ct2_w"] = _uniform(ks[4], (c2, c1, 4, 4), 1.0 / (c1 * 16) ** 0.5)
    p["ct2_b"] = _uniform(ks[5], (c1,), 1.0 / (c1 * 16) ** 0.5)
    p["ct3_w"] = _uniform(ks[6], (c1, c, 4, 4), 1.0 / (c * 16) ** 0.5)
    p["ct3_b"] = _uniform(ks[7], (c,), 1.0 / (c * 16) ** 0.5)
    for i, ch in ((1, c2), (2, c1), (3, c)):
        p[f"bn{i}_g"] = jnp.ones((ch,), jnp.float32)
        p[f"bn{i}_b"] = jnp.zeros((ch,), jnp.float32)
    p["conv_w"] = _uniform(ks[8], (channels, c, 1, 1), 1.0 / c ** 0.5)         # (out, in, 1, 1)
    p["conv_b"] = _uniform(ks[9], (channels,), 1.0 / c ** 0.5)
    return p


def pack_params(p, noise_dim=10, channels=1, n_hidden=32, k=2):
    """One-time re-layout of torch params into kernel-ready form (outside jit):
    - fc weight transposed to (in, out), columns permuted from torch's (c, y, x) feature
      order to NHWC-flat (y, x, c) so the post-fc Reshape needs no transpose.
    - each ConvTranspose2d weight packed into 4 per-phase bf16 matmul matrices.
    """
    c = n_hidden
    c3 = c * k ** 3
    packed = {}
    # fc: new column j' = (y*4+x)*c3 + ch  reads old column ch*16 + (y*4+x)
    s = np.arange(16)
    ch = np.arange(c3)
    perm = (ch[None, :] * 16 + s[:, None]).reshape(-1)
    packed["fc_w"] = jnp.asarray(p["fc_w"]).T[:, perm]                 # (noise_dim, c3*16)
    packed["fc_b"] = jnp.asarray(p["fc_b"])[perm][None, :]             # (1, c3*16)
    H = 4
    for i, (K, pad) in enumerate(CT_LAYERS, start=1):
        OH, _, phases = _phase_geometry(K, pad, H, H)
        packed[f"ct{i}_w"] = _pack_ct_weights(p[f"ct{i}_w"], phases)   # list of 4 bf16 mats
        packed[f"ct{i}_b"] = p[f"ct{i}_b"][None, :]
        packed[f"bn{i}_g"] = p[f"bn{i}_g"][None, :]
        packed[f"bn{i}_b"] = p[f"bn{i}_b"][None, :]
        H = OH
    packed["conv_w"] = p["conv_w"].reshape(channels, c)                # (channels, c)
    packed["conv_b"] = p["conv_b"][None, :]                            # (1, channels)
    return packed


# -------------------------------- forward --------------------------------

@jax.jit
def simple_generator_forward(packed, z):
    B = z.shape[0]
    fc_w, fc_b = packed["fc_w"], packed["fc_b"]
    c3 = fc_w.shape[1] // 16

    # Linear(noise_dim -> c*k^3*4*4) + ReLU; output already NHWC-flat (permuted weights).
    h = pl.pallas_call(
        linear_relu_kernel,
        out_shape=jax.ShapeDtypeStruct((B, fc_w.shape[1]), jnp.bfloat16),
        in_specs=[_vmem(), _vmem(), _vmem()],
        out_specs=_vmem(),
    )(z, fc_w, fc_b)
    x = h.reshape(B, 4, 4, c3)                               # pure reshape (no transpose)

    img = None
    for i, (K, pad) in enumerate(CT_LAYERS):
        _, H, W, _ = x.shape
        OH, OW, phases = _phase_geometry(K, pad, H, W)
        w_mats = packed[f"ct{i + 1}_w"]
        bias, gamma, beta = (packed[f"ct{i + 1}_b"], packed[f"bn{i + 1}_g"],
                             packed[f"bn{i + 1}_b"])
        cout = bias.shape[1]
        pmats = _build_phase_patches(x, phases)
        last = i == len(CT_LAYERS) - 1
        if not last:
            args = (*pmats, *w_mats, bias, gamma, beta)
            outs = pl.pallas_call(
                functools.partial(conv_block_kernel, fuse_head=False),
                out_shape=tuple(jax.ShapeDtypeStruct((pm.shape[0], cout), jnp.bfloat16)
                                for pm in pmats),
                in_specs=[_vmem() for _ in args],
                out_specs=tuple(_vmem() for _ in pmats),
            )(*args)
            x = _assemble_phases(outs, phases, B, OH, OW, cout, jnp.bfloat16)
        else:
            cw, cb = packed["conv_w"], packed["conv_b"]
            n_ch = cw.shape[0]
            args = (*pmats, *w_mats, bias, gamma, beta, cw, cb)
            outs = pl.pallas_call(
                functools.partial(conv_block_kernel, fuse_head=True),
                out_shape=tuple(jax.ShapeDtypeStruct((pm.shape[0], n_ch), jnp.float32)
                                for pm in pmats),
                in_specs=[_vmem() for _ in args],
                out_specs=tuple(_vmem() for _ in pmats),
            )(*args)
            img = _assemble_phases(outs, phases, B, OH, OW, n_ch, jnp.float32)

    # NHWC -> NCHW; SimpleGenerator's final reshape(B, channels, 28, 28) is a no-op here.
    return jnp.transpose(img, (0, 3, 1, 2))


# TODO(synk): BatchNorm2d running_mean/running_var buffer updates are training-time state
# with no effect on this forward output; they are not tracked here.

if __name__ == "__main__":
    key = jax.random.PRNGKey(0)
    pkey, zkey = jax.random.split(key)
    params = init_params(pkey, noise_dim=10, channels=1, n_hidden=32, k=2)
    packed = pack_params(params, noise_dim=10, channels=1, n_hidden=32, k=2)
    z = jax.random.normal(zkey, (2, 10), jnp.float32)        # batch=2, noise_dim=10

    out = jax.block_until_ready(simple_generator_forward(packed, z))

    assert out.shape == (2, 1, 28, 28), out.shape
    assert out.dtype == jnp.float32
    assert bool(jnp.all(jnp.isfinite(out)))
    assert bool(jnp.all(jnp.abs(out) <= 1.0 + 1e-6))         # tanh range
    print("KERNEL_OK")
</pallas_src>

<mosaic_0001>
module attributes {stable_mosaic.version = 11 : i64} {
  func.func @linear_relu_kernel(%arg0: memref<2x10xf32, #tpu.memory_space<vmem>>, %arg1: memref<10x4096xf32, #tpu.memory_space<vmem>>, %arg2: memref<1x4096xf32, #tpu.memory_space<vmem>>, %arg3: memref<2x4096xbf16, #tpu.memory_space<vmem>>) attributes {dimension_semantics = [], scalar_prefetch = 0 : i64, scratch_operands = 0 : i64, tpu.core_type = #tpu.core_type<tc>} {
    %c0 = arith.constant 0 : index
    %c0_0 = arith.constant 0 : index
    %0 = vector.load %arg0[%c0, %c0_0] : memref<2x10xf32, #tpu.memory_space<vmem>>, vector<2x10xf32>
    %c0_1 = arith.constant 0 : index
    %c0_2 = arith.constant 0 : index
    %1 = vector.load %arg1[%c0_1, %c0_2] : memref<10x4096xf32, #tpu.memory_space<vmem>>, vector<10x4096xf32>
    %cst = arith.constant dense<0.000000e+00> : vector<2x4096xf32>
    %2 = tpu.matmul %0, %1, %cst {dimension_numbers = #tpu.dot_dimension_numbers<[1], [0], [0], [1], [0, 0, 1, 1], [], []>} : vector<2x10xf32>, vector<10x4096xf32>, vector<2x4096xf32> -> vector<2x4096xf32>
    %c0_3 = arith.constant 0 : index
    %c0_4 = arith.constant 0 : index
    %3 = vector.load %arg2[%c0_3, %c0_4] : memref<1x4096xf32, #tpu.memory_space<vmem>>, vector<1x4096xf32>
    %4 = vector.broadcast %3 : vector<1x4096xf32> to vector<2x4096xf32>
    %5 = arith.addf %2, %4 : vector<2x4096xf32>
    %cst_5 = arith.constant 0.000000e+00 : f32
    %6 = vector.broadcast %cst_5 : f32 to vector<2x4096xf32>
    %7 = arith.maximumf %5, %6 : vector<2x4096xf32>
    %8 = arith.truncf %7 : vector<2x4096xf32> to vector<2x4096xbf16>
    %c0_6 = arith.constant 0 : index
    %c0_7 = arith.constant 0 : index
    %9 = vector.load %arg3[%c0_6, %c0_7] : memref<2x4096xbf16, #tpu.memory_space<vmem>>, vector<2x4096xbf16>
    tpu.vector_store %arg3[%c0_6, %c0_7], %8 {strides = array<i32>} : memref<2x4096xbf16, #tpu.memory_space<vmem>>, vector<2x4096xbf16>,
    return
  }
}

module attributes {stable_mosaic.version = 11 : i64} {
  func.func @conv_block_kernel(%arg0: memref<32x256xbf16, #tpu.memory_space<vmem>>, %arg1: memref<24x512xbf16, #tpu.memory_space<vmem>>, %arg2: memref<24x512xbf16, #tpu.memory_space<vmem>>, %arg3: memref<18x1024xbf16, #tpu.memory_space<vmem>>, %arg4: memref<256x128xbf16, #tpu.memory_space<vmem>>, %arg5: memref<512x128xbf16, #tpu.memory_space<vmem>>, %arg6: memref<512x128xbf16, #tpu.memory_space<vmem>>, %arg7: memref<1024x128xbf16, #tpu.memory_space<vmem>>, %arg8: memref<1x128xf32, #tpu.memory_space<vmem>>, %arg9: memref<1x128xf32, #tpu.memory_space<vmem>>, %arg10: memref<1x128xf32, #tpu.memory_space<vmem>>, %arg11: memref<32x128xbf16, #tpu.memory_space<vmem>>, %arg12: memref<24x128xbf16, #tpu.memory_space<vmem>>, %arg13: memref<24x128xbf16, #tpu.memory_space<vmem>>, %arg14: memref<18x128xbf16, #tpu.memory_space<vmem>>) attributes {dimension_semantics = [], scalar_prefetch = 0 : i64, scratch_operands = 0 : i64, tpu.core_type = #tpu.core_type<tc>} {
    %c0 = arith.constant 0 : index
    %c0_0 = arith.constant 0 : index
    %0 = vector.load %arg8[%c0, %c0_0] : memref<1x128xf32, #tpu.memory_space<vmem>>, vector<1x128xf32>
    %c0_1 = arith.constant 0 : index
    %c0_2 = arith.constant 0 : index
    %1 = vector.load %arg0[%c0_1, %c0_2] : memref<32x256xbf16, #tpu.memory_space<vmem>>, vector<32x256xbf16>
    %c0_3 = arith.constant 0 : index
    %c0_4 = arith.constant 0 : index
    %2 = vector.load %arg4[%c0_3, %c0_4] : memref<256x128xbf16, #tpu.memory_space<vmem>>, vector<256x128xbf16>
    %cst = arith.constant dense<0.000000e+00> : vector<32x128xf32>
    %3 = tpu.matmul %1, %2, %cst {dimension_numbers = #tpu.dot_dimension_numbers<[1], [0], [0], [1], [0, 0, 1, 1], [], []>} : vector<32x256xbf16>, vector<256x128xbf16>, vector<32x128xf32> -> vector<32x128xf32>
    %4 = vector.broadcast %0 : vector<1x128xf32> to vector<32x128xf32>
    %5 = arith.addf %3, %4 : vector<32x128xf32>
    %c0_5 = arith.constant 0 : index
    %c0_6 = arith.constant 0 : index
    %6 = vector.load %arg1[%c0_5, %c0_6] : memref<24x512xbf16, #tpu.memory_space<vmem>>, vector<24x512xbf16>
    %c0_7 = arith.constant 0 : index
    %c0_8 = arith.constant 0 : index
    %7 = vector.load %arg5[%c0_7, %c0_8] : memref<512x128xbf16, #tpu.memory_space<vmem>>, vector<512x128xbf16>
    %cst_9 = arith.constant dense<0.000000e+00> : vector<24x128xf32>
    %8 = tpu.matmul %6, %7, %cst_9 {dimension_numbers = #tpu.dot_dimension_numbers<[1], [0], [0], [1], [0, 0, 1, 1], [], []>} : vector<24x512xbf16>, vector<512x128xbf16>, vector<24x128xf32> -> vector<24x128xf32>
    %9 = vector.broadcast %0 : vector<1x128xf32> to vector<24x128xf32>
    %10 = arith.addf %8, %9 : vector<24x128xf32>
    %c0_10 = arith.constant 0 : index
    %c0_11 = arith.constant 0 : index
    %11 = vector.load %arg2[%c0_10, %c0_11] : memref<24x512xbf16, #tpu.memory_space<vmem>>, vector<24x512xbf16>
    %c0_12 = arith.constant 0 : index
    %c0_13 = arith.constant 0 : index
    %12 = vector.load %arg6[%c0_12, %c0_13] : memref<512x128xbf16, #tpu.memory_space<vmem>>, vector<512x128xbf16>
    %cst_14 = arith.constant dense<0.000000e+00> : vector<24x128xf32>
    %13 = tpu.matmul %11, %12, %cst_14 {dimension_numbers = #tpu.dot_dimension_numbers<[1], [0], [0], [1], [0, 0, 1, 1], [], []>} : vector<24x512xbf16>, vector<512x128xbf16>, vector<24x128xf32> -> vector<24x128xf32>
    %14 = vector.broadcast %0 : vector<1x128xf32> to vector<24x128xf32>
    %15 = arith.addf %13, %14 : vector<24x128xf32>
    %c0_15 = arith.constant 0 : index
    %c0_16 = arith.constant 0 : index
    %16 = vector.load %arg3[%c0_15, %c0_16] : memref<18x1024xbf16, #tpu.memory_space<vmem>>, vector<18x1024xbf16>
    %c0_17 = arith.constant 0 : index
    %c0_18 = arith.constant 0 : index
    %17 = vector.load %arg7[%c0_17, %c0_18] : memref<1024x128xbf16, #tpu.memory_space<vmem>>, vector<1024x128xbf16>
    %cst_19 = arith.constant dense<0.000000e+00> : vector<18x128xf32>
    %18 = tpu.matmul %16, %17, %cst_19 {dimension_numbers = #tpu.dot_dimension_numbers<[1], [0], [0], [1], [0, 0, 1, 1], [], []>} : vector<18x1024xbf16>, vector<1024x128xbf16>, vector<18x128xf32> -> vector<18x128xf32>
    %19 = vector.broadcast %0 : vector<1x128xf32> to vector<18x128xf32>
    %20 = arith.addf %18, %19 : vector<18x128xf32>
    %cst_20 = arith.constant dense<0.000000e+00> : vector<128xf32>
    %21 = vector.multi_reduction <add>, %5, %cst_20 [0] : vector<32x128xf32> to vector<128xf32>
    %22 = vector.shape_cast %21 : vector<128xf32> to vector<1x128xf32>
    %23 = arith.mulf %5, %5 : vector<32x128xf32>
    %cst_21 = arith.constant dense<0.000000e+00> : vector<128xf32>
    %24 = vector.multi_reduction <add>, %23, %cst_21 [0] : vector<32x128xf32> to vector<128xf32>
    %25 = vector.shape_cast %24 : vector<128xf32> to vector<1x128xf32>
    %cst_22 = arith.constant dense<0.000000e+00> : vector<128xf32>
    %26 = vector.multi_reduction <add>, %10, %cst_22 [0] : vector<24x128xf32> to vector<128xf32>
    %27 = vector.shape_cast %26 : vector<128xf32> to vector<1x128xf32>
    %28 = arith.addf %22, %27 : vector<1x128xf32>
    %29 = arith.mulf %10, %10 : vector<24x128xf32>
    %cst_23 = arith.constant dense<0.000000e+00> : vector<128xf32>
    %30 = vector.multi_reduction <add>, %29, %cst_23 [0] : vector<24x128xf32> to vector<128xf32>
    %31 = vector.shape_cast %30 : vector<128xf32> to vector<1x128xf32>
    %32 = arith.addf %25, %31 : vector<1x128xf32>
    %cst_24 = arith.constant dense<0.000000e+00> : vector<128xf32>
    %33 = vector.multi_reduction <add>, %15, %cst_24 [0] : vector<24x128xf32> to vector<128xf32>
    %34 = vector.shape_cast %33 : vector<128xf32> to vector<1x128xf32>
    %35 = arith.addf %28, %34 : vector<1x128xf32>
    %36 = arith.mulf %15, %15 : vector<24x128xf32>
    %cst_25 = arith.constant dense<0.000000e+00> : vector<128xf32>
    %37 = vector.multi_reduction <add>, %36, %cst_25 [0] : vector<24x128xf32> to vector<128xf32>
    %38 = vector.shape_cast %37 : vector<128xf32> to vector<1x128xf32>
    %39 = arith.addf %32, %38 : vector<1x128xf32>
    %cst_26 = arith.constant dense<0.000000e+00> : vector<128xf32>
    %40 = vector.multi_reduction <add>, %20, %cst_26 [0] : vector<18x128xf32> to vector<128xf32>
    %41 = vector.shape_cast %40 : vector<128xf32> to vector<1x128xf32>
    %42 = arith.addf %35, %41 : vector<1x128xf32>
    %43 = arith.mulf %20, %20 : vector<18x128xf32>
    %cst_27 = arith.constant dense<0.000000e+00> : vector<128xf32>
    %44 = vector.multi_reduction <add>, %43, %cst_27 [0] : vector<18x128xf32> to vector<128xf32>
    %45 = vector.shape_cast %44 : vector<128xf32> to vector<1x128xf32>
    %46 = arith.addf %39, %45 : vector<1x128xf32>
    %cst_28 = arith.constant 0.0102040814 : f32
    %47 = vector.broadcast %cst_28 : f32 to vector<1x128xf32>
    %48 = arith.mulf %42, %47 : vector<1x128xf32>
    %cst_29 = arith.constant 0.0102040814 : f32
    %49 = vector.broadcast %cst_29 : f32 to vector<1x128xf32>
    %50 = arith.mulf %46, %49 : vector<1x128xf32>
    %51 = arith.mulf %48, %48 : vector<1x128xf32>
    %52 = arith.subf %50, %51 : vector<1x128xf32>
    %c0_30 = arith.constant 0 : index
    %c0_31 = arith.constant 0 : index
    %53 = vector.load %arg9[%c0_30, %c0_31] : memref<1x128xf32, #tpu.memory_space<vmem>>, vector<1x128xf32>
    %cst_32 = arith.constant 9.99999974E-6 : f32
    %54 = vector.broadcast %cst_32 : f32 to vector<1x128xf32>
    %55 = arith.addf %52, %54 : vector<1x128xf32>
    %56 = math.rsqrt %55 : vector<1x128xf32>
    %57 = arith.mulf %53, %56 : vector<1x128xf32>
    %c0_33 = arith.constant 0 : index
    %c0_34 = arith.constant 0 : index
    %58 = vector.load %arg10[%c0_33, %c0_34] : memref<1x128xf32, #tpu.memory_space<vmem>>, vector<1x128xf32>
    %59 = arith.mulf %48, %57 : vector<1x128xf32>
    %60 = arith.subf %58, %59 : vector<1x128xf32>
    %61 = vector.broadcast %57 : vector<1x128xf32> to vector<32x128xf32>
    %62 = arith.mulf %5, %61 : vector<32x128xf32>
    %63 = vector.broadcast %60 : vector<1x128xf32> to vector<32x128xf32>
    %64 = arith.addf %62, %63 : vector<32x128xf32>
    %cst_35 = arith.constant 0.000000e+00 : f32
    %65 = vector.broadcast %cst_35 : f32 to vector<32x128xf32>
    %66 = arith.maximumf %64, %65 : vector<32x128xf32>
    %67 = arith.truncf %66 : vector<32x128xf32> to vector<32x128xbf16>
    %c0_36 = arith.constant 0 : index
    %c0_37 = arith.constant 0 : index
    %68 = vector.load %arg11[%c0_36, %c0_37] : memref<32x128xbf16, #tpu.memory_space<vmem>>, vector<32x128xbf16>
    tpu.vector_store %arg11[%c0_36, %c0_37], %67 {strides = array<i32>} : memref<32x128xbf16, #tpu.memory_space<vmem>>, vector<32x128xbf16>,
    %69 = vector.broadcast %57 : vector<1x128xf32> to vector<24x128xf32>
    %70 = arith.mulf %10, %69 : vector<24x128xf32>
    %71 = vector.broadcast %60 : vector<1x128xf32> to vector<24x128xf32>
    %72 = arith.addf %70, %71 : vector<24x128xf32>
    %cst_38 = arith.constant 0.000000e+00 : f32
    %73 = vector.broadcast %cst_38 : f32 to vector<24x128xf32>
    %74 = arith.maximumf %72, %73 : vector<24x128xf32>
    %75 = arith.truncf %74 : vector<24x128xf32> to vector<24x128xbf16>
    %c0_39 = arith.constant 0 : index
    %c0_40 = arith.constant 0 : index
    %76 = vector.load %arg12[%c0_39, %c0_40] : memref<24x128xbf16, #tpu.memory_space<vmem>>, vector<24x128xbf16>
    tpu.vector_store %arg12[%c0_39, %c0_40], %75 {strides = array<i32>} : memref<24x128xbf16, #tpu.memory_space<vmem>>, vector<24x128xbf16>,
    %77 = vector.broadcast %57 : vector<1x128xf32> to vector<24x128xf32>
    %78 = arith.mulf %15, %77 : vector<24x128xf32>
    %79 = vector.broadcast %60 : vector<1x128xf32> to vector<24x128xf32>
    %80 = arith.addf %78, %79 : vector<24x128xf32>
    %cst_41 = arith.constant 0.000000e+00 : f32
    %81 = vector.broadcast %cst_41 : f32 to vector<24x128xf32>
    %82 = arith.maximumf %80, %81 : vector<24x128xf32>
    %83 = arith.truncf %82 : vector<24x128xf32> to vector<24x128xbf16>
    %c0_42 = arith.constant 0 : index
    %c0_43 = arith.constant 0 : index
    %84 = vector.load %arg13[%c0_42, %c0_43] : memref<24x128xbf16, #tpu.memory_space<vmem>>, vector<24x128xbf16>
    tpu.vector_store %arg13[%c0_42, %c0_43], %83 {strides = array<i32>} : memref<24x128xbf16, #tpu.memory_space<vmem>>, vector<24x128xbf16>,
    %85 = vector.broadcast %57 : vector<1x128xf32> to vector<18x128xf32>
    %86 = arith.mulf %20, %85 : vector<18x128xf32>
    %87 = vector.broadcast %60 : vector<1x128xf32> to vector<18x128xf32>
    %88 = arith.addf %86, %87 : vector<18x128xf32>
    %cst_44 = arith.constant 0.000000e+00 : f32
    %89 = vector.broadcast %cst_44 : f32 to vector<18x128xf32>
    %90 = arith.maximumf %88, %89 : vector<18x128xf32>
    %91 = arith.truncf %90 : vector<18x128xf32> to vector<18x128xbf16>
    %c0_45 = arith.constant 0 : index
    %c0_46 = arith.constant 0 : index
    %92 = vector.load %arg14[%c0_45, %c0_46] : memref<18x128xbf16, #tpu.memory_space<vmem>>, vector<18x128xbf16>
    tpu.vector_store %arg14[%c0_45, %c0_46], %91 {strides = array<i32>} : memref<18x128xbf16, #tpu.memory_space<vmem>>, vector<18x128xbf16>,
    return
  }
}

module attributes {stable_mosaic.version = 11 : i64} {
  func.func @conv_block_kernel(%arg0: memref<98x512xbf16, #tpu.memory_space<vmem>>, %arg1: memref<98x512xbf16, #tpu.memory_space<vmem>>, %arg2: memref<98x512xbf16, #tpu.memory_space<vmem>>, %arg3: memref<98x512xbf16, #tpu.memory_space<vmem>>, %arg4: memref<512x64xbf16, #tpu.memory_space<vmem>>, %arg5: memref<512x64xbf16, #tpu.memory_space<vmem>>, %arg6: memref<512x64xbf16, #tpu.memory_space<vmem>>, %arg7: memref<512x64xbf16, #tpu.memory_space<vmem>>, %arg8: memref<1x64xf32, #tpu.memory_space<vmem>>, %arg9: memref<1x64xf32, #tpu.memory_space<vmem>>, %arg10: memref<1x64xf32, #tpu.memory_space<vmem>>, %arg11: memref<98x64xbf16, #tpu.memory_space<vmem>>, %arg12: memref<98x64xbf16, #tpu.memory_space<vmem>>, %arg13: memref<98x64xbf16, #tpu.memory_space<vmem>>, %arg14: memref<98x64xbf16, #tpu.memory_space<vmem>>) attributes {dimension_semantics = [], scalar_prefetch = 0 : i64, scratch_operands = 0 : i64, tpu.core_type = #tpu.core_type<tc>} {
    %c0 = arith.constant 0 : index
    %c0_0 = arith.constant 0 : index
    %0 = vector.load %arg8[%c0, %c0_0] : memref<1x64xf32, #tpu.memory_space<vmem>>, vector<1x64xf32>
    %c0_1 = arith.constant 0 : index
    %c0_2 = arith.constant 0 : index
    %1 = vector.load %arg0[%c0_1, %c0_2] : memref<98x512xbf16, #tpu.memory_space<vmem>>, vector<98x512xbf16>
    %c0_3 = arith.constant 0 : index
    %c0_4 = arith.constant 0 : index
    %2 = vector.load %arg4[%c0_3, %c0_4] : memref<512x64xbf16, #tpu.memory_space<vmem>>, vector<512x64xbf16>
    %cst = arith.constant dense<0.000000e+00> : vector<98x64xf32>
    %3 = tpu.matmul %1, %2, %cst {dimension_numbers = #tpu.dot_dimension_numbers<[1], [0], [0], [1], [0, 0, 1, 1], [], []>} : vector<98x512xbf16>, vector<512x64xbf16>, vector<98x64xf32> -> vector<98x64xf32>
    %4 = vector.broadcast %0 : vector<1x64xf32> to vector<98x64xf32>
    %5 = arith.addf %3, %4 : vector<98x64xf32>
    %c0_5 = arith.constant 0 : index
    %c0_6 = arith.constant 0 : index
    %6 = vector.load %arg1[%c0_5, %c0_6] : memref<98x512xbf16, #tpu.memory_space<vmem>>, vector<98x512xbf16>
    %c0_7 = arith.constant 0 : index
    %c0_8 = arith.constant 0 : index
    %7 = vector.load %arg5[%c0_7, %c0_8] : memref<512x64xbf16, #tpu.memory_space<vmem>>, vector<512x64xbf16>
    %cst_9 = arith.constant dense<0.000000e+00> : vector<98x64xf32>
    %8 = tpu.matmul %6, %7, %cst_9 {dimension_numbers = #tpu.dot_dimension_numbers<[1], [0], [0], [1], [0, 0, 1, 1], [], []>} : vector<98x512xbf16>, vector<512x64xbf16>, vector<98x64xf32> -> vector<98x64xf32>
    %9 = vector.broadcast %0 : vector<1x64xf32> to vector<98x64xf32>
    %10 = arith.addf %8, %9 : vector<98x64xf32>
    %c0_10 = arith.constant 0 : index
    %c0_11 = arith.constant 0 : index
    %11 = vector.load %arg2[%c0_10, %c0_11] : memref<98x512xbf16, #tpu.memory_space<vmem>>, vector<98x512xbf16>
    %c0_12 = arith.constant 0 : index
    %c0_13 = arith.constant 0 : index
    %12 = vector.load %arg6[%c0_12, %c0_13] : memref<512x64xbf16, #tpu.memory_space<vmem>>, vector<512x64xbf16>
    %cst_14 = arith.constant dense<0.000000e+00> : vector<98x64xf32>
    %13 = tpu.matmul %11, %12, %cst_14 {dimension_numbers = #tpu.dot_dimension_numbers<[1], [0], [0], [1], [0, 0, 1, 1], [], []>} : vector<98x512xbf16>, vector<512x64xbf16>, vector<98x64xf32> -> vector<98x64xf32>
    %14 = vector.broadcast %0 : vector<1x64xf32> to vector<98x64xf32>
    %15 = arith.addf %13, %14 : vector<98x64xf32>
    %c0_15 = arith.constant 0 : index
    %c0_16 = arith.constant 0 : index
    %16 = vector.load %arg3[%c0_15, %c0_16] : memref<98x512xbf16, #tpu.memory_space<vmem>>, vector<98x512xbf16>
    %c0_17 = arith.constant 0 : index
    %c0_18 = arith.constant 0 : index
    %17 = vector.load %arg7[%c0_17, %c0_18] : memref<512x64xbf16, #tpu.memory_space<vmem>>, vector<512x64xbf16>
    %cst_19 = arith.constant dense<0.000000e+00> : vector<98x64xf32>
    %18 = tpu.matmul %16, %17, %cst_19 {dimension_numbers = #tpu.dot_dimension_numbers<[1], [0], [0], [1], [0, 0, 1, 1], [], []>} : vector<98x512xbf16>, vector<512x64xbf16>, vector<98x64xf32> -> vector<98x64xf32>
    %19 = vector.broadcast %0 : vector<1x64xf32> to vector<98x64xf32>
    %20 = arith.addf %18, %19 : vector<98x64xf32>
    %cst_20 = arith.constant dense<0.000000e+00> : vector<64xf32>
    %21 = vector.multi_reduction <add>, %5, %cst_20 [0] : vector<98x64xf32> to vector<64xf32>
    %22 = vector.shape_cast %21 : vector<64xf32> to vector<1x64xf32>
    %23 = arith.mulf %5, %5 : vector<98x64xf32>
    %cst_21 = arith.constant dense<0.000000e+00> : vector<64xf32>
    %24 = vector.multi_reduction <add>, %23, %cst_21 [0] : vector<98x64xf32> to vector<64xf32>
    %25 = vector.shape_cast %24 : vector<64xf32> to vector<1x64xf32>
    %cst_22 = arith.constant dense<0.000000e+00> : vector<64xf32>
    %26 = vector.multi_reduction <add>, %10, %cst_22 [0] : vector<98x64xf32> to vector<64xf32>
    %27 = vector.shape_cast %26 : vector<64xf32> to vector<1x64xf32>
    %28 = arith.addf %22, %27 : vector<1x64xf32>
    %29 = arith.mulf %10, %10 : vector<98x64xf32>
    %cst_23 = arith.constant dense<0.000000e+00> : vector<64xf32>
    %30 = vector.multi_reduction <add>, %29, %cst_23 [0] : vector<98x64xf32> to vector<64xf32>
    %31 = vector.shape_cast %30 : vector<64xf32> to vector<1x64xf32>
    %32 = arith.addf %25, %31 : vector<1x64xf32>
    %cst_24 = arith.constant dense<0.000000e+00> : vector<64xf32>
    %33 = vector.multi_reduction <add>, %15, %cst_24 [0] : vector<98x64xf32> to vector<64xf32>
    %34 = vector.shape_cast %33 : vector<64xf32> to vector<1x64xf32>
    %35 = arith.addf %28, %34 : vector<1x64xf32>
    %36 = arith.mulf %15, %15 : vector<98x64xf32>
    %cst_25 = arith.constant dense<0.000000e+00> : vector<64xf32>
    %37 = vector.multi_reduction <add>, %36, %cst_25 [0] : vector<98x64xf32> to vector<64xf32>
    %38 = vector.shape_cast %37 : vector<64xf32> to vector<1x64xf32>
    %39 = arith.addf %32, %38 : vector<1x64xf32>
    %cst_26 = arith.constant dense<0.000000e+00> : vector<64xf32>
    %40 = vector.multi_reduction <add>, %20, %cst_26 [0] : vector<98x64xf32> to vector<64xf32>
    %41 = vector.shape_cast %40 : vector<64xf32> to vector<1x64xf32>
    %42 = arith.addf %35, %41 : vector<1x64xf32>
    %43 = arith.mulf %20, %20 : vector<98x64xf32>
    %cst_27 = arith.constant dense<0.000000e+00> : vector<64xf32>
    %44 = vector.multi_reduction <add>, %43, %cst_27 [0] : vector<98x64xf32> to vector<64xf32>
    %45 = vector.shape_cast %44 : vector<64xf32> to vector<1x64xf32>
    %46 = arith.addf %39, %45 : vector<1x64xf32>
    %cst_28 = arith.constant 0.00255102036 : f32
    %47 = vector.broadcast %cst_28 : f32 to vector<1x64xf32>
    %48 = arith.mulf %42, %47 : vector<1x64xf32>
    %cst_29 = arith.constant 0.00255102036 : f32
    %49 = vector.broadcast %cst_29 : f32 to vector<1x64xf32>
    %50 = arith.mulf %46, %49 : vector<1x64xf32>
    %51 = arith.mulf %48, %48 : vector<1x64xf32>
    %52 = arith.subf %50, %51 : vector<1x64xf32>
    %c0_30 = arith.constant 0 : index
    %c0_31 = arith.constant 0 : index
    %53 = vector.load %arg9[%c0_30, %c0_31] : memref<1x64xf32, #tpu.memory_space<vmem>>, vector<1x64xf32>
    %cst_32 = arith.constant 9.99999974E-6 : f32
    %54 = vector.broadcast %cst_32 : f32 to vector<1x64xf32>
    %55 = arith.addf %52, %54 : vector<1x64xf32>
    %56 = math.rsqrt %55 : vector<1x64xf32>
    %57 = arith.mulf %53, %56 : vector<1x64xf32>
    %c0_33 = arith.constant 0 : index
    %c0_34 = arith.constant 0 : index
    %58 = vector.load %arg10[%c0_33, %c0_34] : memref<1x64xf32, #tpu.memory_space<vmem>>, vector<1x64xf32>
    %59 = arith.mulf %48, %57 : vector<1x64xf32>
    %60 = arith.subf %58, %59 : vector<1x64xf32>
    %61 = vector.broadcast %57 : vector<1x64xf32> to vector<98x64xf32>
    %62 = arith.mulf %5, %61 : vector<98x64xf32>
    %63 = vector.broadcast %60 : vector<1x64xf32> to vector<98x64xf32>
    %64 = arith.addf %62, %63 : vector<98x64xf32>
    %cst_35 = arith.constant 0.000000e+00 : f32
    %65 = vector.broadcast %cst_35 : f32 to vector<98x64xf32>
    %66 = arith.maximumf %64, %65 : vector<98x64xf32>
    %67 = arith.truncf %66 : vector<98x64xf32> to vector<98x64xbf16>
    %c0_36 = arith.constant 0 : index
    %c0_37 = arith.constant 0 : index
    %68 = vector.load %arg11[%c0_36, %c0_37] : memref<98x64xbf16, #tpu.memory_space<vmem>>, vector<98x64xbf16>
    tpu.vector_store %arg11[%c0_36, %c0_37], %67 {strides = array<i32>} : memref<98x64xbf16, #tpu.memory_space<vmem>>, vector<98x64xbf16>,
    %69 = vector.broadcast %57 : vector<1x64xf32> to vector<98x64xf32>
    %70 = arith.mulf %10, %69 : vector<98x64xf32>
    %71 = vector.broadcast %60 : vector<1x64xf32> to vector<98x64xf32>
    %72 = arith.addf %70, %71 : vector<98x64xf32>
    %cst_38 = arith.constant 0.000000e+00 : f32
    %73 = vector.broadcast %cst_38 : f32 to vector<98x64xf32>
    %74 = arith.maximumf %72, %73 : vector<98x64xf32>
    %75 = arith.truncf %74 : vector<98x64xf32> to vector<98x64xbf16>
    %c0_39 = arith.constant 0 : index
    %c0_40 = arith.constant 0 : index
    %76 = vector.load %arg12[%c0_39, %c0_40] : memref<98x64xbf16, #tpu.memory_space<vmem>>, vector<98x64xbf16>
    tpu.vector_store %arg12[%c0_39, %c0_40], %75 {strides = array<i32>} : memref<98x64xbf16, #tpu.memory_space<vmem>>, vector<98x64xbf16>,
    %77 = vector.broadcast %57 : vector<1x64xf32> to vector<98x64xf32>
    %78 = arith.mulf %15, %77 : vector<98x64xf32>
    %79 = vector.broadcast %60 : vector<1x64xf32> to vector<98x64xf32>
    %80 = arith.addf %78, %79 : vector<98x64xf32>
    %cst_41 = arith.constant 0.000000e+00 : f32
    %81 = vector.broadcast %cst_41 : f32 to vector<98x64xf32>
    %82 = arith.maximumf %80, %81 : vector<98x64xf32>
    %83 = arith.truncf %82 : vector<98x64xf32> to vector<98x64xbf16>
    %c0_42 = arith.constant 0 : index
    %c0_43 = arith.constant 0 : index
    %84 = vector.load %arg13[%c0_42, %c0_43] : memref<98x64xbf16, #tpu.memory_space<vmem>>, vector<98x64xbf16>
    tpu.vector_store %arg13[%c0_42, %c0_43], %83 {strides = array<i32>} : memref<98x64xbf16, #tpu.memory_space<vmem>>, vector<98x64xbf16>,
    %85 = vector.broadcast %57 : vector<1x64xf32> to vector<98x64xf32>
    %86 = arith.mulf %20, %85 : vector<98x64xf32>
    %87 = vector.broadcast %60 : vector<1x64xf32> to vector<98x64xf32>
    %88 = arith.addf %86, %87 : vector<98x64xf32>
    %cst_44 = arith.constant 0.000000e+00 : f32
    %89 = vector.broadcast %cst_44 : f32 to vector<98x64xf32>
    %90 = arith.maximumf %88, %89 : vector<98x64xf32>
    %91 = arith.truncf %90 : vector<98x64xf32> to vector<98x64xbf16>
    %c0_45 = arith.constant 0 : index
    %c0_46 = arith.constant 0 : index
    %92 = vector.load %arg14[%c0_45, %c0_46] : memref<98x64xbf16, #tpu.memory_space<vmem>>, vector<98x64xbf16>
    tpu.vector_store %arg14[%c0_45, %c0_46], %91 {strides = array<i32>} : memref<98x64xbf16, #tpu.memory_space<vmem>>, vector<98x64xbf16>,
    return
  }
}

module attributes {stable_mosaic.version = 11 : i64} {
  func.func @conv_block_kernel(%arg0: memref<392x256xbf16, #tpu.memory_space<vmem>>, %arg1: memref<392x256xbf16, #tpu.memory_space<vmem>>, %arg2: memref<392x256xbf16, #tpu.memory_space<vmem>>, %arg3: memref<392x256xbf16, #tpu.memory_space<vmem>>, %arg4: memref<256x32xbf16, #tpu.memory_space<vmem>>, %arg5: memref<256x32xbf16, #tpu.memory_space<vmem>>, %arg6: memref<256x32xbf16, #tpu.memory_space<vmem>>, %arg7: memref<256x32xbf16, #tpu.memory_space<vmem>>, %arg8: memref<1x32xf32, #tpu.memory_space<vmem>>, %arg9: memref<1x32xf32, #tpu.memory_space<vmem>>, %arg10: memref<1x32xf32, #tpu.memory_space<vmem>>, %arg11: memref<1x32xf32, #tpu.memory_space<vmem>>, %arg12: memref<1x1xf32, #tpu.memory_space<vmem>>, %arg13: memref<392x1xf32, #tpu.memory_space<vmem>>, %arg14: memref<392x1xf32, #tpu.memory_space<vmem>>, %arg15: memref<392x1xf32, #tpu.memory_space<vmem>>, %arg16: memref<392x1xf32, #tpu.memory_space<vmem>>) attributes {dimension_semantics = [], scalar_prefetch = 0 : i64, scratch_operands = 0 : i64, tpu.core_type = #tpu.core_type<tc>} {
    %c0 = arith.constant 0 : index
    %c0_0 = arith.constant 0 : index
    %0 = vector.load %arg8[%c0, %c0_0] : memref<1x32xf32, #tpu.memory_space<vmem>>, vector<1x32xf32>
    %c0_1 = arith.constant 0 : index
    %c0_2 = arith.constant 0 : index
    %1 = vector.load %arg0[%c0_1, %c0_2] : memref<392x256xbf16, #tpu.memory_space<vmem>>, vector<392x256xbf16>
    %c0_3 = arith.constant 0 : index
    %c0_4 = arith.constant 0 : index
    %2 = vector.load %arg4[%c0_3, %c0_4] : memref<256x32xbf16, #tpu.memory_space<vmem>>, vector<256x32xbf16>
    %cst = arith.constant dense<0.000000e+00> : vector<392x32xf32>
    %3 = tpu.matmul %1, %2, %cst {dimension_numbers = #tpu.dot_dimension_numbers<[1], [0], [0], [1], [0, 0, 1, 1], [], []>} : vector<392x256xbf16>, vector<256x32xbf16>, vector<392x32xf32> -> vector<392x32xf32>
    %4 = vector.broadcast %0 : vector<1x32xf32> to vector<392x32xf32>
    %5 = arith.addf %3, %4 : vector<392x32xf32>
    %c0_5 = arith.constant 0 : index
    %c0_6 = arith.constant 0 : index
    %6 = vector.load %arg1[%c0_5, %c0_6] : memref<392x256xbf16, #tpu.memory_space<vmem>>, vector<392x256xbf16>
    %c0_7 = arith.constant 0 : index
    %c0_8 = arith.constant 0 : index
    %7 = vector.load %arg5[%c0_7, %c0_8] : memref<256x32xbf16, #tpu.memory_space<vmem>>, vector<256x32xbf16>
    %cst_9 = arith.constant dense<0.000000e+00> : vector<392x32xf32>
    %8 = tpu.matmul %6, %7, %cst_9 {dimension_numbers = #tpu.dot_dimension_numbers<[1], [0], [0], [1], [0, 0, 1, 1], [], []>} : vector<392x256xbf16>, vector<256x32xbf16>, vector<392x32xf32> -> vector<392x32xf32>
    %9 = vector.broadcast %0 : vector<1x32xf32> to vector<392x32xf32>
    %10 = arith.addf %8, %9 : vector<392x32xf32>
    %c0_10 = arith.constant 0 : index
    %c0_11 = arith.constant 0 : index
    %11 = vector.load %arg2[%c0_10, %c0_11] : memref<392x256xbf16, #tpu.memory_space<vmem>>, vector<392x256xbf16>
    %c0_12 = arith.constant 0 : index
    %c0_13 = arith.constant 0 : index
    %12 = vector.load %arg6[%c0_12, %c0_13] : memref<256x32xbf16, #tpu.memory_space<vmem>>, vector<256x32xbf16>
    %cst_14 = arith.constant dense<0.000000e+00> : vector<392x32xf32>
    %13 = tpu.matmul %11, %12, %cst_14 {dimension_numbers = #tpu.dot_dimension_numbers<[1], [0], [0], [1], [0, 0, 1, 1], [], []>} : vector<392x256xbf16>, vector<256x32xbf16>, vector<392x32xf32> -> vector<392x32xf32>
    %14 = vector.broadcast %0 : vector<1x32xf32> to vector<392x32xf32>
    %15 = arith.addf %13, %14 : vector<392x32xf32>
    %c0_15 = arith.constant 0 : index
    %c0_16 = arith.constant 0 : index
    %16 = vector.load %arg3[%c0_15, %c0_16] : memref<392x256xbf16, #tpu.memory_space<vmem>>, vector<392x256xbf16>
    %c0_17 = arith.constant 0 : index
    %c0_18 = arith.constant 0 : index
    %17 = vector.load %arg7[%c0_17, %c0_18] : memref<256x32xbf16, #tpu.memory_space<vmem>>, vector<256x32xbf16>
    %cst_19 = arith.constant dense<0.000000e+00> : vector<392x32xf32>
    %18 = tpu.matmul %16, %17, %cst_19 {dimension_numbers = #tpu.dot_dimension_numbers<[1], [0], [0], [1], [0, 0, 1, 1], [], []>} : vector<392x256xbf16>, vector<256x32xbf16>, vector<392x32xf32> -> vector<392x32xf32>
    %19 = vector.broadcast %0 : vector<1x32xf32> to vector<392x32xf32>
    %20 = arith.addf %18, %19 : vector<392x32xf32>
    %cst_20 = arith.constant dense<0.000000e+00> : vector<32xf32>
    %21 = vector.multi_reduction <add>, %5, %cst_20 [0] : vector<392x32xf32> to vector<32xf32>
    %22 = vector.shape_cast %21 : vector<32xf32> to vector<1x32xf32>
    %23 = arith.mulf %5, %5 : vector<392x32xf32>
    %cst_21 = arith.constant dense<0.000000e+00> : vector<32xf32>
    %24 = vector.multi_reduction <add>, %23, %cst_21 [0] : vector<392x32xf32> to vector<32xf32>
    %25 = vector.shape_cast %24 : vector<32xf32> to vector<1x32xf32>
    %cst_22 = arith.constant dense<0.000000e+00> : vector<32xf32>
    %26 = vector.multi_reduction <add>, %10, %cst_22 [0] : vector<392x32xf32> to vector<32xf32>
    %27 = vector.shape_cast %26 : vector<32xf32> to vector<1x32xf32>
    %28 = arith.addf %22, %27 : vector<1x32xf32>
    %29 = arith.mulf %10, %10 : vector<392x32xf32>
    %cst_23 = arith.constant dense<0.000000e+00> : vector<32xf32>
    %30 = vector.multi_reduction <add>, %29, %cst_23 [0] : vector<392x32xf32> to vector<32xf32>
    %31 = vector.shape_cast %30 : vector<32xf32> to vector<1x32xf32>
    %32 = arith.addf %25, %31 : vector<1x32xf32>
    %cst_24 = arith.constant dense<0.000000e+00> : vector<32xf32>
    %33 = vector.multi_reduction <add>, %15, %cst_24 [0] : vector<392x32xf32> to vector<32xf32>
    %34 = vector.shape_cast %33 : vector<32xf32> to vector<1x32xf32>
    %35 = arith.addf %28, %34 : vector<1x32xf32>
    %36 = arith.mulf %15, %15 : vector<392x32xf32>
    %cst_25 = arith.constant dense<0.000000e+00> : vector<32xf32>
    %37 = vector.multi_reduction <add>, %36, %cst_25 [0] : vector<392x32xf32> to vector<32xf32>
    %38 = vector.shape_cast %37 : vector<32xf32> to vector<1x32xf32>
    %39 = arith.addf %32, %38 : vector<1x32xf32>
    %cst_26 = arith.constant dense<0.000000e+00> : vector<32xf32>
    %40 = vector.multi_reduction <add>, %20, %cst_26 [0] : vector<392x32xf32> to vector<32xf32>
    %41 = vector.shape_cast %40 : vector<32xf32> to vector<1x32xf32>
    %42 = arith.addf %35, %41 : vector<1x32xf32>
    %43 = arith.mulf %20, %20 : vector<392x32xf32>
    %cst_27 = arith.constant dense<0.000000e+00> : vector<32xf32>
    %44 = vector.multi_reduction <add>, %43, %cst_27 [0] : vector<392x32xf32> to vector<32xf32>
    %45 = vector.shape_cast %44 : vector<32xf32> to vector<1x32xf32>
    %46 = arith.addf %39, %45 : vector<1x32xf32>
    %cst_28 = arith.constant 6.37755089E-4 : f32
    %47 = vector.broadcast %cst_28 : f32 to vector<1x32xf32>
    %48 = arith.mulf %42, %47 : vector<1x32xf32>
    %cst_29 = arith.constant 6.37755089E-4 : f32
    %49 = vector.broadcast %cst_29 : f32 to vector<1x32xf32>
    %50 = arith.mulf %46, %49 : vector<1x32xf32>
    %51 = arith.mulf %48, %48 : vector<1x32xf32>
    %52 = arith.subf %50, %51 : vector<1x32xf32>
    %c0_30 = arith.constant 0 : index
    %c0_31 = arith.constant 0 : index
    %53 = vector.load %arg9[%c0_30, %c0_31] : memref<1x32xf32, #tpu.memory_space<vmem>>, vector<1x32xf32>
    %cst_32 = arith.constant 9.99999974E-6 : f32
    %54 = vector.broadcast %cst_32 : f32 to vector<1x32xf32>
    %55 = arith.addf %52, %54 : vector<1x32xf32>
    %56 = math.rsqrt %55 : vector<1x32xf32>
    %57 = arith.mulf %53, %56 : vector<1x32xf32>
    %c0_33 = arith.constant 0 : index
    %c0_34 = arith.constant 0 : index
    %58 = vector.load %arg10[%c0_33, %c0_34] : memref<1x32xf32, #tpu.memory_space<vmem>>, vector<1x32xf32>
    %59 = arith.mulf %48, %57 : vector<1x32xf32>
    %60 = arith.subf %58, %59 : vector<1x32xf32>
    %61 = vector.broadcast %57 : vector<1x32xf32> to vector<392x32xf32>
    %62 = arith.mulf %5, %61 : vector<392x32xf32>
    %63 = vector.broadcast %60 : vector<1x32xf32> to vector<392x32xf32>
    %64 = arith.addf %62, %63 : vector<392x32xf32>
    %cst_35 = arith.constant 0.000000e+00 : f32
    %65 = vector.broadcast %cst_35 : f32 to vector<392x32xf32>
    %66 = arith.maximumf %64, %65 : vector<392x32xf32>
    %c0_36 = arith.constant 0 : index
    %c0_37 = arith.constant 0 : index
    %67 = vector.load %arg11[%c0_36, %c0_37] : memref<1x32xf32, #tpu.memory_space<vmem>>, vector<1x32xf32>
    %68 = vector.broadcast %67 : vector<1x32xf32> to vector<392x32xf32>
    %69 = arith.mulf %66, %68 : vector<392x32xf32>
    %cst_38 = arith.constant dense<0.000000e+00> : vector<392xf32>
    %70 = vector.multi_reduction <add>, %69, %cst_38 [1] : vector<392x32xf32> to vector<392xf32>
    %71 = vector.shape_cast %70 : vector<392xf32> to vector<392x1xf32>
    %c0_39 = arith.constant 0 : index
    %c0_40 = arith.constant 0 : index
    %72 = vector.load %arg12[%c0_39, %c0_40] : memref<1x1xf32, #tpu.memory_space<vmem>>, vector<1x1xf32>
    %73 = vector.broadcast %72 : vector<1x1xf32> to vector<392x1xf32>
    %74 = arith.addf %71, %73 : vector<392x1xf32>
    %75 = math.tanh %74 : vector<392x1xf32>
    %c0_41 = arith.constant 0 : index
    %c0_42 = arith.constant 0 : index
    %76 = vector.load %arg13[%c0_41, %c0_42] : memref<392x1xf32, #tpu.memory_space<vmem>>, vector<392x1xf32>
    tpu.vector_store %arg13[%c0_41, %c0_42], %75 {strides = array<i32>} : memref<392x1xf32, #tpu.memory_space<vmem>>, vector<392x1xf32>,
    %77 = vector.broadcast %57 : vector<1x32xf32> to vector<392x32xf32>
    %78 = arith.mulf %10, %77 : vector<392x32xf32>
    %79 = vector.broadcast %60 : vector<1x32xf32> to vector<392x32xf32>
    %80 = arith.addf %78, %79 : vector<392x32xf32>
    %cst_43 = arith.constant 0.000000e+00 : f32
    %81 = vector.broadcast %cst_43 : f32 to vector<392x32xf32>
    %82 = arith.maximumf %80, %81 : vector<392x32xf32>
    %c0_44 = arith.constant 0 : index
    %c0_45 = arith.constant 0 : index
    %83 = vector.load %arg11[%c0_44, %c0_45] : memref<1x32xf32, #tpu.memory_space<vmem>>, vector<1x32xf32>
    %84 = vector.broadcast %83 : vector<1x32xf32> to vector<392x32xf32>
    %85 = arith.mulf %82, %84 : vector<392x32xf32>
    %cst_46 = arith.constant dense<0.000000e+00> : vector<392xf32>
    %86 = vector.multi_reduction <add>, %85, %cst_46 [1] : vector<392x32xf32> to vector<392xf32>
    %87 = vector.shape_cast %86 : vector<392xf32> to vector<392x1xf32>
    %c0_47 = arith.constant 0 : index
    %c0_48 = arith.constant 0 : index
    %88 = vector.load %arg12[%c0_47, %c0_48] : memref<1x1xf32, #tpu.memory_space<vmem>>, vector<1x1xf32>
    %89 = vector.broadcast %88 : vector<1x1xf32> to vector<392x1xf32>
    %90 = arith.addf %87, %89 : vector<392x1xf32>
    %91 = math.tanh %90 : vector<392x1xf32>
    %c0_49 = arith.constant 0 : index
    %c0_50 = arith.constant 0 : index
    %92 = vector.load %arg14[%c0_49, %c0_50] : memref<392x1xf32, #tpu.memory_space<vmem>>, vector<392x1xf32>
    tpu.vector_store %arg14[%c0_49, %c0_50], %91 {strides = array<i32>} : memref<392x1xf32, #tpu.memory_space<vmem>>, vector<392x1xf32>,
    %93 = vector.broadcast %57 : vector<1x32xf32> to vector<392x32xf32>
    %94 = arith.mulf %15, %93 : vector<392x32xf32>
    %95 = vector.broadcast %60 : vector<1x32xf32> to vector<392x32xf32>
    %96 = arith.addf %94, %95 : vector<392x32xf32>
    %cst_51 = arith.constant 0.000000e+00 : f32
    %97 = vector.broadcast %cst_51 : f32 to vector<392x32xf32>
    %98 = arith.maximumf %96, %97 : vector<392x32xf32>
    %c0_52 = arith.constant 0 : index
    %c0_53 = arith.constant 0 : index
    %99 = vector.load %arg11[%c0_52, %c0_53] : memref<1x32xf32, #tpu.memory_space<vmem>>, vector<1x32xf32>
    %100 = vector.broadcast %99 : vector<1x32xf32> to vector<392x32xf32>
    %101 = arith.mulf %98, %100 : vector<392x32xf32>
    %cst_54 = arith.constant dense<0.000000e+00> : vector<392xf32>
    %102 = vector.multi_reduction <add>, %101, %cst_54 [1] : vector<392x32xf32> to vector<392xf32>
    %103 = vector.shape_cast %102 : vector<392xf32> to vector<392x1xf32>
    %c0_55 = arith.constant 0 : index
    %c0_56 = arith.constant 0 : index
    %104 = vector.load %arg12[%c0_55, %c0_56] : memref<1x1xf32, #tpu.memory_space<vmem>>, vector<1x1xf32>
    %105 = vector.broadcast %104 : vector<1x1xf32> to vector<392x1xf32>
    %106 = arith.addf %103, %105 : vector<392x1xf32>
    %107 = math.tanh %106 : vector<392x1xf32>
    %c0_57 = arith.constant 0 : index
    %c0_58 = arith.constant 0 : index
    %108 = vector.load %arg15[%c0_57, %c0_58] : memref<392x1xf32, #tpu.memory_space<vmem>>, vector<392x1xf32>
    tpu.vector_store %arg15[%c0_57, %c0_58], %107 {strides = array<i32>} : memref<392x1xf32, #tpu.memory_space<vmem>>, vector<392x1xf32>,
    %109 = vector.broadcast %57 : vector<1x32xf32> to vector<392x32xf32>
    %110 = arith.mulf %20, %109 : vector<392x32xf32>
    %111 = vector.broadcast %60 : vector<1x32xf32> to vector<392x32xf32>
    %112 = arith.addf %110, %111 : vector<392x32xf32>
    %cst_59 = arith.constant 0.000000e+00 : f32
    %113 = vector.broadcast %cst_59 : f32 to vector<392x32xf32>
    %114 = arith.maximumf %112, %113 : vector<392x32xf32>
    %c0_60 = arith.constant 0 : index
    %c0_61 = arith.constant 0 : index
    %115 = vector.load %arg11[%c0_60, %c0_61] : memref<1x32xf32, #tpu.memory_space<vmem>>, vector<1x32xf32>
    %116 = vector.broadcast %115 : vector<1x32xf32> to vector<392x32xf32>
    %117 = arith.mulf %114, %116 : vector<392x32xf32>
    %cst_62 = arith.constant dense<0.000000e+00> : vector<392xf32>
    %118 = vector.multi_reduction <add>, %117, %cst_62 [1] : vector<392x32xf32> to vector<392xf32>
    %119 = vector.shape_cast %118 : vector<392xf32> to vector<392x1xf32>
    %c0_63 = arith.constant 0 : index
    %c0_64 = arith.constant 0 : index
    %120 = vector.load %arg12[%c0_63, %c0_64] : memref<1x1xf32, #tpu.memory_space<vmem>>, vector<1x1xf32>
    %121 = vector.broadcast %120 : vector<1x1xf32> to vector<392x1xf32>
    %122 = arith.addf %119, %121 : vector<392x1xf32>
    %123 = math.tanh %122 : vector<392x1xf32>
    %c0_65 = arith.constant 0 : index
    %c0_66 = arith.constant 0 : index
    %124 = vector.load %arg16[%c0_65, %c0_66] : memref<392x1xf32, #tpu.memory_space<vmem>>, vector<392x1xf32>
    tpu.vector_store %arg16[%c0_65, %c0_66], %123 {strides = array<i32>} : memref<392x1xf32, #tpu.memory_space<vmem>>, vector<392x1xf32>,
    return
  }
}

</mosaic_0001>

<bundles_post_ra>
// kernel: simple_generator_forward.4
= control target key start
LH: loop header
LB: loop body
LE: loop exit
PB: predicated region body
PF: predicated region fallthrough
CT: control target
= control target key end

     0   :  { %8 = vsyncpa [#allocation3], 0  ;;  %s1993_s12 = smov [#allocation2]   ;;  %s2316_s0 = inlined_call_operand.vmem [shape: f32[2,10], index: 0, kind: input, shape index: {}]   ;;  %s2317_s1 = inlined_call_operand.hbm [shape: f32[10,4096], index: 1, kind: input, shape index: {}]   ;;  %s2318_s2 = inlined_call_operand.vmem [shape: f32[1,4096], index: 2, kind: input, shape index: {}]   ;;  %s2319_s3 = inlined_call_operand.vmem [shape: bf16[2,4096], index: 3, kind: output, shape index: {}]  }
   0x1   :  { %s16_s13 = sshll.u32 %s1993_s12, 4  ;;  %s1969_s16 = scalar_lea.hbm %s2317_s1, 8192  ;;  %s17_s13 = int_to_ptr.vmem [resolvable:$true] %s16_s13 }
   0x2   :  { %p1970_p0 = scmp.ne.s32.totalorder %s2317_s1, %s1969_s16  ;;  %p1973_p1 = scmp.lt.u32.totalorder %s1969_s16, %s2317_s1 }
   0x4   :  { %p1975_p2 = pnand %p1973_p1, %p1970_p0 }
   0x6   :  { %1978 = shalt.err (!%p1975_p2)
}
   0x7   :  { %s1979_s21 = scalar_lea.vmem %s17_s13, 8192  ;;  %p1984_p4 = scmp.lt.s32.totalorder %s17_s13, %s17_s13 }
   0x8   :  { %p1980_p3 = scmp.ne.s32.totalorder %s17_s13, %s1979_s21  ;;  %p1985_p5 = scmp.lt.s32.totalorder %s1979_s21, %s1979_s21 }
   0xa   :  { %p1986_p6 = por %p1985_p5, %p1984_p4 }
   0xc   :  { %p1987_p7 = pnand %p1986_p6, %p1980_p3 }
   0xe   :  { %1990 = shalt.err (!%p1987_p7)
}
   0xf   :  { %s1994_s22 = smov 4096   ;;  %s1995_s23 = smov 256  }
  0x10   :  { %22 = dma.hbm_to_vmem [thread:$0]  %s2317_s1, 8192, %s17_s13, [#allocation3], %s1994_s22, %s1994_s22, %s1995_s23  }
  0x11   :  { %1991 = dma.done.wait [#allocation3], 8192  }
  0x12   :  { %1992 = vsyncadd [#allocation3], 4294959104  ;;  %v1996_v0 = vmov 0.0   ;;  %vm265_vm0 = vcmask 1041408   ;;  %vm1997_vm1 = vmmov 1   ;;  %v30_v2 = vld [vmem:[#allocation2 + $0x8] sm:$0xff] }
  0x13   :  { %426 = vmatprep.mubr.f32.mxu0 %v1996_v0  ;;  %497 = vmatprep.mubr.f32.mxu1 %v1996_v0  ;;  %vm2033_vm2 = vmpackc.low %vm265_vm0, %vm1997_vm1  ;;  %v62_v3 = vld [vmem:[#allocation2 + $0x108] sm:$0x3]  ;;  %v32_v4 = vld [vmem:[#allocation2 + $0x18] sm:$0xff]  ;;  %vm261_vm3 = vcmask 80896  }
  0x14   :  { %v1867_v5 = vpack.c.bf16 %v62_v3, %v30_v2  ;;  %v64_v6 = vld [vmem:[#allocation2 + $0x118] sm:$0x3]  ;;  %v29_v7 = vld [vmem:[#allocation2] sm:$0xff]  ;;  %v31_v11 = vld [vmem:[#allocation2 + $0x10] sm:$0xff] }
  0x15   :  { %v61_v8 = vld [vmem:[#allocation2 + $0x100] sm:$0x3]  ;;  %v1873_v9 = vpack.c.bf16 %v64_v6, %v32_v4  ;;  %v63_v12 = vld [vmem:[#allocation2 + $0x110] sm:$0x3]  ;;  %v34_v15 = vld [vmem:[#allocation2 + $0x28] sm:$0xff] }
  0x16   :  { %v1870_v10 = vpack.c.bf16 %v61_v8, %v29_v7  ;;  %v2040_v13 = vld [vmem:[%s2316_s0] sm:$0x3]  ;;  %1869 = vmatprep.subr.msk.bf16.mxu0 %vm2033_vm2, %v1867_v5  ;;  %v1876_v14 = vpack.c.bf16 %v63_v12, %v31_v11  ;;  %v66_v16 = vld [vmem:[#allocation2 + $0x128] sm:$0x3]  ;;  %v36_v17 = vld [vmem:[#allocation2 + $0x38] sm:$0xff] }
  0x17   :  { %1875 = vmatprep.subr.msk.bf16.mxu1 %vm2033_vm2, %v1873_v9  ;;  %v1879_v18 = vpack.c.bf16 %v66_v16, %v34_v15  ;;  %v68_v19 = vld [vmem:[#allocation2 + $0x138] sm:$0x3]  ;;  %v33_v20 = vld [vmem:[#allocation2 + $0x20] sm:$0xff]  ;;  %v35_v24 = vld [vmem:[#allocation2 + $0x30] sm:$0xff] }
  0x18   :  { %1872 = vmatpush1.bf16.msk.msra.mxu0 %vm2033_vm2, %v1870_v10  ;;  %v65_v21 = vld [vmem:[#allocation2 + $0x120] sm:$0x3]  ;;  %1878 = vmatpush1.bf16.msk.msra.mxu1 %vm2033_vm2, %v1876_v14  ;;  %v1885_v22 = vpack.c.bf16 %v68_v19, %v36_v17  ;;  %v67_v25 = vld [vmem:[#allocation2 + $0x130] sm:$0x3]  ;;  %v38_v26 = vld [vmem:[#allocation2 + $0x48] sm:$0xff] }
  0x19   :  { %v1882_v23 = vpack.c.bf16 %v65_v21, %v33_v20  ;;  %1881 = vmatprep.subr.msk.bf16.mxu0 %vm2033_vm2, %v1879_v18  ;;  %v1888_v27 = vpack.c.bf16 %v67_v25, %v35_v24  ;;  %v70_v28 = vld [vmem:[#allocation2 + $0x148] sm:$0x3]  ;;  %v40_v29 = vld [vmem:[#allocation2 + $0x58] sm:$0xff]  ;;  %v37_v33 = vld [vmem:[#allocation2 + $0x40] sm:$0xff] }
  0x1a   :  { %v72_v30 = vld [vmem:[#allocation2 + $0x158] sm:$0x3]  ;;  %1887 = vmatprep.subr.msk.bf16.mxu1 %vm2033_vm2, %v1885_v22  ;;  %v1891_v31 = vpack.c.bf16 %v70_v28, %v38_v26  ;;  %v69_v34 = vld [vmem:[#allocation2 + $0x140] sm:$0x3]  ;;  %v39_v35 = vld [vmem:[#allocation2 + $0x50] sm:$0xff] }
  0x1b   :  { %1805 = vmatmul.mubr.msk.f32.vlgmr.msra.gmra.mrb[0].mxu0 %vm261_vm3, %v2040_v13  ;;  %v1897_v32 = vpack.c.bf16 %v72_v30, %v40_v29  ;;  %1808 = vmatmul.mubr.msk.f32.vlgmr.msra.gmra.mrb[0].mxu1 %vm261_vm3, %v2040_v13  ;;  %v1894_v36 = vpack.c.bf16 %v69_v34, %v37_v33  ;;  %v71_v37 = vld [vmem:[#allocation2 + $0x150] sm:$0x3]  ;;  %v42_v38 = vld [vmem:[#allocation2 + $0x68] sm:$0xff]  ;;  %v44_v41 = vld [vmem:[#allocation2 + $0x78] sm:$0xff] }
  0x1c   :  { %1884 = vmatpush1.bf16.msk.msra.mxu0 %vm2033_vm2, %v1882_v23  ;;  %v74_v39 = vld [vmem:[#allocation2 + $0x168] sm:$0x3]  ;;  %1890 = vmatpush1.bf16.msk.msra.mxu1 %vm2033_vm2, %v1888_v27  ;;  %v1900_v40 = vpack.c.bf16 %v71_v37, %v39_v35  ;;  %v76_v42 = vld [vmem:[#allocation2 + $0x178] sm:$0x3]  ;;  %v41_v43 = vld [vmem:[#allocation2 + $0x60] sm:$0xff] }
  0x1d   :  { %568 = vmatprep.mubr.f32.mxu0 %v1996_v0  ;;  %639 = vmatprep.mubr.f32.mxu1 %v1996_v0  ;;  %v1903_v44 = vpack.c.bf16 %v74_v39, %v42_v38  ;;  %v73_v45 = vld [vmem:[#allocation2 + $0x160] sm:$0x3]  ;;  %v43_v46 = vld [vmem:[#allocation2 + $0x70] sm:$0xff]  ;;  %v1909_v48 = vpack.c.bf16 %v76_v42, %v44_v41  ;;  %v46_v49 = vld [vmem:[#allocation2 + $0x88] sm:$0xff]  ;;  %v101_v38 = vlaneseq }
  0x1e   :  { %1893 = vmatprep.subr.msk.bf16.mxu0 %vm2033_vm2, %v1891_v31  ;;  %v75_v47 = vld [vmem:[#allocation2 + $0x170] sm:$0x3]  ;;  %1899 = vmatprep.subr.msk.bf16.mxu1 %vm2033_vm2, %v1897_v32  ;;  %v78_v50 = vld [vmem:[#allocation2 + $0x188] sm:$0x3]  ;;  %v1906_v51 = vpack.c.bf16 %v73_v45, %v41_v43  ;;  %v48_v52 = vld [vmem:[#allocation2 + $0x98] sm:$0xff] }
  0x1f   :  { %1811 = vmatmul.mubr.msk.f32.vlgmr.msra.gmra.mrb[2].mxu0 %vm261_vm3, %v2040_v13  ;;  %1814 = vmatmul.mubr.msk.f32.vlgmr.msra.gmra.mrb[2].mxu1 %vm261_vm3, %v2040_v13  ;;  %v80_v53 = vld [vmem:[#allocation2 + $0x198] sm:$0x3]  ;;  %v1912_v54 = vpack.c.bf16 %v75_v47, %v43_v46  ;;  %v45_v55 = vld [vmem:[#allocation2 + $0x80] sm:$0xff]  ;;  %v1915_v57 = vpack.c.bf16 %v78_v50, %v46_v49  ;;  %v47_v58 = vld [vmem:[#allocation2 + $0x90] sm:$0xff]  ;;  %v102_v39 = vshrl.u32 %v101_v38, 7 }
  0x20   :  { %1896 = vmatpush1.bf16.msk.msra.mxu0 %vm2033_vm2, %v1894_v36  ;;  %1902 = vmatpush1.bf16.msk.msra.mxu1 %vm2033_vm2, %v1900_v40  ;;  %v77_v56 = vld [vmem:[#allocation2 + $0x180] sm:$0x3]  ;;  %v79_v59 = vld [vmem:[#allocation2 + $0x190] sm:$0x3]  ;;  %v1921_v60 = vpack.c.bf16 %v80_v53, %v48_v52  ;;  %v50_v61 = vld [vmem:[#allocation2 + $0xa8] sm:$0xff] }
  0x21   :  { %710 = vmatprep.mubr.f32.mxu0 %v1996_v0  ;;  %781 = vmatprep.mubr.f32.mxu1 %v1996_v0  ;;  %v82_v62 = vld [vmem:[#allocation2 + $0x1a8] sm:$0x3]  ;;  %v1918_v63 = vpack.c.bf16 %v77_v56, %v45_v55  ;;  %v52_v2 = vld [vmem:[#allocation2 + $0xb8] sm:$0xff]  ;;  %v1924_v4 = vpack.c.bf16 %v79_v59, %v47_v58  ;;  %v49_v5 = vld [vmem:[#allocation2 + $0xa0] sm:$0xff]  ;;  %v1998_v40 = vmov 1966171168  }
  0x22   :  { %1905 = vmatprep.subr.msk.bf16.mxu0 %vm2033_vm2, %v1903_v44  ;;  %1911 = vmatprep.subr.msk.bf16.mxu1 %vm2033_vm2, %v1909_v48  ;;  %v84_v3 = vld [vmem:[#allocation2 + $0x1b8] sm:$0x3]  ;;  %v81_v6 = vld [vmem:[#allocation2 + $0x1a0] sm:$0x3]  ;;  %v1927_v7 = vpack.c.bf16 %v82_v62, %v50_v61  ;;  %v51_v8 = vld [vmem:[#allocation2 + $0xb0] sm:$0xff]  ;;  %v1599_v41 = vunpack.c.l.s4 %v1998_v40  ;;  %v2152_v42 = vsub.s32 0, %v102_v39 }
  0x23   :  { %1817 = vmatmul.mubr.msk.f32.vlgmr.msra.gmra.mrb[4].mxu0 %vm261_vm3, %v2040_v13  ;;  %1820 = vmatmul.mubr.msk.f32.vlgmr.msra.gmra.mrb[4].mxu1 %vm261_vm3, %v2040_v13  ;;  %v83_v9 = vld [vmem:[#allocation2 + $0x1b0] sm:$0x3]  ;;  %v1933_v10 = vpack.c.bf16 %v84_v3, %v52_v2  ;;  %v54_v11 = vld [vmem:[#allocation2 + $0xc8] sm:$0xff]  ;;  %v1930_v14 = vpack.c.bf16 %v81_v6, %v49_v5  ;;  %v56_v15 = vld [vmem:[#allocation2 + $0xd8] sm:$0xff]  ;;  %v2157_v43 = vsub.s32 2, %v102_v39  ;;  %v2159_v44 = vsub.s32 1, %v102_v39 }
  0x24   :  { %1908 = vmatpush1.bf16.msk.msra.mxu0 %vm2033_vm2, %v1906_v51  ;;  %1914 = vmatpush1.bf16.msk.msra.mxu1 %vm2033_vm2, %v1912_v54  ;;  %v86_v12 = vld [vmem:[#allocation2 + $0x1c8] sm:$0x3]  ;;  %v88_v16 = vld [vmem:[#allocation2 + $0x1d8] sm:$0x3]  ;;  %v1936_v17 = vpack.c.bf16 %v83_v9, %v51_v8  ;;  %v53_v18 = vld [vmem:[#allocation2 + $0xc0] sm:$0xff]  ;;  %v2163_v45 = vsub.s32 4, %v102_v39 }
  0x25   :  { %852 = vmatprep.mubr.f32.mxu0 %v1996_v0  ;;  %923 = vmatprep.mubr.f32.mxu1 %v1996_v0  ;;  %v85_v19 = vld [vmem:[#allocation2 + $0x1c0] sm:$0x3]  ;;  %v1939_v20 = vpack.c.bf16 %v86_v12, %v54_v11  ;;  %v55_v21 = vld [vmem:[#allocation2 + $0xd0] sm:$0xff]  ;;  %v1945_v23 = vpack.c.bf16 %v88_v16, %v56_v15  ;;  %v58_v24 = vld [vmem:[#allocation2 + $0xe8] sm:$0xff]  ;;  %v2165_v46 = vsub.s32 6, %v102_v39  ;;  %v2167_v47 = vsub.s32 5, %v102_v39 }
  0x26   :  { %1917 = vmatprep.subr.msk.bf16.mxu0 %vm2033_vm2, %v1915_v57  ;;  %1923 = vmatprep.subr.msk.bf16.mxu1 %vm2033_vm2, %v1921_v60  ;;  %v87_v22 = vld [vmem:[#allocation2 + $0x1d0] sm:$0x3]  ;;  %v90_v25 = vld [vmem:[#allocation2 + $0x1e8] sm:$0x3]  ;;  %v1942_v26 = vpack.c.bf16 %v85_v19, %v53_v18  ;;  %v60_v27 = vld [vmem:[#allocation2 + $0xf8] sm:$0xff]  ;;  %v2169_v48 = vsub.s32 7, %v102_v39 }
  0x27   :  { %1823 = vmatmul.mubr.msk.f32.vlgmr.msra.gmra.mrb[6].mxu0 %vm261_vm3, %v2040_v13  ;;  %1826 = vmatmul.mubr.msk.f32.vlgmr.msra.gmra.mrb[6].mxu1 %vm261_vm3, %v2040_v13  ;;  %v92_v28 = vld [vmem:[#allocation2 + $0x1f8] sm:$0x3]  ;;  %v1948_v29 = vpack.c.bf16 %v87_v22, %v55_v21  ;;  %v57_v30 = vld [vmem:[#allocation2 + $0xe0] sm:$0xff]  ;;  %v1951_v32 = vpack.c.bf16 %v90_v25, %v58_v24  ;;  %v59_v33 = vld [vmem:[#allocation2 + $0xf0] sm:$0xff] }
  0x28   :  { %1920 = vmatpush1.bf16.msk.msra.mxu0 %vm2033_vm2, %v1918_v63  ;;  %1926 = vmatpush1.bf16.msk.msra.mxu1 %vm2033_vm2, %v1924_v4  ;;  %v89_v31 = vld [vmem:[#allocation2 + $0x1e0] sm:$0x3]  ;;  %v91_v34 = vld [vmem:[#allocation2 + $0x1f0] sm:$0x3]  ;;  %v1957_v35 = vpack.c.bf16 %v92_v28, %v60_v27  ;;  %v2175_v50 = vld [vmem:[%s2318_s2 + $0x8] sm:$0xff] }
  0x29   :  { %994 = vmatprep.mubr.f32.mxu0 %v1996_v0  ;;  %1065 = vmatprep.mubr.f32.mxu1 %v1996_v0  ;;  %v1954_v36 = vpack.c.bf16 %v89_v31, %v57_v30  ;;  %v1960_v37 = vpack.c.bf16 %v91_v34, %v59_v33  ;;  %v93_v1 = vld [vmem:[%s2318_s2] sm:$0xff]  ;;  %v136_v60 = vrot.slane %v2175_v50, %v2152_v42  ;;  %v2197_v5 = vld [vmem:[%s2318_s2 + $0x10] sm:$0xff] }
  0x2a   :  { %1929 = vmatprep.subr.msk.bf16.mxu0 %vm2033_vm2, %v1927_v7  ;;  %1935 = vmatprep.subr.msk.bf16.mxu1 %vm2033_vm2, %v1933_v10  ;;  %v104_v49 = vrot.slane %v93_v1, %v2152_v42  ;;  %v112_v51 = vrot.slane %v93_v1, %v2157_v43  ;;  %v108_v52 = vrot.slane %v93_v1, %v2159_v44 }
  0x2b   :  { %1829 = vmatmul.mubr.msk.f32.vlgmr.msra.gmra.mrb[8].mxu0 %vm261_vm3, %v2040_v13  ;;  %1832 = vmatmul.mubr.msk.f32.vlgmr.msra.gmra.mrb[8].mxu1 %vm261_vm3, %v2040_v13  ;;  %v120_v54 = vrot.slane %v93_v1, %v2163_v45  ;;  %v128_v55 = vrot.slane %v93_v1, %v2165_v46  ;;  %v124_v58 = vrot.slane %v93_v1, %v2167_v47 }
  0x2c   :  { %1932 = vmatpush1.bf16.msk.msra.mxu0 %vm2033_vm2, %v1930_v14  ;;  %1938 = vmatpush1.bf16.msk.msra.mxu1 %vm2033_vm2, %v1936_v17  ;;  %v132_v59 = vrot.slane %v93_v1, %v2169_v48  ;;  %v144_v2 = vrot.slane %v2175_v50, %v2157_v43  ;;  %v140_v3 = vrot.slane %v2175_v50, %v2159_v44 }
  0x2d   :  { %1136 = vmatprep.mubr.f32.mxu0 %v1996_v0  ;;  %1207 = vmatprep.mubr.f32.mxu1 %v1996_v0  ;;  %v152_v9 = vrot.slane %v2175_v50, %v2163_v45  ;;  %v160_v10 = vrot.slane %v2175_v50, %v2165_v46  ;;  %v156_v14 = vrot.slane %v2175_v50, %v2167_v47 }
  0x2e   :  { %1941 = vmatprep.subr.msk.bf16.mxu0 %vm2033_vm2, %v1939_v20  ;;  %1947 = vmatprep.subr.msk.bf16.mxu1 %vm2033_vm2, %v1945_v23  ;;  %v164_v15 = vrot.slane %v2175_v50, %v2169_v48  ;;  %v168_v19 = vrot.slane %v2197_v5, %v2152_v42  ;;  %v176_v20 = vrot.slane %v2197_v5, %v2157_v43 }
  0x2f   :  { %1835 = vmatmul.mubr.msk.f32.vlgmr.msra.gmra.mrb[10].mxu0 %vm261_vm3, %v2040_v13  ;;  %1838 = vmatmul.mubr.msk.f32.vlgmr.msra.gmra.mrb[10].mxu1 %vm261_vm3, %v2040_v13  ;;  %v172_v25 = vrot.slane %v2197_v5, %v2159_v44  ;;  %v184_v31 = vrot.slane %v2197_v5, %v2163_v45 }
  0x30   :  { %1944 = vmatpush1.bf16.msk.msra.mxu0 %vm2033_vm2, %v1942_v26  ;;  %1950 = vmatpush1.bf16.msk.msra.mxu1 %vm2033_vm2, %v1948_v29 }
  0x31   :  { %1278 = vmatprep.mubr.f32.mxu0 %v1996_v0  ;;  %1349 = vmatprep.mubr.f32.mxu1 %v1996_v0 }
  0x32   :  { %1953 = vmatprep.subr.msk.bf16.mxu0 %vm2033_vm2, %v1951_v32  ;;  %1959 = vmatprep.subr.msk.bf16.mxu1 %vm2033_vm2, %v1957_v35  ;;  %v192_v35 = vrot.slane %v2197_v5, %v2165_v46 }
  0x33   :  { %1841 = vmatmul.mubr.msk.f32.vlgmr.msra.gmra.mrb[12].mxu0 %vm261_vm3, %v2040_v13  ;;  %1844 = vmatmul.mubr.msk.f32.vlgmr.msra.gmra.mrb[12].mxu1 %vm261_vm3, %v2040_v13 }
  0x34   :  { %1956 = vmatpush1.bf16.msk.msra.mxu0 %vm2033_vm2, %v1954_v36  ;;  %1962 = vmatpush1.bf16.msk.msra.mxu1 %vm2033_vm2, %v1960_v37  ;;  %v2222_v36 = vld [vmem:[%s2318_s2 + $0x18] sm:$0xff] }
  0x35   :  { %1420 = vmatprep.mubr.f32.mxu0 %v1996_v0  ;;  %1491 = vmatprep.mubr.f32.mxu1 %v1996_v0  ;;  %v2161_v0 = vsub.s32 3, %v102_v39 }
  0x37   :  { %1847 = vmatmul.mubr.msk.f32.vlgmr.msra.gmra.mrb[14].mxu0 %vm261_vm3, %v2040_v13  ;;  %1850 = vmatmul.mubr.msk.f32.vlgmr.msra.gmra.mrb[14].mxu1 %vm261_vm3, %v2040_v13  ;;  %v1600_v13 = vunpack.c.0.s8 %v1599_v41  ;;  %v116_v53 = vrot.slane %v93_v1, %v2161_v0  ;;  %v148_v4 = vrot.slane %v2175_v50, %v2161_v0  ;;  %v180_v26 = vrot.slane %v2197_v5, %v2161_v0 }
  0x38   :  { %v188_v41 = vrot.slane %v2197_v5, %v2167_v47 }
  0x39   :  { %v2182_v57 = vsub.s32 %v1600_v13, %v102_v39 }
  0xee   :  { %v428_v56 = vpop.f32.mrb[0].mxu0  ;;  %v499_v62 = vpop.f32.mrb[0].mxu1 }
  0xef   :  { %v429_v61 = vadd.f32 %v428_v56, %v104_v49  ;;  %v430_v63 = vpop.f32.mrb[1].mxu0  ;;  %v500_v6 = vadd.f32 %v499_v62, %v112_v51  ;;  %v501_v8 = vpop.f32.mrb[1].mxu1 }
  0xf0   :  { %v431_v7 = vadd.f32 %v430_v63, %v108_v52  ;;  %v502_v12 = vadd.f32 %v501_v8, %v116_v53  ;;  %v196_v52 = vrot.slane %v2197_v5, %v2169_v48 }
  0xf1   :  { %v1498_v11 = vmax.f32 %v429_v61, 0.0  ;;  %v1500_v16 = vmax.f32 %v500_v6, 0.0 }
  0xf2   :  { %v1499_v17 = vmax.f32 %v431_v7, 0.0  ;;  %v570_v18 = vpop.f32.mrb[2].mxu0  ;;  %v1501_v21 = vmax.f32 %v502_v12, 0.0  ;;  %v641_v23 = vpop.f32.mrb[2].mxu1 }
  0xf3   :  { %v571_v22 = vadd.f32 %v570_v18, %v120_v54  ;;  %v572_v24 = vpop.f32.mrb[3].mxu0  ;;  %v642_v28 = vadd.f32 %v641_v23, %v128_v55  ;;  %v643_v30 = vpop.f32.mrb[3].mxu1  ;;  %v204_v18 = vrot.slane %v2222_v36, %v2159_v44 }
  0xf4   :  { %v1851_v27 = vpack.c.bf16 %v1499_v17, %v1498_v11  ;;  %v573_v29 = vadd.f32 %v572_v24, %v124_v58  ;;  %v1852_v32 = vpack.c.bf16 %v1501_v21, %v1500_v16  ;;  %v644_v34 = vadd.f32 %v643_v30, %v132_v59 }
  0xf5   :  { %v1502_v33 = vmax.f32 %v571_v22, 0.0  ;;  %v1504_v38 = vmax.f32 %v642_v28, 0.0  ;;  %v200_v58 = vrot.slane %v2222_v36, %v2152_v42  ;;  %v208_v11 = vrot.slane %v2222_v36, %v2157_v43 }
  0xf6   :  { %v1604_v37 = vrot.slane %v1851_v27, %v2182_v57  ;;  %v1503_v39 = vmax.f32 %v573_v29, 0.0  ;;  %v712_v40 = vpop.f32.mrb[4].mxu0  ;;  %v1611_v1 = vrot.slane %v1852_v32, %v2182_v57  ;;  %v1505_v13 = vmax.f32 %v644_v34, 0.0  ;;  %v783_v50 = vpop.f32.mrb[4].mxu1 }
  0xf7   :  { %v713_v49 = vadd.f32 %v712_v40, %v136_v60  ;;  %v714_v51 = vpop.f32.mrb[5].mxu0  ;;  %v784_v54 = vadd.f32 %v783_v50, %v144_v2  ;;  %v785_v56 = vpop.f32.mrb[5].mxu1  ;;  %v212_v24 = vrot.slane %v2222_v36, %v2161_v0 }
  0xf8   :  { %v1853_v53 = vpack.c.bf16 %v1503_v39, %v1502_v33  ;;  %v715_v55 = vadd.f32 %v714_v51, %v140_v3  ;;  %v1626_v59 = vcombine.low %v1604_v37, %v1611_v1  ;;  %v1854_v61 = vpack.c.bf16 %v1505_v13, %v1504_v38 }
  0xf9   :  { %v1506_v62 = vmax.f32 %v713_v49, 0.0  ;;  %v786_v63 = vadd.f32 %v785_v56, %v148_v4  ;;  %v1508_v7 = vmax.f32 %v784_v54, 0.0  ;;  %v216_v51 = vrot.slane %v2222_v36, %v2163_v45 }
  0xfa   :  { %v1618_v6 = vrot.slane %v1853_v53, %v2182_v57  ;;  %v1507_v60 = vmax.f32 %v715_v55, 0.0  ;;  %v854_v8 = vpop.f32.mrb[6].mxu0  ;;  %v1625_v12 = vrot.slane %v1854_v61, %v2182_v57  ;;  %v925_v16 = vpop.f32.mrb[6].mxu1  ;;  %v1634_v32 = vrot.slane %v1626_v59, %v2182_v57 }
  0xfb   :  { %v1509_v2 = vmax.f32 %v786_v63, 0.0  ;;  %v855_v3 = vadd.f32 %v854_v8, %v152_v9  ;;  %v856_v17 = vpop.f32.mrb[7].mxu0  ;;  %v926_v22 = vadd.f32 %v925_v16, %v160_v10  ;;  %v927_v23 = vpop.f32.mrb[7].mxu1  ;;  %v220_v8 = vrot.slane %v2222_v36, %v2167_v47 }
  0xfc   :  { %v1855_v21 = vpack.c.bf16 %v1507_v60, %v1506_v62  ;;  %v857_v4 = vadd.f32 %v856_v17, %v156_v14  ;;  %v1627_v27 = vcombine.low %v1618_v6, %v1625_v12  ;;  %v928_v30 = vadd.f32 %v927_v23, %v164_v15 }
  0xfd   :  { %v1856_v28 = vpack.c.bf16 %v1509_v2, %v1508_v7  ;;  %v1510_v29 = vmax.f32 %v855_v3, 0.0  ;;  %v1512_v33 = vmax.f32 %v926_v22, 0.0  ;;  %v224_v60 = vrot.slane %v2222_v36, %v2165_v46 }
  0xfe   :  { %v1653_v9 = vrot.slane %v1855_v21, %v2182_v57  ;;  %v1511_v34 = vmax.f32 %v857_v4, 0.0  ;;  %v996_v37 = vpop.f32.mrb[8].mxu0  ;;  %v1641_v38 = vrot.slane %v1627_v27, %v2182_v57  ;;  %v1513_v14 = vmax.f32 %v928_v30, 0.0  ;;  %v1067_v40 = vpop.f32.mrb[8].mxu1 }
  0xff   :  { %v1660_v10 = vrot.slane %v1856_v28, %v2182_v57  ;;  %v997_v39 = vadd.f32 %v996_v37, %v168_v19  ;;  %v998_v1 = vpop.f32.mrb[9].mxu0  ;;  %v1068_v15 = vadd.f32 %v1067_v40, %v176_v20  ;;  %v1069_v50 = vpop.f32.mrb[9].mxu1  ;;  %v228_v21 = vrot.slane %v2222_v36, %v2169_v48 }
 0x100   :  { %v1857_v13 = vpack.c.bf16 %v1511_v34, %v1510_v29  ;;  %v999_v49 = vadd.f32 %v998_v1, %v172_v25  ;;  %v1642_v53 = vcombine.low %v1634_v32, %v1641_v38  ;;  %v1858_v55 = vpack.c.bf16 %v1513_v14, %v1512_v33 }
 0x101   :  { %v1675_v54 = vcombine.low %v1653_v9, %v1660_v10  ;;  %v1514_v56 = vmax.f32 %v997_v39, 0.0  ;;  %v1516_v59 = vmax.f32 %v1068_v15, 0.0  ;;  %v1070_v20 = vadd.f32 %v1069_v50, %v180_v26 }
 0x102   :  { %v1667_v19 = vrot.slane %v1857_v13, %v2182_v57  ;;  %v1515_v61 = vmax.f32 %v999_v49, 0.0  ;;  %v1138_v62 = vpop.f32.mrb[10].mxu0  ;;  %1794 = vst [vmem:[%s2319_s3] sm:$0xff] %v1642_v53  ;;  %v1674_v25 = vrot.slane %v1858_v55, %v2182_v57  ;;  %v1209_v6 = vpop.f32.mrb[10].mxu1 }
 0x103   :  { %v1139_v63 = vadd.f32 %v1138_v62, %v184_v31  ;;  %v1140_v7 = vpop.f32.mrb[11].mxu0  ;;  %v1517_v12 = vmax.f32 %v1070_v20, 0.0  ;;  %v1210_v2 = vadd.f32 %v1209_v6, %v192_v35  ;;  %v1211_v45 = vpop.f32.mrb[11].mxu1  ;;  %v1683_v27 = vrot.slane %v1675_v54, %v2182_v57 }
 0x104   :  { %v1859_v26 = vpack.c.bf16 %v1515_v61, %v1514_v56  ;;  %v1141_v3 = vadd.f32 %v1140_v7, %v188_v41  ;;  %v1676_v31 = vcombine.low %v1667_v19, %v1674_v25  ;;  %v1212_v17 = vadd.f32 %v1211_v45, %v196_v52 }
 0x105   :  { %v1518_v16 = vmax.f32 %v1139_v63, 0.0  ;;  %v1860_v4 = vpack.c.bf16 %v1517_v12, %v1516_v59  ;;  %v1520_v23 = vmax.f32 %v1210_v2, 0.0 }
 0x106   :  { %v1702_v22 = vrot.slane %v1859_v26, %v2182_v57  ;;  %v1519_v46 = vmax.f32 %v1141_v3, 0.0  ;;  %v1280_v35 = vpop.f32.mrb[12].mxu0  ;;  %v1690_v47 = vrot.slane %v1676_v31, %v2182_v57  ;;  %v1521_v41 = vmax.f32 %v1212_v17, 0.0  ;;  %v1351_v5 = vpop.f32.mrb[12].mxu1 }
 0x107   :  { %v1281_v28 = vadd.f32 %v1280_v35, %v200_v58  ;;  %v1282_v52 = vpop.f32.mrb[13].mxu0  ;;  %v1709_v29 = vrot.slane %v1860_v4, %v2182_v57  ;;  %v1352_v30 = vadd.f32 %v1351_v5, %v208_v11  ;;  %v1353_v9 = vpop.f32.mrb[13].mxu1 }
 0x108   :  { %v1861_v48 = vpack.c.bf16 %v1519_v46, %v1518_v16  ;;  %v1283_v32 = vadd.f32 %v1282_v52, %v204_v18  ;;  %v1691_v33 = vcombine.low %v1683_v27, %v1690_v47  ;;  %v1862_v34 = vpack.c.bf16 %v1521_v41, %v1520_v23 }
 0x109   :  { %v1522_v37 = vmax.f32 %v1281_v28, 0.0  ;;  %v1354_v42 = vadd.f32 %v1353_v9, %v212_v24  ;;  %v1724_v58 = vcombine.low %v1702_v22, %v1709_v29  ;;  %v1524_v10 = vmax.f32 %v1352_v30, 0.0 }
 0x10a   :  { %v1716_v38 = vrot.slane %v1861_v48, %v2182_v57  ;;  %v1523_v14 = vmax.f32 %v1283_v32, 0.0  ;;  %v1422_v39 = vpop.f32.mrb[14].mxu0  ;;  %1795 = vst [vmem:[%s2319_s3 + $0x8] sm:$0xff] %v1691_v33  ;;  %v1723_v43 = vrot.slane %v1862_v34, %v2182_v57  ;;  %v1493_v18 = vpop.f32.mrb[14].mxu1 }
 0x10b   :  { %v1525_v44 = vmax.f32 %v1354_v42, 0.0  ;;  %v1423_v11 = vadd.f32 %v1422_v39, %v216_v51  ;;  %v1424_v40 = vpop.f32.mrb[15].mxu0  ;;  %v1494_v13 = vadd.f32 %v1493_v18, %v224_v60  ;;  %v1495_v36 = vpop.f32.mrb[15].mxu1  ;;  %v1732_v56 = vrot.slane %v1724_v58, %v2182_v57 }
 0x10c   :  { %v1863_v1 = vpack.c.bf16 %v1523_v14, %v1522_v37  ;;  %v1425_v0 = vadd.f32 %v1424_v40, %v220_v8  ;;  %v1725_v24 = vcombine.low %v1716_v38, %v1723_v43  ;;  %v1496_v50 = vadd.f32 %v1495_v36, %v228_v21 }
 0x10d   :  { %v1864_v15 = vpack.c.bf16 %v1525_v44, %v1524_v10  ;;  %v1526_v49 = vmax.f32 %v1423_v11, 0.0  ;;  %v1528_v54 = vmax.f32 %v1494_v13, 0.0 }
 0x10e   :  { %v1751_v53 = vrot.slane %v1863_v1, %v2182_v57  ;;  %v1527_v55 = vmax.f32 %v1425_v0, 0.0  ;;  %v1739_v19 = vrot.slane %v1725_v24, %v2182_v57  ;;  %v1529_v59 = vmax.f32 %v1496_v50, 0.0 }
 0x10f   :  { %v1758_v51 = vrot.slane %v1864_v15, %v2182_v57 }
 0x110   :  { %v1865_v61 = vpack.c.bf16 %v1527_v55, %v1526_v49  ;;  %v1740_v20 = vcombine.low %v1732_v56, %v1739_v19  ;;  %v1866_v25 = vpack.c.bf16 %v1529_v59, %v1528_v54 }
 0x111   :  { %v1773_v62 = vcombine.low %v1751_v53, %v1758_v51 }
 0x112   :  { %v1765_v63 = vrot.slane %v1865_v61, %v2182_v57  ;;  %1796 = vst [vmem:[%s2319_s3 + $0x10] sm:$0xff] %v1740_v20  ;;  %v1772_v6 = vrot.slane %v1866_v25, %v2182_v57 }
 0x113   :  { %v1781_v60 = vrot.slane %v1773_v62, %v2182_v57 }
 0x114   :  { %v1774_v7 = vcombine.low %v1765_v63, %v1772_v6 }
 0x116   :  { %v1788_v8 = vrot.slane %v1774_v7, %v2182_v57 }
 0x118   :  { %v1789_v26 = vcombine.low %v1781_v60, %v1788_v8 }
 0x11a   :  { %1797 = vst [vmem:[%s2319_s3 + $0x18] sm:$0xff] %v1789_v26 }
 0x11b   :  { %1802 = vsyncpa [#allocation3], 1 }

// kernel: simple_generator_forward.5
= control target key start
LH: loop header
LB: loop body
LE: loop exit
PB: predicated region body
PF: predicated region fallthrough
CT: control target
= control target key end

     0   :  { %vm1884_vm0 = vcmask 1041408   ;;  %s3439_s4 = inlined_call_operand.vmem [shape: bf16[256,128], index: 4, kind: input, shape index: {}]   ;;  %s3440_s5 = inlined_call_operand.vmem [shape: bf16[512,128], index: 5, kind: input, shape index: {}]   ;;  %s3441_s0 = inlined_call_operand.vmem [shape: bf16[32,256], index: 0, kind: input, shape index: {}]   ;;  %s3442_s1 = inlined_call_operand.vmem [shape: bf16[24,512], index: 1, kind: input, shape index: {}]   ;;  %s3443_s6 = inlined_call_operand.vmem [shape: bf16[512,128], index: 6, kind: input, shape index: {}]   ;;  %s3444_s2 = inlined_call_operand.vmem [shape: bf16[24,512], index: 2, kind: input, shape index: {}]   ;;  %s3445_s7 = inlined_call_operand.vmem [shape: bf16[1024,128], index: 7, kind: input, shape index: {}]   ;;  %s3446_s3 = inlined_call_operand.vmem [shape: bf16[18,1024], index: 3, kind: input, shape index: {}]   ;;  %s3447_s8 = inlined_call_operand.vmem [shape: f32[1,128], index: 8, kind: input, shape index: {}]   ;;  %s3448_s9 = inlined_call_operand.vmem [shape: f32[1,128], index: 9, kind: input, shape index: {}]   ;;  %s3449_s10 = inlined_call_operand.vmem [shape: f32[1,128], index: 10, kind: input, shape index: {}]   ;;  %s3450_s11 = inlined_call_operand.vmem [shape: bf16[32,128], index: 11, kind: output, shape index: {0}]   ;;  %s3451_s12 = inlined_call_operand.vmem [shape: bf16[24,128], index: 12, kind: output, shape index: {1}]   ;;  %s3452_s13 = inlined_call_operand.vmem [shape: bf16[24,128], index: 13, kind: output, shape index: {2}]   ;;  %s3453_s14 = inlined_call_operand.vmem [shape: bf16[18,128], index: 14, kind: output, shape index: {3}]  }
   0x1   :  { %v2554_v0 = vld [vmem:[%s3439_s4 + $0x40] sm:$0xff]   ;;  %v2558_v4 = vld [vmem:[%s3439_s4 + $0x48] sm:$0xff]   ;;  %v2562_v8 = vld [vmem:[%s3439_s4 + $0x50] sm:$0xff]  }
   0x2   :  { %v2555_v1 = vld [vmem:[%s3440_s5 + $0x40] sm:$0xff]   ;;  %2286 = vmatprep.subr.bf16.mxu0 %v2554_v0  ;;  %v2559_v5 = vld [vmem:[%s3440_s5 + $0x48] sm:$0xff]   ;;  %v2563_v9 = vld [vmem:[%s3440_s5 + $0x50] sm:$0xff]  }
   0x3   :  { %v2556_v2 = vld [vmem:[%s3439_s4] sm:$0xff]   ;;  %2314 = vmatprep.subr.bf16.mxu1 %v2555_v1  ;;  %v2560_v6 = vld [vmem:[%s3439_s4 + $0x8] sm:$0xff]   ;;  %v2564_v10 = vld [vmem:[%s3439_s4 + $0x10] sm:$0xff]  }
   0x4   :  { %v2557_v3 = vld [vmem:[%s3440_s5] sm:$0xff]   ;;  %2287 = vmatpush3.bf16.msra.mxu0 %v2556_v2  ;;  %v2561_v7 = vld [vmem:[%s3440_s5 + $0x8] sm:$0xff]   ;;  %v2565_v11 = vld [vmem:[%s3440_s5 + $0x10] sm:$0xff]  }
   0x5   :  { %2315 = vmatpush3.bf16.msra.mxu1 %v2557_v3  ;;  %2288 = vmatprep.subr.bf16.mxu0 %v2558_v4  ;;  %v2566_v12 = vld [vmem:[%s3439_s4 + $0x58] sm:$0xff]   ;;  %v2570_v16 = vld [vmem:[%s3439_s4 + $0x60] sm:$0xff]   ;;  %v2574_v20 = vld [vmem:[%s3439_s4 + $0x68] sm:$0xff]  }
   0x6   :  { %2316 = vmatprep.subr.bf16.mxu1 %v2559_v5  ;;  %v2567_v13 = vld [vmem:[%s3440_s5 + $0x58] sm:$0xff]   ;;  %v2571_v17 = vld [vmem:[%s3440_s5 + $0x60] sm:$0xff]   ;;  %v2575_v21 = vld [vmem:[%s3440_s5 + $0x68] sm:$0xff]  }
   0x7   :  { %v2568_v14 = vld [vmem:[%s3439_s4 + $0x18] sm:$0xff]   ;;  %v2572_v18 = vld [vmem:[%s3439_s4 + $0x20] sm:$0xff]   ;;  %v2576_v22 = vld [vmem:[%s3439_s4 + $0x28] sm:$0xff]  }
   0x8   :  { %2289 = vmatpush3.bf16.msra.mxu0 %v2560_v6  ;;  %v2569_v15 = vld [vmem:[%s3440_s5 + $0x18] sm:$0xff]   ;;  %v2573_v19 = vld [vmem:[%s3440_s5 + $0x20] sm:$0xff]   ;;  %v2577_v23 = vld [vmem:[%s3440_s5 + $0x28] sm:$0xff]  }
   0x9   :  { %2317 = vmatpush3.bf16.msra.mxu1 %v2561_v7  ;;  %2290 = vmatprep.subr.bf16.mxu0 %v2562_v8  ;;  %v2578_v24 = vld [vmem:[%s3439_s4 + $0x70] sm:$0xff]   ;;  %v2582_v28 = vld [vmem:[%s3439_s4 + $0x78] sm:$0xff]   ;;  %v2586_v32 = vld [vmem:[%s3441_s0] ss:$8 sps:$4 sm:$0xff]  }
   0xa   :  { %2318 = vmatprep.subr.bf16.mxu1 %v2563_v9  ;;  %v2579_v25 = vld [vmem:[%s3440_s5 + $0x70] sm:$0xff]   ;;  %v2583_v29 = vld [vmem:[%s3440_s5 + $0x78] sm:$0xff]   ;;  %v2588_v33 = vld [vmem:[%s3441_s0 + $0x4] ss:$8 sps:$4 sm:$0xff]  }
   0xb   :  { %v2580_v26 = vld [vmem:[%s3439_s4 + $0x30] sm:$0xff]   ;;  %v2584_v30 = vld [vmem:[%s3439_s4 + $0x38] sm:$0xff]   ;;  %234 = vmatprep.mubr.bf16.mxu0 %v2588_v33  ;;  %v2592_v36 = vld [vmem:[%s3440_s5 + $0xc0] sm:$0xff]  }
   0xc   :  { %2291 = vmatpush3.bf16.msra.mxu0 %v2564_v10  ;;  %v2581_v27 = vld [vmem:[%s3440_s5 + $0x30] sm:$0xff]   ;;  %v2585_v31 = vld [vmem:[%s3440_s5 + $0x38] sm:$0xff]   ;;  %v2593_v37 = vld [vmem:[%s3443_s6 + $0x40] sm:$0xff]  }
   0xd   :  { %2319 = vmatpush3.bf16.msra.mxu1 %v2565_v11  ;;  %2292 = vmatprep.subr.bf16.mxu0 %v2566_v12  ;;  %v2589_v34 = vld [vmem:[%s3442_s1] ss:$16 sps:$4 sm:$0xff]   ;;  %v2591_v35 = vld [vmem:[%s3442_s1 + $0x4] ss:$16 sps:$4 sm:$0xff]   ;;  %v2596_v40 = vld [vmem:[%s3440_s5 + $0xc8] sm:$0xff]  }
   0xe   :  { %2320 = vmatprep.subr.bf16.mxu1 %v2567_v13  ;;  %579 = vmatprep.mubr.bf16.mxu1 %v2591_v35  ;;  %v2594_v38 = vld [vmem:[%s3440_s5 + $0x80] sm:$0xff]   ;;  %v2597_v41 = vld [vmem:[%s3443_s6 + $0x48] sm:$0xff]   ;;  %v2600_v44 = vld [vmem:[%s3441_s0 + $0x14] ss:$8 sps:$4 sm:$0xff]  }
   0xf   :  { %v2595_v39 = vld [vmem:[%s3443_s6] sm:$0xff]   ;;  %v2598_v42 = vld [vmem:[%s3440_s5 + $0x88] sm:$0xff]   ;;  %v2602_v45 = vld [vmem:[%s3441_s0 + $0x10] ss:$8 sps:$4 sm:$0xff]  }
  0x10   :  { %2293 = vmatpush3.bf16.msra.mxu0 %v2568_v14  ;;  %v2599_v43 = vld [vmem:[%s3443_s6 + $0x8] sm:$0xff]   ;;  %v2603_v46 = vld [vmem:[%s3440_s5 + $0xd0] sm:$0xff]   ;;  %v2607_v50 = vld [vmem:[%s3440_s5 + $0xd8] sm:$0xff]  }
  0x11   :  { %2321 = vmatpush3.bf16.msra.mxu1 %v2569_v15  ;;  %2294 = vmatprep.subr.bf16.mxu0 %v2570_v16  ;;  %v2604_v47 = vld [vmem:[%s3443_s6 + $0x50] sm:$0xff]   ;;  %v2608_v51 = vld [vmem:[%s3443_s6 + $0x58] sm:$0xff]   ;;  %v2611_v54 = vld [vmem:[%s3440_s5 + $0xe0] sm:$0xff]  }
  0x12   :  { %2322 = vmatprep.subr.bf16.mxu1 %v2571_v17  ;;  %v2605_v48 = vld [vmem:[%s3440_s5 + $0x90] sm:$0xff]   ;;  %v2609_v52 = vld [vmem:[%s3440_s5 + $0x98] sm:$0xff]   ;;  %v2612_v55 = vld [vmem:[%s3443_s6 + $0x60] sm:$0xff]  }
  0x13   :  { %v2606_v49 = vld [vmem:[%s3443_s6 + $0x10] sm:$0xff]   ;;  %v2610_v53 = vld [vmem:[%s3443_s6 + $0x18] sm:$0xff]   ;;  %v2613_v56 = vld [vmem:[%s3440_s5 + $0xa0] sm:$0xff]  }
  0x14   :  { %2295 = vmatpush3.bf16.msra.mxu0 %v2572_v18  ;;  %v2614_v57 = vld [vmem:[%s3443_s6 + $0x20] sm:$0xff]   ;;  %v2615_v58 = vld [vmem:[%s3440_s5 + $0xe8] sm:$0xff]   ;;  %v2620_v0 = vld [vmem:[%s3440_s5 + $0xf0] sm:$0xff]  }
  0x15   :  { %2323 = vmatpush3.bf16.msra.mxu1 %v2573_v19  ;;  %2296 = vmatprep.subr.bf16.mxu0 %v2574_v20  ;;  %v2616_v59 = vld [vmem:[%s3443_s6 + $0x68] sm:$0xff]   ;;  %v255_v62 = vld [vmem:[%s3442_s1 + $0x20] sm:$0xff]  ;;  %v2621_v2 = vld [vmem:[%s3443_s6 + $0x70] sm:$0xff]  }
  0x16   :  { %2324 = vmatprep.subr.bf16.mxu1 %v2575_v21  ;;  %v2617_v60 = vld [vmem:[%s3440_s5 + $0xa8] sm:$0xff]   ;;  %v2079_v63 = vcombine.high %v255_v62, %v255_v62  ;;  %v2078_v1 = vcombine.low %v255_v62, %v255_v62  ;;  %v2623_v3 = vld [vmem:[%s3440_s5 + $0xb0] sm:$0xff]   ;;  %v2625_v5 = vld [vmem:[%s3440_s5 + $0xf8] sm:$0xff]  }
  0x17   :  { %v2618_v61 = vld [vmem:[%s3443_s6 + $0x28] sm:$0xff]   ;;  %v2624_v4 = vld [vmem:[%s3443_s6 + $0x30] sm:$0xff]   ;;  %v2626_v6 = vld [vmem:[%s3443_s6 + $0x78] sm:$0xff]  }
  0x18   :  { %2297 = vmatpush3.bf16.msra.mxu0 %v2576_v22  ;;  %v2627_v7 = vld [vmem:[%s3440_s5 + $0xb8] sm:$0xff]   ;;  %v2632_v11 = vld [vmem:[%s3444_s2] ss:$16 sps:$4 sm:$0xff]   ;;  %v2634_v12 = vld [vmem:[%s3444_s2 + $0x4] ss:$16 sps:$4 sm:$0xff]  }
  0x19   :  { %2325 = vmatpush3.bf16.msra.mxu1 %v2577_v23  ;;  %2298 = vmatprep.subr.bf16.mxu0 %v2578_v24  ;;  %v2628_v8 = vld [vmem:[%s3443_s6 + $0x38] sm:$0xff]   ;;  %v2635_v13 = vld [vmem:[%s3443_s6 + $0xc0] sm:$0xff]   ;;  %v2639_v17 = vld [vmem:[%s3443_s6 + $0xc8] sm:$0xff]  }
  0x1a   :  { %2326 = vmatprep.subr.bf16.mxu1 %v2579_v25  ;;  %v2629_v9 = vld [vmem:[%s3442_s1 + $0x8] ss:$16 sps:$4 sm:$0xff]   ;;  %v2631_v10 = vld [vmem:[%s3442_s1 + $0xc] ss:$16 sps:$4 sm:$0xff]   ;;  %v2636_v14 = vld [vmem:[%s3445_s7 + $0x40] sm:$0xff]  }
  0x1b   :  { %v2637_v15 = vld [vmem:[%s3443_s6 + $0x80] sm:$0xff]   ;;  %v2640_v18 = vld [vmem:[%s3445_s7 + $0x48] sm:$0xff]   ;;  %v2645_v24 = vld [vmem:[%s3443_s6 + $0xd0] sm:$0xff]  }
  0x1c   :  { %2299 = vmatpush3.bf16.msra.mxu0 %v2580_v26  ;;  %v2638_v16 = vld [vmem:[%s3445_s7] sm:$0xff]   ;;  %v2641_v19 = vld [vmem:[%s3443_s6 + $0x88] sm:$0xff]   ;;  %v2646_v25 = vld [vmem:[%s3445_s7 + $0x50] sm:$0xff]  }
  0x1d   :  { %2327 = vmatpush3.bf16.msra.mxu1 %v2581_v27  ;;  %2300 = vmatprep.subr.bf16.mxu0 %v2582_v28  ;;  %v2642_v20 = vld [vmem:[%s3445_s7 + $0x8] sm:$0xff]   ;;  %v2647_v26 = vld [vmem:[%s3443_s6 + $0x90] sm:$0xff]   ;;  %v2649_v28 = vld [vmem:[%s3443_s6 + $0xd8] sm:$0xff]  }
  0x1e   :  { %2328 = vmatprep.subr.bf16.mxu1 %v2583_v29  ;;  %v256_v21 = vld [vmem:[%s3442_s1 + $0x28] sm:$0xff]  ;;  %v2648_v27 = vld [vmem:[%s3445_s7 + $0x10] sm:$0xff]   ;;  %v2650_v29 = vld [vmem:[%s3445_s7 + $0x58] sm:$0xff]  }
  0x1f   :  { %v2081_v22 = vcombine.high %v256_v21, %v256_v21  ;;  %v2080_v23 = vcombine.low %v256_v21, %v256_v21  ;;  %v2654_v33 = vld [vmem:[%s3445_s7 + $0x60] sm:$0xff]   ;;  %v2679_v62 = vld [vmem:[%s3445_s7 + $0x148] sm:$0xff]  }
  0x20   :  { %2301 = vmatpush3.bf16.msra.mxu0 %v2584_v30  ;;  %v2651_v30 = vld [vmem:[%s3443_s6 + $0x98] sm:$0xff]   ;;  %v2656_v35 = vld [vmem:[%s3445_s7 + $0x20] sm:$0xff]  }
  0x21   :  { %2329 = vmatpush3.bf16.msra.mxu1 %v2585_v31  ;;  %2342 = vmatprep.subr.bf16.mxu0 %v2592_v36  ;;  %v2652_v31 = vld [vmem:[%s3445_s7 + $0x18] sm:$0xff]   ;;  %v2657_v36 = vld [vmem:[%s3443_s6 + $0xe8] sm:$0xff]  }
  0x22   :  { %2370 = vmatprep.subr.bf16.mxu1 %v2593_v37  ;;  %v2658_v37 = vld [vmem:[%s3445_s7 + $0x68] sm:$0xff]  }
  0x23   :  { %235 = vmatmul.mubr.bf16.vlgmr.msra.gmra.mrb[0].mxu0 %v2586_v32  ;;  %v2653_v32 = vld [vmem:[%s3443_s6 + $0xe0] sm:$0xff]  }
  0x24   :  { %580 = vmatmul.mubr.bf16.vlgmr.msra.gmra.mrb[0].mxu1 %v2589_v34  ;;  %2343 = vmatpush3.bf16.msra.mxu0 %v2594_v38  ;;  %v2655_v34 = vld [vmem:[%s3443_s6 + $0xa0] sm:$0xff]   ;;  %v2659_v38 = vld [vmem:[%s3443_s6 + $0xa8] sm:$0xff]  }
  0x25   :  { %2371 = vmatpush3.bf16.msra.mxu1 %v2595_v39  ;;  %2344 = vmatprep.subr.bf16.mxu0 %v2596_v40  ;;  %v2660_v39 = vld [vmem:[%s3445_s7 + $0x28] sm:$0xff]   ;;  %v647_v40 = vld [vmem:[%s3444_s2 + $0x20] sm:$0xff] }
  0x26   :  { %2372 = vmatprep.subr.bf16.mxu1 %v2597_v41  ;;  %242 = vmatprep.mubr.bf16.mxu0 %v2600_v44  ;;  %v2119_v41 = vcombine.high %v647_v40, %v647_v40  ;;  %v2663_v44 = vld [vmem:[%s3445_s7 + $0x70] sm:$0xff]  }
  0x27   :  { %587 = vmatprep.mubr.bf16.mxu1 %v2079_v63  ;;  %v2680_v63 = vld [vmem:[%s3445_s7 + $0x88] sm:$0xff]  }
  0x28   :  { %2345 = vmatpush3.bf16.msra.mxu0 %v2598_v42  ;;  %v2662_v42 = vld [vmem:[%s3443_s6 + $0xf0] sm:$0xff]  }
  0x29   :  { %2373 = vmatpush3.bf16.msra.mxu1 %v2599_v43  ;;  %2346 = vmatprep.subr.bf16.mxu0 %v2603_v46  ;;  %v2118_v43 = vcombine.low %v647_v40, %v647_v40  ;;  %v2666_v46 = vld [vmem:[%s3445_s7 + $0x30] sm:$0xff]   ;;  %v2711_v40 = vld [vmem:[%s3445_s7 + $0x180] sm:$0xff]  }
  0x2a   :  { %2374 = vmatprep.subr.bf16.mxu1 %v2604_v47  ;;  %v2667_v47 = vld [vmem:[%s3443_s6 + $0xf8] sm:$0xff]  }
  0x2b   :  { %243 = vmatmul.mubr.bf16.gmra.mrb[4].mxu0 %v2602_v45  ;;  %v2665_v45 = vld [vmem:[%s3443_s6 + $0xb0] sm:$0xff]  }
  0x2c   :  { %2347 = vmatpush3.bf16.msra.mxu0 %v2605_v48  ;;  %588 = vmatmul.mubr.bf16.gmra.mrb[4].mxu1 %v2078_v1  ;;  %v2668_v48 = vld [vmem:[%s3445_s7 + $0x78] sm:$0xff]   ;;  %v648_v1 = vld [vmem:[%s3444_s2 + $0x28] sm:$0xff] }
  0x2d   :  { %2375 = vmatpush3.bf16.msra.mxu1 %v2606_v49  ;;  %2348 = vmatprep.subr.bf16.mxu0 %v2607_v50  ;;  %v2669_v49 = vld [vmem:[%s3443_s6 + $0xb8] sm:$0xff]  }
  0x2e   :  { %2376 = vmatprep.subr.bf16.mxu1 %v2608_v51  ;;  %627 = vmatprep.mubr.bf16.mxu0 %v2631_v10  ;;  %v2670_v50 = vld [vmem:[%s3445_s7 + $0x38] sm:$0xff]  }
  0x2f   :  { %971 = vmatprep.mubr.bf16.mxu1 %v2634_v12  ;;  %v2671_v51 = vld [vmem:[%s3444_s2 + $0x8] ss:$16 sps:$4 sm:$0xff]   ;;  %v2692_v12 = vld [vmem:[%s3445_s7 + $0xe0] sm:$0xff]  }
  0x30   :  { %2349 = vmatpush3.bf16.msra.mxu0 %v2609_v52  ;;  %v2673_v52 = vld [vmem:[%s3444_s2 + $0xc] ss:$16 sps:$4 sm:$0xff]  }
  0x31   :  { %2377 = vmatpush3.bf16.msra.mxu1 %v2610_v53  ;;  %2350 = vmatprep.subr.bf16.mxu0 %v2611_v54  ;;  %v1035_v53 = vld [vmem:[%s3446_s3] sm:$0xff]  ;;  %v2690_v10 = vld [vmem:[%s3445_s7 + $0x98] sm:$0xff]  }
  0x32   :  { %2378 = vmatprep.subr.bf16.mxu1 %v2612_v55  ;;  %v1039_v54 = vld [vmem:[%s3446_s3 + $0x20] sm:$0xff] }
  0x33   :  { %v2154_v55 = vcombine.low %v1035_v53, %v1039_v54 }
  0x34   :  { %2351 = vmatpush3.bf16.msra.mxu0 %v2613_v56  ;;  %v2155_v56 = vcombine.high %v1035_v53, %v1039_v54  ;;  %v2722_v53 = vld [vmem:[%s3445_s7 + $0x1e0] sm:$0xff]  }
  0x35   :  { %2379 = vmatpush3.bf16.msra.mxu1 %v2614_v57  ;;  %2352 = vmatprep.subr.bf16.mxu0 %v2615_v58  ;;  %v2674_v57 = vld [vmem:[%s3445_s7 + $0xc0] sm:$0xff]  }
  0x36   :  { %2380 = vmatprep.subr.bf16.mxu1 %v2616_v59  ;;  %v2675_v58 = vld [vmem:[%s3445_s7 + $0x140] sm:$0xff]  }
  0x37   :  { %v2676_v59 = vld [vmem:[%s3445_s7 + $0x80] sm:$0xff]  }
  0x38   :  { %2353 = vmatpush3.bf16.msra.mxu0 %v2617_v60  ;;  %v2677_v60 = vld [vmem:[%s3445_s7 + $0x100] sm:$0xff]  }
  0x39   :  { %2381 = vmatpush3.bf16.msra.mxu1 %v2618_v61  ;;  %2354 = vmatprep.subr.bf16.mxu0 %v2620_v0  ;;  %v2678_v61 = vld [vmem:[%s3445_s7 + $0xc8] sm:$0xff]   ;;  %v2723_v54 = vld [vmem:[%s3445_s7 + $0x1a0] sm:$0xff]  }
  0x3a   :  { %2382 = vmatprep.subr.bf16.mxu1 %v2621_v2  ;;  %v2681_v0 = vld [vmem:[%s3445_s7 + $0x108] sm:$0xff]   ;;  %v2121_v2 = vcombine.high %v648_v1, %v648_v1 }
  0x3c   :  { %2355 = vmatpush3.bf16.msra.mxu0 %v2623_v3  ;;  %v2120_v3 = vcombine.low %v648_v1, %v648_v1  ;;  %v2729_v1 = vld [vmem:[%s3445_s7 + $0x1b8] sm:$0xff]  }
  0x3d   :  { %2383 = vmatpush3.bf16.msra.mxu1 %v2624_v4  ;;  %2356 = vmatprep.subr.bf16.mxu0 %v2625_v5  ;;  %v2684_v4 = vld [vmem:[%s3445_s7 + $0xd0] sm:$0xff]  }
  0x3e   :  { %2384 = vmatprep.subr.bf16.mxu1 %v2626_v6  ;;  %v2685_v5 = vld [vmem:[%s3445_s7 + $0x150] sm:$0xff]  }
  0x3f   :  { %v2686_v6 = vld [vmem:[%s3445_s7 + $0x90] sm:$0xff]  }
  0x40   :  { %2357 = vmatpush3.bf16.msra.mxu0 %v2627_v7  ;;  %v2687_v7 = vld [vmem:[%s3445_s7 + $0x110] sm:$0xff]  }
  0x41   :  { %2385 = vmatpush3.bf16.msra.mxu1 %v2628_v8  ;;  %2398 = vmatprep.subr.bf16.mxu0 %v2635_v13  ;;  %v2688_v8 = vld [vmem:[%s3445_s7 + $0xd8] sm:$0xff]   ;;  %v2693_v13 = vld [vmem:[%s3445_s7 + $0x160] sm:$0xff]  }
  0x42   :  { %2426 = vmatprep.subr.bf16.mxu1 %v2636_v14  ;;  %v2694_v14 = vld [vmem:[%s3445_s7 + $0xa0] sm:$0xff]  }
  0x43   :  { %628 = vmatmul.mubr.bf16.vlgmr.msra.gmra.mrb[8].mxu0 %v2629_v9  ;;  %v2689_v9 = vld [vmem:[%s3445_s7 + $0x158] sm:$0xff]  }
  0x44   :  { %972 = vmatmul.mubr.bf16.vlgmr.msra.gmra.mrb[8].mxu1 %v2632_v11  ;;  %2399 = vmatpush3.bf16.msra.mxu0 %v2637_v15  ;;  %v2691_v11 = vld [vmem:[%s3445_s7 + $0x118] sm:$0xff]   ;;  %v2695_v15 = vld [vmem:[%s3445_s7 + $0x120] sm:$0xff]  }
  0x45   :  { %2427 = vmatpush3.bf16.msra.mxu1 %v2638_v16  ;;  %2400 = vmatprep.subr.bf16.mxu0 %v2639_v17  ;;  %v2696_v16 = vld [vmem:[%s3445_s7 + $0xe8] sm:$0xff]  }
  0x46   :  { %2428 = vmatprep.subr.bf16.mxu1 %v2640_v18  ;;  %635 = vmatprep.mubr.bf16.mxu0 %v2081_v22  ;;  %v2697_v17 = vld [vmem:[%s3445_s7 + $0x168] sm:$0xff]   ;;  %v2701_v22 = vld [vmem:[%s3445_s7 + $0xf0] sm:$0xff]  }
  0x47   :  { %979 = vmatprep.mubr.bf16.mxu1 %v2119_v41  ;;  %v2698_v18 = vld [vmem:[%s3445_s7 + $0xa8] sm:$0xff]  }
  0x48   :  { %2401 = vmatpush3.bf16.msra.mxu0 %v2641_v19  ;;  %v2699_v19 = vld [vmem:[%s3445_s7 + $0x128] sm:$0xff]  }
  0x49   :  { %2429 = vmatpush3.bf16.msra.mxu1 %v2642_v20  ;;  %2402 = vmatprep.subr.bf16.mxu0 %v2645_v24  ;;  %v1043_v20 = vld [vmem:[%s3446_s3 + $0x40] sm:$0x11]  ;;  %v2702_v24 = vld [vmem:[%s3445_s7 + $0x170] sm:$0xff]   ;;  %v2712_v41 = vld [vmem:[%s3445_s7 + $0x1c8] sm:$0xff]  }
  0x4a   :  { %2430 = vmatprep.subr.bf16.mxu1 %v2646_v25  ;;  %v2163_v21 = vcombine.high %v1043_v20, %v1043_v20  ;;  %v2704_v25 = vld [vmem:[%s3445_s7 + $0xb0] sm:$0xff]  }
  0x4b   :  { %636 = vmatmul.mubr.bf16.gmra.mrb[12].mxu0 %v2080_v23  ;;  %v2162_v23 = vcombine.low %v1043_v20, %v1043_v20 }
  0x4c   :  { %2403 = vmatpush3.bf16.msra.mxu0 %v2647_v26  ;;  %980 = vmatmul.mubr.bf16.gmra.mrb[12].mxu1 %v2118_v43  ;;  %v2705_v26 = vld [vmem:[%s3445_s7 + $0x130] sm:$0xff]   ;;  %v1044_v43 = vld [vmem:[%s3446_s3 + $0x48] sm:$0x11] }
  0x4d   :  { %2431 = vmatpush3.bf16.msra.mxu1 %v2648_v27  ;;  %2404 = vmatprep.subr.bf16.mxu0 %v2649_v28  ;;  %v2706_v27 = vld [vmem:[%s3445_s7 + $0xf8] sm:$0xff]  }
  0x4e   :  { %2432 = vmatprep.subr.bf16.mxu1 %v2650_v29  ;;  %1019 = vmatprep.mubr.bf16.mxu0 %v2673_v52  ;;  %v2707_v28 = vld [vmem:[%s3445_s7 + $0x178] sm:$0xff]  }
  0x4f   :  { %1659 = vmatprep.mubr.bf16.mxu1 %v2155_v56  ;;  %v2708_v29 = vld [vmem:[%s3445_s7 + $0xb8] sm:$0xff]  }
  0x50   :  { %2405 = vmatpush3.bf16.msra.mxu0 %v2651_v30  ;;  %v2709_v30 = vld [vmem:[%s3445_s7 + $0x138] sm:$0xff]  }
  0x51   :  { %2433 = vmatpush3.bf16.msra.mxu1 %v2652_v31  ;;  %2406 = vmatprep.subr.bf16.mxu0 %v2653_v32  ;;  %v1036_v31 = vld [vmem:[%s3446_s3 + $0x8] sm:$0xff]  ;;  %v2721_v52 = vld [vmem:[%s3445_s7 + $0x198] sm:$0xff]  }
  0x52   :  { %2434 = vmatprep.subr.bf16.mxu1 %v2654_v33  ;;  %v1040_v32 = vld [vmem:[%s3446_s3 + $0x28] sm:$0xff]  ;;  %v1042_v56 = vld [vmem:[%s3446_s3 + $0x38] sm:$0xff] }
  0x53   :  { %v2156_v33 = vcombine.low %v1036_v31, %v1040_v32 }
  0x54   :  { %2407 = vmatpush3.bf16.msra.mxu0 %v2655_v34  ;;  %v2157_v34 = vcombine.high %v1036_v31, %v1040_v32 }
  0x55   :  { %2435 = vmatpush3.bf16.msra.mxu1 %v2656_v35  ;;  %2408 = vmatprep.subr.bf16.mxu0 %v2657_v36  ;;  %v1037_v35 = vld [vmem:[%s3446_s3 + $0x10] sm:$0xff] }
  0x56   :  { %2436 = vmatprep.subr.bf16.mxu1 %v2658_v37  ;;  %v1041_v36 = vld [vmem:[%s3446_s3 + $0x30] sm:$0xff] }
  0x57   :  { %v2158_v37 = vcombine.low %v1037_v35, %v1041_v36 }
  0x58   :  { %2409 = vmatpush3.bf16.msra.mxu0 %v2659_v38  ;;  %v2159_v38 = vcombine.high %v1037_v35, %v1041_v36 }
  0x59   :  { %2437 = vmatpush3.bf16.msra.mxu1 %v2660_v39  ;;  %2410 = vmatprep.subr.bf16.mxu0 %v2662_v42  ;;  %v2710_v39 = vld [vmem:[%s3445_s7 + $0x1c0] sm:$0xff]   ;;  %v2713_v42 = vld [vmem:[%s3445_s7 + $0x188] sm:$0xff]  }
  0x5a   :  { %2438 = vmatprep.subr.bf16.mxu1 %v2663_v44  ;;  %v2165_v44 = vcombine.high %v1044_v43, %v1044_v43 }
  0x5c   :  { %2411 = vmatpush3.bf16.msra.mxu0 %v2665_v45  ;;  %v2716_v45 = vld [vmem:[%s3445_s7 + $0x1d0] sm:$0xff]  }
  0x5d   :  { %2439 = vmatpush3.bf16.msra.mxu1 %v2666_v46  ;;  %2412 = vmatprep.subr.bf16.mxu0 %v2667_v47  ;;  %v1045_v46 = vld [vmem:[%s3446_s3 + $0x50] sm:$0x11]  ;;  %v2164_v47 = vcombine.low %v1044_v43, %v1044_v43 }
  0x5e   :  { %2440 = vmatprep.subr.bf16.mxu1 %v2668_v48  ;;  %v2167_v48 = vcombine.high %v1045_v46, %v1045_v46 }
  0x60   :  { %2413 = vmatpush3.bf16.msra.mxu0 %v2669_v49  ;;  %v2718_v49 = vld [vmem:[%s3445_s7 + $0x190] sm:$0xff]  }
  0x61   :  { %2441 = vmatpush3.bf16.msra.mxu1 %v2670_v50  ;;  %2454 = vmatprep.subr.bf16.mxu0 %v2674_v57  ;;  %v2166_v50 = vcombine.low %v1045_v46, %v1045_v46  ;;  %v2724_v57 = vld [vmem:[%s3445_s7 + $0x1e8] sm:$0xff]  }
  0x62   :  { %2482 = vmatprep.subr.bf16.mxu1 %v2675_v58 }
  0x63   :  { %1020 = vmatmul.mubr.bf16.vlgmr.msra.gmra.mrb[16].mxu0 %v2671_v51  ;;  %v2720_v51 = vld [vmem:[%s3445_s7 + $0x1d8] sm:$0xff]  }
  0x64   :  { %1660 = vmatmul.mubr.bf16.vlgmr.msra.gmra.mrb[16].mxu1 %v2154_v55  ;;  %2455 = vmatpush3.bf16.msra.mxu0 %v2676_v59  ;;  %v1038_v55 = vld [vmem:[%s3446_s3 + $0x18] sm:$0xff] }
  0x65   :  { %2483 = vmatpush3.bf16.msra.mxu1 %v2677_v60  ;;  %2456 = vmatprep.subr.bf16.mxu0 %v2678_v61  ;;  %v2161_v58 = vcombine.high %v1038_v55, %v1042_v56  ;;  %v1046_v59 = vld [vmem:[%s3446_s3 + $0x58] sm:$0x11]  ;;  %v2725_v61 = vld [vmem:[%s3445_s7 + $0x1a8] sm:$0xff]  }
  0x66   :  { %2484 = vmatprep.subr.bf16.mxu1 %v2679_v62  ;;  %1027 = vmatprep.mubr.bf16.mxu0 %v2121_v2  ;;  %v2169_v60 = vcombine.high %v1046_v59, %v1046_v59  ;;  %v2726_v62 = vld [vmem:[%s3445_s7 + $0x1f0] sm:$0xff]   ;;  %v2160_v2 = vcombine.low %v1038_v55, %v1042_v56 }
  0x67   :  { %1667 = vmatprep.mubr.bf16.mxu1 %v2163_v21 }
  0x68   :  { %2457 = vmatpush3.bf16.msra.mxu0 %v2680_v63  ;;  %v2727_v63 = vld [vmem:[%s3445_s7 + $0x1b0] sm:$0xff]  }
  0x69   :  { %2485 = vmatpush3.bf16.msra.mxu1 %v2681_v0  ;;  %2458 = vmatprep.subr.bf16.mxu0 %v2684_v4  ;;  %v2728_v0 = vld [vmem:[%s3445_s7 + $0x1f8] sm:$0xff]  }
  0x6a   :  { %2486 = vmatprep.subr.bf16.mxu1 %v2685_v5  ;;  %v3328_v5 = vld [vmem:[%s3447_s8] ss:$0 sm:$0xff] }
  0x6b   :  { %1028 = vmatmul.mubr.bf16.gmra.mrb[20].mxu0 %v2120_v3  ;;  %v2168_v3 = vcombine.low %v1046_v59, %v1046_v59 }
  0x6c   :  { %2459 = vmatpush3.bf16.msra.mxu0 %v2686_v6  ;;  %1668 = vmatmul.mubr.bf16.gmra.mrb[20].mxu1 %v2162_v23 }
  0x6d   :  { %2487 = vmatpush3.bf16.msra.mxu1 %v2687_v7  ;;  %2460 = vmatprep.subr.bf16.mxu0 %v2688_v8 }
  0x6e   :  { %2488 = vmatprep.subr.bf16.mxu1 %v2689_v9  ;;  %1707 = vmatprep.mubr.bf16.mxu0 %v2157_v34 }
  0x6f   :  { %1755 = vmatprep.mubr.bf16.mxu1 %v2159_v38 }
  0x70   :  { %2461 = vmatpush3.bf16.msra.mxu0 %v2690_v10 }
  0x71   :  { %2489 = vmatpush3.bf16.msra.mxu1 %v2691_v11  ;;  %2462 = vmatprep.subr.bf16.mxu0 %v2692_v12 }
  0x72   :  { %2490 = vmatprep.subr.bf16.mxu1 %v2693_v13 }
  0x74   :  { %2463 = vmatpush3.bf16.msra.mxu0 %v2694_v14 }
  0x75   :  { %2491 = vmatpush3.bf16.msra.mxu1 %v2695_v15  ;;  %2464 = vmatprep.subr.bf16.mxu0 %v2696_v16 }
  0x76   :  { %2492 = vmatprep.subr.bf16.mxu1 %v2697_v17 }
  0x78   :  { %2465 = vmatpush3.bf16.msra.mxu0 %v2698_v18 }
  0x79   :  { %2493 = vmatpush3.bf16.msra.mxu1 %v2699_v19  ;;  %2466 = vmatprep.subr.bf16.mxu0 %v2701_v22 }
  0x7a   :  { %2494 = vmatprep.subr.bf16.mxu1 %v2702_v24 }
  0x7c   :  { %2467 = vmatpush3.bf16.msra.mxu0 %v2704_v25 }
  0x7d   :  { %2495 = vmatpush3.bf16.msra.mxu1 %v2705_v26  ;;  %2468 = vmatprep.subr.bf16.mxu0 %v2706_v27 }
  0x7e   :  { %2496 = vmatprep.subr.bf16.mxu1 %v2707_v28 }
  0x80   :  { %2469 = vmatpush3.bf16.msra.mxu0 %v2708_v29 }
  0x81   :  { %2497 = vmatpush3.bf16.msra.mxu1 %v2709_v30  ;;  %2510 = vmatprep.subr.bf16.mxu0 %v2710_v39 }
  0x82   :  { %2538 = vmatprep.subr.bf16.mxu1 %v2710_v39 }
  0x83   :  { %1708 = vmatmul.mubr.bf16.vlgmr.msra.gmra.mrb[24].mxu0 %v2156_v33 }
  0x84   :  { %1756 = vmatmul.mubr.bf16.vlgmr.msra.gmra.mrb[24].mxu1 %v2158_v37  ;;  %2511 = vmatpush3.bf16.msra.mxu0 %v2711_v40 }
  0x85   :  { %2546 = vmatpush3.bf16.msra.mxu1 %v2711_v40  ;;  %2512 = vmatprep.subr.bf16.mxu0 %v2712_v41 }
  0x86   :  { %2539 = vmatprep.subr.bf16.mxu1 %v2712_v41  ;;  %1715 = vmatprep.mubr.bf16.mxu0 %v2165_v44 }
  0x87   :  { %1763 = vmatprep.mubr.bf16.mxu1 %v2167_v48 }
  0x88   :  { %2513 = vmatpush3.bf16.msra.mxu0 %v2713_v42 }
  0x89   :  { %2547 = vmatpush3.bf16.msra.mxu1 %v2713_v42  ;;  %2514 = vmatprep.subr.bf16.mxu0 %v2716_v45 }
  0x8a   :  { %2540 = vmatprep.subr.bf16.mxu1 %v2716_v45 }
  0x8b   :  { %1716 = vmatmul.mubr.bf16.gmra.mrb[28].mxu0 %v2164_v47 }
  0x8c   :  { %2515 = vmatpush3.bf16.msra.mxu0 %v2718_v49  ;;  %1764 = vmatmul.mubr.bf16.gmra.mrb[28].mxu1 %v2166_v50 }
  0x8d   :  { %2548 = vmatpush3.bf16.msra.mxu1 %v2718_v49  ;;  %2516 = vmatprep.subr.bf16.mxu0 %v2720_v51 }
  0x8e   :  { %2541 = vmatprep.subr.bf16.mxu1 %v2720_v51  ;;  %1803 = vmatprep.mubr.bf16.mxu0 %v2161_v58 }
  0x8f   :  { %1811 = vmatprep.mubr.bf16.mxu1 %v2169_v60 }
  0x90   :  { %2517 = vmatpush3.bf16.msra.mxu0 %v2721_v52 }
  0x91   :  { %2549 = vmatpush3.bf16.msra.mxu1 %v2721_v52  ;;  %2518 = vmatprep.subr.bf16.mxu0 %v2722_v53 }
  0x92   :  { %2542 = vmatprep.subr.bf16.mxu1 %v2722_v53 }
  0x94   :  { %2519 = vmatpush3.bf16.msra.mxu0 %v2723_v54 }
  0x95   :  { %2550 = vmatpush3.bf16.msra.mxu1 %v2723_v54  ;;  %2520 = vmatprep.subr.bf16.mxu0 %v2724_v57 }
  0x96   :  { %2543 = vmatprep.subr.bf16.mxu1 %v2724_v57 }
  0x98   :  { %2521 = vmatpush3.bf16.msra.mxu0 %v2725_v61 }
  0x99   :  { %2551 = vmatpush3.bf16.msra.mxu1 %v2725_v61  ;;  %2522 = vmatprep.subr.bf16.mxu0 %v2726_v62 }
  0x9a   :  { %2544 = vmatprep.subr.bf16.mxu1 %v2726_v62 }
  0x9c   :  { %2523 = vmatpush3.bf16.msra.mxu0 %v2727_v63 }
  0x9d   :  { %2552 = vmatpush3.bf16.msra.mxu1 %v2727_v63  ;;  %2524 = vmatprep.subr.bf16.mxu0 %v2728_v0 }
  0x9e   :  { %2545 = vmatprep.subr.bf16.mxu1 %v2728_v0 }
  0xa0   :  { %2525 = vmatpush3.bf16.msra.mxu0 %v2729_v1 }
  0xa1   :  { %2553 = vmatpush3.bf16.msra.mxu1 %v2729_v1 }
  0xa3   :  { %1804 = vmatmul.mubr.bf16.vlgmr.msra.gmra.mrb[32].mxu0 %v2160_v2 }
  0xa4   :  { %1812 = vmatmul.mubr.bf16.vlgmr.msra.gmra.mrb[32].mxu1 %v2168_v3 }
  0xf6   :  { %v2302_v4 = vpop.f32.mrb[0].mxu0 }
  0xf7   :  { %v2303_v6 = vpop.f32.mrb[1].mxu0  ;;  %v2330_v7 = vpop.f32.mrb[0].mxu1 }
  0xf8   :  { %v2304_v8 = vadd.f32 %v2303_v6, %v2302_v4  ;;  %v2305_v9 = vpop.f32.mrb[2].mxu0  ;;  %v2331_v10 = vpop.f32.mrb[1].mxu1 }
  0xf9   :  { %v2332_v11 = vadd.f32 %v2331_v10, %v2330_v7  ;;  %v2306_v12 = vpop.f32.mrb[3].mxu0  ;;  %v2333_v13 = vpop.f32.mrb[2].mxu1 }
  0xfa   :  { %v3331_v14 = vadd.f32 %v2304_v8, %v3328_v5  ;;  %v2307_v15 = vadd.f32 %v2306_v12, %v2305_v9  ;;  %v2334_v16 = vpop.f32.mrb[3].mxu1 }
  0xfb   :  { %v2335_v17 = vadd.f32 %v2334_v16, %v2333_v13  ;;  %v582_v45 = vadd.f32 %v2332_v11, %v3328_v5 }
  0xfc   :  { %v3334_v18 = vadd.f32 %v2307_v15, %v3328_v5  ;;  %v1828_v19 = vmul.f32 %v3331_v14, %v3331_v14 }
  0xfd   :  { %v585_v52 = vadd.f32 %v2335_v17, %v3328_v5 }
  0xfe   :  { %v1819_v20 = vadd.f32 %v3334_v18, %v3331_v14  ;;  %v1829_v21 = vmul.f32 %v3334_v18, %v3334_v18  ;;  %v2308_v23 = vpop.f32.mrb[4].mxu0 }
  0xff   :  { %v2309_v24 = vpop.f32.mrb[5].mxu0  ;;  %v2336_v37 = vpop.f32.mrb[4].mxu1 }
 0x100   :  { %v1832_v22 = vadd.f32 %v1829_v21, %v1828_v19  ;;  %v2310_v25 = vadd.f32 %v2309_v24, %v2308_v23  ;;  %v2311_v26 = vpop.f32.mrb[6].mxu0  ;;  %v2337_v38 = vpop.f32.mrb[5].mxu1 }
 0x101   :  { %v2312_v27 = vpop.f32.mrb[7].mxu0  ;;  %v2338_v39 = vadd.f32 %v2337_v38, %v2336_v37  ;;  %v2339_v40 = vpop.f32.mrb[6].mxu1 }
 0x102   :  { %v3343_v28 = vadd.f32 %v2310_v25, %v3328_v5  ;;  %v2313_v29 = vadd.f32 %v2312_v27, %v2311_v26  ;;  %v2340_v41 = vpop.f32.mrb[7].mxu1 }
 0x103   :  { %v590_v3 = vadd.f32 %v2338_v39, %v3328_v5 }
 0x104   :  { %v1820_v30 = vadd.f32 %v1819_v20, %v3343_v28  ;;  %v1830_v31 = vmul.f32 %v3343_v28, %v3343_v28  ;;  %v3349_v32 = vadd.f32 %v2313_v29, %v3328_v5 }
 0x106   :  { %v1833_v33 = vadd.f32 %v1832_v22, %v1830_v31  ;;  %v1821_v34 = vadd.f32 %v1820_v30, %v3349_v32  ;;  %v1831_v35 = vmul.f32 %v3349_v32, %v3349_v32 }
 0x108   :  { %v1834_v36 = vadd.f32 %v1833_v33, %v1831_v35  ;;  %v1822_v61 = vrot.slane %v1821_v34, 4 }
 0x10a   :  { %v1835_v63 = vrot.slane %v1834_v36, 4  ;;  %v1823_v2 = vadd.f32 %v1822_v61, %v1821_v34 }
 0x10c   :  { %v1836_v8 = vadd.f32 %v1835_v63, %v1834_v36  ;;  %v1824_v10 = vrot.slane %v1823_v2, 2 }
 0x10e   :  { %v1837_v13 = vrot.slane %v1836_v8, 2  ;;  %v1825_v17 = vadd.f32 %v1824_v10, %v1823_v2 }
 0x110   :  { %v1838_v21 = vadd.f32 %v1837_v13, %v1836_v8  ;;  %v1826_v24 = vrot.slane %v1825_v17, 1 }
 0x112   :  { %v1839_v27 = vrot.slane %v1838_v21, 1  ;;  %v1827_v34 = vadd.f32 %v1826_v24, %v1825_v17 }
 0x114   :  { %v1840_v40 = vadd.f32 %v1839_v27, %v1838_v21 }
 0x116   :  { %v2358_v42 = vpop.f32.mrb[8].mxu0 }
 0x117   :  { %v2359_v43 = vpop.f32.mrb[9].mxu0  ;;  %v2386_v44 = vpop.f32.mrb[8].mxu1 }
 0x118   :  { %v2360_v46 = vadd.f32 %v2359_v43, %v2358_v42  ;;  %v2361_v47 = vpop.f32.mrb[10].mxu0  ;;  %v2387_v48 = vpop.f32.mrb[9].mxu1 }
 0x119   :  { %v2388_v49 = vadd.f32 %v2387_v48, %v2386_v44  ;;  %v2362_v50 = vpop.f32.mrb[11].mxu0  ;;  %v2389_v51 = vpop.f32.mrb[10].mxu1 }
 0x11a   :  { %v3356_v53 = vadd.f32 %v2360_v46, %v582_v45  ;;  %v2363_v54 = vadd.f32 %v2362_v50, %v2361_v47  ;;  %v2390_v55 = vpop.f32.mrb[11].mxu1 }
 0x11b   :  { %v2391_v56 = vadd.f32 %v2390_v55, %v2389_v51  ;;  %v974_v46 = vadd.f32 %v2388_v49, %v3328_v5 }
 0x11c   :  { %v3358_v57 = vadd.f32 %v2363_v54, %v585_v52  ;;  %v1850_v58 = vmul.f32 %v3356_v53, %v3356_v53 }
 0x11d   :  { %v977_v54 = vadd.f32 %v2391_v56, %v3328_v5 }
 0x11e   :  { %v1841_v59 = vadd.f32 %v3358_v57, %v3356_v53  ;;  %v1851_v60 = vmul.f32 %v3358_v57, %v3358_v57  ;;  %v2364_v0 = vpop.f32.mrb[12].mxu0 }
 0x11f   :  { %v2365_v1 = vpop.f32.mrb[13].mxu0  ;;  %v2392_v31 = vpop.f32.mrb[12].mxu1 }
 0x120   :  { %v1853_v62 = vadd.f32 %v1851_v60, %v1850_v58  ;;  %v2366_v4 = vadd.f32 %v2365_v1, %v2364_v0  ;;  %v2367_v6 = vpop.f32.mrb[14].mxu0  ;;  %v2393_v33 = vpop.f32.mrb[13].mxu1 }
 0x121   :  { %v2368_v7 = vpop.f32.mrb[15].mxu0  ;;  %v2394_v37 = vadd.f32 %v2393_v33, %v2392_v31  ;;  %v2395_v38 = vpop.f32.mrb[14].mxu1 }
 0x122   :  { %v3367_v9 = vadd.f32 %v2366_v4, %v590_v3  ;;  %v2396_v39 = vpop.f32.mrb[15].mxu1 }
 0x123   :  { %v982_v4 = vadd.f32 %v2394_v37, %v3328_v5 }
 0x124   :  { %v1842_v11 = vadd.f32 %v1841_v59, %v3367_v9  ;;  %v1852_v12 = vmul.f32 %v3367_v9, %v3367_v9 }
 0x126   :  { %v1843_v15 = vrot.slane %v1842_v11, 4  ;;  %v1854_v16 = vadd.f32 %v1853_v62, %v1852_v12 }
 0x128   :  { %v1844_v19 = vadd.f32 %v1843_v15, %v1842_v11  ;;  %v1855_v20 = vrot.slane %v1854_v16, 4 }
 0x12a   :  { %v1845_v22 = vrot.slane %v1844_v19, 2  ;;  %v1856_v23 = vadd.f32 %v1855_v20, %v1854_v16 }
 0x12c   :  { %v1846_v25 = vadd.f32 %v1845_v22, %v1844_v19  ;;  %v1857_v26 = vrot.slane %v1856_v23, 2 }
 0x12e   :  { %v1847_v29 = vrot.slane %v1846_v25, 1  ;;  %v1858_v30 = vadd.f32 %v1857_v26, %v1856_v23 }
 0x130   :  { %v1848_v35 = vadd.f32 %v1847_v29, %v1846_v25  ;;  %v1859_v36 = vrot.slane %v1858_v30, 1 }
 0x132   :  { %v1849_v41 = vadd.f32 %v1848_v35, %v1827_v34  ;;  %v1860_v42 = vadd.f32 %v1859_v36, %v1858_v30 }
 0x134   :  { %v1861_v43 = vadd.f32 %v1860_v42, %v1840_v40 }
 0x136   :  { %v2414_v44 = vpop.f32.mrb[16].mxu0 }
 0x137   :  { %v2415_v45 = vpop.f32.mrb[17].mxu0  ;;  %v2442_v48 = vpop.f32.mrb[16].mxu1 }
 0x138   :  { %v2416_v47 = vadd.f32 %v2415_v45, %v2414_v44  ;;  %v2417_v50 = vpop.f32.mrb[18].mxu0  ;;  %v2443_v51 = vpop.f32.mrb[17].mxu1 }
 0x139   :  { %v2418_v52 = vpop.f32.mrb[19].mxu0  ;;  %v2444_v58 = vadd.f32 %v2443_v51, %v2442_v48  ;;  %v2445_v60 = vpop.f32.mrb[18].mxu1 }
 0x13a   :  { %v3374_v55 = vadd.f32 %v2416_v47, %v974_v46  ;;  %v2419_v59 = vadd.f32 %v2418_v52, %v2417_v50  ;;  %v2446_v61 = vpop.f32.mrb[19].mxu1 }
 0x13b   :  { %v2447_v63 = vadd.f32 %v2446_v61, %v2445_v60  ;;  %v1662_v39 = vadd.f32 %v2444_v58, %v3328_v5 }
 0x13c   :  { %v3376_v62 = vadd.f32 %v2419_v59, %v977_v54  ;;  %v1871_v0 = vmul.f32 %v3374_v55, %v3374_v55 }
 0x13d   :  { %v1665_v47 = vadd.f32 %v2447_v63, %v3328_v5 }
 0x13e   :  { %v1862_v49 = vadd.f32 %v3376_v62, %v3374_v55  ;;  %v1872_v1 = vmul.f32 %v3376_v62, %v3376_v62  ;;  %v2420_v56 = vpop.f32.mrb[20].mxu0 }
 0x13f   :  { %v2421_v3 = vpop.f32.mrb[21].mxu0  ;;  %v2448_v25 = vpop.f32.mrb[20].mxu1 }
 0x140   :  { %v1874_v2 = vadd.f32 %v1872_v1, %v1871_v0  ;;  %v2422_v6 = vadd.f32 %v2421_v3, %v2420_v56  ;;  %v2423_v7 = vpop.f32.mrb[22].mxu0  ;;  %v2449_v29 = vpop.f32.mrb[21].mxu1 }
 0x141   :  { %v2424_v8 = vpop.f32.mrb[23].mxu0  ;;  %v2450_v30 = vadd.f32 %v2449_v29, %v2448_v25  ;;  %v2451_v31 = vpop.f32.mrb[22].mxu1 }
 0x142   :  { %v3385_v10 = vadd.f32 %v2422_v6, %v982_v4  ;;  %v2452_v35 = vpop.f32.mrb[23].mxu1 }
 0x143   :  { %v1670_v58 = vadd.f32 %v2450_v30, %v3328_v5 }
 0x144   :  { %v1863_v11 = vadd.f32 %v1862_v49, %v3385_v10  ;;  %v1873_v12 = vmul.f32 %v3385_v10, %v3385_v10 }
 0x146   :  { %v1864_v13 = vrot.slane %v1863_v11, 4  ;;  %v1875_v15 = vadd.f32 %v1874_v2, %v1873_v12 }
 0x148   :  { %v1865_v16 = vadd.f32 %v1864_v13, %v1863_v11  ;;  %v1876_v17 = vrot.slane %v1875_v15, 4 }
 0x14a   :  { %v1866_v19 = vrot.slane %v1865_v16, 2  ;;  %v1877_v20 = vadd.f32 %v1876_v17, %v1875_v15 }
 0x14c   :  { %v1867_v21 = vadd.f32 %v1866_v19, %v1865_v16  ;;  %v1878_v22 = vrot.slane %v1877_v20, 2 }
 0x14e   :  { %v1868_v23 = vrot.slane %v1867_v21, 1  ;;  %v1879_v24 = vadd.f32 %v1878_v22, %v1877_v20 }
 0x150   :  { %v1869_v26 = vadd.f32 %v1868_v23, %v1867_v21  ;;  %v1880_v27 = vrot.slane %v1879_v24, 1 }
 0x152   :  { %v3390_v33 = vadd.f32 %v1869_v26, %v1849_v41  ;;  %v1881_v34 = vadd.f32 %v1880_v27, %v1879_v24 }
 0x154   :  { %v3392_v36 = vadd.f32 %v1881_v34, %v1861_v43 }
 0x156   :  { %v2470_v37 = vpop.f32.mrb[24].mxu0 }
 0x157   :  { %v2471_v38 = vpop.f32.mrb[25].mxu0  ;;  %v2498_v42 = vpop.f32.mrb[24].mxu1 }
 0x158   :  { %v2472_v40 = vadd.f32 %v2471_v38, %v2470_v37  ;;  %v2473_v44 = vpop.f32.mrb[26].mxu0  ;;  %v2499_v45 = vpop.f32.mrb[25].mxu1 }
 0x159   :  { %v2474_v46 = vpop.f32.mrb[27].mxu0  ;;  %v2500_v50 = vadd.f32 %v2499_v45, %v2498_v42  ;;  %v2501_v41 = vpop.f32.mrb[26].mxu1 }
 0x15a   :  { %v1710_v48 = vadd.f32 %v2472_v40, %v1662_v39  ;;  %v2475_v51 = vadd.f32 %v2474_v46, %v2473_v44  ;;  %v2502_v52 = vpop.f32.mrb[27].mxu1 }
 0x15b   :  { %v2503_v43 = vadd.f32 %v2502_v52, %v2501_v41 }
 0x15c   :  { %v1758_v54 = vadd.f32 %v2500_v50, %v1710_v48  ;;  %v1713_v59 = vadd.f32 %v2475_v51, %v1665_v47 }
 0x15e   :  { %v1761_v60 = vadd.f32 %v2503_v43, %v1713_v59  ;;  %v2476_v61 = vpop.f32.mrb[28].mxu0 }
 0x15f   :  { %v2477_v0 = vpop.f32.mrb[29].mxu0  ;;  %v2504_v1 = vpop.f32.mrb[28].mxu1 }
 0x160   :  { %v2478_v49 = vadd.f32 %v2477_v0, %v2476_v61  ;;  %v2479_v2 = vpop.f32.mrb[30].mxu0  ;;  %v2505_v56 = vpop.f32.mrb[29].mxu1 }
 0x161   :  { %v2480_v3 = vpop.f32.mrb[31].mxu0  ;;  %v2506_v63 = vadd.f32 %v2505_v56, %v2504_v1  ;;  %v2507_v6 = vpop.f32.mrb[30].mxu1  ;;  %v1911_v2 = vld [vmem:[%s3448_s9] sm:$0x1] }
 0x162   :  { %v1718_v4 = vadd.f32 %v2478_v49, %v1670_v58  ;;  %v2508_v7 = vpop.f32.mrb[31].mxu1  ;;  %v1919_v49 = vlaneseq }
 0x164   :  { %v1766_v8 = vadd.f32 %v2506_v63, %v1718_v4  ;;  %v1920_v1 = vshrl.u32 %v1919_v49, 7 }
 0x166   :  { %v1921_v56 = vsub.s32 0, %v1920_v1 }
 0x176   :  { %v2526_v11 = vpop.f32.mrb[32].mxu0 }
 0x177   :  { %v2532_v12 = vpop.f32.mrb[32].mxu1  ;;  %v2527_v13 = vpop.f32.mrb[33].mxu0 }
 0x178   :  { %v2528_v15 = vadd.f32 %v2527_v13, %v2526_v11  ;;  %v2533_v16 = vpop.f32.mrb[33].mxu1  ;;  %v2529_v17 = vpop.f32.mrb[34].mxu0 }
 0x179   :  { %v2534_v19 = vadd.f32 %v2533_v16, %v2532_v12  ;;  %v2535_v20 = vpop.f32.mrb[34].mxu1  ;;  %v2530_v21 = vpop.f32.mrb[35].mxu0 }
 0x17a   :  { %v1806_v5 = vadd.f32 %v2528_v15, %v1758_v54  ;;  %v2531_v22 = vadd.f32 %v2530_v21, %v2529_v17  ;;  %v2536_v23 = vpop.f32.mrb[35].mxu1 }
 0x17b   :  { %v1814_v24 = vadd.f32 %v2534_v19, %v1766_v8 }
 0x17c   :  { %v1809_v25 = vadd.f32 %v2531_v22, %v1761_v60  ;;  %v1894_v27 = vmul.f32 %v1806_v5, %v1806_v5 }
 0x17d   :  { %v1896_v26 = vmul.f32 %v1814_v24, %v1814_v24  ;;  %v1885_v31 = vsel %vm1884_vm0, %v1814_v24, 0.0 }
 0x17e   :  { %v1883_v29 = vadd.f32 %v1809_v25, %v1806_v5  ;;  %v1895_v30 = vmul.f32 %v1809_v25, %v1809_v25 }
 0x17f   :  { %v1898_v37 = vsel %vm1884_vm0, %v1896_v26, 0.0 }
 0x180   :  { %v1886_v34 = vadd.f32 %v1885_v31, %v1883_v29  ;;  %v1897_v35 = vadd.f32 %v1895_v30, %v1894_v27 }
 0x182   :  { %v1887_v38 = vrot.slane %v1886_v34, 4  ;;  %v1899_v39 = vadd.f32 %v1898_v37, %v1897_v35 }
 0x184   :  { %v1888_v40 = vadd.f32 %v1887_v38, %v1886_v34  ;;  %v1900_v42 = vrot.slane %v1899_v39, 4 }
 0x186   :  { %v1889_v44 = vrot.slane %v1888_v40, 2  ;;  %v1901_v45 = vadd.f32 %v1900_v42, %v1899_v39 }
 0x188   :  { %v1890_v46 = vadd.f32 %v1889_v44, %v1888_v40  ;;  %v1902_v47 = vrot.slane %v1901_v45, 2 }
 0x18a   :  { %v1891_v48 = vrot.slane %v1890_v46, 1  ;;  %v1903_v50 = vadd.f32 %v1902_v47, %v1901_v45 }
 0x18c   :  { %v1892_v51 = vadd.f32 %v1891_v48, %v1890_v46  ;;  %v1904_v41 = vrot.slane %v1903_v50, 1 }
 0x18e   :  { %v1893_v52 = vadd.f32 %v1892_v51, %v3390_v33  ;;  %v1905_v54 = vadd.f32 %v1904_v41, %v1903_v50  ;;  %v1915_v33 = vld [vmem:[%s3449_s10] sm:$0x1] }
 0x190   :  { %v1906_v59 = vadd.f32 %v1905_v54, %v3392_v36  ;;  %v1907_v43 = vmul.f32 0.010204081, %v1893_v52 }
 0x192   :  { %v1908_v60 = vmul.f32 0.010204081, %v1906_v59  ;;  %v1909_v61 = vmul.f32 %v1907_v43, %v1907_v43 }
 0x194   :  { %v1910_v0 = vsub.f32 %v1908_v60, %v1909_v61 }
 0x196   :  { %v1912_v58 = vadd.f32 1e-05, %v1910_v0 }
 0x198   :  { %2732 = vrsqrt.f32 %v1912_v58 }
 0x1a2   :  { %v2733_v3 = vpop.eup %2732 }
 0x1a3   :  { %v1914_v4 = vmul.f32 %v2733_v3, %v1911_v2 }
 0x1a5   :  { %v1916_v36 = vmul.f32 %v1914_v4, %v1907_v43  ;;  %v1922_v63 = vrot.slane %v1914_v4, %v1921_v56 }
 0x1a7   :  { %v1917_v6 = vsub.f32 %v1915_v33, %v1916_v36  ;;  %v1924_v7 = vmul.f32 %v1922_v63, %v3331_v14  ;;  %v1925_v8 = vmul.f32 %v1922_v63, %v3334_v18  ;;  %v1926_v11 = vmul.f32 %v1922_v63, %v3343_v28 }
 0x1a8   :  { %v1927_v12 = vmul.f32 %v1922_v63, %v3349_v32  ;;  %v1962_v13 = vmul.f32 %v1922_v63, %v3356_v53  ;;  %v1963_v15 = vmul.f32 %v1922_v63, %v3358_v57  ;;  %v1964_v16 = vmul.f32 %v1922_v63, %v3367_v9 }
 0x1a9   :  { %v1932_v17 = vrot.slane %v1917_v6, %v1921_v56  ;;  %v1987_v19 = vmul.f32 %v1922_v63, %v3374_v55  ;;  %v1988_v20 = vmul.f32 %v1922_v63, %v3376_v62  ;;  %v1989_v21 = vmul.f32 %v1922_v63, %v3385_v10 }
 0x1aa   :  { %v2012_v14 = vmul.f32 %v1922_v63, %v1806_v5  ;;  %v2013_v22 = vmul.f32 %v1922_v63, %v1809_v25  ;;  %v2014_v18 = vmul.f32 %v1922_v63, %v1814_v24 }
 0x1ab   :  { %v1934_v23 = vadd.f32 %v1932_v17, %v1924_v7  ;;  %v1935_v28 = vadd.f32 %v1932_v17, %v1925_v8  ;;  %v1936_v26 = vadd.f32 %v1932_v17, %v1926_v11  ;;  %v1937_v32 = vadd.f32 %v1932_v17, %v1927_v12 }
 0x1ac   :  { %v1965_v27 = vadd.f32 %v1962_v13, %v1932_v17  ;;  %v1966_v53 = vadd.f32 %v1963_v15, %v1932_v17  ;;  %v1967_v29 = vadd.f32 %v1964_v16, %v1932_v17  ;;  %v1990_v57 = vadd.f32 %v1987_v19, %v1932_v17 }
 0x1ad   :  { %v1938_v30 = vmax.f32 %v1934_v23, 0.0  ;;  %v1939_v9 = vmax.f32 %v1935_v28, 0.0  ;;  %v1940_v31 = vmax.f32 %v1936_v26, 0.0  ;;  %v1941_v34 = vmax.f32 %v1937_v32, 0.0 }
 0x1ae   :  { %v1968_v55 = vmax.f32 %v1965_v27, 0.0  ;;  %v1969_v35 = vmax.f32 %v1966_v53, 0.0  ;;  %v1970_v62 = vmax.f32 %v1967_v29, 0.0  ;;  %v1991_v37 = vadd.f32 %v1988_v20, %v1932_v17 }
 0x1af   :  { %v2263_v10 = vpack.c.bf16 %v1939_v9, %v1938_v30  ;;  %v2268_v5 = vpack.c.bf16 %v1941_v34, %v1940_v31  ;;  %v1992_v25 = vadd.f32 %v1989_v21, %v1932_v17  ;;  %v1993_v24 = vmax.f32 %v1990_v57, 0.0 }
 0x1b0   :  { %v2253_v38 = vpack.c.bf16 %v1970_v62, %v1970_v62  ;;  %v2273_v39 = vpack.c.bf16 %v1969_v35, %v1968_v55  ;;  %v1994_v40 = vmax.f32 %v1991_v37, 0.0  ;;  %v2015_v42 = vadd.f32 %v2012_v14, %v1932_v17 }
 0x1b1   :  { %2264 = vst [vmem:[%s3450_s11] sm:$0xff] %v2263_v10   ;;  %2285 = vst [vmem:[%s3450_s11 + $0x8] sm:$0xff] %v2268_v5   ;;  %v1995_v44 = vmax.f32 %v1992_v25, 0.0  ;;  %v2016_v45 = vadd.f32 %v2013_v22, %v1932_v17  ;;  %v2017_v46 = vadd.f32 %v2014_v18, %v1932_v17 }
 0x1b2   :  { %2274 = vst [vmem:[%s3451_s12] sm:$0xff] %v2273_v39   ;;  %1986 = vst [vmem:[%s3451_s12 + $0x8] sm:$0xf] %v2253_v38  ;;  %v2278_v47 = vpack.c.bf16 %v1994_v40, %v1993_v24  ;;  %v2018_v48 = vmax.f32 %v2015_v42, 0.0 }
 0x1b3   :  { %v2256_v50 = vpack.c.bf16 %v1995_v44, %v1995_v44  ;;  %v2019_v51 = vmax.f32 %v2016_v45, 0.0  ;;  %v2020_v41 = vmax.f32 %v2017_v46, 0.0 }
 0x1b4   :  { %2279 = vst [vmem:[%s3452_s13] sm:$0xff] %v2278_v47  }
 0x1b5   :  { %2011 = vst [vmem:[%s3452_s13 + $0x8] sm:$0xf] %v2256_v50  ;;  %v2259_v52 = vpack.c.bf16 %v2020_v41, %v2020_v41  ;;  %v2283_v54 = vpack.c.bf16 %v2019_v51, %v2018_v48 }
 0x1b7   :  { %2284 = vst [vmem:[%s3453_s14] sm:$0xff] %v2283_v54   ;;  %2036 = vst [vmem:[%s3453_s14 + $0x8] sm:$0x1] %v2259_v52 }

// kernel: simple_generator_forward.6
= control target key start
LH: loop header
LB: loop body
LE: loop exit
PB: predicated region body
PF: predicated region fallthrough
CT: control target
= control target key end

     0   :  { %vm2418_vm0 = vcmask 523264   ;;  %vm2442_vm1 = vcmask 517120   ;;  %vm2841_vm2 = vcmask 519168   ;;  %vm2854_vm3 = vcmask 516096   ;;  %s5887_s4 = inlined_call_operand.vmem [shape: bf16[512,64], index: 4, kind: input, shape index: {}]   ;;  %s5888_s0 = inlined_call_operand.vmem [shape: bf16[98,512], index: 0, kind: input, shape index: {}]   ;;  %s5889_s5 = inlined_call_operand.vmem [shape: bf16[512,64], index: 5, kind: input, shape index: {}]   ;;  %s5890_s1 = inlined_call_operand.vmem [shape: bf16[98,512], index: 1, kind: input, shape index: {}]   ;;  %s5891_s6 = inlined_call_operand.vmem [shape: bf16[512,64], index: 6, kind: input, shape index: {}]   ;;  %s5892_s2 = inlined_call_operand.vmem [shape: bf16[98,512], index: 2, kind: input, shape index: {}]   ;;  %s5893_s7 = inlined_call_operand.vmem [shape: bf16[512,64], index: 7, kind: input, shape index: {}]   ;;  %s5894_s3 = inlined_call_operand.vmem [shape: bf16[98,512], index: 3, kind: input, shape index: {}]   ;;  %s5895_s8 = inlined_call_operand.vmem [shape: f32[1,64], index: 8, kind: input, shape index: {}]   ;;  %s5896_s9 = inlined_call_operand.vmem [shape: f32[1,64], index: 9, kind: input, shape index: {}]   ;;  %s5897_s10 = inlined_call_operand.vmem [shape: f32[1,64], index: 10, kind: input, shape index: {}]   ;;  %s5898_s11 = inlined_call_operand.vmem [shape: bf16[98,64], index: 11, kind: output, shape index: {0}]   ;;  %s5899_s12 = inlined_call_operand.vmem [shape: bf16[98,64], index: 12, kind: output, shape index: {1}]   ;;  %s5900_s13 = inlined_call_operand.vmem [shape: bf16[98,64], index: 13, kind: output, shape index: {2}]   ;;  %s5901_s14 = inlined_call_operand.vmem [shape: bf16[98,64], index: 14, kind: output, shape index: {3}]  }
   0x1   :  { %v3996_v0 = vld [vmem:[%s5887_s4 + $0x40] sm:$0xff]   ;;  %v4000_v4 = vld [vmem:[%s5887_s4 + $0x48] sm:$0xff]   ;;  %v4004_v8 = vld [vmem:[%s5887_s4 + $0x50] sm:$0xff]  }
   0x2   :  { %v3997_v1 = vld [vmem:[%s5887_s4 + $0xc0] sm:$0xff]   ;;  %3532 = vmatprep.subr.bf16.mxu0 %v3996_v0  ;;  %v4001_v5 = vld [vmem:[%s5887_s4 + $0xc8] sm:$0xff]   ;;  %v4005_v9 = vld [vmem:[%s5887_s4 + $0xd0] sm:$0xff]  }
   0x3   :  { %v3998_v2 = vld [vmem:[%s5887_s4] sm:$0xff]   ;;  %3590 = vmatprep.subr.bf16.mxu1 %v3997_v1  ;;  %v4002_v6 = vld [vmem:[%s5887_s4 + $0x8] sm:$0xff]   ;;  %v4006_v10 = vld [vmem:[%s5887_s4 + $0x10] sm:$0xff]  }
   0x4   :  { %v3999_v3 = vld [vmem:[%s5887_s4 + $0x80] sm:$0xff]   ;;  %3533 = vmatpush3.bf16.msra.mxu0 %v3998_v2  ;;  %v4003_v7 = vld [vmem:[%s5887_s4 + $0x88] sm:$0xff]   ;;  %v4007_v11 = vld [vmem:[%s5887_s4 + $0x90] sm:$0xff]  }
   0x5   :  { %3591 = vmatpush3.bf16.msra.mxu1 %v3999_v3  ;;  %3534 = vmatprep.subr.bf16.mxu0 %v4000_v4  ;;  %v4008_v12 = vld [vmem:[%s5887_s4 + $0x58] sm:$0xff]   ;;  %v4012_v16 = vld [vmem:[%s5887_s4 + $0x60] sm:$0xff]   ;;  %v4016_v20 = vld [vmem:[%s5887_s4 + $0x68] sm:$0xff]  }
   0x6   :  { %3592 = vmatprep.subr.bf16.mxu1 %v4001_v5  ;;  %v4009_v13 = vld [vmem:[%s5887_s4 + $0xd8] sm:$0xff]   ;;  %v4013_v17 = vld [vmem:[%s5887_s4 + $0xe0] sm:$0xff]   ;;  %v4017_v21 = vld [vmem:[%s5887_s4 + $0xe8] sm:$0xff]  }
   0x7   :  { %v4010_v14 = vld [vmem:[%s5887_s4 + $0x18] sm:$0xff]   ;;  %v4014_v18 = vld [vmem:[%s5887_s4 + $0x20] sm:$0xff]   ;;  %v4018_v22 = vld [vmem:[%s5887_s4 + $0x28] sm:$0xff]  }
   0x8   :  { %3535 = vmatpush3.bf16.msra.mxu0 %v4002_v6  ;;  %v4011_v15 = vld [vmem:[%s5887_s4 + $0x98] sm:$0xff]   ;;  %v4015_v19 = vld [vmem:[%s5887_s4 + $0xa0] sm:$0xff]   ;;  %v4019_v23 = vld [vmem:[%s5887_s4 + $0xa8] sm:$0xff]  }
   0x9   :  { %3593 = vmatpush3.bf16.msra.mxu1 %v4003_v7  ;;  %3536 = vmatprep.subr.bf16.mxu0 %v4004_v8  ;;  %v4020_v24 = vld [vmem:[%s5887_s4 + $0x70] sm:$0xff]   ;;  %v4024_v28 = vld [vmem:[%s5887_s4 + $0x78] sm:$0xff]   ;;  %v4034_v36 = vld [vmem:[%s5889_s5 + $0x40] sm:$0xff]  }
   0xa   :  { %3594 = vmatprep.subr.bf16.mxu1 %v4005_v9  ;;  %v4021_v25 = vld [vmem:[%s5887_s4 + $0xf0] sm:$0xff]   ;;  %v4025_v29 = vld [vmem:[%s5887_s4 + $0xf8] sm:$0xff]   ;;  %v4035_v37 = vld [vmem:[%s5889_s5] sm:$0xff]  }
   0xb   :  { %v4022_v26 = vld [vmem:[%s5887_s4 + $0x30] sm:$0xff]   ;;  %v4026_v30 = vld [vmem:[%s5887_s4 + $0x38] sm:$0xff]   ;;  %v4036_v38 = vld [vmem:[%s5889_s5 + $0xc0] sm:$0xff]  }
   0xc   :  { %3537 = vmatpush3.bf16.msra.mxu0 %v4006_v10  ;;  %v4023_v27 = vld [vmem:[%s5887_s4 + $0xb0] sm:$0xff]   ;;  %v4027_v31 = vld [vmem:[%s5887_s4 + $0xb8] sm:$0xff]   ;;  %v4037_v39 = vld [vmem:[%s5889_s5 + $0x80] sm:$0xff]  }
   0xd   :  { %3595 = vmatpush3.bf16.msra.mxu1 %v4007_v11  ;;  %3538 = vmatprep.subr.bf16.mxu0 %v4008_v12  ;;  %v4028_v32 = vld [vmem:[%s5888_s0] ss:$16 sps:$4 sm:$0xff]   ;;  %v4030_v33 = vld [vmem:[%s5888_s0 + $0x4] ss:$16 sps:$4 sm:$0xff]   ;;  %v4031_v34 = vld [vmem:[%s5888_s0 + $0x8] ss:$16 sps:$4 sm:$0xff]  }
   0xe   :  { %3596 = vmatprep.subr.bf16.mxu1 %v4009_v13  ;;  %v4033_v35 = vld [vmem:[%s5888_s0 + $0xc] ss:$16 sps:$4 sm:$0xff]   ;;  %498 = vmatprep.mubr.bf16.mxu0 %v4030_v33  ;;  %v4038_v40 = vld [vmem:[%s5888_s0 + $0x24] ss:$16 sps:$4 sm:$0xff]   ;;  %v4043_v43 = vld [vmem:[%s5888_s0 + $0x20] ss:$16 sps:$4 sm:$0xff]  }
   0xf   :  { %586 = vmatprep.mubr.bf16.mxu1 %v4033_v35  ;;  %v4040_v41 = vld [vmem:[%s5888_s0 + $0x2c] ss:$16 sps:$4 sm:$0xff]   ;;  %v4044_v44 = vld [vmem:[%s5888_s0 + $0x28] ss:$16 sps:$4 sm:$0xff]   ;;  %v4048_v48 = vld [vmem:[%s5889_s5 + $0x50] sm:$0xff]  }
  0x10   :  { %3539 = vmatpush3.bf16.msra.mxu0 %v4010_v14  ;;  %v4042_v42 = vld [vmem:[%s5889_s5 + $0x48] sm:$0xff]   ;;  %v4049_v49 = vld [vmem:[%s5888_s0 + $0x44] ss:$16 sps:$4 sm:$0xff]   ;;  %v4054_v52 = vld [vmem:[%s5888_s0 + $0x40] ss:$16 sps:$4 sm:$0xff]  }
  0x11   :  { %3597 = vmatpush3.bf16.msra.mxu1 %v4011_v15  ;;  %3540 = vmatprep.subr.bf16.mxu0 %v4012_v16  ;;  %v4045_v45 = vld [vmem:[%s5889_s5 + $0x8] sm:$0xff]   ;;  %v4053_v51 = vld [vmem:[%s5889_s5 + $0x10] sm:$0xff]   ;;  %v4058_v56 = vld [vmem:[%s5889_s5 + $0x58] sm:$0xff]  }
  0x12   :  { %3598 = vmatprep.subr.bf16.mxu1 %v4013_v17  ;;  %v4046_v46 = vld [vmem:[%s5889_s5 + $0xc8] sm:$0xff]   ;;  %v4056_v54 = vld [vmem:[%s5889_s5 + $0xd0] sm:$0xff]   ;;  %v4059_v57 = vld [vmem:[%s5889_s5 + $0x18] sm:$0xff]  }
  0x13   :  { %v4047_v47 = vld [vmem:[%s5889_s5 + $0x88] sm:$0xff]   ;;  %v4057_v55 = vld [vmem:[%s5889_s5 + $0x90] sm:$0xff]   ;;  %v4064_v60 = vld [vmem:[%s5889_s5 + $0xd8] sm:$0xff]  }
  0x14   :  { %3541 = vmatpush3.bf16.msra.mxu0 %v4014_v18  ;;  %v4051_v50 = vld [vmem:[%s5888_s0 + $0x4c] ss:$16 sps:$4 sm:$0xff]   ;;  %v4055_v53 = vld [vmem:[%s5888_s0 + $0x48] ss:$16 sps:$4 sm:$0xff]   ;;  %v4060_v58 = vld [vmem:[%s5888_s0 + $0x64] ss:$16 sps:$4 sm:$0xff]  }
  0x15   :  { %3599 = vmatpush3.bf16.msra.mxu1 %v4015_v19  ;;  %3542 = vmatprep.subr.bf16.mxu0 %v4016_v20  ;;  %v4062_v59 = vld [vmem:[%s5888_s0 + $0x6c] ss:$16 sps:$4 sm:$0xff]   ;;  %v4065_v61 = vld [vmem:[%s5888_s0 + $0x60] ss:$16 sps:$4 sm:$0xff]   ;;  %v4066_v62 = vld [vmem:[%s5888_s0 + $0x68] ss:$16 sps:$4 sm:$0xff]  }
  0x16   :  { %3600 = vmatprep.subr.bf16.mxu1 %v4017_v21  ;;  %v4067_v63 = vld [vmem:[%s5889_s5 + $0x98] sm:$0xff]   ;;  %v4068_v0 = vld [vmem:[%s5889_s5 + $0x60] sm:$0xff]   ;;  %v4078_v8 = vld [vmem:[%s5889_s5 + $0x68] sm:$0xff]  }
  0x17   :  { %v4069_v1 = vld [vmem:[%s5889_s5 + $0x20] sm:$0xff]   ;;  %v4073_v4 = vld [vmem:[%s5888_s0 + $0x8c] ss:$16 sps:$4 sm:$0xff]   ;;  %v4077_v7 = vld [vmem:[%s5888_s0 + $0x88] ss:$16 sps:$4 sm:$0xff]  }
  0x18   :  { %3543 = vmatpush3.bf16.msra.mxu0 %v4018_v22  ;;  %v4070_v2 = vld [vmem:[%s5889_s5 + $0xe0] sm:$0xff]   ;;  %v4079_v9 = vld [vmem:[%s5889_s5 + $0x28] sm:$0xff]   ;;  %v4088_v16 = vld [vmem:[%s5889_s5 + $0x70] sm:$0xff]  }
  0x19   :  { %3601 = vmatpush3.bf16.msra.mxu1 %v4019_v23  ;;  %3544 = vmatprep.subr.bf16.mxu0 %v4020_v24  ;;  %v4071_v3 = vld [vmem:[%s5888_s0 + $0x84] ss:$16 sps:$4 sm:$0xff]   ;;  %v4076_v6 = vld [vmem:[%s5888_s0 + $0x80] ss:$16 sps:$4 sm:$0xff]   ;;  %v4080_v10 = vld [vmem:[%s5889_s5 + $0xe8] sm:$0xff]  }
  0x1a   :  { %3602 = vmatprep.subr.bf16.mxu1 %v4021_v25  ;;  %v4075_v5 = vld [vmem:[%s5889_s5 + $0xa0] sm:$0xff]   ;;  %v4081_v11 = vld [vmem:[%s5889_s5 + $0xa8] sm:$0xff]   ;;  %v4089_v17 = vld [vmem:[%s5889_s5 + $0x30] sm:$0xff]  }
  0x1b   :  { %v4082_v12 = vld [vmem:[%s5888_s0 + $0xa4] ss:$16 sps:$4 sm:$0xff]   ;;  %v4084_v13 = vld [vmem:[%s5888_s0 + $0xac] ss:$16 sps:$4 sm:$0xff]   ;;  %v4086_v14 = vld [vmem:[%s5888_s0 + $0xa0] ss:$16 sps:$4 sm:$0xff]  }
  0x1c   :  { %3545 = vmatpush3.bf16.msra.mxu0 %v4022_v26  ;;  %v4087_v15 = vld [vmem:[%s5888_s0 + $0xa8] ss:$16 sps:$4 sm:$0xff]   ;;  %v4090_v18 = vld [vmem:[%s5889_s5 + $0xf0] sm:$0xff]   ;;  %v68_v20 = vld [vmem:[%s5888_s0 + $0xc0] sm:$0x11] }
  0x1d   :  { %3603 = vmatpush3.bf16.msra.mxu1 %v4023_v27  ;;  %3546 = vmatprep.subr.bf16.mxu0 %v4024_v28  ;;  %v4091_v19 = vld [vmem:[%s5889_s5 + $0xb0] sm:$0xff]   ;;  %v69_v21 = vld [vmem:[%s5888_s0 + $0xc8] sm:$0x11]  ;;  %v3213_v22 = vcombine.high %v68_v20, %v68_v20  ;;  %v4096_v24 = vld [vmem:[%s5889_s5 + $0x78] sm:$0xff]   ;;  %v3212_v27 = vcombine.low %v68_v20, %v68_v20 }
  0x1e   :  { %3604 = vmatprep.subr.bf16.mxu1 %v4025_v29  ;;  %v3215_v23 = vcombine.high %v69_v21, %v69_v21  ;;  %v4097_v25 = vld [vmem:[%s5889_s5 + $0x38] sm:$0xff]   ;;  %v3214_v29 = vcombine.low %v69_v21, %v69_v21  ;;  %v4100_v33 = vld [vmem:[%s5890_s1] ss:$16 sps:$4 sm:$0xff]  }
  0x1f   :  { %v4098_v26 = vld [vmem:[%s5889_s5 + $0xf8] sm:$0xff]  }
  0x20   :  { %3547 = vmatpush3.bf16.msra.mxu0 %v4026_v30  ;;  %v4099_v28 = vld [vmem:[%s5889_s5 + $0xb8] sm:$0xff]   ;;  %v4102_v30 = vld [vmem:[%s5890_s1 + $0x4] ss:$16 sps:$4 sm:$0xff]  }
  0x21   :  { %3605 = vmatpush3.bf16.msra.mxu1 %v4027_v31  ;;  %3648 = vmatprep.subr.bf16.mxu0 %v4034_v36  ;;  %v4105_v31 = vld [vmem:[%s5890_s1 + $0xc] ss:$16 sps:$4 sm:$0xff]   ;;  %v4103_v35 = vld [vmem:[%s5890_s1 + $0x8] ss:$16 sps:$4 sm:$0xff]   ;;  %v4107_v36 = vld [vmem:[%s5891_s6] sm:$0xff]  }
  0x22   :  { %3706 = vmatprep.subr.bf16.mxu1 %v4036_v38  ;;  %v4110_v38 = vld [vmem:[%s5890_s1 + $0x24] ss:$16 sps:$4 sm:$0xff]   ;;  %v4159_v20 = vld [vmem:[%s5890_s1 + $0xa8] ss:$16 sps:$4 sm:$0xff]  }
  0x23   :  { %499 = vmatmul.mubr.bf16.vlgmr.msra.gmra.mrb[0].mxu0 %v4028_v32  ;;  %v4106_v32 = vld [vmem:[%s5891_s6 + $0x40] sm:$0xff]   ;;  %v4169_v21 = vld [vmem:[%s5891_s6 + $0x38] sm:$0xff]  }
  0x24   :  { %587 = vmatmul.mubr.bf16.vlgmr.msra.gmra.mrb[0].mxu1 %v4031_v34  ;;  %3649 = vmatpush3.bf16.msra.mxu0 %v4035_v37  ;;  %v4108_v34 = vld [vmem:[%s5891_s6 + $0xc0] sm:$0xff]  }
  0x25   :  { %3707 = vmatpush3.bf16.msra.mxu1 %v4037_v39  ;;  %506 = vmatprep.mubr.bf16.mxu0 %v4038_v40  ;;  %v4109_v37 = vld [vmem:[%s5891_s6 + $0x80] sm:$0xff]   ;;  %v4112_v39 = vld [vmem:[%s5890_s1 + $0x2c] ss:$16 sps:$4 sm:$0xff]  }
  0x26   :  { %594 = vmatprep.mubr.bf16.mxu1 %v4040_v41  ;;  %3650 = vmatprep.subr.bf16.mxu0 %v4042_v42  ;;  %v4114_v40 = vld [vmem:[%s5891_s6 + $0x48] sm:$0xff]  }
  0x27   :  { %3708 = vmatprep.subr.bf16.mxu1 %v4046_v46  ;;  %v4117_v41 = vld [vmem:[%s5891_s6 + $0x8] sm:$0xff]  }
  0x28   :  { %3651 = vmatpush3.bf16.msra.mxu0 %v4045_v45  ;;  %v4118_v42 = vld [vmem:[%s5891_s6 + $0xc8] sm:$0xff]   ;;  %v4115_v45 = vld [vmem:[%s5890_s1 + $0x20] ss:$16 sps:$4 sm:$0xff]  }
  0x29   :  { %3709 = vmatpush3.bf16.msra.mxu1 %v4047_v47  ;;  %3652 = vmatprep.subr.bf16.mxu0 %v4048_v48  ;;  %v4116_v46 = vld [vmem:[%s5890_s1 + $0x28] ss:$16 sps:$4 sm:$0xff]   ;;  %v4121_v47 = vld [vmem:[%s5890_s1 + $0x44] ss:$16 sps:$4 sm:$0xff]   ;;  %v4123_v48 = vld [vmem:[%s5890_s1 + $0x4c] ss:$16 sps:$4 sm:$0xff]  }
  0x2a   :  { %3710 = vmatprep.subr.bf16.mxu1 %v4056_v54  ;;  %v4126_v54 = vld [vmem:[%s5890_s1 + $0x40] ss:$16 sps:$4 sm:$0xff]  }
  0x2b   :  { %507 = vmatmul.mubr.bf16.gmra.mrb[4].mxu0 %v4043_v43  ;;  %v4119_v43 = vld [vmem:[%s5891_s6 + $0x88] sm:$0xff]  }
  0x2c   :  { %595 = vmatmul.mubr.bf16.gmra.mrb[4].mxu1 %v4044_v44  ;;  %514 = vmatprep.mubr.bf16.mxu0 %v4049_v49  ;;  %v4120_v44 = vld [vmem:[%s5891_s6 + $0x50] sm:$0xff]  }
  0x2d   :  { %602 = vmatprep.mubr.bf16.mxu1 %v4051_v50  ;;  %3653 = vmatpush3.bf16.msra.mxu0 %v4053_v51  ;;  %v4125_v49 = vld [vmem:[%s5891_s6 + $0x10] sm:$0xff]  }
  0x2e   :  { %3711 = vmatpush3.bf16.msra.mxu1 %v4057_v55  ;;  %3654 = vmatprep.subr.bf16.mxu0 %v4058_v56  ;;  %v4128_v50 = vld [vmem:[%s5891_s6 + $0xd0] sm:$0xff]   ;;  %v4127_v55 = vld [vmem:[%s5890_s1 + $0x48] ss:$16 sps:$4 sm:$0xff]  }
  0x2f   :  { %3712 = vmatprep.subr.bf16.mxu1 %v4064_v60  ;;  %v4129_v51 = vld [vmem:[%s5891_s6 + $0x90] sm:$0xff]   ;;  %v4140_v60 = vld [vmem:[%s5891_s6 + $0x60] sm:$0xff]  }
  0x30   :  { %v4132_v56 = vld [vmem:[%s5890_s1 + $0x64] ss:$16 sps:$4 sm:$0xff]  }
  0x31   :  { %3655 = vmatpush3.bf16.msra.mxu0 %v4059_v57  ;;  %v4136_v57 = vld [vmem:[%s5891_s6 + $0xd8] sm:$0xff]  }
  0x32   :  { %3713 = vmatpush3.bf16.msra.mxu1 %v4067_v63  ;;  %3656 = vmatprep.subr.bf16.mxu0 %v4068_v0  ;;  %v4137_v63 = vld [vmem:[%s5890_s1 + $0x60] ss:$16 sps:$4 sm:$0xff]   ;;  %v4138_v0 = vld [vmem:[%s5890_s1 + $0x68] ss:$16 sps:$4 sm:$0xff]  }
  0x33   :  { %515 = vmatmul.mubr.bf16.gmra.mrb[8].mxu0 %v4054_v52  ;;  %3714 = vmatprep.subr.bf16.mxu1 %v4070_v2  ;;  %v4130_v52 = vld [vmem:[%s5891_s6 + $0x58] sm:$0xff]  }
  0x34   :  { %603 = vmatmul.mubr.bf16.gmra.mrb[8].mxu1 %v4055_v53  ;;  %522 = vmatprep.mubr.bf16.mxu0 %v4060_v58  ;;  %v4131_v53 = vld [vmem:[%s5891_s6 + $0x18] sm:$0xff]  }
  0x35   :  { %610 = vmatprep.mubr.bf16.mxu1 %v4062_v59  ;;  %3657 = vmatpush3.bf16.msra.mxu0 %v4069_v1  ;;  %v4134_v58 = vld [vmem:[%s5890_s1 + $0x6c] ss:$16 sps:$4 sm:$0xff]   ;;  %v4143_v1 = vld [vmem:[%s5890_s1 + $0x84] ss:$16 sps:$4 sm:$0xff]  }
  0x36   :  { %3715 = vmatpush3.bf16.msra.mxu1 %v4075_v5  ;;  %3658 = vmatprep.subr.bf16.mxu0 %v4078_v8  ;;  %v4139_v59 = vld [vmem:[%s5891_s6 + $0x98] sm:$0xff]   ;;  %v4151_v5 = vld [vmem:[%s5891_s6 + $0x28] sm:$0xff]   ;;  %v4148_v8 = vld [vmem:[%s5890_s1 + $0x80] ss:$16 sps:$4 sm:$0xff]  }
  0x37   :  { %3716 = vmatprep.subr.bf16.mxu1 %v4080_v10  ;;  %v4145_v2 = vld [vmem:[%s5890_s1 + $0x8c] ss:$16 sps:$4 sm:$0xff]   ;;  %v4154_v10 = vld [vmem:[%s5890_s1 + $0xa4] ss:$16 sps:$4 sm:$0xff]  }
  0x39   :  { %3659 = vmatpush3.bf16.msra.mxu0 %v4079_v9  ;;  %v4149_v9 = vld [vmem:[%s5890_s1 + $0x88] ss:$16 sps:$4 sm:$0xff]  }
  0x3a   :  { %3717 = vmatpush3.bf16.msra.mxu1 %v4081_v11  ;;  %3660 = vmatprep.subr.bf16.mxu0 %v4088_v16  ;;  %v4156_v11 = vld [vmem:[%s5890_s1 + $0xac] ss:$16 sps:$4 sm:$0xff]   ;;  %v666_v16 = vld [vmem:[%s5890_s1 + $0xc0] sm:$0x11] }
  0x3b   :  { %523 = vmatmul.mubr.bf16.gmra.mrb[12].mxu0 %v4065_v61  ;;  %3718 = vmatprep.subr.bf16.mxu1 %v4090_v18  ;;  %v4141_v61 = vld [vmem:[%s5891_s6 + $0x20] sm:$0xff]  }
  0x3c   :  { %611 = vmatmul.mubr.bf16.gmra.mrb[12].mxu1 %v4066_v62  ;;  %530 = vmatprep.mubr.bf16.mxu0 %v4071_v3  ;;  %v4142_v62 = vld [vmem:[%s5891_s6 + $0xe0] sm:$0xff]  }
  0x3d   :  { %618 = vmatprep.mubr.bf16.mxu1 %v4073_v4  ;;  %3661 = vmatpush3.bf16.msra.mxu0 %v4089_v17  ;;  %v4147_v3 = vld [vmem:[%s5891_s6 + $0xa0] sm:$0xff]   ;;  %v4150_v4 = vld [vmem:[%s5891_s6 + $0x68] sm:$0xff]  }
  0x3e   :  { %3719 = vmatpush3.bf16.msra.mxu1 %v4091_v19  ;;  %3662 = vmatprep.subr.bf16.mxu0 %v4096_v24  ;;  %v667_v17 = vld [vmem:[%s5890_s1 + $0xc8] sm:$0x11]  ;;  %v4158_v18 = vld [vmem:[%s5890_s1 + $0xa0] ss:$16 sps:$4 sm:$0xff]   ;;  %v4168_v19 = vld [vmem:[%s5891_s6 + $0x78] sm:$0xff]  }
  0x3f   :  { %3720 = vmatprep.subr.bf16.mxu1 %v4098_v26  ;;  %v4171_v24 = vld [vmem:[%s5891_s6 + $0xb8] sm:$0xff]   ;;  %v4178_v26 = vld [vmem:[%s5893_s7 + $0x40] sm:$0xff]  }
  0x41   :  { %3663 = vmatpush3.bf16.msra.mxu0 %v4097_v25  ;;  %v3275_v25 = vcombine.high %v667_v17, %v667_v17 }
  0x42   :  { %3721 = vmatpush3.bf16.msra.mxu1 %v4099_v28  ;;  %3764 = vmatprep.subr.bf16.mxu0 %v4106_v32  ;;  %v3272_v28 = vcombine.low %v666_v16, %v666_v16  ;;  %v4172_v32 = vld [vmem:[%s5892_s2] ss:$16 sps:$4 sm:$0xff]  }
  0x43   :  { %531 = vmatmul.mubr.bf16.gmra.mrb[16].mxu0 %v4076_v6  ;;  %3822 = vmatprep.subr.bf16.mxu1 %v4108_v34  ;;  %v4152_v6 = vld [vmem:[%s5891_s6 + $0xe8] sm:$0xff]   ;;  %v4179_v34 = vld [vmem:[%s5893_s7] sm:$0xff]  }
  0x44   :  { %619 = vmatmul.mubr.bf16.gmra.mrb[16].mxu1 %v4077_v7  ;;  %538 = vmatprep.mubr.bf16.mxu0 %v4082_v12  ;;  %v4153_v7 = vld [vmem:[%s5891_s6 + $0xa8] sm:$0xff]   ;;  %v4160_v12 = vld [vmem:[%s5891_s6 + $0x70] sm:$0xff]  }
  0x45   :  { %626 = vmatprep.mubr.bf16.mxu1 %v4084_v13  ;;  %v4161_v13 = vld [vmem:[%s5891_s6 + $0x30] sm:$0xff]  }
  0x4b   :  { %539 = vmatmul.mubr.bf16.gmra.mrb[20].mxu0 %v4086_v14  ;;  %v4162_v14 = vld [vmem:[%s5891_s6 + $0xf0] sm:$0xff]  }
  0x4c   :  { %627 = vmatmul.mubr.bf16.gmra.mrb[20].mxu1 %v4087_v15  ;;  %546 = vmatprep.mubr.bf16.mxu0 %v3213_v22  ;;  %v4163_v15 = vld [vmem:[%s5891_s6 + $0xb0] sm:$0xff]   ;;  %v4170_v22 = vld [vmem:[%s5891_s6 + $0xf8] sm:$0xff]  }
  0x4d   :  { %634 = vmatprep.mubr.bf16.mxu1 %v3215_v23  ;;  %v3273_v23 = vcombine.high %v666_v16, %v666_v16  ;;  %v4243_v16 = vld [vmem:[%s5893_s7 + $0xb8] sm:$0xff]  }
  0x53   :  { %547 = vmatmul.mubr.bf16.gmra.mrb[24].mxu0 %v3212_v27  ;;  %v4180_v27 = vld [vmem:[%s5893_s7 + $0xc0] sm:$0xff]  }
  0x54   :  { %635 = vmatmul.mubr.bf16.gmra.mrb[24].mxu1 %v3214_v29  ;;  %1090 = vmatprep.mubr.bf16.mxu0 %v4102_v30  ;;  %v3274_v29 = vcombine.low %v667_v17, %v667_v17  ;;  %v4174_v30 = vld [vmem:[%s5892_s2 + $0x4] ss:$16 sps:$4 sm:$0xff]   ;;  %v4228_v17 = vld [vmem:[%s5892_s2 + $0xac] ss:$16 sps:$4 sm:$0xff]  }
  0x55   :  { %1178 = vmatprep.mubr.bf16.mxu1 %v4105_v31  ;;  %v4177_v31 = vld [vmem:[%s5892_s2 + $0xc] ss:$16 sps:$4 sm:$0xff]  }
  0x5b   :  { %1091 = vmatmul.mubr.bf16.vlgmr.msra.gmra.mrb[28].mxu0 %v4100_v33  ;;  %v4175_v33 = vld [vmem:[%s5892_s2 + $0x8] ss:$16 sps:$4 sm:$0xff]  }
  0x5c   :  { %1179 = vmatmul.mubr.bf16.vlgmr.msra.gmra.mrb[28].mxu1 %v4103_v35  ;;  %3765 = vmatpush3.bf16.msra.mxu0 %v4107_v36  ;;  %v4181_v35 = vld [vmem:[%s5893_s7 + $0x80] sm:$0xff]  }
  0x5d   :  { %3823 = vmatpush3.bf16.msra.mxu1 %v4109_v37  ;;  %1098 = vmatprep.mubr.bf16.mxu0 %v4110_v38  ;;  %v4182_v36 = vld [vmem:[%s5892_s2 + $0x24] ss:$16 sps:$4 sm:$0xff]   ;;  %v4184_v37 = vld [vmem:[%s5892_s2 + $0x2c] ss:$16 sps:$4 sm:$0xff]  }
  0x5e   :  { %1186 = vmatprep.mubr.bf16.mxu1 %v4112_v39  ;;  %3766 = vmatprep.subr.bf16.mxu0 %v4114_v40  ;;  %v4186_v38 = vld [vmem:[%s5893_s7 + $0x48] sm:$0xff]  }
  0x5f   :  { %3824 = vmatprep.subr.bf16.mxu1 %v4118_v42  ;;  %v4189_v39 = vld [vmem:[%s5893_s7 + $0x8] sm:$0xff]   ;;  %v4187_v42 = vld [vmem:[%s5892_s2 + $0x20] ss:$16 sps:$4 sm:$0xff]  }
  0x60   :  { %3767 = vmatpush3.bf16.msra.mxu0 %v4117_v41  ;;  %v4190_v40 = vld [vmem:[%s5893_s7 + $0xc8] sm:$0xff]  }
  0x61   :  { %3825 = vmatpush3.bf16.msra.mxu1 %v4119_v43  ;;  %3768 = vmatprep.subr.bf16.mxu0 %v4120_v44  ;;  %v4191_v41 = vld [vmem:[%s5893_s7 + $0x88] sm:$0xff]   ;;  %v4192_v43 = vld [vmem:[%s5893_s7 + $0x50] sm:$0xff]  }
  0x62   :  { %3826 = vmatprep.subr.bf16.mxu1 %v4128_v50  ;;  %v4200_v44 = vld [vmem:[%s5893_s7 + $0xd0] sm:$0xff]   ;;  %v4202_v50 = vld [vmem:[%s5893_s7 + $0x58] sm:$0xff]  }
  0x63   :  { %1099 = vmatmul.mubr.bf16.gmra.mrb[32].mxu0 %v4115_v45  ;;  %v4188_v45 = vld [vmem:[%s5892_s2 + $0x28] ss:$16 sps:$4 sm:$0xff]  }
  0x64   :  { %1187 = vmatmul.mubr.bf16.gmra.mrb[32].mxu1 %v4116_v46  ;;  %1106 = vmatprep.mubr.bf16.mxu0 %v4121_v47  ;;  %v4193_v46 = vld [vmem:[%s5892_s2 + $0x44] ss:$16 sps:$4 sm:$0xff]   ;;  %v4195_v47 = vld [vmem:[%s5892_s2 + $0x4c] ss:$16 sps:$4 sm:$0xff]  }
  0x65   :  { %1194 = vmatprep.mubr.bf16.mxu1 %v4123_v48  ;;  %3769 = vmatpush3.bf16.msra.mxu0 %v4125_v49  ;;  %v4197_v48 = vld [vmem:[%s5893_s7 + $0x10] sm:$0xff]  }
  0x66   :  { %3770 = vmatprep.subr.bf16.mxu0 %v4130_v52  ;;  %3827 = vmatpush3.bf16.msra.mxu1 %v4129_v51  ;;  %v4201_v49 = vld [vmem:[%s5893_s7 + $0x90] sm:$0xff]   ;;  %v4208_v51 = vld [vmem:[%s5893_s7 + $0xd8] sm:$0xff]  }
  0x67   :  { %3828 = vmatprep.subr.bf16.mxu1 %v4136_v57  ;;  %v4203_v52 = vld [vmem:[%s5893_s7 + $0x18] sm:$0xff]   ;;  %v4212_v57 = vld [vmem:[%s5893_s7 + $0x60] sm:$0xff]  }
  0x69   :  { %3771 = vmatpush3.bf16.msra.mxu0 %v4131_v53  ;;  %v4198_v53 = vld [vmem:[%s5892_s2 + $0x40] ss:$16 sps:$4 sm:$0xff]  }
  0x6a   :  { %3829 = vmatpush3.bf16.msra.mxu1 %v4139_v59  ;;  %3772 = vmatprep.subr.bf16.mxu0 %v4140_v60  ;;  %v4206_v59 = vld [vmem:[%s5892_s2 + $0x6c] ss:$16 sps:$4 sm:$0xff]   ;;  %v4213_v60 = vld [vmem:[%s5893_s7 + $0x20] sm:$0xff]  }
  0x6b   :  { %1107 = vmatmul.mubr.bf16.gmra.mrb[36].mxu0 %v4126_v54  ;;  %3830 = vmatprep.subr.bf16.mxu1 %v4142_v62  ;;  %v4211_v54 = vld [vmem:[%s5893_s7 + $0x98] sm:$0xff]   ;;  %v4222_v62 = vld [vmem:[%s5893_s7 + $0x68] sm:$0xff]  }
  0x6c   :  { %1195 = vmatmul.mubr.bf16.gmra.mrb[36].mxu1 %v4127_v55  ;;  %1114 = vmatprep.mubr.bf16.mxu0 %v4132_v56  ;;  %v4199_v55 = vld [vmem:[%s5892_s2 + $0x48] ss:$16 sps:$4 sm:$0xff]   ;;  %v4204_v56 = vld [vmem:[%s5892_s2 + $0x64] ss:$16 sps:$4 sm:$0xff]  }
  0x6d   :  { %1202 = vmatprep.mubr.bf16.mxu1 %v4134_v58  ;;  %3773 = vmatpush3.bf16.msra.mxu0 %v4141_v61  ;;  %v4214_v58 = vld [vmem:[%s5893_s7 + $0xe0] sm:$0xff]  }
  0x6e   :  { %3831 = vmatpush3.bf16.msra.mxu1 %v4147_v3  ;;  %3774 = vmatprep.subr.bf16.mxu0 %v4150_v4  ;;  %v4219_v61 = vld [vmem:[%s5893_s7 + $0xa0] sm:$0xff]   ;;  %v4210_v3 = vld [vmem:[%s5892_s2 + $0x68] ss:$16 sps:$4 sm:$0xff]  }
  0x6f   :  { %3832 = vmatprep.subr.bf16.mxu1 %v4152_v6  ;;  %v4215_v4 = vld [vmem:[%s5892_s2 + $0x84] ss:$16 sps:$4 sm:$0xff]  }
  0x70   :  { %v4232_v6 = vld [vmem:[%s5893_s7 + $0x70] sm:$0xff]  }
  0x71   :  { %3775 = vmatpush3.bf16.msra.mxu0 %v4151_v5  ;;  %v4217_v5 = vld [vmem:[%s5892_s2 + $0x8c] ss:$16 sps:$4 sm:$0xff]  }
  0x72   :  { %3833 = vmatpush3.bf16.msra.mxu1 %v4153_v7  ;;  %3776 = vmatprep.subr.bf16.mxu0 %v4160_v12  ;;  %v4233_v7 = vld [vmem:[%s5893_s7 + $0x30] sm:$0xff]   ;;  %v4221_v12 = vld [vmem:[%s5892_s2 + $0x88] ss:$16 sps:$4 sm:$0xff]  }
  0x73   :  { %1115 = vmatmul.mubr.bf16.gmra.mrb[40].mxu0 %v4137_v63  ;;  %3834 = vmatprep.subr.bf16.mxu1 %v4162_v14  ;;  %v4224_v63 = vld [vmem:[%s5893_s7 + $0xe8] sm:$0xff]   ;;  %v4241_v14 = vld [vmem:[%s5893_s7 + $0x38] sm:$0xff]  }
  0x74   :  { %1203 = vmatmul.mubr.bf16.gmra.mrb[40].mxu1 %v4138_v0  ;;  %1122 = vmatprep.mubr.bf16.mxu0 %v4143_v1  ;;  %v4209_v0 = vld [vmem:[%s5892_s2 + $0x60] ss:$16 sps:$4 sm:$0xff]   ;;  %v4223_v1 = vld [vmem:[%s5893_s7 + $0x28] sm:$0xff]  }
  0x75   :  { %1210 = vmatprep.mubr.bf16.mxu1 %v4145_v2  ;;  %3777 = vmatpush3.bf16.msra.mxu0 %v4161_v13  ;;  %v4225_v2 = vld [vmem:[%s5893_s7 + $0xa8] sm:$0xff]   ;;  %v4226_v13 = vld [vmem:[%s5892_s2 + $0xa4] ss:$16 sps:$4 sm:$0xff]  }
  0x76   :  { %3835 = vmatpush3.bf16.msra.mxu1 %v4163_v15  ;;  %3778 = vmatprep.subr.bf16.mxu0 %v4168_v19  ;;  %v4242_v15 = vld [vmem:[%s5893_s7 + $0xf8] sm:$0xff]   ;;  %v1259_v19 = vld [vmem:[%s5892_s2 + $0xc8] sm:$0x11] }
  0x77   :  { %3836 = vmatprep.subr.bf16.mxu1 %v4170_v22 }
  0x79   :  { %3779 = vmatpush3.bf16.msra.mxu0 %v4169_v21  ;;  %v4231_v21 = vld [vmem:[%s5892_s2 + $0xa8] ss:$16 sps:$4 sm:$0xff]  }
  0x7a   :  { %3837 = vmatpush3.bf16.msra.mxu1 %v4171_v24  ;;  %3880 = vmatprep.subr.bf16.mxu0 %v4178_v26  ;;  %v4246_v26 = vld [vmem:[%s5894_s3 + $0x4] ss:$16 sps:$4 sm:$0xff]  }
  0x7b   :  { %1123 = vmatmul.mubr.bf16.gmra.mrb[44].mxu0 %v4148_v8  ;;  %3938 = vmatprep.subr.bf16.mxu1 %v4180_v27  ;;  %v4234_v8 = vld [vmem:[%s5893_s7 + $0xf0] sm:$0xff]   ;;  %v4249_v27 = vld [vmem:[%s5894_s3 + $0xc] ss:$16 sps:$4 sm:$0xff]  }
  0x7c   :  { %1211 = vmatmul.mubr.bf16.gmra.mrb[44].mxu1 %v4149_v9  ;;  %1130 = vmatprep.mubr.bf16.mxu0 %v4154_v10  ;;  %v4235_v9 = vld [vmem:[%s5893_s7 + $0xb0] sm:$0xff]  }
  0x7d   :  { %1218 = vmatprep.mubr.bf16.mxu1 %v4156_v11  ;;  %v4220_v10 = vld [vmem:[%s5892_s2 + $0x80] ss:$16 sps:$4 sm:$0xff]   ;;  %v4240_v11 = vld [vmem:[%s5893_s7 + $0x78] sm:$0xff]  }
  0x83   :  { %1131 = vmatmul.mubr.bf16.gmra.mrb[48].mxu0 %v4158_v18  ;;  %v1258_v18 = vld [vmem:[%s5892_s2 + $0xc0] sm:$0x11] }
  0x84   :  { %1219 = vmatmul.mubr.bf16.gmra.mrb[48].mxu1 %v4159_v20  ;;  %1138 = vmatprep.mubr.bf16.mxu0 %v3273_v23  ;;  %v4230_v20 = vld [vmem:[%s5892_s2 + $0xa0] ss:$16 sps:$4 sm:$0xff]   ;;  %v3333_v22 = vcombine.high %v1258_v18, %v1258_v18  ;;  %v3335_v23 = vcombine.high %v1259_v19, %v1259_v19  ;;  %v3332_v24 = vcombine.low %v1258_v18, %v1258_v18 }
  0x85   :  { %1226 = vmatprep.mubr.bf16.mxu1 %v3275_v25  ;;  %v3334_v25 = vcombine.low %v1259_v19, %v1259_v19 }
  0x8b   :  { %1139 = vmatmul.mubr.bf16.gmra.mrb[52].mxu0 %v3272_v28  ;;  %v4244_v28 = vld [vmem:[%s5894_s3] ss:$16 sps:$4 sm:$0xff]  }
  0x8c   :  { %1227 = vmatmul.mubr.bf16.gmra.mrb[52].mxu1 %v3274_v29  ;;  %1682 = vmatprep.mubr.bf16.mxu0 %v4174_v30  ;;  %v4247_v29 = vld [vmem:[%s5894_s3 + $0x8] ss:$16 sps:$4 sm:$0xff]   ;;  %v4250_v30 = vld [vmem:[%s5894_s3 + $0x24] ss:$16 sps:$4 sm:$0xff]  }
  0x8d   :  { %1770 = vmatprep.mubr.bf16.mxu1 %v4177_v31  ;;  %v4252_v31 = vld [vmem:[%s5894_s3 + $0x2c] ss:$16 sps:$4 sm:$0xff]  }
  0x93   :  { %1683 = vmatmul.mubr.bf16.vlgmr.msra.gmra.mrb[56].mxu0 %v4172_v32  ;;  %v4254_v32 = vld [vmem:[%s5894_s3 + $0x20] ss:$16 sps:$4 sm:$0xff]  }
  0x94   :  { %1771 = vmatmul.mubr.bf16.vlgmr.msra.gmra.mrb[56].mxu1 %v4175_v33  ;;  %3881 = vmatpush3.bf16.msra.mxu0 %v4179_v34  ;;  %v4255_v33 = vld [vmem:[%s5894_s3 + $0x28] ss:$16 sps:$4 sm:$0xff]   ;;  %v4256_v34 = vld [vmem:[%s5894_s3 + $0x44] ss:$16 sps:$4 sm:$0xff]  }
  0x95   :  { %3939 = vmatpush3.bf16.msra.mxu1 %v4181_v35  ;;  %1690 = vmatprep.mubr.bf16.mxu0 %v4182_v36  ;;  %v4258_v35 = vld [vmem:[%s5894_s3 + $0x4c] ss:$16 sps:$4 sm:$0xff]   ;;  %v4260_v36 = vld [vmem:[%s5894_s3 + $0x40] ss:$16 sps:$4 sm:$0xff]  }
  0x96   :  { %1778 = vmatprep.mubr.bf16.mxu1 %v4184_v37  ;;  %3882 = vmatprep.subr.bf16.mxu0 %v4186_v38  ;;  %v4261_v37 = vld [vmem:[%s5894_s3 + $0x48] ss:$16 sps:$4 sm:$0xff]   ;;  %v4262_v38 = vld [vmem:[%s5894_s3 + $0x64] ss:$16 sps:$4 sm:$0xff]  }
  0x97   :  { %3940 = vmatprep.subr.bf16.mxu1 %v4190_v40  ;;  %v4266_v40 = vld [vmem:[%s5894_s3 + $0x60] ss:$16 sps:$4 sm:$0xff]  }
  0x98   :  { %3883 = vmatpush3.bf16.msra.mxu0 %v4189_v39  ;;  %v4264_v39 = vld [vmem:[%s5894_s3 + $0x6c] ss:$16 sps:$4 sm:$0xff]  }
  0x99   :  { %3941 = vmatpush3.bf16.msra.mxu1 %v4191_v41  ;;  %3884 = vmatprep.subr.bf16.mxu0 %v4192_v43  ;;  %v4267_v41 = vld [vmem:[%s5894_s3 + $0x68] ss:$16 sps:$4 sm:$0xff]   ;;  %v4270_v43 = vld [vmem:[%s5894_s3 + $0x8c] ss:$16 sps:$4 sm:$0xff]  }
  0x9a   :  { %3942 = vmatprep.subr.bf16.mxu1 %v4200_v44  ;;  %v4272_v44 = vld [vmem:[%s5894_s3 + $0x80] ss:$16 sps:$4 sm:$0xff]  }
  0x9b   :  { %1691 = vmatmul.mubr.bf16.gmra.mrb[60].mxu0 %v4187_v42  ;;  %v4268_v42 = vld [vmem:[%s5894_s3 + $0x84] ss:$16 sps:$4 sm:$0xff]  }
  0x9c   :  { %1779 = vmatmul.mubr.bf16.gmra.mrb[60].mxu1 %v4188_v45  ;;  %1698 = vmatprep.mubr.bf16.mxu0 %v4193_v46  ;;  %v4273_v45 = vld [vmem:[%s5894_s3 + $0x88] ss:$16 sps:$4 sm:$0xff]   ;;  %v4274_v46 = vld [vmem:[%s5894_s3 + $0xa4] ss:$16 sps:$4 sm:$0xff]  }
  0x9d   :  { %1786 = vmatprep.mubr.bf16.mxu1 %v4195_v47  ;;  %3885 = vmatpush3.bf16.msra.mxu0 %v4197_v48  ;;  %v4276_v47 = vld [vmem:[%s5894_s3 + $0xac] ss:$16 sps:$4 sm:$0xff]   ;;  %v1850_v48 = vld [vmem:[%s5894_s3 + $0xc0] sm:$0x11] }
  0x9e   :  { %3943 = vmatpush3.bf16.msra.mxu1 %v4201_v49  ;;  %3886 = vmatprep.subr.bf16.mxu0 %v4202_v50  ;;  %v1851_v49 = vld [vmem:[%s5894_s3 + $0xc8] sm:$0x11]  ;;  %v4278_v50 = vld [vmem:[%s5894_s3 + $0xa0] ss:$16 sps:$4 sm:$0xff]  }
  0x9f   :  { %3944 = vmatprep.subr.bf16.mxu1 %v4208_v51  ;;  %v4279_v51 = vld [vmem:[%s5894_s3 + $0xa8] ss:$16 sps:$4 sm:$0xff]  }
  0xa1   :  { %3887 = vmatpush3.bf16.msra.mxu0 %v4203_v52  ;;  %v3393_v52 = vcombine.high %v1850_v48, %v1850_v48 }
  0xa2   :  { %3945 = vmatpush3.bf16.msra.mxu1 %v4211_v54  ;;  %3888 = vmatprep.subr.bf16.mxu0 %v4212_v57 }
  0xa3   :  { %1699 = vmatmul.mubr.bf16.gmra.mrb[64].mxu0 %v4198_v53  ;;  %3946 = vmatprep.subr.bf16.mxu1 %v4214_v58  ;;  %v3395_v53 = vcombine.high %v1851_v49, %v1851_v49  ;;  %v3392_v58 = vcombine.low %v1850_v48, %v1850_v48 }
  0xa4   :  { %1787 = vmatmul.mubr.bf16.gmra.mrb[64].mxu1 %v4199_v55  ;;  %1706 = vmatprep.mubr.bf16.mxu0 %v4204_v56  ;;  %v5061_v56 = vld [vmem:[%s5895_s8] ss:$0 sm:$0xff] }
  0xa5   :  { %1794 = vmatprep.mubr.bf16.mxu1 %v4206_v59  ;;  %3889 = vmatpush3.bf16.msra.mxu0 %v4213_v60 }
  0xa6   :  { %3947 = vmatpush3.bf16.msra.mxu1 %v4219_v61  ;;  %3890 = vmatprep.subr.bf16.mxu0 %v4222_v62  ;;  %v3394_v62 = vcombine.low %v1851_v49, %v1851_v49 }
  0xa7   :  { %3948 = vmatprep.subr.bf16.mxu1 %v4224_v63 }
  0xa9   :  { %3891 = vmatpush3.bf16.msra.mxu0 %v4223_v1 }
  0xaa   :  { %3949 = vmatpush3.bf16.msra.mxu1 %v4225_v2  ;;  %3892 = vmatprep.subr.bf16.mxu0 %v4232_v6 }
  0xab   :  { %1707 = vmatmul.mubr.bf16.gmra.mrb[68].mxu0 %v4209_v0  ;;  %3950 = vmatprep.subr.bf16.mxu1 %v4234_v8 }
  0xac   :  { %1795 = vmatmul.mubr.bf16.gmra.mrb[68].mxu1 %v4210_v3  ;;  %1714 = vmatprep.mubr.bf16.mxu0 %v4215_v4 }
  0xad   :  { %1802 = vmatprep.mubr.bf16.mxu1 %v4217_v5  ;;  %3893 = vmatpush3.bf16.msra.mxu0 %v4233_v7 }
  0xae   :  { %3951 = vmatpush3.bf16.msra.mxu1 %v4235_v9  ;;  %3894 = vmatprep.subr.bf16.mxu0 %v4240_v11 }
  0xaf   :  { %3952 = vmatprep.subr.bf16.mxu1 %v4242_v15 }
  0xb1   :  { %3895 = vmatpush3.bf16.msra.mxu0 %v4241_v14 }
  0xb2   :  { %3953 = vmatpush3.bf16.msra.mxu1 %v4243_v16 }
  0xb3   :  { %1715 = vmatmul.mubr.bf16.gmra.mrb[72].mxu0 %v4220_v10 }
  0xb4   :  { %1803 = vmatmul.mubr.bf16.gmra.mrb[72].mxu1 %v4221_v12  ;;  %1722 = vmatprep.mubr.bf16.mxu0 %v4226_v13 }
  0xb5   :  { %1810 = vmatprep.mubr.bf16.mxu1 %v4228_v17 }
  0xbb   :  { %1723 = vmatmul.mubr.bf16.gmra.mrb[76].mxu0 %v4230_v20 }
  0xbc   :  { %1811 = vmatmul.mubr.bf16.gmra.mrb[76].mxu1 %v4231_v21  ;;  %1730 = vmatprep.mubr.bf16.mxu0 %v3333_v22 }
  0xbd   :  { %1818 = vmatprep.mubr.bf16.mxu1 %v3335_v23 }
  0xc3   :  { %1731 = vmatmul.mubr.bf16.gmra.mrb[80].mxu0 %v3332_v24 }
  0xc4   :  { %1819 = vmatmul.mubr.bf16.gmra.mrb[80].mxu1 %v3334_v25  ;;  %2274 = vmatprep.mubr.bf16.mxu0 %v4246_v26 }
  0xc5   :  { %2362 = vmatprep.mubr.bf16.mxu1 %v4249_v27 }
  0xcb   :  { %2275 = vmatmul.mubr.bf16.vlgmr.msra.gmra.mrb[84].mxu0 %v4244_v28 }
  0xcc   :  { %2363 = vmatmul.mubr.bf16.vlgmr.msra.gmra.mrb[84].mxu1 %v4247_v29  ;;  %2282 = vmatprep.mubr.bf16.mxu0 %v4250_v30 }
  0xcd   :  { %2370 = vmatprep.mubr.bf16.mxu1 %v4252_v31 }
  0xd3   :  { %2283 = vmatmul.mubr.bf16.gmra.mrb[88].mxu0 %v4254_v32 }
  0xd4   :  { %2371 = vmatmul.mubr.bf16.gmra.mrb[88].mxu1 %v4255_v33  ;;  %2290 = vmatprep.mubr.bf16.mxu0 %v4256_v34 }
  0xd5   :  { %2378 = vmatprep.mubr.bf16.mxu1 %v4258_v35 }
  0xdb   :  { %2291 = vmatmul.mubr.bf16.gmra.mrb[92].mxu0 %v4260_v36 }
  0xdc   :  { %2379 = vmatmul.mubr.bf16.gmra.mrb[92].mxu1 %v4261_v37  ;;  %2298 = vmatprep.mubr.bf16.mxu0 %v4262_v38 }
  0xdd   :  { %2386 = vmatprep.mubr.bf16.mxu1 %v4264_v39 }
  0xe3   :  { %2299 = vmatmul.mubr.bf16.gmra.mrb[96].mxu0 %v4266_v40 }
  0xe4   :  { %2387 = vmatmul.mubr.bf16.gmra.mrb[96].mxu1 %v4267_v41  ;;  %2306 = vmatprep.mubr.bf16.mxu0 %v4268_v42 }
  0xe5   :  { %2394 = vmatprep.mubr.bf16.mxu1 %v4270_v43 }
  0xeb   :  { %2307 = vmatmul.mubr.bf16.gmra.mrb[100].mxu0 %v4272_v44 }
  0xec   :  { %2395 = vmatmul.mubr.bf16.gmra.mrb[100].mxu1 %v4273_v45  ;;  %2314 = vmatprep.mubr.bf16.mxu0 %v4274_v46 }
  0xed   :  { %2402 = vmatprep.mubr.bf16.mxu1 %v4276_v47 }
  0xf3   :  { %2315 = vmatmul.mubr.bf16.gmra.mrb[104].mxu0 %v4278_v50 }
  0xf4   :  { %2403 = vmatmul.mubr.bf16.gmra.mrb[104].mxu1 %v4279_v51  ;;  %2322 = vmatprep.mubr.bf16.mxu0 %v3393_v52 }
  0xf5   :  { %2410 = vmatprep.mubr.bf16.mxu1 %v3395_v53 }
  0xf6   :  { %v3548_v54 = vpop.f32.mrb[0].mxu0 }
  0xf7   :  { %v3606_v55 = vpop.f32.mrb[0].mxu1  ;;  %v3549_v57 = vpop.f32.mrb[1].mxu0 }
  0xf8   :  { %v3550_v59 = vadd.f32 %v3549_v57, %v3548_v54  ;;  %v3607_v60 = vpop.f32.mrb[1].mxu1  ;;  %v3551_v61 = vpop.f32.mrb[2].mxu0 }
  0xf9   :  { %v3608_v63 = vadd.f32 %v3607_v60, %v3606_v55  ;;  %v3609_v0 = vpop.f32.mrb[2].mxu1  ;;  %v3552_v1 = vpop.f32.mrb[3].mxu0 }
  0xfa   :  { %v501_v2 = vadd.f32 %v3550_v59, %v5061_v56  ;;  %v3553_v3 = vadd.f32 %v3552_v1, %v3551_v61  ;;  %v3610_v4 = vpop.f32.mrb[3].mxu1 }
  0xfb   :  { %v3611_v5 = vadd.f32 %v3610_v4, %v3609_v0  ;;  %2323 = vmatmul.mubr.bf16.gmra.mrb[108].mxu0 %v3392_v58 }
  0xfc   :  { %v5064_v6 = vadd.f32 %v3608_v63, %v501_v2  ;;  %v504_v7 = vadd.f32 %v3553_v3, %v5061_v56  ;;  %2411 = vmatmul.mubr.bf16.gmra.mrb[108].mxu1 %v3394_v62 }
  0xfe   :  { %v5067_v8 = vadd.f32 %v3611_v5, %v504_v7  ;;  %v3554_v9 = vpop.f32.mrb[4].mxu0  ;;  %v2451_v23 = vmul.f32 %v5064_v6, %v5064_v6  ;;  %v2419_v27 = vsel %vm2418_vm0, %v5064_v6, 0.0 }
  0xff   :  { %v3612_v10 = vpop.f32.mrb[4].mxu1  ;;  %v3555_v11 = vpop.f32.mrb[5].mxu0 }
 0x100   :  { %v3556_v12 = vadd.f32 %v3555_v11, %v3554_v9  ;;  %v3613_v13 = vpop.f32.mrb[5].mxu1  ;;  %v3557_v14 = vpop.f32.mrb[6].mxu0  ;;  %v2452_v18 = vmul.f32 %v5067_v8, %v5067_v8  ;;  %v2420_v24 = vsel %vm2418_vm0, %v5067_v8, 0.0  ;;  %v2464_v36 = vsel %vm2418_vm0, %v2451_v23, 0.0 }
 0x101   :  { %v3614_v15 = vadd.f32 %v3613_v13, %v3612_v10  ;;  %v3615_v16 = vpop.f32.mrb[6].mxu1  ;;  %v3558_v17 = vpop.f32.mrb[7].mxu0  ;;  %v2421_v33 = vadd.f32 %v2420_v24, %v2419_v27 }
 0x102   :  { %v509_v19 = vadd.f32 %v3556_v12, %v5061_v56  ;;  %v3559_v20 = vadd.f32 %v3558_v17, %v3557_v14  ;;  %v3616_v21 = vpop.f32.mrb[7].mxu1  ;;  %v2465_v28 = vsel %vm2418_vm0, %v2452_v18, 0.0 }
 0x103   :  { %v3617_v22 = vadd.f32 %v3616_v21, %v3615_v16  ;;  %v2466_v42 = vadd.f32 %v2465_v28, %v2464_v36 }
 0x104   :  { %v5076_v25 = vadd.f32 %v3614_v15, %v509_v19  ;;  %v512_v26 = vadd.f32 %v3559_v20, %v5061_v56 }
 0x106   :  { %v2422_v29 = vsel %vm2418_vm0, %v5076_v25, 0.0  ;;  %v2453_v30 = vmul.f32 %v5076_v25, %v5076_v25  ;;  %v5086_v31 = vadd.f32 %v3617_v22, %v512_v26  ;;  %v3560_v32 = vpop.f32.mrb[8].mxu0 }
 0x107   :  { %v3618_v34 = vpop.f32.mrb[8].mxu1  ;;  %v3561_v35 = vpop.f32.mrb[9].mxu0  ;;  %v2423_v43 = vadd.f32 %v2422_v29, %v2421_v33 }
 0x108   :  { %v2467_v37 = vsel %vm2418_vm0, %v2453_v30, 0.0  ;;  %v2454_v38 = vmul.f32 %v5086_v31, %v5086_v31  ;;  %v3562_v39 = vadd.f32 %v3561_v35, %v3560_v32  ;;  %v3619_v40 = vpop.f32.mrb[9].mxu1  ;;  %v3563_v41 = vpop.f32.mrb[10].mxu0  ;;  %v2424_v47 = vsel %vm2418_vm0, %v5086_v31, 0.0 }
 0x109   :  { %v3620_v44 = vadd.f32 %v3619_v40, %v3618_v34  ;;  %v3621_v45 = vpop.f32.mrb[10].mxu1  ;;  %v3564_v46 = vpop.f32.mrb[11].mxu0  ;;  %v2468_v51 = vadd.f32 %v2467_v37, %v2466_v42  ;;  %v2425_v57 = vadd.f32 %v2424_v47, %v2423_v43 }
 0x10a   :  { %v517_v48 = vadd.f32 %v3562_v39, %v5061_v56  ;;  %v3565_v49 = vadd.f32 %v3564_v46, %v3563_v41  ;;  %v3622_v50 = vpop.f32.mrb[11].mxu1  ;;  %v2469_v53 = vsel %vm2418_vm0, %v2454_v38, 0.0 }
 0x10b   :  { %v3623_v52 = vadd.f32 %v3622_v50, %v3621_v45  ;;  %v2470_v62 = vadd.f32 %v2469_v53, %v2468_v51 }
 0x10c   :  { %v5096_v54 = vadd.f32 %v3620_v44, %v517_v48  ;;  %v520_v55 = vadd.f32 %v3565_v49, %v5061_v56 }
 0x10e   :  { %v2426_v58 = vsel %vm2418_vm0, %v5096_v54, 0.0  ;;  %v2455_v59 = vmul.f32 %v5096_v54, %v5096_v54  ;;  %v5103_v60 = vadd.f32 %v3623_v52, %v520_v55  ;;  %v3566_v61 = vpop.f32.mrb[12].mxu0 }
 0x10f   :  { %v2427_v63 = vadd.f32 %v2426_v58, %v2425_v57  ;;  %v3624_v0 = vpop.f32.mrb[12].mxu1  ;;  %v3567_v1 = vpop.f32.mrb[13].mxu0 }
 0x110   :  { %v2471_v2 = vsel %vm2418_vm0, %v2455_v59, 0.0  ;;  %v2428_v3 = vsel %vm2418_vm0, %v5103_v60, 0.0  ;;  %v2456_v4 = vmul.f32 %v5103_v60, %v5103_v60  ;;  %v3568_v5 = vadd.f32 %v3567_v1, %v3566_v61  ;;  %v3625_v7 = vpop.f32.mrb[13].mxu1  ;;  %v3569_v9 = vpop.f32.mrb[14].mxu0 }
 0x111   :  { %v2472_v10 = vadd.f32 %v2471_v2, %v2470_v62  ;;  %v2429_v11 = vadd.f32 %v2428_v3, %v2427_v63  ;;  %v3626_v12 = vadd.f32 %v3625_v7, %v3624_v0  ;;  %v3627_v13 = vpop.f32.mrb[14].mxu1  ;;  %v3570_v14 = vpop.f32.mrb[15].mxu0 }
 0x112   :  { %v2473_v15 = vsel %vm2418_vm0, %v2456_v4, 0.0  ;;  %v525_v16 = vadd.f32 %v3568_v5, %v5061_v56  ;;  %v3571_v17 = vadd.f32 %v3570_v14, %v3569_v9  ;;  %v3628_v18 = vpop.f32.mrb[15].mxu1 }
 0x113   :  { %v2474_v19 = vadd.f32 %v2473_v15, %v2472_v10  ;;  %v3629_v20 = vadd.f32 %v3628_v18, %v3627_v13 }
 0x114   :  { %v5112_v21 = vadd.f32 %v3626_v12, %v525_v16  ;;  %v528_v22 = vadd.f32 %v3571_v17, %v5061_v56 }
 0x116   :  { %v2430_v23 = vsel %vm2418_vm0, %v5112_v21, 0.0  ;;  %v2457_v24 = vmul.f32 %v5112_v21, %v5112_v21  ;;  %v5119_v26 = vadd.f32 %v3629_v20, %v528_v22  ;;  %v3572_v27 = vpop.f32.mrb[16].mxu0 }
 0x117   :  { %v2431_v28 = vadd.f32 %v2430_v23, %v2429_v11  ;;  %v3630_v29 = vpop.f32.mrb[16].mxu1  ;;  %v3573_v30 = vpop.f32.mrb[17].mxu0 }
 0x118   :  { %v2475_v32 = vsel %vm2418_vm0, %v2457_v24, 0.0  ;;  %v2432_v33 = vsel %vm2418_vm0, %v5119_v26, 0.0  ;;  %v2458_v34 = vmul.f32 %v5119_v26, %v5119_v26  ;;  %v3574_v35 = vadd.f32 %v3573_v30, %v3572_v27  ;;  %v3631_v36 = vpop.f32.mrb[17].mxu1  ;;  %v3575_v37 = vpop.f32.mrb[18].mxu0 }
 0x119   :  { %v2476_v38 = vadd.f32 %v2475_v32, %v2474_v19  ;;  %v2433_v39 = vadd.f32 %v2432_v33, %v2431_v28  ;;  %v3632_v40 = vadd.f32 %v3631_v36, %v3630_v29  ;;  %v3633_v41 = vpop.f32.mrb[18].mxu1  ;;  %v3576_v42 = vpop.f32.mrb[19].mxu0 }
 0x11a   :  { %v2477_v43 = vsel %vm2418_vm0, %v2458_v34, 0.0  ;;  %v533_v44 = vadd.f32 %v3574_v35, %v5061_v56  ;;  %v3577_v45 = vadd.f32 %v3576_v42, %v3575_v37  ;;  %v3634_v46 = vpop.f32.mrb[19].mxu1 }
 0x11b   :  { %v2478_v47 = vadd.f32 %v2477_v43, %v2476_v38  ;;  %v3635_v48 = vadd.f32 %v3634_v46, %v3633_v41 }
 0x11c   :  { %v5128_v49 = vadd.f32 %v3632_v40, %v533_v44  ;;  %v536_v50 = vadd.f32 %v3577_v45, %v5061_v56 }
 0x11e   :  { %v2434_v51 = vsel %vm2418_vm0, %v5128_v49, 0.0  ;;  %v2459_v52 = vmul.f32 %v5128_v49, %v5128_v49  ;;  %v5135_v53 = vadd.f32 %v3635_v48, %v536_v50  ;;  %v3578_v55 = vpop.f32.mrb[20].mxu0 }
 0x11f   :  { %v2435_v57 = vadd.f32 %v2434_v51, %v2433_v39  ;;  %v3636_v58 = vpop.f32.mrb[20].mxu1  ;;  %v3579_v59 = vpop.f32.mrb[21].mxu0 }
 0x120   :  { %v2479_v61 = vsel %vm2418_vm0, %v2459_v52, 0.0  ;;  %v2436_v62 = vsel %vm2418_vm0, %v5135_v53, 0.0  ;;  %v2460_v63 = vmul.f32 %v5135_v53, %v5135_v53  ;;  %v3580_v0 = vadd.f32 %v3579_v59, %v3578_v55  ;;  %v3637_v1 = vpop.f32.mrb[21].mxu1  ;;  %v3581_v2 = vpop.f32.mrb[22].mxu0 }
 0x121   :  { %v2480_v3 = vadd.f32 %v2479_v61, %v2478_v47  ;;  %v2437_v4 = vadd.f32 %v2436_v62, %v2435_v57  ;;  %v3638_v5 = vadd.f32 %v3637_v1, %v3636_v58  ;;  %v3639_v7 = vpop.f32.mrb[22].mxu1  ;;  %v3582_v9 = vpop.f32.mrb[23].mxu0 }
 0x122   :  { %v2481_v10 = vsel %vm2418_vm0, %v2460_v63, 0.0  ;;  %v541_v11 = vadd.f32 %v3580_v0, %v5061_v56  ;;  %v3583_v12 = vadd.f32 %v3582_v9, %v3581_v2  ;;  %v3640_v13 = vpop.f32.mrb[23].mxu1 }
 0x123   :  { %v2482_v14 = vadd.f32 %v2481_v10, %v2480_v3  ;;  %v3641_v15 = vadd.f32 %v3640_v13, %v3639_v7 }
 0x124   :  { %v5144_v16 = vadd.f32 %v3638_v5, %v541_v11  ;;  %v544_v17 = vadd.f32 %v3583_v12, %v5061_v56 }
 0x126   :  { %v2438_v18 = vsel %vm2418_vm0, %v5144_v16, 0.0  ;;  %v2461_v19 = vmul.f32 %v5144_v16, %v5144_v16  ;;  %v5151_v20 = vadd.f32 %v3641_v15, %v544_v17  ;;  %v3584_v22 = vpop.f32.mrb[24].mxu0 }
 0x127   :  { %v2439_v23 = vadd.f32 %v2438_v18, %v2437_v4  ;;  %v3642_v24 = vpop.f32.mrb[24].mxu1  ;;  %v3585_v27 = vpop.f32.mrb[25].mxu0 }
 0x128   :  { %v2483_v28 = vsel %vm2418_vm0, %v2461_v19, 0.0  ;;  %v2440_v29 = vsel %vm2418_vm0, %v5151_v20, 0.0  ;;  %v2462_v30 = vmul.f32 %v5151_v20, %v5151_v20  ;;  %v3586_v32 = vadd.f32 %v3585_v27, %v3584_v22  ;;  %v3643_v33 = vpop.f32.mrb[25].mxu1  ;;  %v3587_v34 = vpop.f32.mrb[26].mxu0 }
 0x129   :  { %v2484_v35 = vadd.f32 %v2483_v28, %v2482_v14  ;;  %v2441_v36 = vadd.f32 %v2440_v29, %v2439_v23  ;;  %v3644_v37 = vadd.f32 %v3643_v33, %v3642_v24  ;;  %v3645_v38 = vpop.f32.mrb[26].mxu1  ;;  %v3588_v39 = vpop.f32.mrb[27].mxu0 }
 0x12a   :  { %v2485_v40 = vsel %vm2418_vm0, %v2462_v30, 0.0  ;;  %v549_v41 = vadd.f32 %v3586_v32, %v5061_v56  ;;  %v3646_v42 = vpop.f32.mrb[27].mxu1 }
 0x12b   :  { %v2486_v43 = vadd.f32 %v2485_v40, %v2484_v35 }
 0x12c   :  { %v5160_v44 = vadd.f32 %v3644_v37, %v549_v41 }
 0x12e   :  { %v2443_v45 = vsel %vm2442_vm1, %v5160_v44, 0.0  ;;  %v2463_v46 = vmul.f32 %v5160_v44, %v5160_v44  ;;  %v3664_v47 = vpop.f32.mrb[28].mxu0 }
 0x12f   :  { %v5166_v48 = vadd.f32 %v2443_v45, %v2441_v36  ;;  %v3722_v50 = vpop.f32.mrb[28].mxu1  ;;  %v3665_v51 = vpop.f32.mrb[29].mxu0 }
 0x130   :  { %v2487_v52 = vsel %vm2442_vm1, %v2463_v46, 0.0  ;;  %v3666_v55 = vadd.f32 %v3665_v51, %v3664_v47  ;;  %v3723_v57 = vpop.f32.mrb[29].mxu1  ;;  %v3667_v58 = vpop.f32.mrb[30].mxu0 }
 0x131   :  { %v5169_v59 = vadd.f32 %v2487_v52, %v2486_v43  ;;  %v3724_v61 = vadd.f32 %v3723_v57, %v3722_v50  ;;  %v3725_v62 = vpop.f32.mrb[30].mxu1  ;;  %v3668_v63 = vpop.f32.mrb[31].mxu0 }
 0x132   :  { %v1093_v0 = vadd.f32 %v3666_v55, %v5061_v56  ;;  %v3669_v1 = vadd.f32 %v3668_v63, %v3667_v58  ;;  %v3726_v2 = vpop.f32.mrb[31].mxu1 }
 0x133   :  { %v3727_v3 = vadd.f32 %v3726_v2, %v3725_v62 }
 0x134   :  { %v5172_v4 = vadd.f32 %v3724_v61, %v1093_v0  ;;  %v1096_v5 = vadd.f32 %v3669_v1, %v5061_v56 }
 0x136   :  { %v5175_v7 = vadd.f32 %v3727_v3, %v1096_v5  ;;  %v3670_v9 = vpop.f32.mrb[32].mxu0  ;;  %v2527_v38 = vmul.f32 %v5172_v4, %v5172_v4  ;;  %v2495_v50 = vsel %vm2418_vm0, %v5172_v4, 0.0 }
 0x137   :  { %v3728_v10 = vpop.f32.mrb[32].mxu1  ;;  %v3671_v11 = vpop.f32.mrb[33].mxu0 }
 0x138   :  { %v3672_v12 = vadd.f32 %v3671_v11, %v3670_v9  ;;  %v3729_v13 = vpop.f32.mrb[33].mxu1  ;;  %v3673_v14 = vpop.f32.mrb[34].mxu0  ;;  %v2528_v34 = vmul.f32 %v5175_v7, %v5175_v7  ;;  %v2496_v42 = vsel %vm2418_vm0, %v5175_v7, 0.0  ;;  %v2540_v62 = vsel %vm2418_vm0, %v2527_v38, 0.0 }
 0x139   :  { %v3730_v15 = vadd.f32 %v3729_v13, %v3728_v10  ;;  %v3731_v17 = vpop.f32.mrb[34].mxu1  ;;  %v3674_v18 = vpop.f32.mrb[35].mxu0  ;;  %v2497_v61 = vadd.f32 %v2496_v42, %v2495_v50 }
 0x13a   :  { %v1101_v19 = vadd.f32 %v3672_v12, %v5061_v56  ;;  %v3675_v22 = vadd.f32 %v3674_v18, %v3673_v14  ;;  %v3732_v23 = vpop.f32.mrb[35].mxu1  ;;  %v2541_v52 = vsel %vm2418_vm0, %v2528_v34, 0.0 }
 0x13b   :  { %v3733_v24 = vadd.f32 %v3732_v23, %v3731_v17  ;;  %v2542_v3 = vadd.f32 %v2541_v52, %v2540_v62 }
 0x13c   :  { %v5178_v27 = vadd.f32 %v3730_v15, %v1101_v19  ;;  %v1104_v28 = vadd.f32 %v3675_v22, %v5061_v56 }
 0x13e   :  { %v5181_v29 = vadd.f32 %v3733_v24, %v1104_v28  ;;  %v3676_v30 = vpop.f32.mrb[36].mxu0  ;;  %v2529_v43 = vmul.f32 %v5178_v27, %v5178_v27  ;;  %v2498_v55 = vsel %vm2418_vm0, %v5178_v27, 0.0 }
 0x13f   :  { %v3734_v32 = vpop.f32.mrb[36].mxu1  ;;  %v3677_v33 = vpop.f32.mrb[37].mxu0  ;;  %v2499_v5 = vadd.f32 %v2498_v55, %v2497_v61 }
 0x140   :  { %v3678_v35 = vadd.f32 %v3677_v33, %v3676_v30  ;;  %v3735_v36 = vpop.f32.mrb[37].mxu1  ;;  %v3679_v37 = vpop.f32.mrb[38].mxu0  ;;  %v2543_v63 = vsel %vm2418_vm0, %v2529_v43, 0.0  ;;  %v2530_v0 = vmul.f32 %v5181_v29, %v5181_v29  ;;  %v2500_v11 = vsel %vm2418_vm0, %v5181_v29, 0.0 }
 0x141   :  { %v3736_v39 = vadd.f32 %v3735_v36, %v3734_v32  ;;  %v3737_v40 = vpop.f32.mrb[38].mxu1  ;;  %v3680_v41 = vpop.f32.mrb[39].mxu0  ;;  %v2544_v17 = vadd.f32 %v2543_v63, %v2542_v3  ;;  %v2501_v33 = vadd.f32 %v2500_v11, %v2499_v5 }
 0x142   :  { %v1109_v45 = vadd.f32 %v3678_v35, %v5061_v56  ;;  %v3681_v46 = vadd.f32 %v3680_v41, %v3679_v37  ;;  %v3738_v47 = vpop.f32.mrb[39].mxu1  ;;  %v2545_v23 = vsel %vm2418_vm0, %v2530_v0, 0.0 }
 0x143   :  { %v3739_v51 = vadd.f32 %v3738_v47, %v3737_v40 }
 0x144   :  { %v5197_v57 = vadd.f32 %v3736_v39, %v1109_v45  ;;  %v1112_v58 = vadd.f32 %v3681_v46, %v5061_v56  ;;  %v2546_v39 = vadd.f32 %v2545_v23, %v2544_v17 }
 0x146   :  { %v5204_v1 = vadd.f32 %v3739_v51, %v1112_v58  ;;  %v3682_v2 = vpop.f32.mrb[40].mxu0  ;;  %v2531_v12 = vmul.f32 %v5197_v57, %v5197_v57  ;;  %v2502_v24 = vsel %vm2418_vm0, %v5197_v57, 0.0 }
 0x147   :  { %v3740_v9 = vpop.f32.mrb[40].mxu1  ;;  %v3683_v10 = vpop.f32.mrb[41].mxu0  ;;  %v2503_v40 = vadd.f32 %v2502_v24, %v2501_v33 }
 0x148   :  { %v3684_v13 = vadd.f32 %v3683_v10, %v3682_v2  ;;  %v3741_v14 = vpop.f32.mrb[41].mxu1  ;;  %v3685_v15 = vpop.f32.mrb[42].mxu0  ;;  %v2547_v35 = vsel %vm2418_vm0, %v2531_v12, 0.0  ;;  %v2532_v36 = vmul.f32 %v5204_v1, %v5204_v1  ;;  %v2504_v41 = vsel %vm2418_vm0, %v5204_v1, 0.0 }
 0x149   :  { %v3742_v18 = vadd.f32 %v3741_v14, %v3740_v9  ;;  %v3743_v19 = vpop.f32.mrb[42].mxu1  ;;  %v3686_v22 = vpop.f32.mrb[43].mxu0  ;;  %v2548_v46 = vadd.f32 %v2547_v35, %v2546_v39  ;;  %v2505_v62 = vadd.f32 %v2504_v41, %v2503_v40 }
 0x14a   :  { %v1117_v28 = vadd.f32 %v3684_v13, %v5061_v56  ;;  %v3687_v30 = vadd.f32 %v3686_v22, %v3685_v15  ;;  %v3744_v32 = vpop.f32.mrb[43].mxu1  ;;  %v2549_v51 = vsel %vm2418_vm0, %v2532_v36, 0.0 }
 0x14b   :  { %v3745_v34 = vadd.f32 %v3744_v32, %v3743_v19  ;;  %v2550_v12 = vadd.f32 %v2549_v51, %v2548_v46 }
 0x14c   :  { %v5217_v37 = vadd.f32 %v3742_v18, %v1117_v28  ;;  %v1120_v38 = vadd.f32 %v3687_v30, %v5061_v56 }
 0x14e   :  { %v2533_v42 = vmul.f32 %v5217_v37, %v5217_v37  ;;  %v5224_v43 = vadd.f32 %v3745_v34, %v1120_v38  ;;  %v3688_v45 = vpop.f32.mrb[44].mxu0  ;;  %v2506_v52 = vsel %vm2418_vm0, %v5217_v37, 0.0 }
 0x14f   :  { %v3746_v47 = vpop.f32.mrb[44].mxu1  ;;  %v3689_v50 = vpop.f32.mrb[45].mxu0  ;;  %v2507_v13 = vadd.f32 %v2506_v52, %v2505_v62 }
 0x150   :  { %v3690_v55 = vadd.f32 %v3689_v50, %v3688_v45  ;;  %v3747_v58 = vpop.f32.mrb[45].mxu1  ;;  %v3691_v61 = vpop.f32.mrb[46].mxu0  ;;  %v2551_v3 = vsel %vm2418_vm0, %v2533_v42, 0.0  ;;  %v2534_v5 = vmul.f32 %v5224_v43, %v5224_v43  ;;  %v2508_v15 = vsel %vm2418_vm0, %v5224_v43, 0.0 }
 0x151   :  { %v3748_v63 = vadd.f32 %v3747_v58, %v3746_v47  ;;  %v3749_v0 = vpop.f32.mrb[46].mxu1  ;;  %v3692_v2 = vpop.f32.mrb[47].mxu0  ;;  %v2552_v19 = vadd.f32 %v2551_v3, %v2550_v12  ;;  %v2509_v32 = vadd.f32 %v2508_v15, %v2507_v13 }
 0x152   :  { %v1125_v9 = vadd.f32 %v3690_v55, %v5061_v56  ;;  %v3693_v10 = vadd.f32 %v3692_v2, %v3691_v61  ;;  %v3750_v11 = vpop.f32.mrb[47].mxu1  ;;  %v2553_v22 = vsel %vm2418_vm0, %v2534_v5, 0.0 }
 0x153   :  { %v3751_v14 = vadd.f32 %v3750_v11, %v3749_v0  ;;  %v2554_v41 = vadd.f32 %v2553_v22, %v2552_v19  ;;  %v2445_v11 = vrot.slane %v5166_v48, 4 }
 0x154   :  { %v5235_v17 = vadd.f32 %v3748_v63, %v1125_v9  ;;  %v1128_v18 = vadd.f32 %v3693_v10, %v5061_v56 }
 0x156   :  { %v2510_v23 = vsel %vm2418_vm0, %v5235_v17, 0.0  ;;  %v2535_v24 = vmul.f32 %v5235_v17, %v5235_v17  ;;  %v5243_v28 = vadd.f32 %v3751_v14, %v1128_v18  ;;  %v3694_v30 = vpop.f32.mrb[48].mxu0 }
 0x157   :  { %v3752_v33 = vpop.f32.mrb[48].mxu1  ;;  %v3695_v34 = vpop.f32.mrb[49].mxu0  ;;  %v2511_v42 = vadd.f32 %v2510_v23, %v2509_v32  ;;  %v2489_v32 = vrot.slane %v5169_v59, 4 }
 0x158   :  { %v2555_v35 = vsel %vm2418_vm0, %v2535_v24, 0.0  ;;  %v2536_v36 = vmul.f32 %v5243_v28, %v5243_v28  ;;  %v3696_v38 = vadd.f32 %v3695_v34, %v3694_v30  ;;  %v3753_v39 = vpop.f32.mrb[49].mxu1  ;;  %v3697_v40 = vpop.f32.mrb[50].mxu0  ;;  %v2512_v50 = vsel %vm2418_vm0, %v5243_v28, 0.0 }
 0x159   :  { %v3754_v45 = vadd.f32 %v3753_v39, %v3752_v33  ;;  %v3755_v46 = vpop.f32.mrb[50].mxu1  ;;  %v3698_v47 = vpop.f32.mrb[51].mxu0  ;;  %v2556_v58 = vadd.f32 %v2555_v35, %v2554_v41  ;;  %v2513_v2 = vadd.f32 %v2512_v50, %v2511_v42  ;;  %v2446_v42 = vadd.f32 %v2445_v11, %v5166_v48 }
 0x15a   :  { %v1133_v51 = vadd.f32 %v3696_v38, %v5061_v56  ;;  %v3699_v52 = vadd.f32 %v3698_v47, %v3697_v40  ;;  %v3756_v55 = vpop.f32.mrb[51].mxu1  ;;  %v2557_v62 = vsel %vm2418_vm0, %v2536_v36, 0.0  ;;  %v2490_v47 = vadd.f32 %v2489_v32, %v5169_v59 }
 0x15b   :  { %v3757_v61 = vadd.f32 %v3756_v55, %v3755_v46  ;;  %v2558_v12 = vadd.f32 %v2557_v62, %v2556_v58  ;;  %v2447_v55 = vrot.slane %v2446_v42, 2 }
 0x15c   :  { %v5252_v63 = vadd.f32 %v3754_v45, %v1133_v51  ;;  %v1136_v0 = vadd.f32 %v3699_v52, %v5061_v56 }
 0x15e   :  { %v2514_v3 = vsel %vm2418_vm0, %v5252_v63, 0.0  ;;  %v2537_v5 = vmul.f32 %v5252_v63, %v5252_v63  ;;  %v5259_v9 = vadd.f32 %v3757_v61, %v1136_v0  ;;  %v3700_v10 = vpop.f32.mrb[52].mxu0 }
 0x15f   :  { %v2515_v13 = vadd.f32 %v2514_v3, %v2513_v2  ;;  %v3758_v14 = vpop.f32.mrb[52].mxu1  ;;  %v3701_v15 = vpop.f32.mrb[53].mxu0 }
 0x160   :  { %v2559_v18 = vsel %vm2418_vm0, %v2537_v5, 0.0  ;;  %v2516_v19 = vsel %vm2418_vm0, %v5259_v9, 0.0  ;;  %v2538_v22 = vmul.f32 %v5259_v9, %v5259_v9  ;;  %v3702_v23 = vadd.f32 %v3701_v15, %v3700_v10  ;;  %v3759_v24 = vpop.f32.mrb[53].mxu1  ;;  %v3703_v30 = vpop.f32.mrb[54].mxu0 }
 0x161   :  { %v2560_v33 = vadd.f32 %v2559_v18, %v2558_v12  ;;  %v2517_v34 = vadd.f32 %v2516_v19, %v2515_v13  ;;  %v3760_v35 = vadd.f32 %v3759_v24, %v3758_v14  ;;  %v3761_v36 = vpop.f32.mrb[54].mxu1  ;;  %v3704_v38 = vpop.f32.mrb[55].mxu0  ;;  %v2491_v5 = vrot.slane %v2490_v47, 2 }
 0x162   :  { %v2561_v39 = vsel %vm2418_vm0, %v2538_v22, 0.0  ;;  %v1141_v40 = vadd.f32 %v3702_v23, %v5061_v56  ;;  %v3762_v41 = vpop.f32.mrb[55].mxu1  ;;  %v2448_v19 = vadd.f32 %v2447_v55, %v2446_v42 }
 0x163   :  { %v2562_v45 = vadd.f32 %v2561_v39, %v2560_v33  ;;  %v2492_v33 = vadd.f32 %v2491_v5, %v2490_v47 }
 0x164   :  { %v5271_v46 = vadd.f32 %v3760_v35, %v1141_v40  ;;  %v2449_v39 = vrot.slane %v2448_v19, 1 }
 0x165   :  { %v2493_v55 = vrot.slane %v2492_v33, 1 }
 0x166   :  { %v2518_v50 = vsel %vm2442_vm1, %v5271_v46, 0.0  ;;  %v2539_v51 = vmul.f32 %v5271_v46, %v5271_v46  ;;  %v3780_v52 = vpop.f32.mrb[56].mxu0  ;;  %v2450_v5 = vadd.f32 %v2449_v39, %v2448_v19 }
 0x167   :  { %v2519_v58 = vadd.f32 %v2518_v50, %v2517_v34  ;;  %v3838_v61 = vpop.f32.mrb[56].mxu1  ;;  %v3781_v62 = vpop.f32.mrb[57].mxu0 }
 0x168   :  { %v2563_v0 = vsel %vm2442_vm1, %v2539_v51, 0.0  ;;  %v3782_v2 = vadd.f32 %v3781_v62, %v3780_v52  ;;  %v3839_v48 = vpop.f32.mrb[57].mxu1  ;;  %v3783_v3 = vpop.f32.mrb[58].mxu0 }
 0x169   :  { %v2520_v10 = vrot.slane %v2519_v58, 4  ;;  %v2564_v11 = vadd.f32 %v2563_v0, %v2562_v45  ;;  %v3840_v59 = vadd.f32 %v3839_v48, %v3838_v61  ;;  %v3841_v12 = vpop.f32.mrb[58].mxu1  ;;  %v3784_v13 = vpop.f32.mrb[59].mxu0 }
 0x16a   :  { %v1685_v14 = vadd.f32 %v3782_v2, %v5061_v56  ;;  %v3785_v15 = vadd.f32 %v3784_v13, %v3783_v3  ;;  %v3842_v18 = vpop.f32.mrb[59].mxu1 }
 0x16b   :  { %v2521_v22 = vadd.f32 %v2520_v10, %v2519_v58  ;;  %v2565_v23 = vrot.slane %v2564_v11, 4  ;;  %v3843_v24 = vadd.f32 %v3842_v18, %v3841_v12 }
 0x16c   :  { %v5280_v30 = vadd.f32 %v3840_v59, %v1685_v14  ;;  %v1688_v32 = vadd.f32 %v3785_v15, %v5061_v56  ;;  %v2494_v14 = vadd.f32 %v2493_v55, %v2492_v33 }
 0x16d   :  { %v2522_v34 = vrot.slane %v2521_v22, 2  ;;  %v2566_v35 = vadd.f32 %v2565_v23, %v2564_v11 }
 0x16e   :  { %v5283_v36 = vadd.f32 %v3843_v24, %v1688_v32  ;;  %v3786_v38 = vpop.f32.mrb[60].mxu0 }
 0x16f   :  { %v2523_v40 = vadd.f32 %v2522_v34, %v2521_v22  ;;  %v2567_v41 = vrot.slane %v2566_v35, 2  ;;  %v3844_v45 = vpop.f32.mrb[60].mxu1  ;;  %v3787_v50 = vpop.f32.mrb[61].mxu0 }
 0x170   :  { %5920 = vst [vmem:[#allocation2_spill] sm:$0xff] %v5283_v36  ;;  %v3788_v51 = vadd.f32 %v3787_v50, %v3786_v38  ;;  %v3845_v42 = vpop.f32.mrb[61].mxu1  ;;  %v3789_v52 = vpop.f32.mrb[62].mxu0 }
 0x171   :  { %v2524_v58 = vrot.slane %v2523_v40, 1  ;;  %v2568_v61 = vadd.f32 %v2567_v41, %v2566_v35  ;;  %v3846_v62 = vadd.f32 %v3845_v42, %v3844_v45  ;;  %v3847_v0 = vpop.f32.mrb[62].mxu1  ;;  %v3790_v2 = vpop.f32.mrb[63].mxu0 }
 0x172   :  { %v1693_v47 = vadd.f32 %v3788_v51, %v5061_v56  ;;  %v3791_v48 = vadd.f32 %v3790_v2, %v3789_v52  ;;  %v3848_v3 = vpop.f32.mrb[63].mxu1 }
 0x173   :  { %v2525_v10 = vadd.f32 %v2524_v58, %v2523_v40  ;;  %v2569_v11 = vrot.slane %v2568_v61, 1  ;;  %v3849_v59 = vadd.f32 %v3848_v3, %v3847_v0 }
 0x174   :  { %v5286_v12 = vadd.f32 %v3846_v62, %v1693_v47  ;;  %v1696_v13 = vadd.f32 %v3791_v48, %v5061_v56 }
 0x175   :  { %v5289_v15 = vadd.f32 %v2525_v10, %v2450_v5  ;;  %v2570_v18 = vadd.f32 %v2569_v11, %v2568_v61 }
 0x176   :  { %5921 = vst [vmem:[#allocation3_spill] sm:$0xff] %v5286_v12  ;;  %v5291_v22 = vadd.f32 %v3849_v59, %v1696_v13  ;;  %v3792_v23 = vpop.f32.mrb[64].mxu0 }
 0x177   :  { %v5293_v24 = vadd.f32 %v2570_v18, %v2494_v14  ;;  %v3850_v32 = vpop.f32.mrb[64].mxu1  ;;  %v3793_v34 = vpop.f32.mrb[65].mxu0 }
 0x178   :  { %5922 = vst [vmem:[#allocation4_spill] sm:$0xff] %v5291_v22  ;;  %v3794_v35 = vadd.f32 %v3793_v34, %v3792_v23  ;;  %v3851_v19 = vpop.f32.mrb[65].mxu1  ;;  %v3795_v38 = vpop.f32.mrb[66].mxu0 }
 0x179   :  { %v3852_v39 = vadd.f32 %v3851_v19, %v3850_v32  ;;  %v3853_v40 = vpop.f32.mrb[66].mxu1  ;;  %v3796_v41 = vpop.f32.mrb[67].mxu0 }
 0x17a   :  { %v1701_v45 = vadd.f32 %v3794_v35, %v5061_v56  ;;  %v3797_v50 = vadd.f32 %v3796_v41, %v3795_v38  ;;  %v3854_v33 = vpop.f32.mrb[67].mxu1 }
 0x17b   :  { %v3855_v51 = vadd.f32 %v3854_v33, %v3853_v40 }
 0x17c   :  { %v5296_v42 = vadd.f32 %v3852_v39, %v1701_v45  ;;  %v1704_v52 = vadd.f32 %v3797_v50, %v5061_v56 }
 0x17e   :  { %5923 = vst [vmem:[#allocation5_spill] sm:$0xff] %v5296_v42  ;;  %v5299_v55 = vadd.f32 %v3855_v51, %v1704_v52  ;;  %v3798_v58 = vpop.f32.mrb[68].mxu0 }
 0x17f   :  { %v3856_v61 = vpop.f32.mrb[68].mxu1  ;;  %v3799_v62 = vpop.f32.mrb[69].mxu0 }
 0x180   :  { %5924 = vst [vmem:[#allocation6_spill] sm:$0xff] %v5299_v55  ;;  %v3800_v0 = vadd.f32 %v3799_v62, %v3798_v58  ;;  %v3857_v2 = vpop.f32.mrb[69].mxu1  ;;  %v3801_v47 = vpop.f32.mrb[70].mxu0 }
 0x181   :  { %v3858_v48 = vadd.f32 %v3857_v2, %v3856_v61  ;;  %v3859_v3 = vpop.f32.mrb[70].mxu1  ;;  %v3802_v5 = vpop.f32.mrb[71].mxu0 }
 0x182   :  { %v1709_v10 = vadd.f32 %v3800_v0, %v5061_v56  ;;  %v3803_v11 = vadd.f32 %v3802_v5, %v3801_v47  ;;  %v3860_v59 = vpop.f32.mrb[71].mxu1 }
 0x183   :  { %v3861_v13 = vadd.f32 %v3860_v59, %v3859_v3 }
 0x184   :  { %v5302_v14 = vadd.f32 %v3858_v48, %v1709_v10  ;;  %v1712_v18 = vadd.f32 %v3803_v11, %v5061_v56 }
 0x186   :  { %5925 = vst [vmem:[#allocation7_spill] sm:$0xff] %v5302_v14  ;;  %v5305_v23 = vadd.f32 %v3861_v13, %v1712_v18  ;;  %v3804_v32 = vpop.f32.mrb[72].mxu0 }
 0x187   :  { %v3862_v34 = vpop.f32.mrb[72].mxu1  ;;  %v3805_v35 = vpop.f32.mrb[73].mxu0 }
 0x188   :  { %5926 = vst [vmem:[#allocation8_spill] sm:$0xff] %v5305_v23  ;;  %v3806_v19 = vadd.f32 %v3805_v35, %v3804_v32  ;;  %v3863_v38 = vpop.f32.mrb[73].mxu1  ;;  %v3807_v39 = vpop.f32.mrb[74].mxu0 }
 0x189   :  { %v3864_v40 = vadd.f32 %v3863_v38, %v3862_v34  ;;  %v3865_v41 = vpop.f32.mrb[74].mxu1  ;;  %v3808_v45 = vpop.f32.mrb[75].mxu0 }
 0x18a   :  { %v1717_v50 = vadd.f32 %v3806_v19, %v5061_v56  ;;  %v3809_v33 = vadd.f32 %v3808_v45, %v3807_v39  ;;  %v3866_v51 = vpop.f32.mrb[75].mxu1 }
 0x18b   :  { %v3867_v52 = vadd.f32 %v3866_v51, %v3865_v41 }
 0x18c   :  { %v5308_v58 = vadd.f32 %v3864_v40, %v1717_v50  ;;  %v1720_v61 = vadd.f32 %v3809_v33, %v5061_v56 }
 0x18e   :  { %5927 = vst [vmem:[#allocation9_spill] sm:$0xff] %v5308_v58  ;;  %v5311_v62 = vadd.f32 %v3867_v52, %v1720_v61  ;;  %v3810_v0 = vpop.f32.mrb[76].mxu0 }
 0x18f   :  { %v3868_v2 = vpop.f32.mrb[76].mxu1  ;;  %v3811_v47 = vpop.f32.mrb[77].mxu0 }
 0x190   :  { %5928 = vst [vmem:[#allocation10_spill] sm:$0xff] %v5311_v62  ;;  %v3812_v48 = vadd.f32 %v3811_v47, %v3810_v0  ;;  %v3869_v3 = vpop.f32.mrb[77].mxu1  ;;  %v3813_v5 = vpop.f32.mrb[78].mxu0  ;;  %v2573_v47 = vsel %vm2418_vm0, %v5283_v36, 0.0 }
 0x191   :  { %v3870_v10 = vadd.f32 %v3869_v3, %v3868_v2  ;;  %v3871_v11 = vpop.f32.mrb[78].mxu1  ;;  %v3814_v59 = vpop.f32.mrb[79].mxu0 }
 0x192   :  { %v1725_v13 = vadd.f32 %v3812_v48, %v5061_v56  ;;  %v3815_v18 = vadd.f32 %v3814_v59, %v3813_v5  ;;  %v3872_v32 = vpop.f32.mrb[79].mxu1  ;;  %v2605_v48 = vmul.f32 %v5283_v36, %v5283_v36  ;;  %v2604_v5 = vmul.f32 %v5280_v30, %v5280_v30 }
 0x193   :  { %v3873_v34 = vadd.f32 %v3872_v32, %v3871_v11  ;;  %v2572_v11 = vsel %vm2418_vm0, %v5280_v30, 0.0  ;;  %v2575_v59 = vsel %vm2418_vm0, %v5286_v12, 0.0 }
 0x194   :  { %v5314_v35 = vadd.f32 %v3870_v10, %v1725_v13  ;;  %v1728_v19 = vadd.f32 %v3815_v18, %v5061_v56  ;;  %v2606_v10 = vmul.f32 %v5286_v12, %v5286_v12  ;;  %v2574_v18 = vadd.f32 %v2573_v47, %v2572_v11 }
 0x196   :  { %v5317_v38 = vadd.f32 %v3873_v34, %v1728_v19  ;;  %v3816_v39 = vpop.f32.mrb[80].mxu0  ;;  %v2618_v19 = vsel %vm2418_vm0, %v2605_v48, 0.0 }
 0x197   :  { %v3874_v40 = vpop.f32.mrb[80].mxu1  ;;  %v3817_v41 = vpop.f32.mrb[81].mxu0 }
 0x198   :  { %v3818_v45 = vadd.f32 %v3817_v41, %v3816_v39  ;;  %v3875_v50 = vpop.f32.mrb[81].mxu1  ;;  %v3819_v33 = vpop.f32.mrb[82].mxu0 }
 0x199   :  { %v3876_v51 = vadd.f32 %v3875_v50, %v3874_v40  ;;  %v3877_v52 = vpop.f32.mrb[82].mxu1  ;;  %v3820_v61 = vpop.f32.mrb[83].mxu0  ;;  %v2576_v50 = vadd.f32 %v2575_v59, %v2574_v18  ;;  %v2620_v33 = vsel %vm2418_vm0, %v2606_v10, 0.0  ;;  %v2608_v10 = vmul.f32 %v5296_v42, %v5296_v42 }
 0x19a   :  { %v1733_v0 = vadd.f32 %v3818_v45, %v5061_v56  ;;  %v3878_v2 = vpop.f32.mrb[83].mxu1  ;;  %v2617_v45 = vsel %vm2418_vm0, %v2604_v5, 0.0  ;;  %v2579_v5 = vsel %vm2418_vm0, %v5296_v42, 0.0 }
 0x19b   :  { %v2607_v2 = vmul.f32 %v5291_v22, %v5291_v22 }
 0x19c   :  { %v5324_v3 = vadd.f32 %v3876_v51, %v1733_v0  ;;  %v2577_v0 = vsel %vm2418_vm0, %v5291_v22, 0.0 }
 0x19d   :  { %v2622_v22 = vsel %vm2418_vm0, %v2607_v2, 0.0 }
 0x19e   :  { %v3896_v13 = vpop.f32.mrb[84].mxu0 }
 0x19f   :  { %v3954_v32 = vpop.f32.mrb[84].mxu1  ;;  %v3897_v34 = vpop.f32.mrb[85].mxu0 }
 0x1a0   :  { %v3898_v39 = vadd.f32 %v3897_v34, %v3896_v13  ;;  %v3955_v40 = vpop.f32.mrb[85].mxu1  ;;  %v3899_v41 = vpop.f32.mrb[86].mxu0  ;;  %v2619_v13 = vadd.f32 %v2618_v19, %v2617_v45 }
 0x1a1   :  { %v3956_v51 = vadd.f32 %v3955_v40, %v3954_v32  ;;  %v3957_v52 = vpop.f32.mrb[86].mxu1  ;;  %v3900_v61 = vpop.f32.mrb[87].mxu0  ;;  %v2578_v40 = vadd.f32 %v2577_v0, %v2576_v50 }
 0x1a2   :  { %v2277_v47 = vadd.f32 %v3898_v39, %v5061_v56  ;;  %v3901_v48 = vadd.f32 %v3900_v61, %v3899_v41  ;;  %v3958_v11 = vpop.f32.mrb[87].mxu1  ;;  %v2621_v32 = vadd.f32 %v2620_v33, %v2619_v13  ;;  %v2581_v61 = vsel %vm2418_vm0, %v5299_v55, 0.0 }
 0x1a3   :  { %v3959_v34 = vadd.f32 %v3958_v11, %v3957_v52  ;;  %v2580_v41 = vadd.f32 %v2579_v5, %v2578_v40  ;;  %v2624_v52 = vsel %vm2418_vm0, %v2608_v10, 0.0  ;;  %v2583_v11 = vsel %vm2418_vm0, %v5302_v14, 0.0 }
 0x1a4   :  { %v5346_v59 = vadd.f32 %v3956_v51, %v2277_v47  ;;  %v2280_v18 = vadd.f32 %v3901_v48, %v5061_v56  ;;  %v2609_v51 = vmul.f32 %v5299_v55, %v5299_v55  ;;  %v2623_v50 = vadd.f32 %v2622_v22, %v2621_v32 }
 0x1a5   :  { %v2610_v13 = vmul.f32 %v5302_v14, %v5302_v14  ;;  %v2582_v22 = vadd.f32 %v2581_v61, %v2580_v41  ;;  %v2611_v14 = vmul.f32 %v5305_v23, %v5305_v23  ;;  %v2612_v61 = vmul.f32 %v5308_v58, %v5308_v58 }
 0x1a6   :  { %5929 = vst [vmem:[#allocation11_spill] sm:$0xff] %v5346_v59  ;;  %v5350_v12 = vadd.f32 %v3959_v34, %v2280_v18  ;;  %v3902_v39 = vpop.f32.mrb[88].mxu0  ;;  %v5364_v34 = vld [vmem:[%s5895_s8] ss:$0 sm:$0xff]  ;;  %v2625_v40 = vadd.f32 %v2624_v52, %v2623_v50 }
 0x1a7   :  { %v3960_v19 = vpop.f32.mrb[88].mxu1  ;;  %v3903_v45 = vpop.f32.mrb[89].mxu0  ;;  %v2628_v55 = vsel %vm2418_vm0, %v2610_v13, 0.0 }
 0x1a8   :  { %5930 = vst [vmem:[#allocation12_spill] sm:$0xff] %v5350_v12  ;;  %v3904_v47 = vadd.f32 %v3903_v45, %v3902_v39  ;;  %v3961_v56 = vpop.f32.mrb[89].mxu1  ;;  %v3905_v33 = vpop.f32.mrb[90].mxu0  ;;  %v2626_v39 = vsel %vm2418_vm0, %v2609_v51, 0.0 }
 0x1a9   :  { %v3962_v0 = vadd.f32 %v3961_v56, %v3960_v19  ;;  %v3963_v2 = vpop.f32.mrb[90].mxu1  ;;  %v3906_v48 = vpop.f32.mrb[91].mxu0  ;;  %v2584_v56 = vadd.f32 %v2583_v11, %v2582_v22  ;;  %v2627_v41 = vadd.f32 %v2626_v39, %v2625_v40  ;;  %v2682_v40 = vmul.f32 %v5350_v12, %v5350_v12 }
 0x1aa   :  { %v2285_v5 = vadd.f32 %v5364_v34, %v3904_v47  ;;  %v3907_v10 = vadd.f32 %v3906_v48, %v3905_v33  ;;  %v3964_v18 = vpop.f32.mrb[91].mxu1  ;;  %v2585_v47 = vsel %vm2418_vm0, %v5305_v23, 0.0 }
 0x1ab   :  { %v3965_v32 = vadd.f32 %v3964_v18, %v3963_v2  ;;  %v2629_v11 = vadd.f32 %v2628_v55, %v2627_v41  ;;  %v2613_v55 = vmul.f32 %v5311_v62, %v5311_v62 }
 0x1ac   :  { %v5368_v19 = vadd.f32 %v3962_v0, %v2285_v5  ;;  %v2288_v45 = vadd.f32 %v5364_v34, %v3907_v10  ;;  %v2586_v5 = vadd.f32 %v2585_v47, %v2584_v56  ;;  %v2630_v10 = vsel %vm2418_vm0, %v2611_v14, 0.0 }
 0x1ad   :  { %v2681_v14 = vmul.f32 %v5346_v59, %v5346_v59  ;;  %v2650_v47 = vsel %vm2418_vm0, %v5350_v12, 0.0 }
 0x1ae   :  { %5931 = vst [vmem:[#allocation13_spill] sm:$0xff] %v5368_v19  ;;  %v5376_v33 = vadd.f32 %v3965_v32, %v2288_v45  ;;  %v3908_v52 = vpop.f32.mrb[92].mxu0  ;;  %v2587_v32 = vsel %vm2418_vm0, %v5308_v58, 0.0  ;;  %v2683_v41 = vmul.f32 %v5368_v19, %v5368_v19 }
 0x1af   :  { %v3966_v51 = vpop.f32.mrb[92].mxu1  ;;  %v3909_v50 = vpop.f32.mrb[93].mxu0 }
 0x1b0   :  { %5932 = vst [vmem:[#allocation14_spill] sm:$0xff] %v5376_v33  ;;  %v3910_v0 = vadd.f32 %v3909_v50, %v3908_v52  ;;  %v3967_v2 = vpop.f32.mrb[93].mxu1  ;;  %v3911_v48 = vpop.f32.mrb[94].mxu0  ;;  %v2632_v52 = vsel %vm2418_vm0, %v2612_v61, 0.0  ;;  %v2649_v61 = vsel %vm2418_vm0, %v5346_v59, 0.0 }
 0x1b1   :  { %v3968_v13 = vadd.f32 %v3967_v2, %v3966_v51  ;;  %v3969_v18 = vpop.f32.mrb[94].mxu1  ;;  %v3912_v22 = vpop.f32.mrb[95].mxu0  ;;  %v2588_v2 = vadd.f32 %v2587_v32, %v2586_v5  ;;  %v2697_v32 = vsel %vm2418_vm0, %v2683_v41, 0.0 }
 0x1b2   :  { %v2293_v39 = vadd.f32 %v5364_v34, %v3910_v0  ;;  %v3913_v45 = vadd.f32 %v3912_v22, %v3911_v48  ;;  %v3970_v23 = vpop.f32.mrb[95].mxu1  ;;  %v2631_v0 = vadd.f32 %v2630_v10, %v2629_v11  ;;  %v2695_v48 = vsel %vm2418_vm0, %v2682_v40, 0.0 }
 0x1b3   :  { %v3971_v56 = vadd.f32 %v3970_v23, %v3969_v18  ;;  %v2652_v23 = vsel %vm2418_vm0, %v5368_v19, 0.0  ;;  %v2694_v10 = vsel %vm2418_vm0, %v2681_v14, 0.0  ;;  %v2684_v40 = vmul.f32 %v5376_v33, %v5376_v33 }
 0x1b4   :  { %v5395_v51 = vadd.f32 %v3968_v13, %v2293_v39  ;;  %v2296_v50 = vadd.f32 %v5364_v34, %v3913_v45  ;;  %v2633_v12 = vadd.f32 %v2632_v52, %v2631_v0  ;;  %v2589_v13 = vsel %vm2418_vm0, %v5311_v62, 0.0 }
 0x1b5   :  { %v2634_v39 = vsel %vm2418_vm0, %v2613_v55, 0.0  ;;  %v2651_v45 = vadd.f32 %v2650_v47, %v2649_v61  ;;  %v2614_v52 = vmul.f32 %v5314_v35, %v5314_v35  ;;  %v2696_v0 = vadd.f32 %v2695_v48, %v2694_v10 }
 0x1b6   :  { %v5403_v18 = vadd.f32 %v3971_v56, %v2296_v50  ;;  %v3914_v22 = vpop.f32.mrb[96].mxu0  ;;  %v2654_v61 = vsel %vm2418_vm0, %v5376_v33, 0.0  ;;  %v2685_v14 = vmul.f32 %v5395_v51, %v5395_v51  ;;  %v2699_v48 = vsel %vm2418_vm0, %v2684_v40, 0.0 }
 0x1b7   :  { %v3972_v11 = vpop.f32.mrb[96].mxu1  ;;  %v3915_v5 = vpop.f32.mrb[97].mxu0  ;;  %v2653_v59 = vadd.f32 %v2652_v23, %v2651_v45  ;;  %v2698_v42 = vadd.f32 %v2697_v32, %v2696_v0  ;;  %v2656_v23 = vsel %vm2418_vm0, %v5395_v51, 0.0  ;;  %v2590_v10 = vadd.f32 %v2589_v13, %v2588_v2 }
 0x1b8   :  { %5933 = vst [vmem:[#allocation15_spill] sm:$0xff] %v5403_v18  ;;  %v3916_v19 = vadd.f32 %v3915_v5, %v3914_v22  ;;  %v3973_v56 = vpop.f32.mrb[97].mxu1  ;;  %v3917_v50 = vpop.f32.mrb[98].mxu0  ;;  %v2591_v5 = vsel %vm2418_vm0, %v5314_v35, 0.0  ;;  %v2686_v32 = vmul.f32 %v5403_v18, %v5403_v18 }
 0x1b9   :  { %v3974_v62 = vadd.f32 %v3973_v56, %v3972_v11  ;;  %v3975_v55 = vpop.f32.mrb[98].mxu1  ;;  %v3918_v47 = vpop.f32.mrb[99].mxu0  ;;  %v2635_v56 = vadd.f32 %v2634_v39, %v2633_v12  ;;  %v2655_v33 = vadd.f32 %v2654_v61, %v2653_v59  ;;  %v2593_v12 = vsel %vm2418_vm0, %v5317_v38, 0.0 }
 0x1ba   :  { %v2301_v41 = vadd.f32 %v5364_v34, %v3916_v19  ;;  %v3919_v58 = vadd.f32 %v3918_v47, %v3917_v50  ;;  %v3976_v22 = vpop.f32.mrb[99].mxu1  ;;  %v2636_v19 = vsel %vm2418_vm0, %v2614_v52, 0.0  ;;  %v2701_v50 = vsel %vm2418_vm0, %v2685_v14, 0.0 }
 0x1bb   :  { %v3977_v36 = vadd.f32 %v3976_v22, %v3975_v55  ;;  %v2592_v55 = vadd.f32 %v2591_v5, %v2590_v10  ;;  %v2700_v47 = vadd.f32 %v2699_v48, %v2698_v42  ;;  %v2658_v59 = vsel %vm2418_vm0, %v5403_v18, 0.0 }
 0x1bc   :  { %v5424_v45 = vadd.f32 %v3974_v62, %v2301_v41  ;;  %v2304_v11 = vadd.f32 %v5364_v34, %v3919_v58  ;;  %v2615_v62 = vmul.f32 %v5317_v38, %v5317_v38  ;;  %v2657_v41 = vadd.f32 %v2656_v23, %v2655_v33 }
 0x1bd   :  { %v2637_v61 = vadd.f32 %v2636_v19, %v2635_v56  ;;  %v2616_v14 = vmul.f32 %v5324_v3, %v5324_v3  ;;  %v2702_v42 = vadd.f32 %v2701_v50, %v2700_v47  ;;  %v2703_v48 = vsel %vm2418_vm0, %v2686_v32, 0.0 }
 0x1be   :  { %5934 = vst [vmem:[#allocation16_spill] sm:$0xff] %v5424_v45  ;;  %v5431_v0 = vadd.f32 %v3977_v36, %v2304_v11  ;;  %v3920_v40 = vpop.f32.mrb[100].mxu0  ;;  %v2687_v13 = vmul.f32 %v5424_v45, %v5424_v45  ;;  %v2660_v23 = vsel %vm2418_vm0, %v5424_v45, 0.0  ;;  %v2595_v56 = vsel %vm2442_vm1, %v5324_v3, 0.0 }
 0x1bf   :  { %v3978_v58 = vpop.f32.mrb[100].mxu1  ;;  %v3921_v2 = vpop.f32.mrb[101].mxu0  ;;  %v2659_v19 = vadd.f32 %v2658_v59, %v2657_v41 }
 0x1c0   :  { %5935 = vst [vmem:[#allocation17_spill] sm:$0xff] %v5431_v0  ;;  %v3922_v36 = vadd.f32 %v3921_v2, %v3920_v40  ;;  %v3979_v39 = vpop.f32.mrb[101].mxu1  ;;  %v3923_v52 = vpop.f32.mrb[102].mxu0  ;;  %v2638_v40 = vsel %vm2418_vm0, %v2615_v62, 0.0  ;;  %v2705_v50 = vsel %vm2418_vm0, %v2687_v13, 0.0  ;;  %v2688_v47 = vmul.f32 %v5431_v0, %v5431_v0 }
 0x1c1   :  { %v3980_v33 = vadd.f32 %v3979_v39, %v3978_v58  ;;  %v3981_v22 = vpop.f32.mrb[102].mxu1  ;;  %v3924_v5 = vpop.f32.mrb[103].mxu0  ;;  %v2594_v39 = vadd.f32 %v2593_v12, %v2592_v55  ;;  %v2662_v62 = vsel %vm2418_vm0, %v5431_v0, 0.0  ;;  %v2639_v13 = vadd.f32 %v2638_v40, %v2637_v61 }
 0x1c2   :  { %v2309_v11 = vadd.f32 %v5364_v34, %v3922_v36  ;;  %v3925_v10 = vadd.f32 %v3924_v5, %v3923_v52  ;;  %v3982_v18 = vpop.f32.mrb[103].mxu1  ;;  %v2704_v36 = vadd.f32 %v2703_v48, %v2702_v42  ;;  %v2661_v52 = vadd.f32 %v2660_v23, %v2659_v19 }
 0x1c3   :  { %v3983_v2 = vadd.f32 %v3982_v18, %v3981_v22  ;;  %v2640_v5 = vsel %vm2442_vm1, %v2616_v14, 0.0  ;;  %v2596_v22 = vadd.f32 %v2595_v56, %v2594_v39  ;;  %v2707_v55 = vsel %vm2418_vm0, %v2688_v47, 0.0 }
 0x1c4   :  { %v5453_v32 = vadd.f32 %v3980_v33, %v2309_v11  ;;  %v2312_v58 = vadd.f32 %v5364_v34, %v3925_v10  ;;  %v2706_v33 = vadd.f32 %v2705_v50, %v2704_v36  ;;  %v2641_v23 = vadd.f32 %v2640_v5, %v2639_v13 }
 0x1c5   :  { %v2663_v10 = vadd.f32 %v2662_v62, %v2661_v52  ;;  %v2597_v47 = vrot.slane %v2596_v22, 4 }
 0x1c6   :  { %v2689_v18 = vmul.f32 %v5453_v32, %v5453_v32  ;;  %v5461_v41 = vadd.f32 %v3983_v2, %v2312_v58  ;;  %v3926_v59 = vpop.f32.mrb[104].mxu0  ;;  %v2664_v12 = vsel %vm2418_vm0, %v5453_v32, 0.0  ;;  %v2708_v39 = vadd.f32 %v2707_v55, %v2706_v33 }
 0x1c7   :  { %v3984_v11 = vpop.f32.mrb[104].mxu1  ;;  %v3927_v45 = vpop.f32.mrb[105].mxu0  ;;  %v2665_v36 = vadd.f32 %v2664_v12, %v2663_v10  ;;  %v2598_v55 = vadd.f32 %v2597_v47, %v2596_v22 }
 0x1c8   :  { %5936 = vst [vmem:[#allocation18_spill] sm:$0xff] %v5461_v41  ;;  %v3928_v14 = vadd.f32 %v3927_v45, %v3926_v59  ;;  %v3985_v42 = vpop.f32.mrb[105].mxu1  ;;  %v3929_v48 = vpop.f32.mrb[106].mxu0  ;;  %v2709_v58 = vsel %vm2418_vm0, %v2689_v18, 0.0  ;;  %v2690_v61 = vmul.f32 %v5461_v41, %v5461_v41  ;;  %v2666_v5 = vsel %vm2418_vm0, %v5461_v41, 0.0 }
 0x1c9   :  { %v3986_v19 = vadd.f32 %v3985_v42, %v3984_v11  ;;  %v3987_v0 = vpop.f32.mrb[106].mxu1  ;;  %v3930_v2 = vpop.f32.mrb[107].mxu0  ;;  %v2642_v59 = vrot.slane %v2641_v23, 4  ;;  %v2710_v18 = vadd.f32 %v2709_v58, %v2708_v39  ;;  %v2667_v12 = vadd.f32 %v2666_v5, %v2665_v36 }
 0x1ca   :  { %v2317_v40 = vadd.f32 %v5364_v34, %v3928_v14  ;;  %v3931_v56 = vadd.f32 %v3930_v2, %v3929_v48  ;;  %v3988_v50 = vpop.f32.mrb[107].mxu1  ;;  %v2711_v13 = vsel %vm2418_vm0, %v2690_v61, 0.0  ;;  %v2599_v5 = vrot.slane %v2598_v55, 2 }
 0x1cb   :  { %v3989_v45 = vadd.f32 %v3988_v50, %v3987_v0 }
 0x1cc   :  { %v5472_v52 = vadd.f32 %v3986_v19, %v2317_v40  ;;  %v2320_v62 = vadd.f32 %v5364_v34, %v3931_v56  ;;  %v2643_v40 = vadd.f32 %v2642_v59, %v2641_v23  ;;  %v2712_v56 = vadd.f32 %v2711_v13, %v2710_v18 }
 0x1cd   :  { %v2600_v59 = vadd.f32 %v2599_v5, %v2598_v55 }
 0x1ce   :  { %5937 = vst [vmem:[#allocation19_spill] sm:$0xff] %v5472_v52  ;;  %v2668_v11 = vsel %vm2418_vm0, %v5472_v52, 0.0  ;;  %v2691_v14 = vmul.f32 %v5472_v52, %v5472_v52  ;;  %v5480_v33 = vadd.f32 %v3989_v45, %v2320_v62  ;;  %v3932_v0 = vpop.f32.mrb[108].mxu0 }
 0x1cf   :  { %v3990_v42 = vpop.f32.mrb[108].mxu1  ;;  %v3933_v48 = vpop.f32.mrb[109].mxu0  ;;  %v2669_v50 = vadd.f32 %v2668_v11, %v2667_v12 }
 0x1d0   :  { %v2713_v10 = vsel %vm2418_vm0, %v2691_v14, 0.0  ;;  %v2692_v19 = vmul.f32 %v5480_v33, %v5480_v33  ;;  %v3934_v2 = vadd.f32 %v3933_v48, %v3932_v0  ;;  %v3991_v58 = vpop.f32.mrb[109].mxu1  ;;  %v3935_v61 = vpop.f32.mrb[110].mxu0  ;;  %v2670_v22 = vsel %vm2418_vm0, %v5480_v33, 0.0 }
 0x1d1   :  { %v3992_v39 = vadd.f32 %v3991_v58, %v3990_v42  ;;  %v3993_v52 = vpop.f32.mrb[110].mxu1  ;;  %v3936_v45 = vpop.f32.mrb[111].mxu0  ;;  %v2714_v62 = vadd.f32 %v2713_v10, %v2712_v56  ;;  %v2644_v0 = vrot.slane %v2643_v40, 2  ;;  %v2671_v48 = vadd.f32 %v2670_v22, %v2669_v50 }
 0x1d2   :  { %v2325_v47 = vadd.f32 %v5364_v34, %v3934_v2  ;;  %v3994_v36 = vpop.f32.mrb[111].mxu1  ;;  %v2715_v14 = vsel %vm2418_vm0, %v2692_v19, 0.0  ;;  %v2601_v10 = vrot.slane %v2600_v59, 1 }
 0x1d3   :  { %v2716_v18 = vadd.f32 %v2715_v14, %v2714_v62  ;;  %v2645_v11 = vadd.f32 %v2644_v0, %v2643_v40 }
 0x1d4   :  { %v5489_v41 = vadd.f32 %v3992_v39, %v2325_v47  ;;  %v2602_v50 = vadd.f32 %v2601_v10, %v2600_v59  ;;  %v2738_v59 = vlaneseq }
 0x1d5   :  { %v2646_v58 = vrot.slane %v2645_v11, 1 }
 0x1d6   :  { %v2672_v23 = vsel %vm2442_vm1, %v5489_v41, 0.0  ;;  %v2693_v52 = vmul.f32 %v5489_v41, %v5489_v41  ;;  %v2603_v55 = vadd.f32 %v2602_v50, %v5289_v15 }
 0x1d7   :  { %v2673_v13 = vadd.f32 %v2672_v23, %v2671_v48  ;;  %v2647_v22 = vadd.f32 %v2646_v58, %v2645_v11  ;;  %v2730_v11 = vld [vmem:[%s5896_s9] sm:$0x1] }
 0x1d8   :  { %v2717_v34 = vsel %vm2442_vm1, %v2693_v52, 0.0 }
 0x1d9   :  { %v2674_v12 = vrot.slane %v2673_v13, 4  ;;  %v2718_v42 = vadd.f32 %v2717_v34, %v2716_v18  ;;  %v2648_v40 = vadd.f32 %v2647_v22, %v5293_v24  ;;  %v2734_v24 = vld [vmem:[%s5897_s10] sm:$0x1] }
 0x1db   :  { %v2675_v19 = vadd.f32 %v2674_v12, %v2673_v13  ;;  %v2719_v2 = vrot.slane %v2718_v42, 4  ;;  %v2739_v12 = vshrl.u32 %v2738_v59, 7 }
 0x1dd   :  { %v2676_v61 = vrot.slane %v2675_v19, 2  ;;  %v2720_v56 = vadd.f32 %v2719_v2, %v2718_v42  ;;  %v2740_v15 = vsub.s32 0, %v2739_v12 }
 0x1df   :  { %v2677_v39 = vadd.f32 %v2676_v61, %v2675_v19  ;;  %v2721_v45 = vrot.slane %v2720_v56, 2 }
 0x1e1   :  { %v2678_v47 = vrot.slane %v2677_v39, 1  ;;  %v2722_v36 = vadd.f32 %v2721_v45, %v2720_v56 }
 0x1e3   :  { %v2679_v5 = vadd.f32 %v2678_v47, %v2677_v39  ;;  %v2723_v62 = vrot.slane %v2722_v36, 1 }
 0x1e5   :  { %v2680_v14 = vadd.f32 %v2679_v5, %v2603_v55  ;;  %v2724_v0 = vadd.f32 %v2723_v62, %v2722_v36 }
 0x1e7   :  { %v2725_v48 = vadd.f32 %v2724_v0, %v2648_v40  ;;  %v2726_v23 = vmul.f32 0.0025510204, %v2680_v14 }
 0x1e9   :  { %v2727_v52 = vmul.f32 0.0025510204, %v2725_v48  ;;  %v2728_v18 = vmul.f32 %v2726_v23, %v2726_v23 }
 0x1eb   :  { %v2729_v13 = vsub.f32 %v2727_v52, %v2728_v18 }
 0x1ed   :  { %v2731_v34 = vadd.f32 1e-05, %v2729_v13 }
 0x1ef   :  { %4284 = vrsqrt.f32 %v2731_v34 }
 0x1f9   :  { %v4285_v42 = vpop.eup %4284 }
 0x1fa   :  { %v2733_v10 = vmul.f32 %v4285_v42, %v2730_v11 }
 0x1fc   :  { %v2735_v19 = vmul.f32 %v2733_v10, %v2726_v23  ;;  %v5504_v2 = vrot.slane %v2733_v10, %v2740_v15 }
 0x1fe   :  { %v2736_v58 = vsub.f32 %v2734_v24, %v2735_v19  ;;  %v2743_v61 = vmul.f32 %v5504_v2, %v5064_v6  ;;  %v2744_v56 = vmul.f32 %v5504_v2, %v5067_v8  ;;  %v2745_v50 = vmul.f32 %v5504_v2, %v5076_v25 }
 0x1ff   :  { %v2746_v39 = vmul.f32 %v5504_v2, %v5086_v31  ;;  %v2747_v45 = vmul.f32 %v5504_v2, %v5096_v54  ;;  %v2748_v22 = vmul.f32 %v5504_v2, %v5103_v60  ;;  %v2749_v47 = vmul.f32 %v5504_v2, %v5112_v21 }
 0x200   :  { %v2750_v6 = vmul.f32 %v5504_v2, %v5119_v26  ;;  %v2751_v8 = vmul.f32 %v5504_v2, %v5128_v49  ;;  %v2752_v25 = vmul.f32 %v5504_v2, %v5135_v53  ;;  %v2753_v31 = vmul.f32 %v5504_v2, %v5144_v16 }
 0x201   :  { %v2754_v54 = vmul.f32 %v5504_v2, %v5151_v20  ;;  %v2755_v60 = vmul.f32 %v5504_v2, %v5160_v44  ;;  %v5532_v21 = vrot.slane %v2736_v58, %v2740_v15  ;;  %v5536_v26 = vmul.f32 %v5504_v2, %v5172_v4 }
 0x202   :  { %v5540_v49 = vmul.f32 %v5504_v2, %v5175_v7  ;;  %v5544_v53 = vmul.f32 %v5504_v2, %v5178_v27  ;;  %v5548_v16 = vmul.f32 %v5504_v2, %v5181_v29  ;;  %v5552_v20 = vmul.f32 %v5504_v2, %v5197_v57 }
 0x203   :  { %v2762_v44 = vadd.f32 %v5532_v21, %v2743_v61  ;;  %v2763_v4 = vadd.f32 %v5532_v21, %v2744_v56  ;;  %v2764_v36 = vadd.f32 %v5532_v21, %v2745_v50  ;;  %v2765_v7 = vadd.f32 %v5532_v21, %v2746_v39 }
 0x204   :  { %v2766_v27 = vadd.f32 %v5532_v21, %v2747_v45  ;;  %v2767_v55 = vadd.f32 %v5532_v21, %v2748_v22  ;;  %v2768_v29 = vadd.f32 %v5532_v21, %v2749_v47  ;;  %v2769_v5 = vadd.f32 %v5532_v21, %v2750_v6 }
 0x205   :  { %v2770_v57 = vadd.f32 %v5532_v21, %v2751_v8  ;;  %v2771_v62 = vadd.f32 %v5532_v21, %v2752_v25  ;;  %v2772_v40 = vadd.f32 %v5532_v21, %v2753_v31  ;;  %v2773_v14 = vadd.f32 %v5532_v21, %v2754_v54 }
 0x206   :  { %v2774_v0 = vadd.f32 %v5532_v21, %v2755_v60  ;;  %v2775_v48 = vmax.f32 %v2762_v44, 0.0  ;;  %v2776_v23 = vmax.f32 %v2763_v4, 0.0  ;;  %v2777_v52 = vmax.f32 %v2764_v36, 0.0 }
 0x207   :  { %v2778_v18 = vmax.f32 %v2765_v7, 0.0  ;;  %v2779_v13 = vmax.f32 %v2766_v27, 0.0  ;;  %v2780_v34 = vmax.f32 %v2767_v55, 0.0  ;;  %v2781_v59 = vmax.f32 %v2768_v29, 0.0 }
 0x208   :  { %v2782_v12 = vmax.f32 %v2769_v5, 0.0  ;;  %v2783_v11 = vmax.f32 %v2770_v57, 0.0  ;;  %v2784_v15 = vmax.f32 %v2771_v62, 0.0  ;;  %v2785_v42 = vmax.f32 %v2772_v40, 0.0 }
 0x209   :  { %v2786_v10 = vmax.f32 %v2773_v14, 0.0  ;;  %v2787_v24 = vmax.f32 %v2774_v0, 0.0  ;;  %v3480_v19 = vpack.c.bf16 %v2775_v48, %v2775_v48  ;;  %v3481_v58 = vpack.c.bf16 %v2776_v23, %v2776_v23 }
 0x20a   :  { %v3482_v61 = vpack.c.bf16 %v2777_v52, %v2777_v52  ;;  %v3483_v56 = vpack.c.bf16 %v2778_v18, %v2778_v18  ;;  %v3484_v50 = vpack.c.bf16 %v2779_v13, %v2779_v13  ;;  %v3485_v39 = vpack.c.bf16 %v2780_v34, %v2780_v34 }
 0x20b   :  { %v3486_v45 = vpack.c.bf16 %v2781_v59, %v2781_v59  ;;  %v3487_v22 = vpack.c.bf16 %v2782_v12, %v2782_v12  ;;  %v3488_v47 = vpack.c.bf16 %v2783_v11, %v2783_v11  ;;  %v3489_v6 = vpack.c.bf16 %v2784_v15, %v2784_v15  ;;  %2842 = vst.msk [vmem:[%s5898_s11] sm:$0xf] %vm2841_vm2, %v3480_v19 }
 0x20c   :  { %2843 = vst.msk [vmem:[%s5898_s11 + $0x4] sm:$0xf] %vm2841_vm2, %v3481_v58  ;;  %v3490_v8 = vpack.c.bf16 %v2785_v42, %v2785_v42  ;;  %v3491_v25 = vpack.c.bf16 %v2786_v10, %v2786_v10  ;;  %v3492_v31 = vpack.c.bf16 %v2787_v24, %v2787_v24  ;;  %2844 = vst.msk [vmem:[%s5898_s11 + $0x8] sm:$0xf] %vm2841_vm2, %v3482_v61 }
 0x20d   :  { %2845 = vst.msk [vmem:[%s5898_s11 + $0xc] sm:$0xf] %vm2841_vm2, %v3483_v56  ;;  %2846 = vst.msk [vmem:[%s5898_s11 + $0x10] sm:$0xf] %vm2841_vm2, %v3484_v50  ;;  %v2861_v54 = vmul.f32 %v5504_v2, %v5204_v1  ;;  %v2862_v1 = vmul.f32 %v5504_v2, %v5217_v37  ;;  %v2863_v60 = vmul.f32 %v5504_v2, %v5224_v43 }
 0x20e   :  { %2847 = vst.msk [vmem:[%s5898_s11 + $0x14] sm:$0xf] %vm2841_vm2, %v3485_v39  ;;  %2848 = vst.msk [vmem:[%s5898_s11 + $0x18] sm:$0xf] %vm2841_vm2, %v3486_v45  ;;  %v2864_v44 = vmul.f32 %v5504_v2, %v5235_v17  ;;  %v2865_v4 = vmul.f32 %v5504_v2, %v5243_v28  ;;  %v2866_v37 = vmul.f32 %v5504_v2, %v5252_v63 }
 0x20f   :  { %2849 = vst.msk [vmem:[%s5898_s11 + $0x1c] sm:$0xf] %vm2841_vm2, %v3487_v22  ;;  %2850 = vst.msk [vmem:[%s5898_s11 + $0x20] sm:$0xf] %vm2841_vm2, %v3488_v47  ;;  %v2867_v43 = vmul.f32 %v5504_v2, %v5259_v9  ;;  %v2868_v17 = vmul.f32 %v5504_v2, %v5271_v46  ;;  %v2869_v28 = vadd.f32 %v5536_v26, %v5532_v21  ;;  %v5938_v22 = vld [vmem:[#allocation2_spill] sm:$0xff] }
 0x210   :  { %2851 = vst.msk [vmem:[%s5898_s11 + $0x24] sm:$0xf] %vm2841_vm2, %v3489_v6  ;;  %2852 = vst.msk [vmem:[%s5898_s11 + $0x28] sm:$0xf] %vm2841_vm2, %v3490_v8  ;;  %v2870_v36 = vadd.f32 %v5540_v49, %v5532_v21  ;;  %v2871_v7 = vadd.f32 %v5544_v53, %v5532_v21  ;;  %v2872_v27 = vadd.f32 %v5548_v16, %v5532_v21  ;;  %v5940_v8 = vld [vmem:[#allocation4_spill] sm:$0xff] }
 0x211   :  { %2853 = vst.msk [vmem:[%s5898_s11 + $0x2c] sm:$0xf] %vm2841_vm2, %v3491_v25  ;;  %v2873_v63 = vadd.f32 %v5552_v20, %v5532_v21  ;;  %v2874_v9 = vadd.f32 %v2861_v54, %v5532_v21  ;;  %v2875_v55 = vadd.f32 %v2862_v1, %v5532_v21  ;;  %v2876_v46 = vadd.f32 %v2863_v60, %v5532_v21  ;;  %v5942_v1 = vld [vmem:[#allocation6_spill] sm:$0xff] }
 0x212   :  { %2855 = vst.msk [vmem:[%s5898_s11 + $0x30] sm:$0x1] %vm2854_vm3, %v3492_v31  ;;  %v2877_v26 = vadd.f32 %v2864_v44, %v5532_v21  ;;  %v2878_v29 = vadd.f32 %v2865_v4, %v5532_v21  ;;  %v2879_v49 = vadd.f32 %v2866_v37, %v5532_v21  ;;  %v2880_v53 = vadd.f32 %v2867_v43, %v5532_v21  ;;  %v5941_v31 = vld [vmem:[#allocation5_spill] sm:$0xff]  ;;  %v5943_v44 = vld [vmem:[#allocation7_spill] sm:$0xff]  ;;  %v5944_v37 = vld [vmem:[#allocation8_spill] sm:$0xff] }
 0x213   :  { %v2881_v5 = vadd.f32 %v2868_v17, %v5532_v21  ;;  %v2882_v16 = vmax.f32 %v2869_v28, 0.0  ;;  %v2883_v57 = vmax.f32 %v2870_v36, 0.0  ;;  %v2884_v62 = vmax.f32 %v2871_v7, 0.0  ;;  %v5945_v17 = vld [vmem:[#allocation9_spill] sm:$0xff]  ;;  %v5946_v36 = vld [vmem:[#allocation10_spill] sm:$0xff] }
 0x214   :  { %v2885_v20 = vmax.f32 %v2872_v27, 0.0  ;;  %v2886_v40 = vmax.f32 %v2873_v63, 0.0  ;;  %v2887_v14 = vmax.f32 %v2874_v9, 0.0  ;;  %v2888_v0 = vmax.f32 %v2875_v55, 0.0 }
 0x215   :  { %v2889_v48 = vmax.f32 %v2876_v46, 0.0  ;;  %v2890_v23 = vmax.f32 %v2877_v26, 0.0  ;;  %v2891_v52 = vmax.f32 %v2878_v29, 0.0  ;;  %v2892_v18 = vmax.f32 %v2879_v49, 0.0 }
 0x216   :  { %v2893_v13 = vmax.f32 %v2880_v53, 0.0  ;;  %v2894_v34 = vmax.f32 %v2881_v5, 0.0  ;;  %v3493_v59 = vpack.c.bf16 %v2882_v16, %v2882_v16  ;;  %v3494_v12 = vpack.c.bf16 %v2883_v57, %v2883_v57 }
 0x217   :  { %v3495_v11 = vpack.c.bf16 %v2884_v62, %v2884_v62  ;;  %v3496_v15 = vpack.c.bf16 %v2885_v20, %v2885_v20  ;;  %v3497_v42 = vpack.c.bf16 %v2886_v40, %v2886_v40  ;;  %v3498_v10 = vpack.c.bf16 %v2887_v14, %v2887_v14 }
 0x218   :  { %v3499_v24 = vpack.c.bf16 %v2888_v0, %v2888_v0  ;;  %v3500_v19 = vpack.c.bf16 %v2889_v48, %v2889_v48  ;;  %v3501_v58 = vpack.c.bf16 %v2890_v23, %v2890_v23  ;;  %v3502_v61 = vpack.c.bf16 %v2891_v52, %v2891_v52  ;;  %2948 = vst.msk [vmem:[%s5899_s12] sm:$0xf] %vm2841_vm2, %v3493_v59 }
 0x219   :  { %v3503_v56 = vpack.c.bf16 %v2892_v18, %v2892_v18  ;;  %2949 = vst.msk [vmem:[%s5899_s12 + $0x4] sm:$0xf] %vm2841_vm2, %v3494_v12  ;;  %2950 = vst.msk [vmem:[%s5899_s12 + $0x8] sm:$0xf] %vm2841_vm2, %v3495_v11  ;;  %v3504_v50 = vpack.c.bf16 %v2893_v13, %v2893_v13  ;;  %v3505_v39 = vpack.c.bf16 %v2894_v34, %v2894_v34 }
 0x21a   :  { %2951 = vst.msk [vmem:[%s5899_s12 + $0xc] sm:$0xf] %vm2841_vm2, %v3496_v15  ;;  %2952 = vst.msk [vmem:[%s5899_s12 + $0x10] sm:$0xf] %vm2841_vm2, %v3497_v42  ;;  %v2961_v45 = vmul.f32 %v5504_v2, %v5280_v30  ;;  %v2962_v47 = vmul.f32 %v5504_v2, %v5938_v22  ;;  %v5939_v30 = vld [vmem:[#allocation3_spill] sm:$0xff]  ;;  %v2964_v25 = vmul.f32 %v5504_v2, %v5940_v8  ;;  %v5948_v8 = vld [vmem:[#allocation12_spill] sm:$0xff] }
 0x21b   :  { %2953 = vst.msk [vmem:[%s5899_s12 + $0x14] sm:$0xf] %vm2841_vm2, %v3498_v10  ;;  %2954 = vst.msk [vmem:[%s5899_s12 + $0x18] sm:$0xf] %vm2841_vm2, %v3499_v24  ;;  %v2963_v6 = vmul.f32 %v5504_v2, %v5939_v30  ;;  %v2965_v54 = vmul.f32 %v5504_v2, %v5941_v31  ;;  %v2966_v60 = vmul.f32 %v5504_v2, %v5942_v1  ;;  %v5947_v30 = vld [vmem:[#allocation11_spill] sm:$0xff]  ;;  %v5949_v31 = vld [vmem:[#allocation13_spill] sm:$0xff] }
 0x21c   :  { %2955 = vst.msk [vmem:[%s5899_s12 + $0x1c] sm:$0xf] %vm2841_vm2, %v3500_v19  ;;  %2956 = vst.msk [vmem:[%s5899_s12 + $0x20] sm:$0xf] %vm2841_vm2, %v3501_v58  ;;  %v2967_v4 = vmul.f32 %v5504_v2, %v5943_v44  ;;  %v2968_v43 = vmul.f32 %v5504_v2, %v5944_v37  ;;  %v2969_v28 = vmul.f32 %v5504_v2, %v5945_v17  ;;  %v5950_v1 = vld [vmem:[#allocation14_spill] sm:$0xff] }
 0x21d   :  { %2957 = vst.msk [vmem:[%s5899_s12 + $0x24] sm:$0xf] %vm2841_vm2, %v3502_v61  ;;  %2958 = vst.msk [vmem:[%s5899_s12 + $0x28] sm:$0xf] %vm2841_vm2, %v3503_v56  ;;  %v2970_v7 = vmul.f32 %v5504_v2, %v5946_v36  ;;  %v2971_v27 = vmul.f32 %v5504_v2, %v5314_v35  ;;  %v2972_v63 = vmul.f32 %v5504_v2, %v5317_v38 }
 0x21e   :  { %2959 = vst.msk [vmem:[%s5899_s12 + $0x2c] sm:$0xf] %vm2841_vm2, %v3504_v50  ;;  %v2973_v9 = vmul.f32 %v5504_v2, %v5324_v3  ;;  %v2974_v55 = vadd.f32 %v2961_v45, %v5532_v21  ;;  %v2975_v46 = vadd.f32 %v2962_v47, %v5532_v21  ;;  %v2976_v26 = vadd.f32 %v2963_v6, %v5532_v21 }
 0x21f   :  { %2960 = vst.msk [vmem:[%s5899_s12 + $0x30] sm:$0x1] %vm2854_vm3, %v3505_v39  ;;  %v2977_v29 = vadd.f32 %v2964_v25, %v5532_v21  ;;  %v2978_v49 = vadd.f32 %v2965_v54, %v5532_v21  ;;  %v2979_v53 = vadd.f32 %v2966_v60, %v5532_v21  ;;  %v2980_v35 = vadd.f32 %v2967_v4, %v5532_v21  ;;  %v5951_v4 = vld [vmem:[#allocation15_spill] sm:$0xff] }
 0x220   :  { %v2981_v5 = vadd.f32 %v2968_v43, %v5532_v21  ;;  %v2982_v38 = vadd.f32 %v2969_v28, %v5532_v21  ;;  %v2983_v3 = vadd.f32 %v2970_v7, %v5532_v21  ;;  %v2984_v16 = vadd.f32 %v2971_v27, %v5532_v21  ;;  %v5952_v43 = vld [vmem:[#allocation16_spill] sm:$0xff]  ;;  %v5953_v28 = vld [vmem:[#allocation17_spill] sm:$0xff]  ;;  %v5954_v7 = vld [vmem:[#allocation18_spill] sm:$0xff] }
 0x221   :  { %v2985_v57 = vadd.f32 %v2972_v63, %v5532_v21  ;;  %v2986_v62 = vadd.f32 %v2973_v9, %v5532_v21  ;;  %v2987_v20 = vmax.f32 %v2974_v55, 0.0  ;;  %v2988_v40 = vmax.f32 %v2975_v46, 0.0  ;;  %v5955_v63 = vld [vmem:[#allocation19_spill] sm:$0xff] }
 0x222   :  { %v2989_v14 = vmax.f32 %v2976_v26, 0.0  ;;  %v2990_v0 = vmax.f32 %v2977_v29, 0.0  ;;  %v2991_v48 = vmax.f32 %v2978_v49, 0.0  ;;  %v2992_v23 = vmax.f32 %v2979_v53, 0.0 }
 0x223   :  { %v2993_v52 = vmax.f32 %v2980_v35, 0.0  ;;  %v2994_v18 = vmax.f32 %v2981_v5, 0.0  ;;  %v2995_v13 = vmax.f32 %v2982_v38, 0.0  ;;  %v2996_v34 = vmax.f32 %v2983_v3, 0.0 }
 0x224   :  { %v2997_v59 = vmax.f32 %v2984_v16, 0.0  ;;  %v2998_v12 = vmax.f32 %v2985_v57, 0.0  ;;  %v2999_v11 = vmax.f32 %v2986_v62, 0.0  ;;  %v3506_v15 = vpack.c.bf16 %v2987_v20, %v2987_v20 }
 0x225   :  { %v3507_v42 = vpack.c.bf16 %v2988_v40, %v2988_v40  ;;  %v3508_v10 = vpack.c.bf16 %v2989_v14, %v2989_v14  ;;  %v3509_v24 = vpack.c.bf16 %v2990_v0, %v2990_v0  ;;  %v3510_v19 = vpack.c.bf16 %v2991_v48, %v2991_v48 }
 0x226   :  { %v3511_v58 = vpack.c.bf16 %v2992_v23, %v2992_v23  ;;  %v3512_v61 = vpack.c.bf16 %v2993_v52, %v2993_v52  ;;  %v3513_v56 = vpack.c.bf16 %v2994_v18, %v2994_v18  ;;  %v3514_v50 = vpack.c.bf16 %v2995_v13, %v2995_v13  ;;  %3053 = vst.msk [vmem:[%s5900_s13] sm:$0xf] %vm2841_vm2, %v3506_v15 }
 0x227   :  { %v3515_v39 = vpack.c.bf16 %v2996_v34, %v2996_v34  ;;  %v3516_v45 = vpack.c.bf16 %v2997_v59, %v2997_v59  ;;  %3054 = vst.msk [vmem:[%s5900_s13 + $0x4] sm:$0xf] %vm2841_vm2, %v3507_v42  ;;  %3055 = vst.msk [vmem:[%s5900_s13 + $0x8] sm:$0xf] %vm2841_vm2, %v3508_v10  ;;  %v3517_v22 = vpack.c.bf16 %v2998_v12, %v2998_v12 }
 0x228   :  { %v3518_v47 = vpack.c.bf16 %v2999_v11, %v2999_v11  ;;  %3056 = vst.msk [vmem:[%s5900_s13 + $0xc] sm:$0xf] %vm2841_vm2, %v3509_v24  ;;  %3057 = vst.msk [vmem:[%s5900_s13 + $0x10] sm:$0xf] %vm2841_vm2, %v3510_v19  ;;  %v3066_v6 = vmul.f32 %v5504_v2, %v5947_v30  ;;  %v3067_v25 = vmul.f32 %v5504_v2, %v5948_v8 }
 0x229   :  { %3058 = vst.msk [vmem:[%s5900_s13 + $0x14] sm:$0xf] %vm2841_vm2, %v3511_v58  ;;  %3059 = vst.msk [vmem:[%s5900_s13 + $0x18] sm:$0xf] %vm2841_vm2, %v3512_v61  ;;  %v3068_v54 = vmul.f32 %v5504_v2, %v5949_v31  ;;  %v3069_v60 = vmul.f32 %v5504_v2, %v5950_v1  ;;  %v3070_v44 = vmul.f32 %v5504_v2, %v5395_v51 }
 0x22a   :  { %3060 = vst.msk [vmem:[%s5900_s13 + $0x1c] sm:$0xf] %vm2841_vm2, %v3513_v56  ;;  %3061 = vst.msk [vmem:[%s5900_s13 + $0x20] sm:$0xf] %vm2841_vm2, %v3514_v50  ;;  %v3071_v37 = vmul.f32 %v5504_v2, %v5951_v4  ;;  %v3072_v17 = vmul.f32 %v5504_v2, %v5952_v43  ;;  %v3073_v36 = vmul.f32 %v5504_v2, %v5953_v28 }
 0x22b   :  { %3062 = vst.msk [vmem:[%s5900_s13 + $0x24] sm:$0xf] %vm2841_vm2, %v3515_v39  ;;  %3063 = vst.msk [vmem:[%s5900_s13 + $0x28] sm:$0xf] %vm2841_vm2, %v3516_v45  ;;  %v3074_v51 = vmul.f32 %v5504_v2, %v5453_v32  ;;  %v3075_v27 = vmul.f32 %v5504_v2, %v5954_v7  ;;  %v3076_v9 = vmul.f32 %v5504_v2, %v5955_v63 }
 0x22c   :  { %3064 = vst.msk [vmem:[%s5900_s13 + $0x2c] sm:$0xf] %vm2841_vm2, %v3517_v22  ;;  %v3077_v55 = vmul.f32 %v5504_v2, %v5480_v33  ;;  %v3078_v46 = vmul.f32 %v5504_v2, %v5489_v41  ;;  %v3079_v26 = vadd.f32 %v3066_v6, %v5532_v21  ;;  %v3080_v29 = vadd.f32 %v3067_v25, %v5532_v21 }
 0x22d   :  { %3065 = vst.msk [vmem:[%s5900_s13 + $0x30] sm:$0x1] %vm2854_vm3, %v3518_v47  ;;  %v3081_v49 = vadd.f32 %v3068_v54, %v5532_v21  ;;  %v3082_v32 = vadd.f32 %v3069_v60, %v5532_v21  ;;  %v3083_v53 = vadd.f32 %v3070_v44, %v5532_v21  ;;  %v3084_v35 = vadd.f32 %v3071_v37, %v5532_v21 }
 0x22e   :  { %v3085_v5 = vadd.f32 %v3072_v17, %v5532_v21  ;;  %v3086_v38 = vadd.f32 %v3073_v36, %v5532_v21  ;;  %v3087_v33 = vadd.f32 %v3074_v51, %v5532_v21  ;;  %v3088_v41 = vadd.f32 %v3075_v27, %v5532_v21 }
 0x22f   :  { %v3089_v2 = vadd.f32 %v3076_v9, %v5532_v21  ;;  %v3090_v3 = vadd.f32 %v3077_v55, %v5532_v21  ;;  %v3091_v16 = vadd.f32 %v3078_v46, %v5532_v21  ;;  %v3092_v57 = vmax.f32 %v3079_v26, 0.0 }
 0x230   :  { %v3093_v62 = vmax.f32 %v3080_v29, 0.0  ;;  %v3094_v20 = vmax.f32 %v3081_v49, 0.0  ;;  %v3095_v40 = vmax.f32 %v3082_v32, 0.0  ;;  %v3096_v14 = vmax.f32 %v3083_v53, 0.0 }
 0x231   :  { %v3097_v0 = vmax.f32 %v3084_v35, 0.0  ;;  %v3098_v48 = vmax.f32 %v3085_v5, 0.0  ;;  %v3099_v23 = vmax.f32 %v3086_v38, 0.0  ;;  %v3100_v52 = vmax.f32 %v3087_v33, 0.0 }
 0x232   :  { %v3101_v18 = vmax.f32 %v3088_v41, 0.0  ;;  %v3102_v13 = vmax.f32 %v3089_v2, 0.0  ;;  %v3103_v34 = vmax.f32 %v3090_v3, 0.0  ;;  %v3104_v59 = vmax.f32 %v3091_v16, 0.0 }
 0x233   :  { %v3519_v12 = vpack.c.bf16 %v3092_v57, %v3092_v57  ;;  %v3520_v11 = vpack.c.bf16 %v3093_v62, %v3093_v62  ;;  %v3521_v15 = vpack.c.bf16 %v3094_v20, %v3094_v20  ;;  %v3522_v42 = vpack.c.bf16 %v3095_v40, %v3095_v40 }
 0x234   :  { %v3523_v10 = vpack.c.bf16 %v3096_v14, %v3096_v14  ;;  %v3524_v24 = vpack.c.bf16 %v3097_v0, %v3097_v0  ;;  %v3525_v21 = vpack.c.bf16 %v3098_v48, %v3098_v48  ;;  %v3526_v19 = vpack.c.bf16 %v3099_v23, %v3099_v23 }
 0x235   :  { %v3527_v58 = vpack.c.bf16 %v3100_v52, %v3100_v52  ;;  %v3528_v61 = vpack.c.bf16 %v3101_v18, %v3101_v18  ;;  %v3529_v56 = vpack.c.bf16 %v3102_v13, %v3102_v13  ;;  %3158 = vst.msk [vmem:[%s5901_s14] sm:$0xf] %vm2841_vm2, %v3519_v12  ;;  %3159 = vst.msk [vmem:[%s5901_s14 + $0x4] sm:$0xf] %vm2841_vm2, %v3520_v11 }
 0x236   :  { %3160 = vst.msk [vmem:[%s5901_s14 + $0x8] sm:$0xf] %vm2841_vm2, %v3521_v15  ;;  %v3530_v50 = vpack.c.bf16 %v3103_v34, %v3103_v34  ;;  %v3531_v39 = vpack.c.bf16 %v3104_v59, %v3104_v59  ;;  %3161 = vst.msk [vmem:[%s5901_s14 + $0xc] sm:$0xf] %vm2841_vm2, %v3522_v42 }
 0x237   :  { %3162 = vst.msk [vmem:[%s5901_s14 + $0x10] sm:$0xf] %vm2841_vm2, %v3523_v10  ;;  %3163 = vst.msk [vmem:[%s5901_s14 + $0x14] sm:$0xf] %vm2841_vm2, %v3524_v24 }
 0x238   :  { %3164 = vst.msk [vmem:[%s5901_s14 + $0x18] sm:$0xf] %vm2841_vm2, %v3525_v21  ;;  %3165 = vst.msk [vmem:[%s5901_s14 + $0x1c] sm:$0xf] %vm2841_vm2, %v3526_v19 }
 0x239   :  { %3166 = vst.msk [vmem:[%s5901_s14 + $0x20] sm:$0xf] %vm2841_vm2, %v3527_v58  ;;  %3167 = vst.msk [vmem:[%s5901_s14 + $0x24] sm:$0xf] %vm2841_vm2, %v3528_v61 }
 0x23a   :  { %3168 = vst.msk [vmem:[%s5901_s14 + $0x28] sm:$0xf] %vm2841_vm2, %v3529_v56  ;;  %3169 = vst.msk [vmem:[%s5901_s14 + $0x2c] sm:$0xf] %vm2841_vm2, %v3530_v50 }
 0x23b   :  { %3170 = vst.msk [vmem:[%s5901_s14 + $0x30] sm:$0x1] %vm2854_vm3, %v3531_v39 }

// kernel: simple_generator_forward.7
= control target key start
LH: loop header
LB: loop body
LE: loop exit
PB: predicated region body
PF: predicated region fallthrough
CT: control target
= control target key end

     0   :  { %v6802_v0 = vmov 0   ;;  %vm2682_vm0 = vcmask 261120   ;;  %vm4187_vm1 = vcmask 7168   ;;  %s11851_s4 = inlined_call_operand.vmem [shape: bf16[256,32], index: 4, kind: input, shape index: {}]   ;;  %s11852_s5 = inlined_call_operand.vmem [shape: bf16[256,32], index: 5, kind: input, shape index: {}]   ;;  %s11853_s0 = inlined_call_operand.vmem [shape: bf16[392,256], index: 0, kind: input, shape index: {}]   ;;  %s11854_s1 = inlined_call_operand.vmem [shape: bf16[392,256], index: 1, kind: input, shape index: {}]   ;;  %s11855_s6 = inlined_call_operand.vmem [shape: bf16[256,32], index: 6, kind: input, shape index: {}]   ;;  %s11856_s7 = inlined_call_operand.vmem [shape: bf16[256,32], index: 7, kind: input, shape index: {}]   ;;  %s11857_s2 = inlined_call_operand.vmem [shape: bf16[392,256], index: 2, kind: input, shape index: {}]   ;;  %s11858_s3 = inlined_call_operand.vmem [shape: bf16[392,256], index: 3, kind: input, shape index: {}]   ;;  %s11859_s8 = inlined_call_operand.vmem [shape: f32[1,32], index: 8, kind: input, shape index: {}]   ;;  %s11860_s9 = inlined_call_operand.vmem [shape: f32[1,32], index: 9, kind: input, shape index: {}]   ;;  %s11861_s10 = inlined_call_operand.vmem [shape: f32[1,32], index: 10, kind: input, shape index: {}]   ;;  %s11862_s11 = inlined_call_operand.vmem [shape: f32[1,32], index: 11, kind: input, shape index: {}]   ;;  %s11863_s12 = inlined_call_operand.<no memory space> [shape: f32[1,1], index: 12, kind: input, shape index: {}]   ;;  %s11864_s13 = inlined_call_operand.vmem [shape: f32[392,1], index: 13, kind: output, shape index: {0}]   ;;  %s11865_s14 = inlined_call_operand.vmem [shape: f32[392,1], index: 14, kind: output, shape index: {1}]   ;;  %s11866_s15 = inlined_call_operand.vmem [shape: f32[392,1], index: 15, kind: output, shape index: {2}]   ;;  %s11867_s16 = inlined_call_operand.vmem [shape: f32[392,1], index: 16, kind: output, shape index: {3}]  }
   0x1   :  { %12036 = sst [smem:[#allocation170_spill]] %s11851_s4  ;;  %482 = vmatprep.subr.bf16.mxu0 %v6802_v0  ;;  %1138 = vmatprep.subr.bf16.mxu1 %v6802_v0  ;;  %v6040_v2 = vld [vmem:[%s11852_s5] sm:$0xff]   ;;  %v6042_v4 = vld [vmem:[%s11852_s5 + $0x8] sm:$0xff]   ;;  %v6044_v6 = vld [vmem:[%s11852_s5 + $0x10] sm:$0xff]  }
   0x2   :  { %s12037_s23 = sld [smem:[#allocation170_spill]]  ;;  %1139 = vmatpush1.bf16.msra.mxu1 %v6040_v2  ;;  %v6046_v8 = vld [vmem:[%s11852_s5 + $0x18] sm:$0xff]   ;;  %v6048_v10 = vld [vmem:[%s11852_s5 + $0x20] sm:$0xff]   ;;  %v6050_v12 = vld [vmem:[%s11852_s5 + $0x28] sm:$0xff]  }
   0x3   :  { %1140 = vmatprep.subr.bf16.mxu1 %v6802_v0  ;;  %v6052_v14 = vld [vmem:[%s11852_s5 + $0x30] sm:$0xff]   ;;  %v6054_v16 = vld [vmem:[%s11852_s5 + $0x38] sm:$0xff]   ;;  %v6056_v18 = vld [vmem:[%s11852_s5 + $0x40] sm:$0xff]  }
   0x4   :  { %v6073_v19 = vld [vmem:[%s11853_s0 + $0x4] ss:$8 sps:$4 sm:$0xff]   ;;  %v6060_v24 = vld [vmem:[%s11852_s5 + $0x50] sm:$0xff]   ;;  %v6062_v26 = vld [vmem:[%s11852_s5 + $0x58] sm:$0xff]  }
   0x5   :  { %v6076_v21 = vld [vmem:[%s11854_s1 + $0x4] ss:$8 sps:$4 sm:$0xff]   ;;  %514 = vmatprep.mubr.bf16.mxu0 %v6073_v19  ;;  %v6068_v32 = vld [vmem:[%s11852_s5 + $0x70] sm:$0xff]   ;;  %v6070_v34 = vld [vmem:[%s11852_s5 + $0x78] sm:$0xff]  }
   0x6   :  { %1141 = vmatpush1.bf16.msra.mxu1 %v6042_v4  ;;  %v6058_v22 = vld [vmem:[%s11852_s5 + $0x48] sm:$0xff]   ;;  %1170 = vmatprep.mubr.bf16.mxu1 %v6076_v21  ;;  %v6064_v28 = vld [vmem:[%s11852_s5 + $0x60] sm:$0xff]   ;;  %v6079_v39 = vld [vmem:[%s11853_s0 + $0x14] ss:$8 sps:$4 sm:$0xff]  }
   0x7   :  { %1142 = vmatprep.subr.bf16.mxu1 %v6802_v0  ;;  %v6066_v30 = vld [vmem:[%s11852_s5 + $0x68] sm:$0xff]   ;;  %v6077_v37 = vld [vmem:[%s11855_s6] sm:$0xff]   ;;  %v6081_v40 = vld [vmem:[%s11854_s1 + $0x14] ss:$8 sps:$4 sm:$0xff]  }
   0x8   :  { %v6039_v1 = vld [vmem:[%s12037_s23] sm:$0xff]   ;;  %v6041_v3 = vld [vmem:[%s12037_s23 + $0x8] sm:$0xff]   ;;  %v6043_v5 = vld [vmem:[%s12037_s23 + $0x10] sm:$0xff]  }
   0x9   :  { %483 = vmatpush1.bf16.msra.mxu0 %v6039_v1  ;;  %v6045_v7 = vld [vmem:[%s12037_s23 + $0x18] sm:$0xff]   ;;  %v6047_v9 = vld [vmem:[%s12037_s23 + $0x20] sm:$0xff]   ;;  %v6049_v11 = vld [vmem:[%s12037_s23 + $0x28] sm:$0xff]  }
   0xa   :  { %484 = vmatprep.subr.bf16.mxu0 %v6802_v0  ;;  %1143 = vmatpush1.bf16.msra.mxu1 %v6044_v6  ;;  %v6051_v13 = vld [vmem:[%s12037_s23 + $0x30] sm:$0xff]   ;;  %v6053_v15 = vld [vmem:[%s12037_s23 + $0x38] sm:$0xff]   ;;  %v6055_v17 = vld [vmem:[%s12037_s23 + $0x40] sm:$0xff]  }
   0xb   :  { %1144 = vmatprep.subr.bf16.mxu1 %v6802_v0  ;;  %v6057_v20 = vld [vmem:[%s12037_s23 + $0x48] sm:$0xff]   ;;  %v6059_v23 = vld [vmem:[%s12037_s23 + $0x50] sm:$0xff]   ;;  %v6061_v25 = vld [vmem:[%s12037_s23 + $0x58] sm:$0xff]  }
   0xc   :  { %v6063_v27 = vld [vmem:[%s12037_s23 + $0x60] sm:$0xff]   ;;  %v6065_v29 = vld [vmem:[%s12037_s23 + $0x68] sm:$0xff]   ;;  %v6067_v31 = vld [vmem:[%s12037_s23 + $0x70] sm:$0xff]  }
   0xd   :  { %485 = vmatpush1.bf16.msra.mxu0 %v6041_v3  ;;  %v6069_v33 = vld [vmem:[%s12037_s23 + $0x78] sm:$0xff]   ;;  %v6071_v35 = vld [vmem:[%s11853_s0] ss:$8 sps:$4 sm:$0xff]   ;;  %v6086_v45 = vld [vmem:[%s11853_s0 + $0x24] ss:$8 sps:$4 sm:$0xff]  }
   0xe   :  { %486 = vmatprep.subr.bf16.mxu0 %v6802_v0  ;;  %1145 = vmatpush1.bf16.msra.mxu1 %v6046_v8  ;;  %v6074_v36 = vld [vmem:[%s11854_s1] ss:$8 sps:$4 sm:$0xff]   ;;  %v6083_v43 = vld [vmem:[%s11853_s0 + $0x10] ss:$8 sps:$4 sm:$0xff]   ;;  %v6088_v46 = vld [vmem:[%s11854_s1 + $0x24] ss:$8 sps:$4 sm:$0xff]  }
   0xf   :  { %1146 = vmatprep.subr.bf16.mxu1 %v6802_v0  ;;  %v6078_v38 = vld [vmem:[%s11856_s7] sm:$0xff]   ;;  %v6085_v41 = vld [vmem:[%s11855_s6 + $0x8] sm:$0xff]   ;;  %v6084_v44 = vld [vmem:[%s11854_s1 + $0x10] ss:$8 sps:$4 sm:$0xff]  }
  0x10   :  { %v6092_v42 = vld [vmem:[%s11856_s7 + $0x8] sm:$0xff]   ;;  %v6099_v47 = vld [vmem:[%s11855_s6 + $0x10] sm:$0xff]   ;;  %v6111_v49 = vld [vmem:[%s11855_s6 + $0x18] sm:$0xff]  }
  0x11   :  { %487 = vmatpush1.bf16.msra.mxu0 %v6043_v5  ;;  %v6100_v48 = vld [vmem:[%s11856_s7 + $0x10] sm:$0xff]   ;;  %v6114_v50 = vld [vmem:[%s11856_s7 + $0x18] sm:$0xff]   ;;  %v6090_v51 = vld [vmem:[%s11853_s0 + $0x20] ss:$8 sps:$4 sm:$0xff]  }
  0x12   :  { %488 = vmatprep.subr.bf16.mxu0 %v6802_v0  ;;  %1147 = vmatpush1.bf16.msra.mxu1 %v6048_v10  ;;  %v6091_v52 = vld [vmem:[%s11854_s1 + $0x20] ss:$8 sps:$4 sm:$0xff]   ;;  %v6093_v53 = vld [vmem:[%s11853_s0 + $0x34] ss:$8 sps:$4 sm:$0xff]   ;;  %v6097_v57 = vld [vmem:[%s11853_s0 + $0x30] ss:$8 sps:$4 sm:$0xff]  }
  0x13   :  { %1148 = vmatprep.subr.bf16.mxu1 %v6802_v0  ;;  %v6095_v54 = vld [vmem:[%s11854_s1 + $0x34] ss:$8 sps:$4 sm:$0xff]   ;;  %v6121_v55 = vld [vmem:[%s11855_s6 + $0x20] sm:$0xff]   ;;  %v6135_v58 = vld [vmem:[%s11855_s6 + $0x28] sm:$0xff]  }
  0x14   :  { %v6122_v56 = vld [vmem:[%s11856_s7 + $0x20] sm:$0xff]   ;;  %v6136_v59 = vld [vmem:[%s11856_s7 + $0x28] sm:$0xff]   ;;  %v6098_v60 = vld [vmem:[%s11854_s1 + $0x30] ss:$8 sps:$4 sm:$0xff]  }
  0x15   :  { %489 = vmatpush1.bf16.msra.mxu0 %v6045_v7  ;;  %v6101_v61 = vld [vmem:[%s11853_s0 + $0x44] ss:$8 sps:$4 sm:$0xff]   ;;  %v6143_v63 = vld [vmem:[%s11855_s6 + $0x30] sm:$0xff]   ;;  %v6105_v2 = vld [vmem:[%s11853_s0 + $0x40] ss:$8 sps:$4 sm:$0xff]  }
  0x16   :  { %490 = vmatprep.subr.bf16.mxu0 %v6802_v0  ;;  %1149 = vmatpush1.bf16.msra.mxu1 %v6050_v12  ;;  %v6103_v62 = vld [vmem:[%s11854_s1 + $0x44] ss:$8 sps:$4 sm:$0xff]   ;;  %v6144_v1 = vld [vmem:[%s11856_s7 + $0x30] sm:$0xff]   ;;  %v6157_v3 = vld [vmem:[%s11855_s6 + $0x38] sm:$0xff]  }
  0x17   :  { %1150 = vmatprep.subr.bf16.mxu1 %v6802_v0  ;;  %v6158_v4 = vld [vmem:[%s11856_s7 + $0x38] sm:$0xff]   ;;  %v6106_v5 = vld [vmem:[%s11854_s1 + $0x40] ss:$8 sps:$4 sm:$0xff]  }
  0x18   :  { %v6107_v6 = vld [vmem:[%s11853_s0 + $0x54] ss:$8 sps:$4 sm:$0xff]   ;;  %v6165_v8 = vld [vmem:[%s11855_s6 + $0x40] sm:$0xff]   ;;  %v6179_v10 = vld [vmem:[%s11855_s6 + $0x48] sm:$0xff]  }
  0x19   :  { %491 = vmatpush1.bf16.msra.mxu0 %v6047_v9  ;;  %v6109_v7 = vld [vmem:[%s11854_s1 + $0x54] ss:$8 sps:$4 sm:$0xff]   ;;  %v6170_v9 = vld [vmem:[%s11856_s7 + $0x40] sm:$0xff]   ;;  %v6112_v12 = vld [vmem:[%s11853_s0 + $0x50] ss:$8 sps:$4 sm:$0xff]  }
  0x1a   :  { %492 = vmatprep.subr.bf16.mxu0 %v6802_v0  ;;  %1151 = vmatpush1.bf16.msra.mxu1 %v6052_v14  ;;  %v6115_v14 = vld [vmem:[%s11853_s0 + $0x64] ss:$8 sps:$4 sm:$0xff]   ;;  %v6201_v19 = vld [vmem:[%s11855_s6 + $0x58] sm:$0xff]   ;;  %v6120_v21 = vld [vmem:[%s11854_s1 + $0x60] ss:$8 sps:$4 sm:$0xff]  }
  0x1b   :  { %1152 = vmatprep.subr.bf16.mxu1 %v6802_v0 }
  0x1d   :  { %493 = vmatpush1.bf16.msra.mxu0 %v6049_v11  ;;  %v6180_v11 = vld [vmem:[%s11856_s7 + $0x48] sm:$0xff]  }
  0x1e   :  { %494 = vmatprep.subr.bf16.mxu0 %v6802_v0  ;;  %1153 = vmatpush1.bf16.msra.mxu1 %v6054_v16  ;;  %v6187_v16 = vld [vmem:[%s11855_s6 + $0x50] sm:$0xff]  }
  0x1f   :  { %1154 = vmatprep.subr.bf16.mxu1 %v6802_v0 }
  0x21   :  { %495 = vmatpush1.bf16.msra.mxu0 %v6051_v13  ;;  %v6113_v13 = vld [vmem:[%s11854_s1 + $0x50] ss:$8 sps:$4 sm:$0xff]  }
  0x22   :  { %496 = vmatprep.subr.bf16.mxu0 %v6802_v0  ;;  %1155 = vmatpush1.bf16.msra.mxu1 %v6056_v18  ;;  %v6119_v18 = vld [vmem:[%s11853_s0 + $0x60] ss:$8 sps:$4 sm:$0xff]  }
  0x23   :  { %1156 = vmatprep.subr.bf16.mxu1 %v6802_v0 }
  0x25   :  { %497 = vmatpush1.bf16.msra.mxu0 %v6053_v15  ;;  %v6117_v15 = vld [vmem:[%s11854_s1 + $0x64] ss:$8 sps:$4 sm:$0xff]  }
  0x26   :  { %498 = vmatprep.subr.bf16.mxu0 %v6802_v0  ;;  %1157 = vmatpush1.bf16.msra.mxu1 %v6058_v22  ;;  %v6123_v22 = vld [vmem:[%s11853_s0 + $0x74] ss:$8 sps:$4 sm:$0xff]  }
  0x27   :  { %1158 = vmatprep.subr.bf16.mxu1 %v6802_v0 }
  0x29   :  { %499 = vmatpush1.bf16.msra.mxu0 %v6055_v17  ;;  %v6194_v17 = vld [vmem:[%s11856_s7 + $0x50] sm:$0xff]  }
  0x2a   :  { %500 = vmatprep.subr.bf16.mxu0 %v6802_v0  ;;  %1159 = vmatpush1.bf16.msra.mxu1 %v6060_v24  ;;  %v6213_v24 = vld [vmem:[%s11855_s6 + $0x60] sm:$0xff]  }
  0x2b   :  { %1160 = vmatprep.subr.bf16.mxu1 %v6802_v0 }
  0x2d   :  { %501 = vmatpush1.bf16.msra.mxu0 %v6057_v20  ;;  %v6202_v20 = vld [vmem:[%s11856_s7 + $0x58] sm:$0xff]  }
  0x2e   :  { %502 = vmatprep.subr.bf16.mxu0 %v6802_v0  ;;  %1161 = vmatpush1.bf16.msra.mxu1 %v6062_v26  ;;  %v6223_v26 = vld [vmem:[%s11855_s6 + $0x68] sm:$0xff]  }
  0x2f   :  { %1162 = vmatprep.subr.bf16.mxu1 %v6802_v0 }
  0x31   :  { %503 = vmatpush1.bf16.msra.mxu0 %v6059_v23  ;;  %v6125_v23 = vld [vmem:[%s11854_s1 + $0x74] ss:$8 sps:$4 sm:$0xff]  }
  0x32   :  { %504 = vmatprep.subr.bf16.mxu0 %v6802_v0  ;;  %1163 = vmatpush1.bf16.msra.mxu1 %v6064_v28  ;;  %v6127_v28 = vld [vmem:[%s11853_s0 + $0x70] ss:$8 sps:$4 sm:$0xff]  }
  0x33   :  { %1164 = vmatprep.subr.bf16.mxu1 %v6802_v0 }
  0x35   :  { %505 = vmatpush1.bf16.msra.mxu0 %v6061_v25  ;;  %v6216_v25 = vld [vmem:[%s11856_s7 + $0x60] sm:$0xff]  }
  0x36   :  { %506 = vmatprep.subr.bf16.mxu0 %v6802_v0  ;;  %1165 = vmatpush1.bf16.msra.mxu1 %v6066_v30  ;;  %v6129_v30 = vld [vmem:[%s11853_s0 + $0x84] ss:$8 sps:$4 sm:$0xff]  }
  0x37   :  { %1166 = vmatprep.subr.bf16.mxu1 %v6802_v0 }
  0x39   :  { %507 = vmatpush1.bf16.msra.mxu0 %v6063_v27  ;;  %v6224_v27 = vld [vmem:[%s11856_s7 + $0x68] sm:$0xff]  }
  0x3a   :  { %508 = vmatprep.subr.bf16.mxu0 %v6802_v0  ;;  %1167 = vmatpush1.bf16.msra.mxu1 %v6068_v32  ;;  %v6237_v32 = vld [vmem:[%s11855_s6 + $0x70] sm:$0xff]  }
  0x3b   :  { %1168 = vmatprep.subr.bf16.mxu1 %v6802_v0 }
  0x3d   :  { %509 = vmatpush1.bf16.msra.mxu0 %v6065_v29  ;;  %v6128_v29 = vld [vmem:[%s11854_s1 + $0x70] ss:$8 sps:$4 sm:$0xff]  }
  0x3e   :  { %510 = vmatprep.subr.bf16.mxu0 %v6802_v0  ;;  %1169 = vmatpush1.bf16.msra.mxu1 %v6070_v34  ;;  %v6133_v34 = vld [vmem:[%s11853_s0 + $0x80] ss:$8 sps:$4 sm:$0xff]  }
  0x3f   :  { %2450 = vmatprep.subr.bf16.mxu1 %v6802_v0 }
  0x41   :  { %511 = vmatpush1.bf16.msra.mxu0 %v6067_v31  ;;  %1171 = vmatmul.mubr.bf16.vlgmr.msra.gmra.mrb[0].mxu1 %v6074_v36  ;;  %v6131_v31 = vld [vmem:[%s11854_s1 + $0x84] ss:$8 sps:$4 sm:$0xff]   ;;  %v6137_v36 = vld [vmem:[%s11853_s0 + $0x94] ss:$8 sps:$4 sm:$0xff]  }
  0x42   :  { %512 = vmatprep.subr.bf16.mxu0 %v6802_v0  ;;  %2451 = vmatpush1.bf16.msra.mxu1 %v6078_v38  ;;  %v6139_v38 = vld [vmem:[%s11854_s1 + $0x94] ss:$8 sps:$4 sm:$0xff]  }
  0x43   :  { %1178 = vmatprep.mubr.bf16.mxu1 %v6081_v40  ;;  %2452 = vmatprep.subr.bf16.mxu1 %v6802_v0  ;;  %v6141_v40 = vld [vmem:[%s11853_s0 + $0x90] ss:$8 sps:$4 sm:$0xff]  }
  0x45   :  { %513 = vmatpush1.bf16.msra.mxu0 %v6069_v33  ;;  %v6238_v33 = vld [vmem:[%s11856_s7 + $0x70] sm:$0xff]  }
  0x46   :  { %1794 = vmatprep.subr.bf16.mxu0 %v6802_v0  ;;  %2453 = vmatpush1.bf16.msra.mxu1 %v6092_v42  ;;  %v6147_v42 = vld [vmem:[%s11854_s1 + $0xa4] ss:$8 sps:$4 sm:$0xff]  }
  0x47   :  { %2454 = vmatprep.subr.bf16.mxu1 %v6802_v0 }
  0x48   :  { %515 = vmatmul.mubr.bf16.vlgmr.msra.gmra.mrb[0].mxu0 %v6071_v35  ;;  %v6134_v35 = vld [vmem:[%s11854_s1 + $0x80] ss:$8 sps:$4 sm:$0xff]  }
  0x49   :  { %1795 = vmatpush1.bf16.msra.mxu0 %v6077_v37  ;;  %522 = vmatprep.mubr.bf16.mxu0 %v6079_v39  ;;  %v6245_v37 = vld [vmem:[%s11855_s6 + $0x78] sm:$0xff]  }
  0x4a   :  { %1796 = vmatprep.subr.bf16.mxu0 %v6802_v0  ;;  %1179 = vmatmul.mubr.bf16.gmra.mrb[4].mxu1 %v6084_v44  ;;  %v6248_v39 = vld [vmem:[%s11856_s7 + $0x78] sm:$0xff]   ;;  %v6150_v44 = vld [vmem:[%s11854_s1 + $0xa0] ss:$8 sps:$4 sm:$0xff]  }
  0x4b   :  { %1186 = vmatprep.mubr.bf16.mxu1 %v6088_v46  ;;  %2455 = vmatpush1.bf16.msra.mxu1 %v6100_v48  ;;  %v6153_v46 = vld [vmem:[%s11854_s1 + $0xb4] ss:$8 sps:$4 sm:$0xff]   ;;  %v6156_v48 = vld [vmem:[%s11854_s1 + $0xb0] ss:$8 sps:$4 sm:$0xff]  }
  0x4c   :  { %2456 = vmatprep.subr.bf16.mxu1 %v6802_v0 }
  0x4d   :  { %1797 = vmatpush1.bf16.msra.mxu0 %v6085_v41  ;;  %v6145_v41 = vld [vmem:[%s11853_s0 + $0xa4] ss:$8 sps:$4 sm:$0xff]  }
  0x4e   :  { %1798 = vmatprep.subr.bf16.mxu0 %v6802_v0 }
  0x4f   :  { %2457 = vmatpush1.bf16.msra.mxu1 %v6114_v50  ;;  %v6161_v50 = vld [vmem:[%s11854_s1 + $0xc4] ss:$8 sps:$4 sm:$0xff]  }
  0x50   :  { %523 = vmatmul.mubr.bf16.gmra.mrb[4].mxu0 %v6083_v43  ;;  %2458 = vmatprep.subr.bf16.mxu1 %v6802_v0  ;;  %v6149_v43 = vld [vmem:[%s11853_s0 + $0xa0] ss:$8 sps:$4 sm:$0xff]  }
  0x51   :  { %530 = vmatprep.mubr.bf16.mxu0 %v6086_v45  ;;  %1799 = vmatpush1.bf16.msra.mxu0 %v6099_v47  ;;  %v6151_v45 = vld [vmem:[%s11853_s0 + $0xb4] ss:$8 sps:$4 sm:$0xff]   ;;  %v6155_v47 = vld [vmem:[%s11853_s0 + $0xb0] ss:$8 sps:$4 sm:$0xff]  }
  0x52   :  { %1800 = vmatprep.subr.bf16.mxu0 %v6802_v0  ;;  %1187 = vmatmul.mubr.bf16.gmra.mrb[8].mxu1 %v6091_v52  ;;  %v6164_v52 = vld [vmem:[%s11854_s1 + $0xc0] ss:$8 sps:$4 sm:$0xff]  }
  0x53   :  { %1194 = vmatprep.mubr.bf16.mxu1 %v6095_v54  ;;  %2459 = vmatpush1.bf16.msra.mxu1 %v6122_v56  ;;  %v6168_v54 = vld [vmem:[%s11854_s1 + $0xd4] ss:$8 sps:$4 sm:$0xff]   ;;  %v6172_v56 = vld [vmem:[%s11854_s1 + $0xd0] ss:$8 sps:$4 sm:$0xff]  }
  0x54   :  { %2460 = vmatprep.subr.bf16.mxu1 %v6802_v0 }
  0x55   :  { %1801 = vmatpush1.bf16.msra.mxu0 %v6111_v49  ;;  %v6159_v49 = vld [vmem:[%s11853_s0 + $0xc4] ss:$8 sps:$4 sm:$0xff]  }
  0x56   :  { %1802 = vmatprep.subr.bf16.mxu0 %v6802_v0 }
  0x57   :  { %2461 = vmatpush1.bf16.msra.mxu1 %v6136_v59  ;;  %v6177_v59 = vld [vmem:[%s11853_s0 + $0xe0] ss:$8 sps:$4 sm:$0xff]  }
  0x58   :  { %531 = vmatmul.mubr.bf16.gmra.mrb[8].mxu0 %v6090_v51  ;;  %2462 = vmatprep.subr.bf16.mxu1 %v6802_v0  ;;  %v6163_v51 = vld [vmem:[%s11853_s0 + $0xc0] ss:$8 sps:$4 sm:$0xff]  }
  0x59   :  { %538 = vmatprep.mubr.bf16.mxu0 %v6093_v53  ;;  %1803 = vmatpush1.bf16.msra.mxu0 %v6121_v55  ;;  %v6166_v53 = vld [vmem:[%s11853_s0 + $0xd4] ss:$8 sps:$4 sm:$0xff]   ;;  %v6171_v55 = vld [vmem:[%s11853_s0 + $0xd0] ss:$8 sps:$4 sm:$0xff]  }
  0x5a   :  { %1804 = vmatprep.subr.bf16.mxu0 %v6802_v0  ;;  %1195 = vmatmul.mubr.bf16.gmra.mrb[12].mxu1 %v6098_v60  ;;  %v6178_v60 = vld [vmem:[%s11854_s1 + $0xe0] ss:$8 sps:$4 sm:$0xff]  }
  0x5b   :  { %1202 = vmatprep.mubr.bf16.mxu1 %v6103_v62  ;;  %2463 = vmatpush1.bf16.msra.mxu1 %v6144_v1  ;;  %v6183_v62 = vld [vmem:[%s11854_s1 + $0xf4] ss:$8 sps:$4 sm:$0xff]   ;;  %v6186_v1 = vld [vmem:[%s11854_s1 + $0xf0] ss:$8 sps:$4 sm:$0xff]  }
  0x5c   :  { %2464 = vmatprep.subr.bf16.mxu1 %v6802_v0 }
  0x5d   :  { %1805 = vmatpush1.bf16.msra.mxu0 %v6135_v58  ;;  %v6175_v58 = vld [vmem:[%s11854_s1 + $0xe4] ss:$8 sps:$4 sm:$0xff]  }
  0x5e   :  { %1806 = vmatprep.subr.bf16.mxu0 %v6802_v0 }
  0x5f   :  { %2465 = vmatpush1.bf16.msra.mxu1 %v6158_v4  ;;  %v6192_v4 = vld [vmem:[%s11853_s0 + $0x100] ss:$8 sps:$4 sm:$0xff]  }
  0x60   :  { %539 = vmatmul.mubr.bf16.gmra.mrb[12].mxu0 %v6097_v57  ;;  %2466 = vmatprep.subr.bf16.mxu1 %v6802_v0  ;;  %v6173_v57 = vld [vmem:[%s11853_s0 + $0xe4] ss:$8 sps:$4 sm:$0xff]  }
  0x61   :  { %546 = vmatprep.mubr.bf16.mxu0 %v6101_v61  ;;  %1807 = vmatpush1.bf16.msra.mxu0 %v6143_v63  ;;  %v6181_v61 = vld [vmem:[%s11853_s0 + $0xf4] ss:$8 sps:$4 sm:$0xff]   ;;  %v6185_v63 = vld [vmem:[%s11853_s0 + $0xf0] ss:$8 sps:$4 sm:$0xff]  }
  0x62   :  { %1808 = vmatprep.subr.bf16.mxu0 %v6802_v0  ;;  %1203 = vmatmul.mubr.bf16.gmra.mrb[16].mxu1 %v6106_v5  ;;  %v6193_v5 = vld [vmem:[%s11854_s1 + $0x100] ss:$8 sps:$4 sm:$0xff]  }
  0x63   :  { %1210 = vmatprep.mubr.bf16.mxu1 %v6109_v7  ;;  %2467 = vmatpush1.bf16.msra.mxu1 %v6170_v9  ;;  %v6197_v7 = vld [vmem:[%s11854_s1 + $0x114] ss:$8 sps:$4 sm:$0xff]   ;;  %v6200_v9 = vld [vmem:[%s11854_s1 + $0x110] ss:$8 sps:$4 sm:$0xff]  }
  0x64   :  { %2468 = vmatprep.subr.bf16.mxu1 %v6802_v0 }
  0x65   :  { %1809 = vmatpush1.bf16.msra.mxu0 %v6157_v3  ;;  %v6190_v3 = vld [vmem:[%s11854_s1 + $0x104] ss:$8 sps:$4 sm:$0xff]  }
  0x66   :  { %1810 = vmatprep.subr.bf16.mxu0 %v6802_v0 }
  0x67   :  { %2469 = vmatpush1.bf16.msra.mxu1 %v6180_v11  ;;  %v6205_v11 = vld [vmem:[%s11854_s1 + $0x124] ss:$8 sps:$4 sm:$0xff]  }
  0x68   :  { %547 = vmatmul.mubr.bf16.gmra.mrb[16].mxu0 %v6105_v2  ;;  %2470 = vmatprep.subr.bf16.mxu1 %v6802_v0  ;;  %v6188_v2 = vld [vmem:[%s11853_s0 + $0x104] ss:$8 sps:$4 sm:$0xff]  }
  0x69   :  { %554 = vmatprep.mubr.bf16.mxu0 %v6107_v6  ;;  %1811 = vmatpush1.bf16.msra.mxu0 %v6165_v8  ;;  %v6195_v6 = vld [vmem:[%s11853_s0 + $0x114] ss:$8 sps:$4 sm:$0xff]   ;;  %v6199_v8 = vld [vmem:[%s11853_s0 + $0x110] ss:$8 sps:$4 sm:$0xff]  }
  0x6a   :  { %1812 = vmatprep.subr.bf16.mxu0 %v6802_v0  ;;  %1211 = vmatmul.mubr.bf16.gmra.mrb[20].mxu1 %v6113_v13  ;;  %v6208_v13 = vld [vmem:[%s11854_s1 + $0x120] ss:$8 sps:$4 sm:$0xff]  }
  0x6b   :  { %1218 = vmatprep.mubr.bf16.mxu1 %v6117_v15  ;;  %2471 = vmatpush1.bf16.msra.mxu1 %v6194_v17  ;;  %v6211_v15 = vld [vmem:[%s11854_s1 + $0x134] ss:$8 sps:$4 sm:$0xff]   ;;  %v6215_v17 = vld [vmem:[%s11854_s1 + $0x130] ss:$8 sps:$4 sm:$0xff]  }
  0x6c   :  { %2472 = vmatprep.subr.bf16.mxu1 %v6802_v0 }
  0x6d   :  { %1813 = vmatpush1.bf16.msra.mxu0 %v6179_v10  ;;  %v6203_v10 = vld [vmem:[%s11853_s0 + $0x124] ss:$8 sps:$4 sm:$0xff]  }
  0x6e   :  { %1814 = vmatprep.subr.bf16.mxu0 %v6802_v0 }
  0x6f   :  { %2473 = vmatpush1.bf16.msra.mxu1 %v6202_v20  ;;  %v6221_v20 = vld [vmem:[%s11853_s0 + $0x140] ss:$8 sps:$4 sm:$0xff]  }
  0x70   :  { %555 = vmatmul.mubr.bf16.gmra.mrb[20].mxu0 %v6112_v12  ;;  %2474 = vmatprep.subr.bf16.mxu1 %v6802_v0  ;;  %v6207_v12 = vld [vmem:[%s11853_s0 + $0x120] ss:$8 sps:$4 sm:$0xff]  }
  0x71   :  { %562 = vmatprep.mubr.bf16.mxu0 %v6115_v14  ;;  %1815 = vmatpush1.bf16.msra.mxu0 %v6187_v16  ;;  %v6209_v14 = vld [vmem:[%s11853_s0 + $0x134] ss:$8 sps:$4 sm:$0xff]   ;;  %v6214_v16 = vld [vmem:[%s11853_s0 + $0x130] ss:$8 sps:$4 sm:$0xff]  }
  0x72   :  { %1816 = vmatprep.subr.bf16.mxu0 %v6802_v0  ;;  %1219 = vmatmul.mubr.bf16.gmra.mrb[24].mxu1 %v6120_v21  ;;  %v6222_v21 = vld [vmem:[%s11854_s1 + $0x140] ss:$8 sps:$4 sm:$0xff]  }
  0x73   :  { %1226 = vmatprep.mubr.bf16.mxu1 %v6125_v23  ;;  %2475 = vmatpush1.bf16.msra.mxu1 %v6216_v25  ;;  %v6227_v23 = vld [vmem:[%s11854_s1 + $0x154] ss:$8 sps:$4 sm:$0xff]   ;;  %v6230_v25 = vld [vmem:[%s11854_s1 + $0x150] ss:$8 sps:$4 sm:$0xff]  }
  0x74   :  { %2476 = vmatprep.subr.bf16.mxu1 %v6802_v0 }
  0x75   :  { %1817 = vmatpush1.bf16.msra.mxu0 %v6201_v19  ;;  %v6219_v19 = vld [vmem:[%s11854_s1 + $0x144] ss:$8 sps:$4 sm:$0xff]  }
  0x76   :  { %1818 = vmatprep.subr.bf16.mxu0 %v6802_v0 }
  0x77   :  { %2477 = vmatpush1.bf16.msra.mxu1 %v6224_v27  ;;  %v6233_v27 = vld [vmem:[%s11854_s1 + $0x164] ss:$8 sps:$4 sm:$0xff]  }
  0x78   :  { %563 = vmatmul.mubr.bf16.gmra.mrb[24].mxu0 %v6119_v18  ;;  %2478 = vmatprep.subr.bf16.mxu1 %v6802_v0  ;;  %v6217_v18 = vld [vmem:[%s11853_s0 + $0x144] ss:$8 sps:$4 sm:$0xff]  }
  0x79   :  { %570 = vmatprep.mubr.bf16.mxu0 %v6123_v22  ;;  %1819 = vmatpush1.bf16.msra.mxu0 %v6213_v24  ;;  %v6225_v22 = vld [vmem:[%s11853_s0 + $0x154] ss:$8 sps:$4 sm:$0xff]   ;;  %v6229_v24 = vld [vmem:[%s11853_s0 + $0x150] ss:$8 sps:$4 sm:$0xff]  }
  0x7a   :  { %1820 = vmatprep.subr.bf16.mxu0 %v6802_v0  ;;  %1227 = vmatmul.mubr.bf16.gmra.mrb[28].mxu1 %v6128_v29  ;;  %v6236_v29 = vld [vmem:[%s11854_s1 + $0x160] ss:$8 sps:$4 sm:$0xff]  }
  0x7b   :  { %1234 = vmatprep.mubr.bf16.mxu1 %v6131_v31  ;;  %2479 = vmatpush1.bf16.msra.mxu1 %v6238_v33  ;;  %v6241_v31 = vld [vmem:[%s11854_s1 + $0x174] ss:$8 sps:$4 sm:$0xff]   ;;  %v762_v33 = vld [vmem:[%s11854_s1 + $0x180] sm:$0xff] }
  0x7c   :  { %2480 = vmatprep.subr.bf16.mxu1 %v6802_v0 }
  0x7d   :  { %1821 = vmatpush1.bf16.msra.mxu0 %v6223_v26  ;;  %v6231_v26 = vld [vmem:[%s11853_s0 + $0x164] ss:$8 sps:$4 sm:$0xff]  }
  0x7e   :  { %1822 = vmatprep.subr.bf16.mxu0 %v6802_v0 }
  0x7f   :  { %2481 = vmatpush1.bf16.msra.mxu1 %v6248_v39  ;;  %v5880_v39 = vcombine.low %v762_v33, %v762_v33 }
  0x80   :  { %571 = vmatmul.mubr.bf16.gmra.mrb[28].mxu0 %v6127_v28  ;;  %v6235_v28 = vld [vmem:[%s11853_s0 + $0x160] ss:$8 sps:$4 sm:$0xff]  }
  0x81   :  { %578 = vmatprep.mubr.bf16.mxu0 %v6129_v30  ;;  %1823 = vmatpush1.bf16.msra.mxu0 %v6237_v32  ;;  %v6239_v30 = vld [vmem:[%s11853_s0 + $0x174] ss:$8 sps:$4 sm:$0xff]   ;;  %v100_v32 = vld [vmem:[%s11853_s0 + $0x180] sm:$0xff] }
  0x82   :  { %1824 = vmatprep.subr.bf16.mxu0 %v6802_v0  ;;  %1235 = vmatmul.mubr.bf16.gmra.mrb[32].mxu1 %v6134_v35  ;;  %v6142_v0 = vld [vmem:[%s11854_s1 + $0x90] ss:$8 sps:$4 sm:$0xff]  }
  0x83   :  { %1242 = vmatprep.mubr.bf16.mxu1 %v6139_v38  ;;  %v6244_v35 = vld [vmem:[%s11854_s1 + $0x170] ss:$8 sps:$4 sm:$0xff]   ;;  %v5814_v38 = vcombine.low %v100_v32, %v100_v32 }
  0x85   :  { %1825 = vmatpush1.bf16.msra.mxu0 %v6245_v37  ;;  %v5881_v37 = vcombine.high %v762_v33, %v762_v33 }
  0x88   :  { %579 = vmatmul.mubr.bf16.gmra.mrb[32].mxu0 %v6133_v34  ;;  %v6243_v34 = vld [vmem:[%s11853_s0 + $0x170] ss:$8 sps:$4 sm:$0xff]  }
  0x89   :  { %586 = vmatprep.mubr.bf16.mxu0 %v6137_v36  ;;  %v5815_v36 = vcombine.high %v100_v32, %v100_v32  ;;  %v6289_v32 = vld [vmem:[%s11858_s3 + $0x64] ss:$8 sps:$4 sm:$0xff]  }
  0x8a   :  { %1243 = vmatmul.mubr.bf16.gmra.mrb[36].mxu1 %v6142_v0  ;;  %v6256_v0 = vld [vmem:[%s11858_s3 + $0x4] ss:$8 sps:$4 sm:$0xff]  }
  0x8b   :  { %1250 = vmatprep.mubr.bf16.mxu1 %v6147_v42  ;;  %v6254_v42 = vld [vmem:[%s11858_s3] ss:$8 sps:$4 sm:$0xff]  }
  0x90   :  { %587 = vmatmul.mubr.bf16.gmra.mrb[36].mxu0 %v6141_v40  ;;  %v6253_v40 = vld [vmem:[%s11857_s2 + $0x4] ss:$8 sps:$4 sm:$0xff]  }
  0x91   :  { %594 = vmatprep.mubr.bf16.mxu0 %v6145_v41  ;;  %v6251_v41 = vld [vmem:[%s11857_s2] ss:$8 sps:$4 sm:$0xff]  }
  0x92   :  { %1251 = vmatmul.mubr.bf16.gmra.mrb[40].mxu1 %v6150_v44  ;;  %v6259_v44 = vld [vmem:[%s11858_s3 + $0x14] ss:$8 sps:$4 sm:$0xff]  }
  0x93   :  { %1258 = vmatprep.mubr.bf16.mxu1 %v6153_v46  ;;  %v6262_v46 = vld [vmem:[%s11858_s3 + $0x10] ss:$8 sps:$4 sm:$0xff]  }
  0x98   :  { %595 = vmatmul.mubr.bf16.gmra.mrb[40].mxu0 %v6149_v43  ;;  %v6257_v43 = vld [vmem:[%s11857_s2 + $0x14] ss:$8 sps:$4 sm:$0xff]  }
  0x99   :  { %602 = vmatprep.mubr.bf16.mxu0 %v6151_v45  ;;  %v6261_v45 = vld [vmem:[%s11857_s2 + $0x10] ss:$8 sps:$4 sm:$0xff]  }
  0x9a   :  { %1259 = vmatmul.mubr.bf16.gmra.mrb[44].mxu1 %v6156_v48  ;;  %v6265_v48 = vld [vmem:[%s11858_s3 + $0x24] ss:$8 sps:$4 sm:$0xff]  }
  0x9b   :  { %1266 = vmatprep.mubr.bf16.mxu1 %v6161_v50 }
  0xa0   :  { %603 = vmatmul.mubr.bf16.gmra.mrb[44].mxu0 %v6155_v47  ;;  %v6263_v47 = vld [vmem:[%s11857_s2 + $0x24] ss:$8 sps:$4 sm:$0xff]  }
  0xa1   :  { %610 = vmatprep.mubr.bf16.mxu0 %v6159_v49 }
  0xa2   :  { %1267 = vmatmul.mubr.bf16.gmra.mrb[48].mxu1 %v6164_v52  ;;  %v6267_v52 = vld [vmem:[%s11857_s2 + $0x20] ss:$8 sps:$4 sm:$0xff]  }
  0xa3   :  { %1274 = vmatprep.mubr.bf16.mxu1 %v6168_v54 }
  0xa8   :  { %611 = vmatmul.mubr.bf16.gmra.mrb[48].mxu0 %v6163_v51 }
  0xa9   :  { %618 = vmatprep.mubr.bf16.mxu0 %v6166_v53 }
  0xaa   :  { %1275 = vmatmul.mubr.bf16.gmra.mrb[52].mxu1 %v6172_v56  ;;  %v6269_v56 = vld [vmem:[%s11857_s2 + $0x34] ss:$8 sps:$4 sm:$0xff]  }
  0xab   :  { %1282 = vmatprep.mubr.bf16.mxu1 %v6175_v58 }
  0xb0   :  { %619 = vmatmul.mubr.bf16.gmra.mrb[52].mxu0 %v6171_v55  ;;  %v6268_v55 = vld [vmem:[%s11858_s3 + $0x20] ss:$8 sps:$4 sm:$0xff]  }
  0xb1   :  { %626 = vmatprep.mubr.bf16.mxu0 %v6173_v57 }
  0xb2   :  { %1283 = vmatmul.mubr.bf16.gmra.mrb[56].mxu1 %v6178_v60 }
  0xb3   :  { %1290 = vmatprep.mubr.bf16.mxu1 %v6183_v62 }
  0xb8   :  { %627 = vmatmul.mubr.bf16.gmra.mrb[56].mxu0 %v6177_v59  ;;  %v6271_v59 = vld [vmem:[%s11858_s3 + $0x34] ss:$8 sps:$4 sm:$0xff]  }
  0xb9   :  { %634 = vmatprep.mubr.bf16.mxu0 %v6181_v61 }
  0xba   :  { %1291 = vmatmul.mubr.bf16.gmra.mrb[60].mxu1 %v6186_v1  ;;  %v6273_v1 = vld [vmem:[%s11857_s2 + $0x30] ss:$8 sps:$4 sm:$0xff]  }
  0xbb   :  { %1298 = vmatprep.mubr.bf16.mxu1 %v6190_v3 }
  0xc0   :  { %635 = vmatmul.mubr.bf16.gmra.mrb[60].mxu0 %v6185_v63 }
  0xc1   :  { %642 = vmatprep.mubr.bf16.mxu0 %v6188_v2 }
  0xc2   :  { %1299 = vmatmul.mubr.bf16.gmra.mrb[64].mxu1 %v6193_v5  ;;  %v6275_v5 = vld [vmem:[%s11857_s2 + $0x44] ss:$8 sps:$4 sm:$0xff]  }
  0xc3   :  { %1306 = vmatprep.mubr.bf16.mxu1 %v6197_v7 }
  0xc8   :  { %643 = vmatmul.mubr.bf16.gmra.mrb[64].mxu0 %v6192_v4  ;;  %v6274_v4 = vld [vmem:[%s11858_s3 + $0x30] ss:$8 sps:$4 sm:$0xff]  }
  0xc9   :  { %650 = vmatprep.mubr.bf16.mxu0 %v6195_v6 }
  0xca   :  { %1307 = vmatmul.mubr.bf16.gmra.mrb[68].mxu1 %v6200_v9 }
  0xcb   :  { %1314 = vmatprep.mubr.bf16.mxu1 %v6205_v11 }
  0xd0   :  { %651 = vmatmul.mubr.bf16.gmra.mrb[68].mxu0 %v6199_v8  ;;  %v6277_v8 = vld [vmem:[%s11858_s3 + $0x44] ss:$8 sps:$4 sm:$0xff]  }
  0xd1   :  { %658 = vmatprep.mubr.bf16.mxu0 %v6203_v10 }
  0xd2   :  { %1315 = vmatmul.mubr.bf16.gmra.mrb[72].mxu1 %v6208_v13  ;;  %v6279_v13 = vld [vmem:[%s11857_s2 + $0x40] ss:$8 sps:$4 sm:$0xff]  }
  0xd3   :  { %1322 = vmatprep.mubr.bf16.mxu1 %v6211_v15 }
  0xd8   :  { %659 = vmatmul.mubr.bf16.gmra.mrb[72].mxu0 %v6207_v12 }
  0xd9   :  { %666 = vmatprep.mubr.bf16.mxu0 %v6209_v14 }
  0xda   :  { %1323 = vmatmul.mubr.bf16.gmra.mrb[76].mxu1 %v6215_v17  ;;  %v6281_v17 = vld [vmem:[%s11857_s2 + $0x54] ss:$8 sps:$4 sm:$0xff]  }
  0xdb   :  { %1330 = vmatprep.mubr.bf16.mxu1 %v6219_v19 }
  0xe0   :  { %667 = vmatmul.mubr.bf16.gmra.mrb[76].mxu0 %v6214_v16  ;;  %v6280_v16 = vld [vmem:[%s11858_s3 + $0x40] ss:$8 sps:$4 sm:$0xff]  }
  0xe1   :  { %674 = vmatprep.mubr.bf16.mxu0 %v6217_v18 }
  0xe2   :  { %1331 = vmatmul.mubr.bf16.gmra.mrb[80].mxu1 %v6222_v21 }
  0xe3   :  { %1338 = vmatprep.mubr.bf16.mxu1 %v6227_v23 }
  0xe8   :  { %675 = vmatmul.mubr.bf16.gmra.mrb[80].mxu0 %v6221_v20  ;;  %v6283_v20 = vld [vmem:[%s11858_s3 + $0x54] ss:$8 sps:$4 sm:$0xff]  }
  0xe9   :  { %682 = vmatprep.mubr.bf16.mxu0 %v6225_v22 }
  0xea   :  { %1339 = vmatmul.mubr.bf16.gmra.mrb[84].mxu1 %v6230_v25  ;;  %v6285_v25 = vld [vmem:[%s11857_s2 + $0x50] ss:$8 sps:$4 sm:$0xff]  }
  0xeb   :  { %1346 = vmatprep.mubr.bf16.mxu1 %v6233_v27 }
  0xf0   :  { %683 = vmatmul.mubr.bf16.gmra.mrb[84].mxu0 %v6229_v24 }
  0xf1   :  { %690 = vmatprep.mubr.bf16.mxu0 %v6231_v26 }
  0xf2   :  { %1347 = vmatmul.mubr.bf16.gmra.mrb[88].mxu1 %v6236_v29  ;;  %v6287_v29 = vld [vmem:[%s11857_s2 + $0x64] ss:$8 sps:$4 sm:$0xff]  }
  0xf3   :  { %1354 = vmatprep.mubr.bf16.mxu1 %v6241_v31 }
  0xf8   :  { %691 = vmatmul.mubr.bf16.gmra.mrb[88].mxu0 %v6235_v28  ;;  %v6286_v28 = vld [vmem:[%s11858_s3 + $0x50] ss:$8 sps:$4 sm:$0xff]  }
  0xf9   :  { %698 = vmatprep.mubr.bf16.mxu0 %v6239_v30 }
  0xfa   :  { %1355 = vmatmul.mubr.bf16.gmra.mrb[92].mxu1 %v6244_v35 }
  0xfb   :  { %1362 = vmatprep.mubr.bf16.mxu1 %v5881_v37  ;;  %v6291_v37 = vld [vmem:[%s11857_s2 + $0x60] ss:$8 sps:$4 sm:$0xff]  }
 0x100   :  { %699 = vmatmul.mubr.bf16.gmra.mrb[92].mxu0 %v6243_v34 }
 0x101   :  { %706 = vmatprep.mubr.bf16.mxu0 %v5815_v36 }
 0x102   :  { %1363 = vmatmul.mubr.bf16.gmra.mrb[96].mxu1 %v5880_v39 }
 0x103   :  { %2482 = vmatprep.mubr.bf16.mxu1 %v6256_v0  ;;  %v6293_v0 = vld [vmem:[%s11857_s2 + $0x74] ss:$8 sps:$4 sm:$0xff]  }
 0x108   :  { %707 = vmatmul.mubr.bf16.gmra.mrb[96].mxu0 %v5814_v38 }
 0x109   :  { %1826 = vmatprep.mubr.bf16.mxu0 %v6253_v40  ;;  %v6292_v40 = vld [vmem:[%s11858_s3 + $0x60] ss:$8 sps:$4 sm:$0xff]  }
 0x10a   :  { %2483 = vmatmul.mubr.bf16.vlgmr.msra.gmra.mrb[100].mxu1 %v6254_v42 }
 0x10b   :  { %2490 = vmatprep.mubr.bf16.mxu1 %v6259_v44 }
 0x110   :  { %1827 = vmatmul.mubr.bf16.vlgmr.msra.gmra.mrb[100].mxu0 %v6251_v41 }
 0x111   :  { %1834 = vmatprep.mubr.bf16.mxu0 %v6257_v43  ;;  %v6295_v43 = vld [vmem:[%s11858_s3 + $0x74] ss:$8 sps:$4 sm:$0xff]  }
 0x112   :  { %2491 = vmatmul.mubr.bf16.gmra.mrb[104].mxu1 %v6262_v46 }
 0x113   :  { %2498 = vmatprep.mubr.bf16.mxu1 %v6265_v48  ;;  %v6297_v48 = vld [vmem:[%s11857_s2 + $0x70] ss:$8 sps:$4 sm:$0xff]  }
 0x114   :  { %v7470_v50 = vpop.f32.mrb[0].mxu1 }
 0x115   :  { %v1174_v53 = vpop.f32.mrb[1].mxu1 }
 0x116   :  { %v7483_v57 = vpop.f32.mrb[2].mxu1  ;;  %v6298_v53 = vld [vmem:[%s11858_s3 + $0x70] ss:$8 sps:$4 sm:$0xff]  }
 0x117   :  { %v1177_v60 = vpop.f32.mrb[3].mxu1 }
 0x118   :  { %1835 = vmatmul.mubr.bf16.gmra.mrb[104].mxu0 %v6261_v45 }
 0x119   :  { %1842 = vmatprep.mubr.bf16.mxu0 %v6263_v47 }
 0x11a   :  { %2499 = vmatmul.mubr.bf16.gmra.mrb[108].mxu1 %v6268_v55  ;;  %v6299_v55 = vld [vmem:[%s11857_s2 + $0x84] ss:$8 sps:$4 sm:$0xff]  }
 0x11b   :  { %v7468_v49 = vpop.f32.mrb[0].mxu0  ;;  %2506 = vmatprep.mubr.bf16.mxu1 %v6271_v59  ;;  %v6301_v59 = vld [vmem:[%s11858_s3 + $0x84] ss:$8 sps:$4 sm:$0xff]  }
 0x11c   :  { %v518_v51 = vpop.f32.mrb[1].mxu0 }
 0x11d   :  { %v7475_v54 = vpop.f32.mrb[2].mxu0  ;;  %v7490_v62 = vpop.f32.mrb[4].mxu1 }
 0x11e   :  { %v521_v58 = vpop.f32.mrb[3].mxu0  ;;  %v1182_v2 = vpop.f32.mrb[5].mxu1 }
 0x11f   :  { %v7503_v6 = vpop.f32.mrb[6].mxu1 }
 0x120   :  { %1843 = vmatmul.mubr.bf16.gmra.mrb[108].mxu0 %v6267_v52  ;;  %v1185_v9 = vpop.f32.mrb[7].mxu1 }
 0x121   :  { %1850 = vmatprep.mubr.bf16.mxu0 %v6269_v56  ;;  %v6305_v9 = vld [vmem:[%s11857_s2 + $0x94] ss:$8 sps:$4 sm:$0xff]  }
 0x122   :  { %2507 = vmatmul.mubr.bf16.gmra.mrb[112].mxu1 %v6274_v4  ;;  %v6303_v4 = vld [vmem:[%s11857_s2 + $0x80] ss:$8 sps:$4 sm:$0xff]  }
 0x123   :  { %v7488_v61 = vpop.f32.mrb[4].mxu0  ;;  %2514 = vmatprep.mubr.bf16.mxu1 %v6277_v8  ;;  %v6304_v8 = vld [vmem:[%s11858_s3 + $0x80] ss:$8 sps:$4 sm:$0xff]  }
 0x124   :  { %v526_v63 = vpop.f32.mrb[5].mxu0 }
 0x125   :  { %v7495_v3 = vpop.f32.mrb[6].mxu0  ;;  %v7510_v11 = vpop.f32.mrb[8].mxu1 }
 0x126   :  { %v529_v7 = vpop.f32.mrb[7].mxu0  ;;  %v1190_v14 = vpop.f32.mrb[9].mxu1 }
 0x127   :  { %v7523_v18 = vpop.f32.mrb[10].mxu1  ;;  %v6307_v14 = vld [vmem:[%s11858_s3 + $0x94] ss:$8 sps:$4 sm:$0xff]  }
 0x128   :  { %1851 = vmatmul.mubr.bf16.gmra.mrb[112].mxu0 %v6273_v1  ;;  %v1193_v21 = vpop.f32.mrb[11].mxu1 }
 0x129   :  { %1858 = vmatprep.mubr.bf16.mxu0 %v6275_v5  ;;  %v6309_v21 = vld [vmem:[%s11857_s2 + $0x90] ss:$8 sps:$4 sm:$0xff]  }
 0x12a   :  { %2515 = vmatmul.mubr.bf16.gmra.mrb[116].mxu1 %v6280_v16 }
 0x12b   :  { %v7508_v10 = vpop.f32.mrb[8].mxu0  ;;  %2522 = vmatprep.mubr.bf16.mxu1 %v6283_v20 }
 0x12c   :  { %v534_v12 = vpop.f32.mrb[9].mxu0 }
 0x12d   :  { %v7515_v15 = vpop.f32.mrb[10].mxu0  ;;  %v7530_v23 = vpop.f32.mrb[12].mxu1 }
 0x12e   :  { %v537_v19 = vpop.f32.mrb[11].mxu0  ;;  %v1198_v26 = vpop.f32.mrb[13].mxu1 }
 0x12f   :  { %v7543_v30 = vpop.f32.mrb[14].mxu1  ;;  %v6310_v26 = vld [vmem:[%s11858_s3 + $0x90] ss:$8 sps:$4 sm:$0xff]  }
 0x130   :  { %1859 = vmatmul.mubr.bf16.gmra.mrb[116].mxu0 %v6279_v13  ;;  %v1201_v33 = vpop.f32.mrb[15].mxu1 }
 0x131   :  { %1866 = vmatprep.mubr.bf16.mxu0 %v6281_v17 }
 0x132   :  { %2523 = vmatmul.mubr.bf16.gmra.mrb[120].mxu1 %v6286_v28  ;;  %v6311_v28 = vld [vmem:[%s11857_s2 + $0xa4] ss:$8 sps:$4 sm:$0xff]  }
 0x133   :  { %v7528_v22 = vpop.f32.mrb[12].mxu0  ;;  %2530 = vmatprep.mubr.bf16.mxu1 %v6289_v32  ;;  %v6313_v32 = vld [vmem:[%s11858_s3 + $0xa4] ss:$8 sps:$4 sm:$0xff]  }
 0x134   :  { %v542_v24 = vpop.f32.mrb[13].mxu0 }
 0x135   :  { %v7535_v27 = vpop.f32.mrb[14].mxu0  ;;  %v7550_v35 = vpop.f32.mrb[16].mxu1 }
 0x136   :  { %v545_v31 = vpop.f32.mrb[15].mxu0  ;;  %v1206_v38 = vpop.f32.mrb[17].mxu1 }
 0x137   :  { %v7563_v41 = vpop.f32.mrb[18].mxu1 }
 0x138   :  { %1867 = vmatmul.mubr.bf16.gmra.mrb[120].mxu0 %v6285_v25  ;;  %v1209_v44 = vpop.f32.mrb[19].mxu1 }
 0x139   :  { %1874 = vmatprep.mubr.bf16.mxu0 %v6287_v29  ;;  %v6317_v44 = vld [vmem:[%s11857_s2 + $0xb4] ss:$8 sps:$4 sm:$0xff]  }
 0x13a   :  { %2531 = vmatmul.mubr.bf16.gmra.mrb[124].mxu1 %v6292_v40  ;;  %v6315_v40 = vld [vmem:[%s11857_s2 + $0xa0] ss:$8 sps:$4 sm:$0xff]  }
 0x13b   :  { %v7548_v34 = vpop.f32.mrb[16].mxu0  ;;  %2538 = vmatprep.mubr.bf16.mxu1 %v6295_v43  ;;  %v6316_v43 = vld [vmem:[%s11858_s3 + $0xa0] ss:$8 sps:$4 sm:$0xff]  }
 0x13c   :  { %v550_v36 = vpop.f32.mrb[17].mxu0 }
 0x13d   :  { %v7555_v39 = vpop.f32.mrb[18].mxu0  ;;  %v7570_v46 = vpop.f32.mrb[20].mxu1 }
 0x13e   :  { %v553_v42 = vpop.f32.mrb[19].mxu0  ;;  %v1214_v51 = vpop.f32.mrb[21].mxu1 }
 0x13f   :  { %v7583_v56 = vpop.f32.mrb[22].mxu1  ;;  %v6319_v51 = vld [vmem:[%s11858_s3 + $0xb4] ss:$8 sps:$4 sm:$0xff]  }
 0x140   :  { %1875 = vmatmul.mubr.bf16.gmra.mrb[124].mxu0 %v6291_v37  ;;  %v1217_v60 = vpop.f32.mrb[23].mxu1 }
 0x141   :  { %1882 = vmatprep.mubr.bf16.mxu0 %v6293_v0 }
 0x142   :  { %2539 = vmatmul.mubr.bf16.gmra.mrb[128].mxu1 %v6298_v53 }
 0x143   :  { %v7568_v45 = vpop.f32.mrb[20].mxu0  ;;  %2546 = vmatprep.mubr.bf16.mxu1 %v6301_v59 }
 0x144   :  { %v558_v47 = vpop.f32.mrb[21].mxu0 }
 0x145   :  { %v7575_v52 = vpop.f32.mrb[22].mxu0  ;;  %v7590_v1 = vpop.f32.mrb[24].mxu1 }
 0x146   :  { %v561_v58 = vpop.f32.mrb[23].mxu0  ;;  %v1222_v5 = vpop.f32.mrb[25].mxu1 }
 0x147   :  { %v7603_v12 = vpop.f32.mrb[26].mxu1  ;;  %v7653_v58 = vld [vmem:[%s11859_s8] ss:$0 sm:$0xff] }
 0x148   :  { %1883 = vmatmul.mubr.bf16.gmra.mrb[128].mxu0 %v6297_v48  ;;  %v1225_v16 = vpop.f32.mrb[27].mxu1 }
 0x149   :  { %1890 = vmatprep.mubr.bf16.mxu0 %v6299_v55  ;;  %v6325_v16 = vld [vmem:[%s11858_s3 + $0xc4] ss:$8 sps:$4 sm:$0xff]  }
 0x14a   :  { %2547 = vmatmul.mubr.bf16.gmra.mrb[132].mxu1 %v6304_v8  ;;  %v6322_v8 = vld [vmem:[%s11858_s3 + $0xb0] ss:$8 sps:$4 sm:$0xff]  }
 0x14b   :  { %v7588_v63 = vpop.f32.mrb[24].mxu0  ;;  %2554 = vmatprep.mubr.bf16.mxu1 %v6307_v14 }
 0x14c   :  { %v566_v2 = vpop.f32.mrb[25].mxu0 }
 0x14d   :  { %v7595_v7 = vpop.f32.mrb[26].mxu0  ;;  %v7610_v19 = vpop.f32.mrb[28].mxu1  ;;  %v6321_v2 = vld [vmem:[%s11857_s2 + $0xb0] ss:$8 sps:$4 sm:$0xff]  }
 0x14e   :  { %v569_v13 = vpop.f32.mrb[27].mxu0  ;;  %v1230_v24 = vpop.f32.mrb[29].mxu1 }
 0x14f   :  { %v7623_v29 = vpop.f32.mrb[30].mxu1  ;;  %v7679_v24 = vadd.f32 %v7653_v58, %v7470_v50 }
 0x150   :  { %1891 = vmatmul.mubr.bf16.gmra.mrb[132].mxu0 %v6303_v4  ;;  %v1233_v33 = vpop.f32.mrb[31].mxu1 }
 0x151   :  { %1898 = vmatprep.mubr.bf16.mxu0 %v6305_v9  ;;  %v6323_v9 = vld [vmem:[%s11857_s2 + $0xc4] ss:$8 sps:$4 sm:$0xff]   ;;  %12039 = vst [vmem:[#allocation4_spill] sm:$0xff] %v7679_v24  ;;  %v6327_v33 = vld [vmem:[%s11857_s2 + $0xc0] ss:$8 sps:$4 sm:$0xff]  }
 0x152   :  { %2555 = vmatmul.mubr.bf16.gmra.mrb[136].mxu1 %v6310_v26  ;;  %v7683_v26 = vadd.f32 %v7653_v58, %v7475_v54 }
 0x153   :  { %v7608_v17 = vpop.f32.mrb[28].mxu0  ;;  %2562 = vmatprep.mubr.bf16.mxu1 %v6313_v32 }
 0x154   :  { %v574_v20 = vpop.f32.mrb[29].mxu0  ;;  %12040 = vst [vmem:[#allocation5_spill] sm:$0xff] %v7683_v26 }
 0x155   :  { %v7615_v25 = vpop.f32.mrb[30].mxu0  ;;  %v7630_v37 = vpop.f32.mrb[32].mxu1 }
 0x156   :  { %v577_v31 = vpop.f32.mrb[31].mxu0  ;;  %v1238_v0 = vpop.f32.mrb[33].mxu1 }
 0x157   :  { %v7643_v47 = vpop.f32.mrb[34].mxu1  ;;  %v6328_v0 = vld [vmem:[%s11858_s3 + $0xc0] ss:$8 sps:$4 sm:$0xff]  }
 0x158   :  { %1899 = vmatmul.mubr.bf16.gmra.mrb[136].mxu0 %v6309_v21  ;;  %v1241_v53 = vpop.f32.mrb[35].mxu1  ;;  %v7675_v21 = vadd.f32 %v7653_v58, %v7468_v49  ;;  %v7691_v49 = vadd.f32 %v7653_v58, %v7488_v61  ;;  %v2787_v61 = vmul.f32 %v7683_v26, %v7683_v26 }
 0x159   :  { %1906 = vmatprep.mubr.bf16.mxu0 %v6311_v28  ;;  %v7687_v28 = vadd.f32 %v7653_v58, %v7483_v57  ;;  %v3042_v57 = vmul.f32 %v7679_v24, %v7679_v24 }
 0x15a   :  { %2563 = vmatmul.mubr.bf16.gmra.mrb[140].mxu1 %v6316_v43  ;;  %12038 = vst [vmem:[#allocation3_spill] sm:$0xff] %v7675_v21  ;;  %12042 = vst [vmem:[#allocation7_spill] sm:$0xff] %v7691_v49  ;;  %v2786_v50 = vmul.f32 %v7675_v21, %v7675_v21  ;;  %v6329_v43 = vld [vmem:[%s11857_s2 + $0xd4] ss:$8 sps:$4 sm:$0xff]  }
 0x15b   :  { %v7628_v36 = vpop.f32.mrb[32].mxu0  ;;  %2570 = vmatprep.mubr.bf16.mxu1 %v6319_v51  ;;  %12041 = vst [vmem:[#allocation6_spill] sm:$0xff] %v7687_v28  ;;  %v7720_v51 = vadd.f32 %v7653_v58, %v7490_v62 }
 0x15c   :  { %v582_v38 = vpop.f32.mrb[33].mxu0  ;;  %v2835_v62 = vsel %vm2682_vm0, %v2786_v50, 0.0 }
 0x15d   :  { %v7635_v42 = vpop.f32.mrb[34].mxu0  ;;  %v7655_v59 = vpop.f32.mrb[36].mxu1  ;;  %12043 = vst [vmem:[#allocation8_spill] sm:$0xff] %v7720_v51  ;;  %v3044_v50 = vmul.f32 %v7720_v51, %v7720_v51 }
 0x15e   :  { %v585_v48 = vpop.f32.mrb[35].mxu0  ;;  %v1246_v4 = vpop.f32.mrb[37].mxu1 }
 0x15f   :  { %v7668_v13 = vpop.f32.mrb[38].mxu1  ;;  %v3043_v48 = vmul.f32 %v7687_v28, %v7687_v28  ;;  %v2788_v4 = vmul.f32 %v7691_v49, %v7691_v49 }
 0x160   :  { %1907 = vmatmul.mubr.bf16.gmra.mrb[140].mxu0 %v6315_v40  ;;  %v1249_v20 = vpop.f32.mrb[39].mxu1 }
 0x161   :  { %1914 = vmatprep.mubr.bf16.mxu0 %v6317_v44  ;;  %v2684_v44 = vsel %vm2682_vm0, %v7683_v26, 0.0  ;;  %v3091_v20 = vsel %vm2682_vm0, %v3042_v57, 0.0  ;;  %v2838_v57 = vsel %vm2682_vm0, %v2788_v4, 0.0 }
 0x162   :  { %2571 = vmatmul.mubr.bf16.gmra.mrb[144].mxu1 %v6322_v8  ;;  %v7731_v8 = vadd.f32 %v7653_v58, %v7495_v3  ;;  %v3092_v3 = vsel %vm2682_vm0, %v3043_v48, 0.0 }
 0x163   :  { %v7648_v55 = vpop.f32.mrb[36].mxu0  ;;  %2578 = vmatprep.mubr.bf16.mxu1 %v6325_v16  ;;  %v2938_v16 = vsel %vm2682_vm0, %v7679_v24, 0.0 }
 0x164   :  { %v590_v60 = vpop.f32.mrb[37].mxu0  ;;  %12044 = vst [vmem:[#allocation9_spill] sm:$0xff] %v7731_v8 }
 0x165   :  { %v7660_v5 = vpop.f32.mrb[38].mxu0  ;;  %v7697_v32 = vpop.f32.mrb[40].mxu1 }
 0x166   :  { %v593_v14 = vpop.f32.mrb[39].mxu0  ;;  %v1254_v38 = vpop.f32.mrb[41].mxu1 }
 0x167   :  { %v7722_v53 = vpop.f32.mrb[42].mxu1  ;;  %v2683_v14 = vsel %vm2682_vm0, %v7675_v21, 0.0  ;;  %v2836_v38 = vsel %vm2682_vm0, %v2787_v61, 0.0  ;;  %v2941_v61 = vsel %vm2682_vm0, %v7720_v51, 0.0  ;;  %v6333_v51 = vld [vmem:[%s11857_s2 + $0xd0] ss:$8 sps:$4 sm:$0xff]  }
 0x168   :  { %1915 = vmatmul.mubr.bf16.gmra.mrb[144].mxu0 %v6321_v2  ;;  %v6331_v2 = vld [vmem:[%s11858_s3 + $0xd4] ss:$8 sps:$4 sm:$0xff]   ;;  %v2837_v48 = vadd.f32 %v2836_v38, %v2835_v62  ;;  %v6334_v62 = vld [vmem:[%s11858_s3 + $0xd0] ss:$8 sps:$4 sm:$0xff]  }
 0x169   :  { %1922 = vmatprep.mubr.bf16.mxu0 %v6323_v9  ;;  %v1257_v9 = vpop.f32.mrb[43].mxu1 }
 0x16a   :  { %2579 = vmatmul.mubr.bf16.gmra.mrb[148].mxu1 %v6328_v0  ;;  %v2686_v9 = vsel %vm2682_vm0, %v7691_v49, 0.0  ;;  %v2789_v0 = vmul.f32 %v7731_v8, %v7731_v8 }
 0x16b   :  { %v7693_v31 = vpop.f32.mrb[40].mxu0  ;;  %2586 = vmatprep.mubr.bf16.mxu1 %v6331_v2 }
 0x16c   :  { %v598_v54 = vpop.f32.mrb[41].mxu0 }
 0x16d   :  { %v7706_v40 = vpop.f32.mrb[42].mxu0  ;;  %v2685_v54 = vadd.f32 %v2684_v44, %v2683_v14  ;;  %v7766_v2 = vpop.f32.mrb[44].mxu1 }
 0x16e   :  { %v601_v60 = vpop.f32.mrb[43].mxu0  ;;  %v1262_v26 = vpop.f32.mrb[45].mxu1 }
 0x16f   :  { %v2939_v60 = vsel %vm2682_vm0, %v7687_v28, 0.0  ;;  %v3093_v28 = vadd.f32 %v3092_v3, %v3091_v20  ;;  %v2687_v24 = vadd.f32 %v2686_v9, %v2685_v54  ;;  %v7782_v20 = vpop.f32.mrb[46].mxu1  ;;  %v6337_v54 = vld [vmem:[%s11858_s3 + $0xe4] ss:$8 sps:$4 sm:$0xff]   ;;  %v2688_v3 = vsel %vm2682_vm0, %v7731_v8, 0.0 }
 0x170   :  { %1923 = vmatmul.mubr.bf16.gmra.mrb[148].mxu0 %v6327_v33  ;;  %v7749_v33 = vadd.f32 %v7653_v58, %v7503_v6  ;;  %v2940_v14 = vadd.f32 %v2939_v60, %v2938_v16  ;;  %v7764_v6 = vadd.f32 %v7653_v58, %v7510_v11  ;;  %v6335_v11 = vld [vmem:[%s11857_s2 + $0xe4] ss:$8 sps:$4 sm:$0xff]   ;;  %v2839_v16 = vadd.f32 %v2838_v57, %v2837_v48 }
 0x171   :  { %1930 = vmatprep.mubr.bf16.mxu0 %v6329_v43  ;;  %v7758_v43 = vadd.f32 %v7653_v58, %v7508_v10  ;;  %v3094_v60 = vsel %vm2682_vm0, %v3044_v50, 0.0  ;;  %12048 = vst [vmem:[#allocation13_spill] sm:$0xff] %v7782_v20  ;;  %v2840_v9 = vsel %vm2682_vm0, %v2789_v0, 0.0 }
 0x172   :  { %12045 = vst [vmem:[#allocation10_spill] sm:$0xff] %v7749_v33  ;;  %12047 = vst [vmem:[#allocation12_spill] sm:$0xff] %v7764_v6  ;;  %v2942_v38 = vadd.f32 %v2941_v61, %v2940_v14  ;;  %v2943_v57 = vsel %vm2682_vm0, %v7749_v33, 0.0  ;;  %v1265_v61 = vpop.f32.mrb[47].mxu1  ;;  %v3046_v48 = vmul.f32 %v7764_v6, %v7764_v6  ;;  %v7798_v14 = vadd.f32 %v7653_v58, %v7515_v15 }
 0x173   :  { %12046 = vst [vmem:[#allocation11_spill] sm:$0xff] %v7758_v43  ;;  %v7760_v44 = vpop.f32.mrb[44].mxu0  ;;  %v2790_v50 = vmul.f32 %v7758_v43, %v7758_v43  ;;  %v3095_v0 = vadd.f32 %v3094_v60, %v3093_v28  ;;  %2587 = vmatmul.mubr.bf16.gmra.mrb[152].mxu1 %v6334_v62  ;;  %v2841_v8 = vadd.f32 %v2840_v9, %v2839_v16  ;;  %v2690_v21 = vsel %vm2682_vm0, %v7758_v43, 0.0 }
 0x174   :  { %v606_v4 = vpop.f32.mrb[45].mxu0  ;;  %12049 = vst [vmem:[#allocation14_spill] sm:$0xff] %v7798_v14  ;;  %v2944_v49 = vadd.f32 %v2943_v57, %v2942_v38  ;;  %2594 = vmatprep.mubr.bf16.mxu1 %v6337_v54  ;;  %v2945_v20 = vsel %vm2682_vm0, %v7764_v6, 0.0 }
 0x175   :  { %v7771_v10 = vpop.f32.mrb[46].mxu0  ;;  %v3045_v4 = vmul.f32 %v7749_v33, %v7749_v33  ;;  %v2689_v33 = vadd.f32 %v2688_v3, %v2687_v24  ;;  %v2842_v15 = vsel %vm2682_vm0, %v2790_v50, 0.0  ;;  %v3098_v24 = vsel %vm2682_vm0, %v3046_v48, 0.0  ;;  %v7825_v16 = vpop.f32.mrb[48].mxu1  ;;  %v6340_v3 = vld [vmem:[%s11858_s3 + $0xe0] ss:$8 sps:$4 sm:$0xff]  }
 0x176   :  { %v609_v26 = vpop.f32.mrb[47].mxu0  ;;  %v2843_v57 = vadd.f32 %v2842_v15, %v2841_v8  ;;  %v2946_v50 = vadd.f32 %v2945_v20, %v2944_v49  ;;  %v2692_v48 = vsel %vm2682_vm0, %v7798_v14, 0.0  ;;  %v7859_v15 = vadd.f32 %v7653_v58, %v7543_v30 }
 0x177   :  { %v7802_v26 = vadd.f32 %v7653_v58, %v7523_v18  ;;  %v3096_v61 = vsel %vm2682_vm0, %v3045_v4, 0.0  ;;  %v7812_v18 = vadd.f32 %v7653_v58, %v7528_v22  ;;  %v6339_v22 = vld [vmem:[%s11857_s2 + $0xe0] ss:$8 sps:$4 sm:$0xff]   ;;  %v1270_v4 = vpop.f32.mrb[49].mxu1  ;;  %v2691_v9 = vadd.f32 %v2690_v21, %v2689_v33 }
 0x178   :  { %1931 = vmatmul.mubr.bf16.gmra.mrb[152].mxu0 %v6333_v51  ;;  %v2791_v51 = vmul.f32 %v7798_v14, %v7798_v14  ;;  %v3097_v60 = vadd.f32 %v3096_v61, %v3095_v0  ;;  %v6343_v61 = vld [vmem:[%s11858_s3 + $0xf4] ss:$8 sps:$4 sm:$0xff]   ;;  %v7851_v21 = vadd.f32 %v7653_v58, %v7535_v27  ;;  %12054 = vst [vmem:[#allocation19_spill] sm:$0xff] %v7859_v15 }
 0x179   :  { %12050 = vst [vmem:[#allocation15_spill] sm:$0xff] %v7802_v26  ;;  %1938 = vmatprep.mubr.bf16.mxu0 %v6335_v11  ;;  %12051 = vst [vmem:[#allocation16_spill] sm:$0xff] %v7812_v18  ;;  %v3047_v62 = vmul.f32 %v7802_v26, %v7802_v26  ;;  %v7823_v11 = vadd.f32 %v7653_v58, %v7530_v23  ;;  %v6341_v23 = vld [vmem:[%s11857_s2 + $0xf4] ss:$8 sps:$4 sm:$0xff]   ;;  %v2947_v6 = vsel %vm2682_vm0, %v7802_v26, 0.0 }
 0x17a   :  { %v3099_v4 = vadd.f32 %v3098_v24, %v3097_v60  ;;  %v2792_v43 = vmul.f32 %v7812_v18, %v7812_v18  ;;  %12053 = vst [vmem:[#allocation18_spill] sm:$0xff] %v7851_v21  ;;  %v2844_v8 = vsel %vm2682_vm0, %v2791_v51, 0.0  ;;  %v2694_v24 = vsel %vm2682_vm0, %v7812_v18, 0.0 }
 0x17b   :  { %v7814_v28 = vpop.f32.mrb[48].mxu0  ;;  %12052 = vst [vmem:[#allocation17_spill] sm:$0xff] %v7823_v11  ;;  %v3100_v33 = vsel %vm2682_vm0, %v3047_v62, 0.0  ;;  %v3048_v20 = vmul.f32 %v7823_v11, %v7823_v11  ;;  %v2949_v27 = vsel %vm2682_vm0, %v7823_v11, 0.0  ;;  %v7867_v60 = vadd.f32 %v7653_v58, %v7548_v34  ;;  %2595 = vmatmul.mubr.bf16.gmra.mrb[156].mxu1 %v6340_v3  ;;  %v6345_v34 = vld [vmem:[%s11857_s2 + $0xf0] ss:$8 sps:$4 sm:$0xff]  }
 0x17c   :  { %v614_v38 = vpop.f32.mrb[49].mxu0  ;;  %v2693_v51 = vadd.f32 %v2692_v48, %v2691_v9  ;;  %v2948_v62 = vadd.f32 %v2947_v6, %v2946_v50  ;;  %2602 = vmatprep.mubr.bf16.mxu1 %v6343_v61  ;;  %v2845_v30 = vadd.f32 %v2844_v8, %v2843_v57  ;;  %v2793_v11 = vmul.f32 %v7851_v21, %v7851_v21 }
 0x17d   :  { %v7830_v54 = vpop.f32.mrb[50].mxu0  ;;  %v7840_v38 = vpop.f32.mrb[50].mxu1  ;;  %12055 = vst [vmem:[#allocation20_spill] sm:$0xff] %v7867_v60  ;;  %v2696_v50 = vsel %vm2682_vm0, %v7851_v21, 0.0  ;;  %v2951_v48 = vsel %vm2682_vm0, %v7859_v15, 0.0  ;;  %v2794_v61 = vmul.f32 %v7867_v60, %v7867_v60 }
 0x17e   :  { %v617_v0 = vpop.f32.mrb[51].mxu0  ;;  %v1273_v49 = vpop.f32.mrb[51].mxu1  ;;  %v2695_v3 = vadd.f32 %v2694_v24, %v2693_v51  ;;  %v2950_v6 = vadd.f32 %v2949_v27, %v2948_v62  ;;  %v7908_v51 = vadd.f32 %v7653_v58, %v7563_v41 }
 0x17f   :  { %v7871_v0 = vadd.f32 %v7653_v58, %v7550_v35  ;;  %v2846_v49 = vsel %vm2682_vm0, %v2792_v43, 0.0  ;;  %v3049_v35 = vmul.f32 %v7859_v15, %v7859_v15  ;;  %v7884_v9 = vpop.f32.mrb[52].mxu1  ;;  %v6346_v43 = vld [vmem:[%s11858_s3 + $0xf0] ss:$8 sps:$4 sm:$0xff]   ;;  %v2848_v15 = vsel %vm2682_vm0, %v2793_v11, 0.0 }
 0x180   :  { %1939 = vmatmul.mubr.bf16.gmra.mrb[156].mxu0 %v6339_v22  ;;  %v3101_v22 = vadd.f32 %v3100_v33, %v3099_v4  ;;  %v7897_v4 = vadd.f32 %v7653_v58, %v7555_v39  ;;  %v1278_v8 = vpop.f32.mrb[53].mxu1  ;;  %v2847_v24 = vadd.f32 %v2846_v49, %v2845_v30  ;;  %12058 = vst [vmem:[#allocation23_spill] sm:$0xff] %v7908_v51  ;;  %v6349_v39 = vld [vmem:[%s11858_s3 + $0x104] ss:$8 sps:$4 sm:$0xff]   ;;  %v2698_v30 = vsel %vm2682_vm0, %v7867_v60, 0.0 }
 0x181   :  { %1946 = vmatprep.mubr.bf16.mxu0 %v6341_v23  ;;  %12056 = vst [vmem:[#allocation21_spill] sm:$0xff] %v7871_v0  ;;  %v3102_v23 = vsel %vm2682_vm0, %v3048_v20, 0.0  ;;  %v6347_v20 = vld [vmem:[%s11857_s2 + $0x104] ss:$8 sps:$4 sm:$0xff]   ;;  %v3050_v27 = vmul.f32 %v7871_v0, %v7871_v0  ;;  %v7910_v62 = vpop.f32.mrb[54].mxu1  ;;  %v7920_v49 = vadd.f32 %v7653_v58, %v7568_v45  ;;  %v2697_v41 = vadd.f32 %v2696_v50, %v2695_v3 }
 0x182   :  { %12057 = vst [vmem:[#allocation22_spill] sm:$0xff] %v7897_v4  ;;  %v3103_v8 = vadd.f32 %v3102_v23, %v3101_v22  ;;  %v1281_v21 = vpop.f32.mrb[55].mxu1  ;;  %v2952_v18 = vadd.f32 %v2951_v48, %v2950_v6  ;;  %v3104_v14 = vsel %vm2682_vm0, %v3049_v35, 0.0  ;;  %v2953_v22 = vsel %vm2682_vm0, %v7871_v0, 0.0 }
 0x183   :  { %v7876_v26 = vpop.f32.mrb[52].mxu0  ;;  %12059 = vst [vmem:[#allocation24_spill] sm:$0xff] %v7920_v49  ;;  %v2795_v11 = vmul.f32 %v7897_v4, %v7897_v4  ;;  %v7930_v23 = vadd.f32 %v7653_v58, %v7570_v46  ;;  %2603 = vmatmul.mubr.bf16.gmra.mrb[160].mxu1 %v6346_v43  ;;  %v2849_v45 = vadd.f32 %v2848_v15, %v2847_v24  ;;  %v3106_v3 = vsel %vm2682_vm0, %v3050_v27, 0.0  ;;  %v6351_v15 = vld [vmem:[%s11857_s2 + $0x100] ss:$8 sps:$4 sm:$0xff]  }
 0x184   :  { %v622_v57 = vpop.f32.mrb[53].mxu0  ;;  %v2699_v21 = vadd.f32 %v2698_v30, %v2697_v41  ;;  %2610 = vmatprep.mubr.bf16.mxu1 %v6349_v39  ;;  %v3105_v6 = vadd.f32 %v3104_v14, %v3103_v8  ;;  %v2700_v35 = vsel %vm2682_vm0, %v7897_v4, 0.0  ;;  %v2796_v50 = vmul.f32 %v7920_v49, %v7920_v49  ;;  %v6352_v27 = vld [vmem:[%s11858_s3 + $0x100] ss:$8 sps:$4 sm:$0xff]  }
 0x185   :  { %v7899_v33 = vpop.f32.mrb[54].mxu0  ;;  %12060 = vst [vmem:[#allocation25_spill] sm:$0xff] %v7930_v23  ;;  %v7941_v46 = vadd.f32 %v7653_v58, %v7575_v52  ;;  %v2955_v14 = vsel %vm2682_vm0, %v7908_v51, 0.0  ;;  %v2852_v39 = vsel %vm2682_vm0, %v2795_v11, 0.0  ;;  %v3052_v8 = vmul.f32 %v7930_v23, %v7930_v23 }
 0x186   :  { %v625_v57 = vpop.f32.mrb[55].mxu0  ;;  %v3107_v52 = vadd.f32 %v3106_v3, %v3105_v6  ;;  %v7960_v30 = vadd.f32 %v7653_v58, %v7583_v56  ;;  %v2702_v11 = vsel %vm2682_vm0, %v7920_v49, 0.0  ;;  %v6355_v56 = vld [vmem:[%s11858_s3 + $0x114] ss:$8 sps:$4 sm:$0xff]  }
 0x187   :  { %v2850_v57 = vsel %vm2682_vm0, %v2794_v61, 0.0  ;;  %v2954_v61 = vadd.f32 %v2953_v22, %v2952_v18  ;;  %v2701_v22 = vadd.f32 %v2700_v35, %v2699_v21  ;;  %v2797_v21 = vmul.f32 %v7941_v46, %v7941_v46 }
 0x188   :  { %1947 = vmatmul.mubr.bf16.gmra.mrb[160].mxu0 %v6345_v34  ;;  %v3051_v34 = vmul.f32 %v7908_v51, %v7908_v51  ;;  %v2851_v48 = vadd.f32 %v2850_v57, %v2849_v45  ;;  %12061 = vst [vmem:[#allocation26_spill] sm:$0xff] %v7960_v30  ;;  %v6353_v57 = vld [vmem:[%s11857_s2 + $0x114] ss:$8 sps:$4 sm:$0xff]   ;;  %v3110_v4 = vsel %vm2682_vm0, %v3052_v8, 0.0 }
 0x189   :  { %1954 = vmatprep.mubr.bf16.mxu0 %v6347_v20  ;;  %v7950_v20 = vpop.f32.mrb[56].mxu1  ;;  %v2956_v0 = vadd.f32 %v2955_v14, %v2954_v61  ;;  %v2959_v61 = vsel %vm2682_vm0, %v7960_v30, 0.0  ;;  %v8000_v14 = vadd.f32 %v7653_v58, %v7595_v7 }
 0x18a   :  { %v1286_v18 = vpop.f32.mrb[57].mxu1  ;;  %v3108_v45 = vsel %vm2682_vm0, %v3051_v34, 0.0  ;;  %v7982_v34 = vadd.f32 %v7653_v58, %v7588_v63  ;;  %v2853_v51 = vadd.f32 %v2852_v39, %v2851_v48  ;;  %v2704_v48 = vsel %vm2682_vm0, %v7941_v46, 0.0 }
 0x18b   :  { %v7943_v43 = vpop.f32.mrb[56].mxu0  ;;  %v7970_v3 = vpop.f32.mrb[58].mxu1  ;;  %v2957_v18 = vsel %vm2682_vm0, %v7930_v23, 0.0  ;;  %v3109_v49 = vadd.f32 %v3108_v45, %v3107_v52  ;;  %v3053_v23 = vmul.f32 %v7960_v30, %v7960_v30  ;;  %2611 = vmatmul.mubr.bf16.gmra.mrb[164].mxu1 %v6352_v27  ;;  %12063 = vst [vmem:[#allocation28_spill] sm:$0xff] %v8000_v14  ;;  %v6357_v27 = vld [vmem:[%s11857_s2 + $0x110] ss:$8 sps:$4 sm:$0xff]  }
 0x18c   :  { %v630_v24 = vpop.f32.mrb[57].mxu0  ;;  %v1289_v35 = vpop.f32.mrb[59].mxu1  ;;  %v2958_v63 = vadd.f32 %v2957_v18, %v2956_v0  ;;  %2618 = vmatprep.mubr.bf16.mxu1 %v6355_v56  ;;  %v2706_v39 = vsel %vm2682_vm0, %v7982_v34, 0.0  ;;  %v6359_v56 = vld [vmem:[%s11857_s2 + $0x124] ss:$8 sps:$4 sm:$0xff]  }
 0x18d   :  { %v7962_v41 = vpop.f32.mrb[58].mxu0  ;;  %v2854_v24 = vsel %vm2682_vm0, %v2796_v50, 0.0  ;;  %v2703_v50 = vadd.f32 %v2702_v11, %v2701_v22  ;;  %v3111_v52 = vadd.f32 %v3110_v4, %v3109_v49  ;;  %v3112_v45 = vsel %vm2682_vm0, %v3053_v23, 0.0 }
 0x18e   :  { %v633_v6 = vpop.f32.mrb[59].mxu0  ;;  %v2855_v60 = vadd.f32 %v2854_v24, %v2853_v51  ;;  %v8004_v51 = vadd.f32 %v7653_v58, %v7603_v12  ;;  %v6358_v12 = vld [vmem:[%s11858_s3 + $0x110] ss:$8 sps:$4 sm:$0xff]   ;;  %v8023_v11 = vadd.f32 %v7653_v58, %v7608_v17  ;;  %v2960_v18 = vadd.f32 %v2959_v61, %v2958_v63  ;;  %v6361_v17 = vld [vmem:[%s11858_s3 + $0x124] ss:$8 sps:$4 sm:$0xff]  }
 0x18f   :  { %v7986_v6 = vadd.f32 %v7653_v58, %v7590_v1  ;;  %v2856_v1 = vsel %vm2682_vm0, %v2797_v21, 0.0  ;;  %v2705_v22 = vadd.f32 %v2704_v48, %v2703_v50  ;;  %v3113_v61 = vadd.f32 %v3112_v45, %v3111_v52 }
 0x190   :  { %1955 = vmatmul.mubr.bf16.gmra.mrb[164].mxu0 %v6351_v15  ;;  %v2798_v15 = vmul.f32 %v7982_v34, %v7982_v34  ;;  %12064 = vst [vmem:[#allocation29_spill] sm:$0xff] %v8004_v51  ;;  %12065 = vst [vmem:[#allocation30_spill] sm:$0xff] %v8023_v11  ;;  %v2857_v24 = vadd.f32 %v2856_v1, %v2855_v60  ;;  %v3055_v60 = vmul.f32 %v8004_v51, %v8004_v51 }
 0x191   :  { %12062 = vst [vmem:[#allocation27_spill] sm:$0xff] %v7986_v6  ;;  %1962 = vmatprep.mubr.bf16.mxu0 %v6353_v57  ;;  %v3054_v8 = vmul.f32 %v7986_v6, %v7986_v6  ;;  %v8015_v57 = vpop.f32.mrb[60].mxu1  ;;  %v2961_v21 = vsel %vm2682_vm0, %v7986_v6, 0.0  ;;  %v2707_v23 = vadd.f32 %v2706_v39, %v2705_v22  ;;  %v8053_v22 = vadd.f32 %v7653_v58, %v7615_v25  ;;  %v6363_v25 = vld [vmem:[%s11857_s2 + $0x120] ss:$8 sps:$4 sm:$0xff]  }
 0x192   :  { %v1294_v4 = vpop.f32.mrb[61].mxu1  ;;  %v2858_v48 = vsel %vm2682_vm0, %v2798_v15, 0.0  ;;  %v2962_v39 = vadd.f32 %v2961_v21, %v2960_v18  ;;  %v2800_v15 = vmul.f32 %v8023_v11, %v8023_v11  ;;  %v8072_v21 = vadd.f32 %v7653_v58, %v7623_v29 }
 0x193   :  { %v8006_v0 = vpop.f32.mrb[60].mxu0  ;;  %v8032_v35 = vpop.f32.mrb[62].mxu1  ;;  %v3114_v1 = vsel %vm2682_vm0, %v3054_v8, 0.0  ;;  %v2708_v4 = vsel %vm2682_vm0, %v8000_v14, 0.0  ;;  %12067 = vst [vmem:[#allocation32_spill] sm:$0xff] %v8053_v22  ;;  %2619 = vmatmul.mubr.bf16.gmra.mrb[168].mxu1 %v6358_v12  ;;  %v2859_v52 = vadd.f32 %v2858_v48, %v2857_v24  ;;  %v2963_v8 = vsel %vm2682_vm0, %v8004_v51, 0.0 }
 0x194   :  { %v638_v7 = vpop.f32.mrb[61].mxu0  ;;  %v1297_v63 = vpop.f32.mrb[63].mxu1  ;;  %2626 = vmatprep.mubr.bf16.mxu1 %v6361_v17  ;;  %v3115_v45 = vadd.f32 %v3114_v1, %v3113_v61  ;;  %v2710_v12 = vsel %vm2682_vm0, %v8023_v11, 0.0  ;;  %12068 = vst [vmem:[#allocation33_spill] sm:$0xff] %v8072_v21  ;;  %v6364_v48 = vld [vmem:[%s11858_s3 + $0x120] ss:$8 sps:$4 sm:$0xff]   ;;  %v2801_v61 = vmul.f32 %v8053_v22, %v8053_v22  ;;  %v8084_v1 = vadd.f32 %v7653_v58, %v7628_v36 }
 0x195   :  { %v8025_v49 = vpop.f32.mrb[62].mxu0  ;;  %v2799_v7 = vmul.f32 %v8000_v14, %v8000_v14  ;;  %v2709_v63 = vadd.f32 %v2708_v4, %v2707_v23  ;;  %v8074_v17 = vpop.f32.mrb[64].mxu1  ;;  %v6367_v36 = vld [vmem:[%s11858_s3 + $0x134] ss:$8 sps:$4 sm:$0xff]  }
 0x196   :  { %v641_v50 = vpop.f32.mrb[63].mxu0  ;;  %12069 = vst [vmem:[#allocation34_spill] sm:$0xff] %v8084_v1  ;;  %v1302_v4 = vpop.f32.mrb[65].mxu1 }
 0x197   :  { %v8047_v50 = vadd.f32 %v7653_v58, %v7610_v19  ;;  %v2860_v19 = vsel %vm2682_vm0, %v2799_v7, 0.0  ;;  %v2964_v7 = vadd.f32 %v2963_v8, %v2962_v39  ;;  %v8093_v39 = vadd.f32 %v7653_v58, %v7630_v37 }
 0x198   :  { %1963 = vmatmul.mubr.bf16.gmra.mrb[168].mxu0 %v6357_v27  ;;  %v3116_v27 = vsel %vm2682_vm0, %v3055_v60, 0.0  ;;  %v2862_v60 = vsel %vm2682_vm0, %v2800_v15, 0.0  ;;  %v8095_v15 = vpop.f32.mrb[66].mxu1  ;;  %v2711_v4 = vadd.f32 %v2710_v12, %v2709_v63  ;;  %v3057_v37 = vmul.f32 %v8072_v21, %v8072_v21 }
 0x199   :  { %12066 = vst [vmem:[#allocation31_spill] sm:$0xff] %v8047_v50  ;;  %1970 = vmatprep.mubr.bf16.mxu0 %v6359_v56  ;;  %v2965_v56 = vsel %vm2682_vm0, %v8047_v50, 0.0  ;;  %v3056_v24 = vmul.f32 %v8047_v50, %v8047_v50  ;;  %v2861_v50 = vadd.f32 %v2860_v19, %v2859_v52  ;;  %12070 = vst [vmem:[#allocation35_spill] sm:$0xff] %v8093_v39  ;;  %v1305_v30 = vpop.f32.mrb[67].mxu1  ;;  %v2712_v52 = vsel %vm2682_vm0, %v8053_v22, 0.0 }
 0x19a   :  { %v3117_v51 = vadd.f32 %v3116_v27, %v3115_v45  ;;  %v2966_v6 = vadd.f32 %v2965_v56, %v2964_v7  ;;  %v2864_v19 = vsel %vm2682_vm0, %v2801_v61, 0.0  ;;  %v2802_v45 = vmul.f32 %v8084_v1, %v8084_v1 }
 0x19b   :  { %v8059_v18 = vpop.f32.mrb[64].mxu0  ;;  %v2863_v11 = vadd.f32 %v2862_v60, %v2861_v50  ;;  %v3118_v14 = vsel %vm2682_vm0, %v3056_v24, 0.0  ;;  %v8112_v30 = vadd.f32 %v7653_v58, %v7635_v42  ;;  %2627 = vmatmul.mubr.bf16.gmra.mrb[172].mxu1 %v6364_v48  ;;  %v2714_v50 = vsel %vm2682_vm0, %v8084_v1, 0.0  ;;  %v6369_v24 = vld [vmem:[%s11857_s2 + $0x130] ss:$8 sps:$4 sm:$0xff]  }
 0x19c   :  { %v646_v23 = vpop.f32.mrb[65].mxu0  ;;  %v3058_v63 = vmul.f32 %v8093_v39, %v8093_v39  ;;  %v8120_v27 = vadd.f32 %v7653_v58, %v7643_v47  ;;  %2634 = vmatprep.mubr.bf16.mxu1 %v6367_v36  ;;  %v2713_v12 = vadd.f32 %v2712_v52, %v2711_v4  ;;  %v8124_v56 = vadd.f32 %v7653_v58, %v7648_v55  ;;  %v6371_v4 = vld [vmem:[%s11857_s2 + $0x144] ss:$8 sps:$4 sm:$0xff]  }
 0x19d   :  { %v8086_v29 = vpop.f32.mrb[66].mxu0  ;;  %v6365_v23 = vld [vmem:[%s11857_s2 + $0x134] ss:$8 sps:$4 sm:$0xff]   ;;  %12071 = vst [vmem:[#allocation36_spill] sm:$0xff] %v8112_v30  ;;  %v2865_v48 = vadd.f32 %v2864_v19, %v2863_v11  ;;  %v3120_v60 = vsel %vm2682_vm0, %v3057_v37, 0.0  ;;  %v8132_v61 = vpop.f32.mrb[68].mxu1  ;;  %v2803_v36 = vmul.f32 %v8112_v30, %v8112_v30 }
 0x19e   :  { %v649_v8 = vpop.f32.mrb[67].mxu0  ;;  %12072 = vst [vmem:[#allocation37_spill] sm:$0xff] %v8120_v27  ;;  %12073 = vst [vmem:[#allocation38_spill] sm:$0xff] %v8124_v56  ;;  %v2866_v55 = vsel %vm2682_vm0, %v2802_v45, 0.0  ;;  %v1310_v11 = vpop.f32.mrb[69].mxu1  ;;  %v3122_v52 = vsel %vm2682_vm0, %v3058_v63, 0.0  ;;  %v3059_v19 = vmul.f32 %v8120_v27, %v8120_v27  ;;  %v2804_v63 = vmul.f32 %v8124_v56, %v8124_v56 }
 0x19f   :  { %v2967_v8 = vsel %vm2682_vm0, %v8072_v21, 0.0  ;;  %v2716_v37 = vsel %vm2682_vm0, %v8112_v30, 0.0  ;;  %v8156_v45 = vpop.f32.mrb[70].mxu1  ;;  %v8165_v11 = vadd.f32 %v7653_v58, %v7660_v5  ;;  %v2867_v21 = vadd.f32 %v2866_v55, %v2865_v48 }
 0x1a0   :  { %1971 = vmatmul.mubr.bf16.gmra.mrb[172].mxu0 %v6363_v25  ;;  %v3119_v25 = vadd.f32 %v3118_v14, %v3117_v51  ;;  %v2968_v7 = vadd.f32 %v2967_v8, %v2966_v6  ;;  %v6370_v14 = vld [vmem:[%s11858_s3 + $0x130] ss:$8 sps:$4 sm:$0xff]   ;;  %v2715_v51 = vadd.f32 %v2714_v50, %v2713_v12  ;;  %v8154_v8 = vadd.f32 %v7653_v58, %v7655_v59  ;;  %v6373_v12 = vld [vmem:[%s11858_s3 + $0x144] ss:$8 sps:$4 sm:$0xff]  }
 0x1a1   :  { %1978 = vmatprep.mubr.bf16.mxu0 %v6365_v23  ;;  %v2969_v23 = vsel %vm2682_vm0, %v8093_v39, 0.0  ;;  %12075 = vst [vmem:[#allocation40_spill] sm:$0xff] %v8165_v11  ;;  %v1313_v39 = vpop.f32.mrb[71].mxu1  ;;  %v2971_v22 = vsel %vm2682_vm0, %v8120_v27, 0.0 }
 0x1a2   :  { %12074 = vst [vmem:[#allocation39_spill] sm:$0xff] %v8154_v8  ;;  %v2970_v30 = vadd.f32 %v2969_v23, %v2968_v7  ;;  %v2717_v1 = vadd.f32 %v2716_v37, %v2715_v51  ;;  %v3060_v5 = vmul.f32 %v8154_v8, %v8154_v8  ;;  %v8177_v39 = vadd.f32 %v7653_v58, %v7668_v13 }
 0x1a3   :  { %v8126_v42 = vpop.f32.mrb[68].mxu0  ;;  %2635 = vmatmul.mubr.bf16.gmra.mrb[176].mxu1 %v6370_v14  ;;  %v2973_v48 = vsel %vm2682_vm0, %v8154_v8, 0.0  ;;  %v2805_v7 = vmul.f32 %v8165_v11, %v8165_v11  ;;  %v8186_v14 = vadd.f32 %v7653_v58, %v7693_v31  ;;  %v8192_v13 = vadd.f32 %v7653_v58, %v7697_v32  ;;  %v6377_v32 = vld [vmem:[%s11857_s2 + $0x154] ss:$8 sps:$4 sm:$0xff]  }
 0x1a4   :  { %v654_v47 = vpop.f32.mrb[69].mxu0  ;;  %12076 = vst [vmem:[#allocation41_spill] sm:$0xff] %v8177_v39  ;;  %2642 = vmatprep.mubr.bf16.mxu1 %v6373_v12  ;;  %v2972_v23 = vadd.f32 %v2971_v22, %v2970_v30  ;;  %v6376_v22 = vld [vmem:[%s11858_s3 + $0x140] ss:$8 sps:$4 sm:$0xff]  }
 0x1a5   :  { %v8142_v6 = vpop.f32.mrb[70].mxu0  ;;  %v3121_v47 = vadd.f32 %v3120_v60, %v3119_v25  ;;  %v3124_v25 = vsel %vm2682_vm0, %v3059_v19, 0.0  ;;  %v2718_v60 = vsel %vm2682_vm0, %v8124_v56, 0.0  ;;  %12077 = vst [vmem:[#allocation42_spill] sm:$0xff] %v8186_v14  ;;  %12078 = vst [vmem:[#allocation43_spill] sm:$0xff] %v8192_v13  ;;  %v2722_v8 = vsel %vm2682_vm0, %v8186_v14, 0.0 }
 0x1a6   :  { %v657_v50 = vpop.f32.mrb[71].mxu0  ;;  %v2719_v19 = vadd.f32 %v2718_v60, %v2717_v1  ;;  %v2974_v30 = vadd.f32 %v2973_v48, %v2972_v23  ;;  %v2872_v60 = vsel %vm2682_vm0, %v2805_v7, 0.0  ;;  %v8226_v23 = vadd.f32 %v7653_v58, %v7706_v40 }
 0x1a7   :  { %v3123_v59 = vadd.f32 %v3122_v52, %v3121_v47  ;;  %v2868_v50 = vsel %vm2682_vm0, %v2803_v36, 0.0  ;;  %v8194_v36 = vpop.f32.mrb[72].mxu1  ;;  %v6375_v52 = vld [vmem:[%s11857_s2 + $0x140] ss:$8 sps:$4 sm:$0xff]   ;;  %v3126_v47 = vsel %vm2682_vm0, %v3060_v5, 0.0  ;;  %v2806_v5 = vmul.f32 %v8186_v14, %v8186_v14 }
 0x1a8   :  { %1979 = vmatmul.mubr.bf16.gmra.mrb[176].mxu0 %v6369_v24  ;;  %v2870_v24 = vsel %vm2682_vm0, %v2804_v63, 0.0  ;;  %v2869_v55 = vadd.f32 %v2868_v50, %v2867_v21  ;;  %v1318_v12 = vpop.f32.mrb[73].mxu1  ;;  %v3061_v63 = vmul.f32 %v8177_v39, %v8177_v39  ;;  %v6379_v50 = vld [vmem:[%s11858_s3 + $0x154] ss:$8 sps:$4 sm:$0xff]   ;;  %12079 = vst [vmem:[#allocation44_spill] sm:$0xff] %v8226_v23  ;;  %v2977_v27 = vsel %vm2682_vm0, %v8192_v13, 0.0 }
 0x1a9   :  { %1986 = vmatprep.mubr.bf16.mxu0 %v6371_v4  ;;  %v3125_v37 = vadd.f32 %v3124_v25, %v3123_v59  ;;  %v8210_v59 = vpop.f32.mrb[74].mxu1  ;;  %v2720_v25 = vsel %vm2682_vm0, %v8165_v11, 0.0  ;;  %v2874_v40 = vsel %vm2682_vm0, %v2806_v5, 0.0 }
 0x1aa   :  { %v2871_v21 = vadd.f32 %v2870_v24, %v2869_v55  ;;  %v2975_v24 = vsel %vm2682_vm0, %v8177_v39, 0.0  ;;  %v1321_v48 = vpop.f32.mrb[75].mxu1  ;;  %v3062_v55 = vmul.f32 %v8192_v13, %v8192_v13  ;;  %v2721_v12 = vadd.f32 %v2720_v25, %v2719_v19  ;;  %v6382_v25 = vld [vmem:[%s11858_s3 + $0x150] ss:$8 sps:$4 sm:$0xff]  }
 0x1ab   :  { %v8188_v51 = vpop.f32.mrb[72].mxu0  ;;  %v3127_v7 = vadd.f32 %v3126_v47, %v3125_v37  ;;  %2643 = vmatmul.mubr.bf16.gmra.mrb[180].mxu1 %v6376_v22  ;;  %v2976_v39 = vadd.f32 %v2975_v24, %v2974_v30  ;;  %v3128_v48 = vsel %vm2682_vm0, %v3061_v63, 0.0  ;;  %v2807_v19 = vmul.f32 %v8226_v23, %v8226_v23 }
 0x1ac   :  { %v662_v4 = vpop.f32.mrb[73].mxu0  ;;  %2650 = vmatprep.mubr.bf16.mxu1 %v6379_v50  ;;  %v3130_v37 = vsel %vm2682_vm0, %v3062_v55, 0.0  ;;  %v2724_v55 = vsel %vm2682_vm0, %v8226_v23, 0.0 }
 0x1ad   :  { %v8199_v31 = vpop.f32.mrb[74].mxu0  ;;  %v8230_v4 = vadd.f32 %v7653_v58, %v7722_v53  ;;  %v8240_v53 = vadd.f32 %v7653_v58, %v7760_v44  ;;  %v6381_v44 = vld [vmem:[%s11857_s2 + $0x150] ss:$8 sps:$4 sm:$0xff]   ;;  %v3129_v47 = vadd.f32 %v3128_v48, %v3127_v7  ;;  %v2978_v5 = vadd.f32 %v2977_v27, %v2976_v39  ;;  %v6385_v48 = vld [vmem:[%s11858_s3 + $0x164] ss:$8 sps:$4 sm:$0xff]  }
 0x1ae   :  { %v665_v1 = vpop.f32.mrb[75].mxu0  ;;  %v8279_v27 = vadd.f32 %v7653_v58, %v7771_v10  ;;  %v2876_v39 = vsel %vm2682_vm0, %v2807_v19, 0.0 }
 0x1af   :  { %12080 = vst [vmem:[#allocation45_spill] sm:$0xff] %v8230_v4  ;;  %v2873_v1 = vadd.f32 %v2872_v60, %v2871_v21  ;;  %12081 = vst [vmem:[#allocation46_spill] sm:$0xff] %v8240_v53  ;;  %v3063_v22 = vmul.f32 %v8230_v4, %v8230_v4  ;;  %v8253_v21 = vpop.f32.mrb[76].mxu1  ;;  %v2723_v60 = vadd.f32 %v2722_v8, %v2721_v12  ;;  %v2979_v13 = vsel %vm2682_vm0, %v8230_v4, 0.0 }
 0x1b0   :  { %1987 = vmatmul.mubr.bf16.gmra.mrb[180].mxu0 %v6375_v52  ;;  %v1326_v63 = vpop.f32.mrb[77].mxu1  ;;  %v2808_v14 = vmul.f32 %v8240_v53, %v8240_v53  ;;  %12083 = vst [vmem:[#allocation48_spill] sm:$0xff] %v8279_v27 }
 0x1b1   :  { %1994 = vmatprep.mubr.bf16.mxu0 %v6377_v32  ;;  %v8251_v32 = vadd.f32 %v7653_v58, %v7766_v2  ;;  %v6383_v2 = vld [vmem:[%s11857_s2 + $0x164] ss:$8 sps:$4 sm:$0xff]   ;;  %v2875_v24 = vadd.f32 %v2874_v40, %v2873_v1  ;;  %v3131_v63 = vadd.f32 %v3130_v37, %v3129_v47  ;;  %v3132_v12 = vsel %vm2682_vm0, %v3063_v22, 0.0  ;;  %v12084_v40 = vld [vmem:[#allocation13_spill] sm:$0xff] }
 0x1b2   :  { %v8287_v37 = vadd.f32 %v7653_v58, %v12084_v40  ;;  %v2726_v47 = vsel %vm2682_vm0, %v8240_v53, 0.0  ;;  %v2725_v19 = vadd.f32 %v2724_v55, %v2723_v60  ;;  %v2980_v22 = vadd.f32 %v2979_v13, %v2978_v5 }
 0x1b3   :  { %v8242_v52 = vpop.f32.mrb[76].mxu0  ;;  %12082 = vst [vmem:[#allocation47_spill] sm:$0xff] %v8251_v32  ;;  %v3064_v1 = vmul.f32 %v8251_v32, %v8251_v32  ;;  %v2981_v10 = vsel %vm2682_vm0, %v8251_v32, 0.0  ;;  %2651 = vmatmul.mubr.bf16.gmra.mrb[184].mxu1 %v6382_v25  ;;  %v3133_v40 = vadd.f32 %v3132_v12, %v3131_v63  ;;  %v2878_v4 = vsel %vm2682_vm0, %v2808_v14, 0.0  ;;  %v6388_v14 = vld [vmem:[%s11858_s3 + $0x160] ss:$8 sps:$4 sm:$0xff]  }
 0x1b4   :  { %v670_v30 = vpop.f32.mrb[77].mxu0  ;;  %12085 = vst [vmem:[#allocation13_spill] sm:$0xff] %v8287_v37  ;;  %2658 = vmatprep.mubr.bf16.mxu1 %v6385_v48  ;;  %v2809_v32 = vmul.f32 %v8279_v27, %v8279_v27  ;;  %v2727_v25 = vadd.f32 %v2726_v47, %v2725_v19  ;;  %v2982_v13 = vadd.f32 %v2981_v10, %v2980_v22  ;;  %v2728_v5 = vsel %vm2682_vm0, %v8279_v27, 0.0 }
 0x1b5   :  { %v8258_v50 = vpop.f32.mrb[78].mxu0  ;;  %v8268_v30 = vpop.f32.mrb[78].mxu1  ;;  %v2983_v55 = vsel %vm2682_vm0, %v8287_v37, 0.0  ;;  %v8325_v63 = vadd.f32 %v7653_v58, %v7830_v54  ;;  %v8336_v19 = vadd.f32 %v7653_v58, %v7840_v38  ;;  %v6391_v54 = vld [vmem:[%s11858_s3 + $0x174] ss:$8 sps:$4 sm:$0xff]   ;;  %v8350_v38 = vld [vmem:[%s11857_s2 + $0x180] sm:$0xff] }
 0x1b6   :  { %v673_v7 = vpop.f32.mrb[79].mxu0  ;;  %v1329_v8 = vpop.f32.mrb[79].mxu1  ;;  %v2729_v23 = vadd.f32 %v2728_v5, %v2727_v25  ;;  %v8371_v5 = vadd.f32 %v7653_v58, %v7884_v9 }
 0x1b7   :  { %v8295_v7 = vadd.f32 %v7653_v58, %v7814_v28  ;;  %v8299_v8 = vadd.f32 %v7653_v58, %v7825_v16  ;;  %v6387_v28 = vld [vmem:[%s11857_s2 + $0x160] ss:$8 sps:$4 sm:$0xff]   ;;  %v3065_v16 = vmul.f32 %v8287_v37, %v8287_v37  ;;  %v8312_v60 = vpop.f32.mrb[80].mxu1  ;;  %12088 = vst [vmem:[#allocation51_spill] sm:$0xff] %v8325_v63  ;;  %12089 = vst [vmem:[#allocation52_spill] sm:$0xff] %v8336_v19  ;;  %v2880_v37 = vsel %vm2682_vm0, %v2809_v32, 0.0 }
 0x1b8   :  { %1995 = vmatmul.mubr.bf16.gmra.mrb[184].mxu0 %v6381_v44  ;;  %v2877_v44 = vadd.f32 %v2876_v39, %v2875_v24  ;;  %v1334_v39 = vpop.f32.mrb[81].mxu1  ;;  %v2811_v25 = vmul.f32 %v8325_v63, %v8325_v63  ;;  %12091 = vst [vmem:[#allocation54_spill] sm:$0xff] %v8371_v5  ;;  %v2987_v9 = vsel %vm2682_vm0, %v8336_v19, 0.0 }
 0x1b9   :  { %12086 = vst [vmem:[#allocation49_spill] sm:$0xff] %v8295_v7  ;;  %2002 = vmatprep.mubr.bf16.mxu0 %v6383_v2  ;;  %12087 = vst [vmem:[#allocation50_spill] sm:$0xff] %v8299_v8  ;;  %v3134_v2 = vsel %vm2682_vm0, %v3064_v1, 0.0  ;;  %v2810_v48 = vmul.f32 %v8295_v7, %v8295_v7  ;;  %v6389_v1 = vld [vmem:[%s11857_s2 + $0x174] ss:$8 sps:$4 sm:$0xff]   ;;  %v3066_v10 = vmul.f32 %v8299_v8, %v8299_v8  ;;  %v8338_v22 = vpop.f32.mrb[82].mxu1 }
 0x1ba   :  { %v2879_v47 = vadd.f32 %v2878_v4, %v2877_v44  ;;  %v3135_v39 = vadd.f32 %v3134_v2, %v3133_v40  ;;  %v1337_v27 = vpop.f32.mrb[83].mxu1  ;;  %v2984_v4 = vadd.f32 %v2983_v55, %v2982_v13  ;;  %v3136_v44 = vsel %vm2682_vm0, %v3065_v16, 0.0  ;;  %v8355_v40 = vld [vmem:[%s11858_s3 + $0x180] sm:$0xff] }
 0x1bb   :  { %v8304_v53 = vpop.f32.mrb[80].mxu0  ;;  %v2730_v11 = vsel %vm2682_vm0, %v8295_v7, 0.0  ;;  %v2882_v32 = vsel %vm2682_vm0, %v2810_v48, 0.0  ;;  %v2985_v27 = vsel %vm2682_vm0, %v8299_v8, 0.0  ;;  %2659 = vmatmul.mubr.bf16.gmra.mrb[188].mxu1 %v6388_v14  ;;  %v3138_v2 = vsel %vm2682_vm0, %v3066_v10, 0.0 }
 0x1bc   :  { %v678_v24 = vpop.f32.mrb[81].mxu0  ;;  %v2881_v13 = vadd.f32 %v2880_v37, %v2879_v47  ;;  %v3067_v16 = vmul.f32 %v8336_v19, %v8336_v19  ;;  %2666 = vmatprep.mubr.bf16.mxu1 %v6391_v54  ;;  %v3137_v55 = vadd.f32 %v3136_v44, %v3135_v39  ;;  %v2731_v48 = vadd.f32 %v2730_v11, %v2729_v23  ;;  %v6393_v11 = vld [vmem:[%s11857_s2 + $0x170] ss:$8 sps:$4 sm:$0xff]  }
 0x1bd   :  { %v8327_v12 = vpop.f32.mrb[82].mxu0  ;;  %v6013_v37 = vcombine.high %v8355_v40, %v8355_v40  ;;  %v2732_v47 = vsel %vm2682_vm0, %v8325_v63, 0.0  ;;  %v8383_v10 = vpop.f32.mrb[84].mxu1  ;;  %v2884_v39 = vsel %vm2682_vm0, %v2811_v25, 0.0  ;;  %v3068_v25 = vmul.f32 %v8371_v5, %v8371_v5 }
 0x1be   :  { %v681_v24 = vpop.f32.mrb[83].mxu0  ;;  %v2883_v14 = vadd.f32 %v2882_v32, %v2881_v13  ;;  %v3139_v23 = vadd.f32 %v3138_v2, %v3137_v55  ;;  %v1342_v32 = vpop.f32.mrb[85].mxu1  ;;  %v6394_v13 = vld [vmem:[%s11858_s3 + $0x170] ss:$8 sps:$4 sm:$0xff]   ;;  %v2733_v19 = vadd.f32 %v2732_v47, %v2731_v48 }
 0x1bf   :  { %v8414_v55 = vpop.f32.mrb[86].mxu1 }
 0x1c0   :  { %2003 = vmatmul.mubr.bf16.gmra.mrb[188].mxu0 %v6387_v28  ;;  %v8364_v28 = vadd.f32 %v7653_v58, %v7876_v26  ;;  %v5947_v26 = vcombine.high %v8350_v38, %v8350_v38  ;;  %v2885_v63 = vadd.f32 %v2884_v39, %v2883_v14 }
 0x1c1   :  { %2010 = vmatprep.mubr.bf16.mxu0 %v6389_v1  ;;  %v2986_v1 = vadd.f32 %v2985_v27, %v2984_v4  ;;  %v8393_v4 = vadd.f32 %v7653_v58, %v7899_v33  ;;  %v8408_v58 = vld [vmem:[%s11859_s8] ss:$0 sm:$0xff] }
 0x1c2   :  { %12090 = vst [vmem:[#allocation53_spill] sm:$0xff] %v8364_v28  ;;  %v2812_v44 = vmul.f32 %v8364_v28, %v8364_v28  ;;  %v2734_v2 = vsel %vm2682_vm0, %v8364_v28, 0.0  ;;  %v8412_v33 = vadd.f32 %v8408_v58, %v7910_v62  ;;  %v8420_v8 = vadd.f32 %v8408_v58, %v7943_v43  ;;  %v1345_v28 = vpop.f32.mrb[87].mxu1 }
 0x1c3   :  { %v8373_v24 = vpop.f32.mrb[84].mxu0  ;;  %v2988_v7 = vadd.f32 %v2987_v9, %v2986_v1  ;;  %v8424_v56 = vadd.f32 %v8408_v58, %v7950_v20  ;;  %v5946_v62 = vcombine.low %v8350_v38, %v8350_v38  ;;  %v2735_v48 = vadd.f32 %v2734_v2, %v2733_v19  ;;  %2667 = vmatmul.mubr.bf16.gmra.mrb[192].mxu1 %v6394_v13 }
 0x1c4   :  { %v686_v54 = vpop.f32.mrb[85].mxu0  ;;  %12092 = vst [vmem:[#allocation55_spill] sm:$0xff] %v8412_v33  ;;  %v2886_v47 = vsel %vm2682_vm0, %v2812_v44, 0.0  ;;  %v3142_v28 = vsel %vm2682_vm0, %v3068_v25, 0.0  ;;  %v2736_v20 = vsel %vm2682_vm0, %v8393_v4, 0.0  ;;  %v3069_v14 = vmul.f32 %v8412_v33, %v8412_v33  ;;  %2674 = vmatprep.mubr.bf16.mxu1 %v6013_v37 }
 0x1c5   :  { %v8395_v27 = vpop.f32.mrb[86].mxu0  ;;  %v3140_v54 = vsel %vm2682_vm0, %v3067_v16, 0.0  ;;  %v2989_v16 = vsel %vm2682_vm0, %v8371_v5, 0.0  ;;  %12093 = vst [vmem:[#allocation56_spill] sm:$0xff] %v8424_v56  ;;  %v2813_v5 = vmul.f32 %v8393_v4, %v8393_v4  ;;  %v2991_v19 = vsel %vm2682_vm0, %v8412_v33, 0.0 }
 0x1c6   :  { %v689_v32 = vpop.f32.mrb[87].mxu0  ;;  %v2990_v43 = vadd.f32 %v2989_v16, %v2988_v7  ;;  %v2814_v38 = vmul.f32 %v8420_v8, %v8420_v8  ;;  %v8442_v1 = vadd.f32 %v8408_v58, %v7962_v41  ;;  %v8446_v7 = vadd.f32 %v8408_v58, %v7970_v3 }
 0x1c7   :  { %v3141_v32 = vadd.f32 %v3140_v54, %v3139_v23  ;;  %v2887_v9 = vadd.f32 %v2886_v47, %v2885_v63  ;;  %v2738_v37 = vsel %vm2682_vm0, %v8420_v8, 0.0  ;;  %v8454_v23 = vpop.f32.mrb[88].mxu1  ;;  %v6012_v41 = vcombine.low %v8355_v40, %v8355_v40 }
 0x1c8   :  { %2011 = vmatmul.mubr.bf16.gmra.mrb[192].mxu0 %v6393_v11  ;;  %12094 = vst [vmem:[#allocation57_spill] sm:$0xff] %v8446_v7  ;;  %v3070_v11 = vmul.f32 %v8424_v56, %v8424_v56  ;;  %v2737_v13 = vadd.f32 %v2736_v20, %v2735_v48  ;;  %v2888_v3 = vsel %vm2682_vm0, %v2813_v5, 0.0  ;;  %v8461_v54 = vadd.f32 %v8408_v58, %v8006_v0  ;;  %v1350_v63 = vpop.f32.mrb[89].mxu1 }
 0x1c9   :  { %2018 = vmatprep.mubr.bf16.mxu0 %v5947_v26  ;;  %v3143_v44 = vadd.f32 %v3142_v28, %v3141_v32  ;;  %v2992_v25 = vadd.f32 %v2991_v19, %v2990_v43  ;;  %v3144_v16 = vsel %vm2682_vm0, %v3069_v14, 0.0  ;;  %v2993_v47 = vsel %vm2682_vm0, %v8424_v56, 0.0 }
 0x1ca   :  { %v2739_v32 = vadd.f32 %v2738_v37, %v2737_v13  ;;  %v2890_v48 = vsel %vm2682_vm0, %v2814_v38, 0.0  ;;  %v2815_v5 = vmul.f32 %v8442_v1, %v8442_v1  ;;  %v3071_v0 = vmul.f32 %v8446_v7, %v8446_v7 }
 0x1cb   :  { %v8448_v26 = vpop.f32.mrb[88].mxu0  ;;  %v2889_v20 = vadd.f32 %v2888_v3, %v2887_v9  ;;  %v3146_v43 = vsel %vm2682_vm0, %v3070_v11, 0.0  ;;  %v2740_v14 = vsel %vm2682_vm0, %v8442_v1, 0.0  ;;  %v8480_v19 = vadd.f32 %v8408_v58, %v8015_v57  ;;  %2675 = vmatmul.mubr.bf16.gmra.mrb[196].mxu1 %v6012_v41 }
 0x1cc   :  { %v694_v39 = vpop.f32.mrb[89].mxu0  ;;  %v3145_v37 = vadd.f32 %v3144_v16, %v3143_v44  ;;  %v2994_v38 = vadd.f32 %v2993_v47, %v2992_v25  ;;  %v2816_v13 = vmul.f32 %v8461_v54, %v8461_v54  ;;  %v8486_v63 = vadd.f32 %v8408_v58, %v8025_v49 }
 0x1cd   :  { %v8463_v2 = vpop.f32.mrb[90].mxu0  ;;  %v8468_v39 = vpop.f32.mrb[90].mxu1  ;;  %12095 = vst [vmem:[#allocation58_spill] sm:$0xff] %v8480_v19  ;;  %v2891_v9 = vadd.f32 %v2890_v48, %v2889_v20  ;;  %v2995_v11 = vsel %vm2682_vm0, %v8446_v7, 0.0  ;;  %v2892_v57 = vsel %vm2682_vm0, %v2815_v5, 0.0  ;;  %v2742_v25 = vsel %vm2682_vm0, %v8461_v54, 0.0 }
 0x1ce   :  { %v697_v40 = vpop.f32.mrb[91].mxu0  ;;  %v1353_v28 = vpop.f32.mrb[91].mxu1  ;;  %v3147_v3 = vadd.f32 %v3146_v43, %v3145_v37  ;;  %v2997_v49 = vsel %vm2682_vm0, %v8480_v19, 0.0  ;;  %v3072_v41 = vmul.f32 %v8480_v19, %v8480_v19  ;;  %v8502_v16 = vadd.f32 %v8408_v58, %v8032_v35 }
 0x1cf   :  { %v2741_v40 = vadd.f32 %v2740_v14, %v2739_v32  ;;  %v8504_v47 = vpop.f32.mrb[92].mxu1  ;;  %v2996_v48 = vadd.f32 %v2995_v11, %v2994_v38  ;;  %v2894_v5 = vsel %vm2682_vm0, %v2816_v13, 0.0  ;;  %v8511_v28 = vadd.f32 %v8408_v58, %v8059_v18 }
 0x1d0   :  { %2019 = vmatmul.mubr.bf16.gmra.mrb[196].mxu0 %v5946_v62  ;;  %v3148_v62 = vsel %vm2682_vm0, %v3071_v0, 0.0  ;;  %12096 = vst [vmem:[#allocation59_spill] sm:$0xff] %v8502_v16  ;;  %v2817_v0 = vmul.f32 %v8486_v63, %v8486_v63  ;;  %v1358_v20 = vpop.f32.mrb[93].mxu1  ;;  %v2893_v14 = vadd.f32 %v2892_v57, %v2891_v9  ;;  %v8517_v35 = vadd.f32 %v8408_v58, %v8074_v17 }
 0x1d1   :  { %v8519_v37 = vpop.f32.mrb[94].mxu1  ;;  %v3149_v11 = vadd.f32 %v3148_v62, %v3147_v3  ;;  %v2743_v13 = vadd.f32 %v2742_v25, %v2741_v40  ;;  %v3150_v56 = vsel %vm2682_vm0, %v3072_v41, 0.0  ;;  %v2744_v18 = vsel %vm2682_vm0, %v8486_v63, 0.0 }
 0x1d2   :  { %12097 = vst [vmem:[#allocation60_spill] sm:$0xff] %v8517_v35  ;;  %v1361_v19 = vpop.f32.mrb[95].mxu1  ;;  %v2895_v7 = vadd.f32 %v2894_v5, %v2893_v14  ;;  %v3073_v9 = vmul.f32 %v8502_v16, %v8502_v16  ;;  %v2896_v57 = vsel %vm2682_vm0, %v2817_v0, 0.0  ;;  %v2999_v17 = vsel %vm2682_vm0, %v8502_v16, 0.0 }
 0x1d3   :  { %v8492_v44 = vpop.f32.mrb[92].mxu0  ;;  %v2818_v3 = vmul.f32 %v8511_v28, %v8511_v28  ;;  %v8533_v19 = vadd.f32 %v8408_v58, %v8086_v29  ;;  %v2746_v40 = vsel %vm2682_vm0, %v8511_v28, 0.0  ;;  %v3074_v62 = vmul.f32 %v8517_v35, %v8517_v35 }
 0x1d4   :  { %v702_v32 = vpop.f32.mrb[93].mxu0  ;;  %v8541_v25 = vadd.f32 %v8408_v58, %v8095_v15  ;;  %v2745_v41 = vadd.f32 %v2744_v18, %v2743_v13  ;;  %v2897_v29 = vadd.f32 %v2896_v57, %v2895_v7  ;;  %v3152_v20 = vsel %vm2682_vm0, %v3073_v9, 0.0 }
 0x1d5   :  { %v8513_v43 = vpop.f32.mrb[94].mxu0  ;;  %v2998_v32 = vadd.f32 %v2997_v49, %v2996_v48  ;;  %12098 = vst [vmem:[#allocation61_spill] sm:$0xff] %v8533_v19  ;;  %v3151_v49 = vadd.f32 %v3150_v56, %v3149_v11  ;;  %v8545_v48 = vadd.f32 %v8408_v58, %v8126_v42  ;;  %v8550_v14 = vpop.f32.mrb[96].mxu1  ;;  %v2898_v33 = vsel %vm2682_vm0, %v2818_v3, 0.0 }
 0x1d6   :  { %v705_v38 = vpop.f32.mrb[95].mxu0  ;;  %12099 = vst [vmem:[#allocation62_spill] sm:$0xff] %v8541_v25  ;;  %v2747_v16 = vadd.f32 %v2746_v40, %v2745_v41  ;;  %v3001_v15 = vsel %vm2682_vm0, %v8517_v35, 0.0  ;;  %v2819_v56 = vmul.f32 %v8533_v19, %v8533_v19  ;;  %v1366_v42 = vpop.f32.mrb[97].mxu1  ;;  %v3154_v13 = vsel %vm2682_vm0, %v3074_v62, 0.0 }
 0x1d7   :  { %12100 = vst [vmem:[#allocation63_spill] sm:$0xff] %v8545_v48  ;;  %v3000_v0 = vadd.f32 %v2999_v17, %v2998_v32  ;;  %v2748_v7 = vsel %vm2682_vm0, %v8533_v19, 0.0  ;;  %v3075_v32 = vmul.f32 %v8541_v25, %v8541_v25  ;;  %v8564_v18 = vadd.f32 %v8408_v58, %v8132_v61  ;;  %v1367_v9 = vpop.f32.mrb[98].mxu1 }
 0x1d8   :  { %v3153_v17 = vadd.f32 %v3152_v20, %v3151_v49  ;;  %v2820_v3 = vmul.f32 %v8545_v48, %v8545_v48  ;;  %v8570_v40 = vadd.f32 %v8408_v58, %v8142_v6  ;;  %v1368_v62 = vpop.f32.mrb[99].mxu1  ;;  %v2899_v41 = vadd.f32 %v2898_v33, %v2897_v29 }
 0x1d9   :  { %12101 = vst [vmem:[#allocation64_spill] sm:$0xff] %v8564_v18  ;;  %v2900_v35 = vsel %vm2682_vm0, %v2819_v56, 0.0  ;;  %v3003_v61 = vsel %vm2682_vm0, %v8541_v25, 0.0  ;;  %v3156_v9 = vsel %vm2682_vm0, %v3075_v32, 0.0  ;;  %v2750_v49 = vsel %vm2682_vm0, %v8545_v48, 0.0 }
 0x1da   :  { %12102 = vst [vmem:[#allocation65_spill] sm:$0xff] %v8570_v40  ;;  %v3155_v42 = vadd.f32 %v3154_v13, %v3153_v17  ;;  %v3076_v20 = vmul.f32 %v8564_v18, %v8564_v18  ;;  %v8582_v6 = vadd.f32 %v8408_v58, %v8156_v45  ;;  %v2902_v33 = vsel %vm2682_vm0, %v2820_v3, 0.0 }
 0x1db   :  { %v8547_v5 = vpop.f32.mrb[96].mxu0  ;;  %v2821_v29 = vmul.f32 %v8570_v40, %v8570_v40  ;;  %v2901_v56 = vadd.f32 %v2900_v35, %v2899_v41  ;;  %v8597_v45 = vadd.f32 %v8408_v58, %v8194_v36  ;;  %v2752_v36 = vsel %vm2682_vm0, %v8570_v40, 0.0 }
 0x1dc   :  { %v710_v38 = vpop.f32.mrb[97].mxu0  ;;  %12103 = vst [vmem:[#allocation66_spill] sm:$0xff] %v8582_v6  ;;  %v3077_v35 = vmul.f32 %v8582_v6, %v8582_v6 }
 0x1dd   :  { %v711_v11 = vpop.f32.mrb[98].mxu0  ;;  %v3002_v38 = vadd.f32 %v3001_v15, %v3000_v0  ;;  %v8591_v0 = vadd.f32 %v8408_v58, %v8188_v51  ;;  %12105 = vst [vmem:[#allocation68_spill] sm:$0xff] %v8597_v45  ;;  %v3158_v51 = vsel %vm2682_vm0, %v3076_v20, 0.0  ;;  %v8619_v20 = vadd.f32 %v8408_v58, %v8199_v31 }
 0x1de   :  { %v712_v57 = vpop.f32.mrb[99].mxu0  ;;  %v2749_v11 = vadd.f32 %v2748_v7, %v2747_v16  ;;  %v3005_v16 = vsel %vm2682_vm0, %v8564_v18, 0.0  ;;  %v8599_v7 = vpop.f32.mrb[100].mxu1  ;;  %v2903_v18 = vadd.f32 %v2902_v33, %v2901_v56  ;;  %v8623_v33 = vadd.f32 %v8408_v58, %v8210_v59 }
 0x1df   :  { %12104 = vst [vmem:[#allocation67_spill] sm:$0xff] %v8591_v0  ;;  %v3004_v13 = vadd.f32 %v3003_v61, %v3002_v38  ;;  %v3157_v57 = vadd.f32 %v3156_v9, %v3155_v42  ;;  %v2486_v3 = vpop.f32.mrb[101].mxu1  ;;  %v2904_v61 = vsel %vm2682_vm0, %v2821_v29, 0.0  ;;  %v3007_v42 = vsel %vm2682_vm0, %v8582_v6, 0.0  ;;  %12106 = vst [vmem:[#allocation69_spill] sm:$0xff] %v8619_v20 }
 0x1e0   :  { %v2751_v17 = vadd.f32 %v2750_v49, %v2749_v11  ;;  %v8606_v41 = vpop.f32.mrb[102].mxu1  ;;  %v2822_v11 = vmul.f32 %v8591_v0, %v8591_v0  ;;  %v3078_v49 = vmul.f32 %v8597_v45, %v8597_v45  ;;  %12107 = vst [vmem:[#allocation70_spill] sm:$0xff] %v8623_v33  ;;  %v2905_v56 = vadd.f32 %v2904_v61, %v2903_v18 }
 0x1e1   :  { %v3006_v25 = vadd.f32 %v3005_v16, %v3004_v13  ;;  %v2489_v9 = vpop.f32.mrb[103].mxu1  ;;  %v3159_v16 = vadd.f32 %v3158_v51, %v3157_v57  ;;  %v2754_v3 = vsel %vm2682_vm0, %v8591_v0, 0.0  ;;  %v8633_v31 = vadd.f32 %v8408_v58, %v8242_v52 }
 0x1e2   :  { %v2753_v29 = vadd.f32 %v2752_v36, %v2751_v17  ;;  %v3009_v9 = vsel %vm2682_vm0, %v8597_v45, 0.0  ;;  %v3162_v57 = vsel %vm2682_vm0, %v3078_v49, 0.0  ;;  %v3079_v18 = vmul.f32 %v8623_v33, %v8623_v33 }
 0x1e3   :  { %v8593_v15 = vpop.f32.mrb[100].mxu0  ;;  %v3008_v13 = vadd.f32 %v3007_v42, %v3006_v25  ;;  %12108 = vst [vmem:[#allocation71_spill] sm:$0xff] %v8633_v31  ;;  %v2823_v25 = vmul.f32 %v8619_v20, %v8619_v20  ;;  %v8644_v17 = vadd.f32 %v8408_v58, %v8253_v21  ;;  %v2756_v45 = vsel %vm2682_vm0, %v8619_v20, 0.0 }
 0x1e4   :  { %v1830_v32 = vpop.f32.mrb[101].mxu0  ;;  %v2755_v42 = vadd.f32 %v2754_v3, %v2753_v29  ;;  %v3011_v21 = vsel %vm2682_vm0, %v8623_v33, 0.0  ;;  %v2758_v3 = vsel %vm2682_vm0, %v8633_v31, 0.0 }
 0x1e5   :  { %v8601_v62 = vpop.f32.mrb[102].mxu0  ;;  %v3160_v32 = vsel %vm2682_vm0, %v3077_v35, 0.0  ;;  %12109 = vst [vmem:[#allocation72_spill] sm:$0xff] %v8644_v17  ;;  %v8646_v51 = vpop.f32.mrb[104].mxu1  ;;  %v3010_v49 = vadd.f32 %v3009_v9, %v3008_v13  ;;  %v3164_v13 = vsel %vm2682_vm0, %v3079_v18, 0.0 }
 0x1e6   :  { %v1833_v38 = vpop.f32.mrb[103].mxu0  ;;  %v3161_v36 = vadd.f32 %v3160_v32, %v3159_v16  ;;  %v2494_v52 = vpop.f32.mrb[105].mxu1  ;;  %v8660_v16 = vadd.f32 %v8408_v58, %v8258_v50  ;;  %v3080_v32 = vmul.f32 %v8644_v17, %v8644_v17  ;;  %v8676_v50 = vadd.f32 %v8408_v58, %v8304_v53 }
 0x1e7   :  { %v2906_v38 = vsel %vm2682_vm0, %v2822_v11, 0.0  ;;  %v8652_v6 = vpop.f32.mrb[106].mxu1  ;;  %v2757_v9 = vadd.f32 %v2756_v45, %v2755_v42 }
 0x1e8   :  { %v2907_v11 = vadd.f32 %v2906_v38, %v2905_v56  ;;  %v3163_v40 = vadd.f32 %v3162_v57, %v3161_v36  ;;  %12110 = vst [vmem:[#allocation73_spill] sm:$0xff] %v8660_v16  ;;  %v2497_v29 = vpop.f32.mrb[107].mxu1  ;;  %v2908_v56 = vsel %vm2682_vm0, %v2823_v25, 0.0  ;;  %v3013_v38 = vsel %vm2682_vm0, %v8644_v17, 0.0  ;;  %12112 = vst [vmem:[#allocation75_spill] sm:$0xff] %v8676_v50 }
 0x1e9   :  { %v3012_v57 = vadd.f32 %v3011_v21, %v3010_v49  ;;  %v8680_v25 = vadd.f32 %v8408_v58, %v8312_v60  ;;  %v2825_v52 = vmul.f32 %v8660_v16, %v8660_v16  ;;  %v2759_v17 = vadd.f32 %v2758_v3, %v2757_v9 }
 0x1ea   :  { %v2909_v18 = vadd.f32 %v2908_v56, %v2907_v11  ;;  %v3165_v36 = vadd.f32 %v3164_v13, %v3163_v40  ;;  %v3166_v53 = vsel %vm2682_vm0, %v3080_v32, 0.0  ;;  %v2760_v40 = vsel %vm2682_vm0, %v8660_v16, 0.0 }
 0x1eb   :  { %v8635_v59 = vpop.f32.mrb[104].mxu0  ;;  %12113 = vst [vmem:[#allocation76_spill] sm:$0xff] %v8680_v25  ;;  %v3014_v33 = vadd.f32 %v3013_v38, %v3012_v57  ;;  %v2826_v49 = vmul.f32 %v8676_v50, %v8676_v50  ;;  %v8700_v21 = vadd.f32 %v8408_v58, %v8327_v12  ;;  %v3082_v32 = vmul.f32 %v8680_v25, %v8680_v25 }
 0x1ec   :  { %v1838_v35 = vpop.f32.mrb[105].mxu0  ;;  %v8708_v3 = vadd.f32 %v8408_v58, %v8338_v22  ;;  %v3167_v57 = vadd.f32 %v3166_v53, %v3165_v36  ;;  %v2762_v12 = vsel %vm2682_vm0, %v8676_v50, 0.0  ;;  %v3017_v22 = vsel %vm2682_vm0, %v8680_v25, 0.0 }
 0x1ed   :  { %v8648_v61 = vpop.f32.mrb[106].mxu0  ;;  %v2824_v35 = vmul.f32 %v8633_v31, %v8633_v31  ;;  %v8690_v42 = vpop.f32.mrb[108].mxu1  ;;  %12114 = vst [vmem:[#allocation77_spill] sm:$0xff] %v8700_v21  ;;  %v2827_v31 = vmul.f32 %v8700_v21, %v8700_v21  ;;  %v8723_v36 = vadd.f32 %v8408_v58, %v8373_v24 }
 0x1ee   :  { %v1841_v0 = vpop.f32.mrb[107].mxu0  ;;  %12115 = vst [vmem:[#allocation78_spill] sm:$0xff] %v8708_v3 }
 0x1ef   :  { %v8668_v0 = vadd.f32 %v8408_v58, %v8268_v30  ;;  %v2910_v30 = vsel %vm2682_vm0, %v2824_v35, 0.0  ;;  %v2502_v35 = vpop.f32.mrb[109].mxu1  ;;  %12116 = vst [vmem:[#allocation79_spill] sm:$0xff] %v8723_v36 }
 0x1f0   :  { %v2911_v13 = vadd.f32 %v2910_v30, %v2909_v18  ;;  %v8710_v38 = vpop.f32.mrb[110].mxu1  ;;  %v2914_v30 = vsel %vm2682_vm0, %v2826_v49, 0.0 }
 0x1f1   :  { %12111 = vst [vmem:[#allocation74_spill] sm:$0xff] %v8668_v0  ;;  %v3081_v45 = vmul.f32 %v8668_v0, %v8668_v0  ;;  %v3015_v11 = vsel %vm2682_vm0, %v8668_v0, 0.0  ;;  %v2505_v35 = vpop.f32.mrb[111].mxu1  ;;  %v2761_v0 = vadd.f32 %v2760_v40, %v2759_v17  ;;  %v8732_v40 = vadd.f32 %v8408_v58, %v8383_v10 }
 0x1f2   :  { %v3016_v16 = vadd.f32 %v3015_v11, %v3014_v33  ;;  %v3083_v33 = vmul.f32 %v8708_v3, %v8708_v3 }
 0x1f3   :  { %v8685_v29 = vpop.f32.mrb[108].mxu0  ;;  %v3168_v18 = vsel %vm2682_vm0, %v3081_v45, 0.0  ;;  %v2763_v53 = vadd.f32 %v2762_v12, %v2761_v0  ;;  %v2764_v45 = vsel %vm2682_vm0, %v8700_v21, 0.0  ;;  %12117 = vst [vmem:[#allocation80_spill] sm:$0xff] %v8732_v40 }
 0x1f4   :  { %v1846_v60 = vpop.f32.mrb[109].mxu0  ;;  %v3169_v17 = vadd.f32 %v3168_v18, %v3167_v57  ;;  %v3018_v24 = vadd.f32 %v3017_v22, %v3016_v16  ;;  %v3019_v57 = vsel %vm2682_vm0, %v8708_v3, 0.0  ;;  %v3172_v25 = vsel %vm2682_vm0, %v3083_v33, 0.0 }
 0x1f5   :  { %v8702_v56 = vpop.f32.mrb[110].mxu0  ;;  %v2912_v60 = vsel %vm2682_vm0, %v2825_v52, 0.0  ;;  %v8736_v35 = vpop.f32.mrb[112].mxu1  ;;  %v2765_v10 = vadd.f32 %v2764_v45, %v2763_v53  ;;  %v2766_v16 = vsel %vm2682_vm0, %v8723_v36, 0.0  ;;  %v8762_v53 = vadd.f32 %v8408_v58, %v8599_v7 }
 0x1f6   :  { %v1849_v9 = vpop.f32.mrb[111].mxu0  ;;  %v2913_v52 = vadd.f32 %v2912_v60, %v2911_v13  ;;  %v2828_v60 = vmul.f32 %v8723_v36, %v8723_v36  ;;  %v2510_v12 = vpop.f32.mrb[113].mxu1  ;;  %v8766_v33 = vadd.f32 %v8408_v58, %v8601_v62  ;;  %v3020_v45 = vadd.f32 %v3019_v57, %v3018_v24 }
 0x1f7   :  { %v3170_v9 = vsel %vm2682_vm0, %v3082_v32, 0.0  ;;  %v2916_v32 = vsel %vm2682_vm0, %v2827_v31, 0.0  ;;  %v8752_v31 = vpop.f32.mrb[114].mxu1  ;;  %12120 = vst [vmem:[#allocation83_spill] sm:$0xff] %v8762_v53  ;;  %v8772_v12 = vadd.f32 %v8408_v58, %v8606_v41  ;;  %v8777_v7 = vadd.f32 %v8408_v58, %v8635_v59 }
 0x1f8   :  { %v2915_v49 = vadd.f32 %v2914_v30, %v2913_v52  ;;  %v3171_v13 = vadd.f32 %v3170_v9, %v3169_v17  ;;  %v8750_v30 = vadd.f32 %v8408_v58, %v8395_v27  ;;  %v3021_v52 = vsel %vm2682_vm0, %v8732_v40, 0.0  ;;  %12121 = vst [vmem:[#allocation84_spill] sm:$0xff] %v8766_v33  ;;  %v2513_v27 = vpop.f32.mrb[115].mxu1 }
 0x1f9   :  { %v8758_v9 = vadd.f32 %v8408_v58, %v8593_v15  ;;  %12122 = vst [vmem:[#allocation85_spill] sm:$0xff] %v8772_v12  ;;  %v2918_v3 = vsel %vm2682_vm0, %v2828_v60, 0.0  ;;  %12123 = vst [vmem:[#allocation86_spill] sm:$0xff] %v8777_v7  ;;  %v8779_v62 = vadd.f32 %v3021_v52, %v3020_v45  ;;  %v8785_v24 = vadd.f32 %v8408_v58, %v8414_v55 }
 0x1fa   :  { %12118 = vst [vmem:[#allocation81_spill] sm:$0xff] %v8750_v30  ;;  %v2917_v17 = vadd.f32 %v2916_v32, %v2915_v49  ;;  %v3173_v15 = vadd.f32 %v3172_v25, %v3171_v13  ;;  %v2768_v49 = vsel %vm2682_vm0, %v8750_v30, 0.0  ;;  %v8789_v41 = vadd.f32 %v8408_v58, %v8646_v51 }
 0x1fb   :  { %v8734_v11 = vpop.f32.mrb[112].mxu0  ;;  %12119 = vst [vmem:[#allocation82_spill] sm:$0xff] %v8758_v9  ;;  %v2829_v25 = vmul.f32 %v8750_v30, %v8750_v30  ;;  %v3299_v59 = vmul.f32 %v8758_v9, %v8758_v9  ;;  %v3556_v13 = vmul.f32 %v8762_v53, %v8762_v53  ;;  %v3300_v32 = vmul.f32 %v8766_v33, %v8766_v33 }
 0x1fc   :  { %v1854_v0 = vpop.f32.mrb[113].mxu0  ;;  %12124 = vst [vmem:[#allocation87_spill] sm:$0xff] %v8789_v41  ;;  %v8801_v55 = vadd.f32 %v2918_v3, %v2917_v17  ;;  %v3452_v51 = vsel %vm2682_vm0, %v8762_v53, 0.0  ;;  %v3196_v27 = vsel %vm2682_vm0, %v8766_v33, 0.0  ;;  %v3453_v45 = vsel %vm2682_vm0, %v8772_v12, 0.0 }
 0x1fd   :  { %v8743_v18 = vpop.f32.mrb[114].mxu0  ;;  %v3084_v0 = vmul.f32 %v8732_v40, %v8732_v40  ;;  %v3301_v3 = vmul.f32 %v8777_v7, %v8777_v7  ;;  %v8818_v17 = vadd.f32 %v8408_v58, %v8648_v61  ;;  %v3558_v33 = vmul.f32 %v8789_v41, %v8789_v41 }
 0x1fe   :  { %v1857_v22 = vpop.f32.mrb[115].mxu0  ;;  %v3195_v61 = vsel %vm2682_vm0, %v8758_v9, 0.0  ;;  %v3454_v20 = vadd.f32 %v3453_v45, %v3452_v51  ;;  %v2920_v45 = vsel %vm2682_vm0, %v2829_v25, 0.0 }
 0x1ff   :  { %v2767_v22 = vadd.f32 %v2766_v16, %v2765_v10  ;;  %v3174_v60 = vsel %vm2682_vm0, %v3084_v0, 0.0  ;;  %v3557_v10 = vmul.f32 %v8772_v12, %v8772_v12  ;;  %v8808_v16 = vpop.f32.mrb[116].mxu1  ;;  %v8830_v12 = vadd.f32 %v8408_v58, %v8652_v6 }
 0x200   :  { %v2518_v0 = vpop.f32.mrb[117].mxu1  ;;  %v3197_v50 = vadd.f32 %v3196_v27, %v3195_v61  ;;  %v3198_v6 = vsel %vm2682_vm0, %v8777_v7, 0.0  ;;  %v3351_v19 = vsel %vm2682_vm0, %v3301_v3, 0.0  ;;  %v8858_v27 = vadd.f32 %v3174_v60, %v3173_v15 }
 0x201   :  { %v8822_v40 = vadd.f32 %v2768_v49, %v2767_v22  ;;  %12125 = vst [vmem:[#allocation88_spill] sm:$0xff] %v8830_v12  ;;  %v8832_v30 = vpop.f32.mrb[118].mxu1  ;;  %v3348_v0 = vsel %vm2682_vm0, %v3299_v59, 0.0  ;;  %v3605_v22 = vsel %vm2682_vm0, %v3556_v13, 0.0  ;;  %v3349_v49 = vsel %vm2682_vm0, %v3300_v32, 0.0 }
 0x202   :  { %v2521_v21 = vpop.f32.mrb[119].mxu1  ;;  %v3606_v48 = vsel %vm2682_vm0, %v3557_v10, 0.0  ;;  %v3302_v59 = vmul.f32 %v8818_v17, %v8818_v17  ;;  %v8849_v13 = vadd.f32 %v8408_v58, %v8685_v29  ;;  %v3608_v32 = vsel %vm2682_vm0, %v3558_v33, 0.0 }
 0x203   :  { %v8799_v57 = vpop.f32.mrb[116].mxu0  ;;  %v3350_v21 = vadd.f32 %v3349_v49, %v3348_v0  ;;  %v3559_v51 = vmul.f32 %v8830_v12, %v8830_v12  ;;  %v8856_v10 = vadd.f32 %v8408_v58, %v8690_v42  ;;  %v3607_v3 = vadd.f32 %v3606_v48, %v3605_v22 }
 0x204   :  { %v1862_v52 = vpop.f32.mrb[117].mxu0  ;;  %12126 = vst [vmem:[#allocation89_spill] sm:$0xff] %v8849_v13  ;;  %v3199_v61 = vadd.f32 %v3198_v6, %v3197_v50  ;;  %v3200_v33 = vsel %vm2682_vm0, %v8818_v17, 0.0  ;;  %v3457_v0 = vsel %vm2682_vm0, %v8830_v12, 0.0  ;;  %v3353_v15 = vsel %vm2682_vm0, %v3302_v59, 0.0 }
 0x205   :  { %v8820_v53 = vpop.f32.mrb[118].mxu0  ;;  %v3023_v52 = vsel %vm2682_vm0, %v8785_v24, 0.0  ;;  %12127 = vst [vmem:[#allocation90_spill] sm:$0xff] %v8856_v10  ;;  %v3352_v29 = vadd.f32 %v3351_v19, %v3350_v21  ;;  %v8867_v49 = vpop.f32.mrb[120].mxu1  ;;  %v3609_v9 = vadd.f32 %v3608_v32, %v3607_v3  ;;  %v3303_v48 = vmul.f32 %v8849_v13, %v8849_v13 }
 0x206   :  { %v1865_v36 = vpop.f32.mrb[119].mxu0  ;;  %v8874_v50 = vadd.f32 %v8408_v58, %v8702_v56  ;;  %v2526_v19 = vpop.f32.mrb[121].mxu1  ;;  %v3610_v25 = vsel %vm2682_vm0, %v3559_v51, 0.0  ;;  %v3202_v60 = vsel %vm2682_vm0, %v8849_v13, 0.0  ;;  %v3560_v22 = vmul.f32 %v8856_v10, %v8856_v10 }
 0x207   :  { %v3455_v36 = vsel %vm2682_vm0, %v8789_v41, 0.0  ;;  %v8885_v6 = vadd.f32 %v8408_v58, %v8710_v38  ;;  %v8890_v56 = vadd.f32 %v3023_v52, %v8779_v62  ;;  %v3201_v21 = vadd.f32 %v3200_v33, %v3199_v61 }
 0x208   :  { %v3456_v7 = vadd.f32 %v3455_v36, %v3454_v20  ;;  %12128 = vst [vmem:[#allocation91_spill] sm:$0xff] %v8874_v50  ;;  %v8887_v36 = vpop.f32.mrb[122].mxu1  ;;  %v3459_v32 = vsel %vm2682_vm0, %v8856_v10, 0.0  ;;  %v8896_v51 = vadd.f32 %v8408_v58, %v8734_v11  ;;  %v3354_v38 = vadd.f32 %v3353_v15, %v3352_v29 }
 0x209   :  { %12129 = vst [vmem:[#allocation92_spill] sm:$0xff] %v8885_v6  ;;  %v2529_v3 = vpop.f32.mrb[123].mxu1  ;;  %v3611_v62 = vadd.f32 %v3610_v25, %v3609_v9  ;;  %v3203_v52 = vadd.f32 %v3202_v60, %v3201_v21  ;;  %v3355_v61 = vsel %vm2682_vm0, %v3303_v48, 0.0  ;;  %v3304_v33 = vmul.f32 %v8874_v50, %v8874_v50 }
 0x20a   :  { %12130 = vst [vmem:[#allocation93_spill] sm:$0xff] %v8896_v51  ;;  %v3458_v19 = vadd.f32 %v3457_v0, %v3456_v7  ;;  %v3612_v11 = vsel %vm2682_vm0, %v3560_v22, 0.0  ;;  %v3204_v3 = vsel %vm2682_vm0, %v8874_v50, 0.0  ;;  %v3561_v7 = vmul.f32 %v8885_v6, %v8885_v6 }
 0x20b   :  { %v8861_v41 = vpop.f32.mrb[120].mxu0  ;;  %v3305_v9 = vmul.f32 %v8896_v51, %v8896_v51  ;;  %v8918_v29 = vadd.f32 %v8408_v58, %v8743_v18  ;;  %v8922_v0 = vadd.f32 %v8408_v58, %v8752_v31  ;;  %v8927_v48 = vadd.f32 %v2920_v45, %v8801_v55 }
 0x20c   :  { %v1870_v42 = vpop.f32.mrb[121].mxu0  ;;  %v3460_v12 = vadd.f32 %v3459_v32, %v3458_v19  ;;  %v3356_v25 = vadd.f32 %v3355_v61, %v3354_v38  ;;  %v3206_v60 = vsel %vm2682_vm0, %v8896_v51, 0.0  ;;  %v3613_v32 = vadd.f32 %v3612_v11, %v3611_v62 }
 0x20d   :  { %v8876_v20 = vpop.f32.mrb[122].mxu0  ;;  %v3085_v42 = vmul.f32 %v8785_v24, %v8785_v24  ;;  %12132 = vst [vmem:[#allocation95_spill] sm:$0xff] %v8918_v29  ;;  %12133 = vst [vmem:[#allocation96_spill] sm:$0xff] %v8922_v0  ;;  %v8933_v21 = vpop.f32.mrb[124].mxu1  ;;  %v3205_v19 = vadd.f32 %v3204_v3, %v3203_v52  ;;  %v3357_v31 = vsel %vm2682_vm0, %v3304_v33, 0.0  ;;  %v3614_v10 = vsel %vm2682_vm0, %v3561_v7, 0.0 }
 0x20e   :  { %v1873_v59 = vpop.f32.mrb[123].mxu0  ;;  %v2534_v55 = vpop.f32.mrb[125].mxu1  ;;  %v3359_v33 = vsel %vm2682_vm0, %v3305_v9, 0.0  ;;  %v3563_v11 = vmul.f32 %v8922_v0, %v8922_v0  ;;  %v3208_v7 = vsel %vm2682_vm0, %v8918_v29, 0.0 }
 0x20f   :  { %v8902_v59 = vadd.f32 %v8408_v58, %v8736_v35  ;;  %v3461_v35 = vsel %vm2682_vm0, %v8885_v6, 0.0  ;;  %v8938_v6 = vadd.f32 %v8408_v58, %v8799_v57  ;;  %v3176_v38 = vsel %vm2682_vm0, %v3085_v42, 0.0 }
 0x210   :  { %v3462_v61 = vadd.f32 %v3461_v35, %v3460_v12  ;;  %v3207_v52 = vadd.f32 %v3206_v60, %v3205_v19  ;;  %v3306_v57 = vmul.f32 %v8918_v29, %v8918_v29  ;;  %v3358_v42 = vadd.f32 %v3357_v31, %v3356_v25 }
 0x211   :  { %12131 = vst [vmem:[#allocation94_spill] sm:$0xff] %v8902_v59  ;;  %v3562_v22 = vmul.f32 %v8902_v59, %v8902_v59  ;;  %12134 = vst [vmem:[#allocation97_spill] sm:$0xff] %v8938_v6  ;;  %v3463_v51 = vsel %vm2682_vm0, %v8902_v59, 0.0  ;;  %v8958_v35 = vadd.f32 %v8408_v58, %v8808_v16  ;;  %v3615_v60 = vadd.f32 %v3614_v10, %v3613_v32 }
 0x212   :  { %v3464_v19 = vadd.f32 %v3463_v51, %v3462_v61  ;;  %v3307_v9 = vmul.f32 %v8938_v6, %v8938_v6  ;;  %v8964_v55 = vadd.f32 %v8408_v58, %v8820_v53  ;;  %v8967_v25 = vadd.f32 %v3176_v38, %v8858_v27 }
 0x213   :  { %v8924_v15 = vpop.f32.mrb[124].mxu0  ;;  %v3616_v12 = vsel %vm2682_vm0, %v3562_v22, 0.0  ;;  %12135 = vst [vmem:[#allocation98_spill] sm:$0xff] %v8958_v35  ;;  %v8971_v22 = vadd.f32 %v8408_v58, %v8448_v26  ;;  %v3360_v31 = vadd.f32 %v3359_v33, %v3358_v42  ;;  %v3465_v16 = vsel %vm2682_vm0, %v8922_v0, 0.0 }
 0x214   :  { %v1878_v18 = vpop.f32.mrb[125].mxu0  ;;  %12136 = vst [vmem:[#allocation99_spill] sm:$0xff] %v8964_v55  ;;  %v3617_v10 = vadd.f32 %v3616_v12, %v3615_v60  ;;  %v3209_v51 = vadd.f32 %v3208_v7, %v3207_v52  ;;  %v3361_v32 = vsel %vm2682_vm0, %v3306_v57, 0.0  ;;  %v3618_v61 = vsel %vm2682_vm0, %v3563_v11, 0.0 }
 0x215   :  { %v8940_v45 = vpop.f32.mrb[126].mxu0  ;;  %v8946_v18 = vpop.f32.mrb[126].mxu1  ;;  %v3210_v53 = vsel %vm2682_vm0, %v8938_v6, 0.0  ;;  %v3467_v27 = vsel %vm2682_vm0, %v8958_v35, 0.0  ;;  %v3564_v26 = vmul.f32 %v8958_v35, %v8958_v35  ;;  %v8987_v38 = vadd.f32 %v8408_v58, %v8832_v30 }
 0x216   :  { %v1881_v62 = vpop.f32.mrb[127].mxu0  ;;  %v2537_v3 = vpop.f32.mrb[127].mxu1  ;;  %v3466_v57 = vadd.f32 %v3465_v16, %v3464_v19  ;;  %v3363_v11 = vsel %vm2682_vm0, %v3307_v9, 0.0  ;;  %v8996_v42 = vadd.f32 %v8408_v58, %v8861_v41  ;;  %v2770_v30 = vsel %vm2682_vm0, %v8971_v22, 0.0 }
 0x217   :  { %12137 = vst [vmem:[#allocation100_spill] sm:$0xff] %v8987_v38  ;;  %v8989_v52 = vpop.f32.mrb[128].mxu1  ;;  %v3308_v3 = vmul.f32 %v8964_v55, %v8964_v55  ;;  %v9004_v60 = vadd.f32 %v8408_v58, %v8454_v23  ;;  %v3362_v19 = vadd.f32 %v3361_v32, %v3360_v31  ;;  %v9008_v9 = vadd.f32 %v8408_v58, %v8867_v49 }
 0x218   :  { %12138 = vst [vmem:[#allocation101_spill] sm:$0xff] %v8996_v42  ;;  %v2542_v12 = vpop.f32.mrb[129].mxu1  ;;  %v2830_v41 = vmul.f32 %v8971_v22, %v8971_v22  ;;  %v3211_v35 = vadd.f32 %v3210_v53, %v3209_v51  ;;  %v3468_v0 = vadd.f32 %v3467_v27, %v3466_v57  ;;  %v3620_v29 = vsel %vm2682_vm0, %v3564_v26, 0.0 }
 0x219   :  { %12139 = vst [vmem:[#allocation102_spill] sm:$0xff] %v9008_v9  ;;  %v9010_v16 = vpop.f32.mrb[130].mxu1  ;;  %v3619_v12 = vadd.f32 %v3618_v61, %v3617_v10  ;;  %v3364_v6 = vadd.f32 %v3363_v11, %v3362_v19  ;;  %v3212_v23 = vsel %vm2682_vm0, %v8964_v55, 0.0  ;;  %v3565_v49 = vmul.f32 %v8987_v38, %v8987_v38 }
 0x21a   :  { %v2545_v59 = vpop.f32.mrb[131].mxu1  ;;  %v3365_v31 = vsel %vm2682_vm0, %v3308_v3, 0.0  ;;  %v3469_v32 = vsel %vm2682_vm0, %v8987_v38, 0.0  ;;  %v3309_v10 = vmul.f32 %v8996_v42, %v8996_v42  ;;  %v9030_v51 = vadd.f32 %v8408_v58, %v8463_v2 }
 0x21b   :  { %v8977_v62 = vpop.f32.mrb[128].mxu0  ;;  %v9026_v59 = vadd.f32 %v8408_v58, %v8876_v20  ;;  %v3214_v61 = vsel %vm2682_vm0, %v8996_v42, 0.0  ;;  %v3566_v53 = vmul.f32 %v9008_v9, %v9008_v9  ;;  %v9038_v27 = vadd.f32 %v8408_v58, %v8887_v36 }
 0x21c   :  { %v1886_v33 = vpop.f32.mrb[129].mxu0  ;;  %v9041_v26 = vadd.f32 %v2770_v30, %v8822_v40  ;;  %v3621_v57 = vadd.f32 %v3620_v29, %v3619_v12  ;;  %v3213_v20 = vadd.f32 %v3212_v23, %v3211_v35  ;;  %v9045_v11 = vadd.f32 %v8408_v58, %v8924_v15 }
 0x21d   :  { %v8998_v7 = vpop.f32.mrb[130].mxu0  ;;  %12140 = vst [vmem:[#allocation103_spill] sm:$0xff] %v9026_v59  ;;  %12141 = vst [vmem:[#allocation104_spill] sm:$0xff] %v9038_v27  ;;  %v3025_v3 = vsel %vm2682_vm0, %v9004_v60, 0.0  ;;  %v3366_v19 = vadd.f32 %v3365_v31, %v3364_v6  ;;  %v3622_v38 = vsel %vm2682_vm0, %v3565_v49, 0.0  ;;  %v9052_v36 = vpop.f32.mrb[132].mxu1  ;;  %v3310_v15 = vmul.f32 %v9026_v59, %v9026_v59 }
 0x21e   :  { %v1889_v33 = vpop.f32.mrb[131].mxu0  ;;  %12142 = vst [vmem:[#allocation105_spill] sm:$0xff] %v9045_v11  ;;  %v3215_v40 = vadd.f32 %v3214_v61, %v3213_v20  ;;  %v3367_v29 = vsel %vm2682_vm0, %v3309_v10, 0.0  ;;  %v3471_v35 = vsel %vm2682_vm0, %v9008_v9, 0.0  ;;  %v2550_v30 = vpop.f32.mrb[133].mxu1  ;;  %v3624_v6 = vsel %vm2682_vm0, %v3566_v53, 0.0 }
 0x21f   :  { %v3470_v33 = vadd.f32 %v3469_v32, %v3468_v0  ;;  %v3216_v0 = vsel %vm2682_vm0, %v9026_v59, 0.0  ;;  %v9068_v23 = vadd.f32 %v8408_v58, %v8933_v21  ;;  %v9070_v49 = vpop.f32.mrb[134].mxu1  ;;  %v3086_v32 = vmul.f32 %v9004_v60, %v9004_v60 }
 0x220   :  { %v3623_v10 = vadd.f32 %v3622_v38, %v3621_v57  ;;  %v3311_v61 = vmul.f32 %v9045_v11, %v9045_v11  ;;  %v9078_v53 = vadd.f32 %v8408_v58, %v8940_v45  ;;  %v2553_v20 = vpop.f32.mrb[135].mxu1  ;;  %v2922_v30 = vsel %vm2682_vm0, %v2830_v41, 0.0 }
 0x221   :  { %12143 = vst [vmem:[#allocation106_spill] sm:$0xff] %v9068_v23  ;;  %v9083_v21 = vadd.f32 %v8408_v58, %v8468_v39  ;;  %v3368_v9 = vadd.f32 %v3367_v29, %v3366_v19  ;;  %v3217_v55 = vadd.f32 %v3216_v0, %v3215_v40  ;;  %v3369_v38 = vsel %vm2682_vm0, %v3310_v15, 0.0 }
 0x222   :  { %12144 = vst [vmem:[#allocation107_spill] sm:$0xff] %v9078_v53  ;;  %v3625_v59 = vadd.f32 %v3624_v6, %v3623_v10  ;;  %v3473_v57 = vsel %vm2682_vm0, %v9038_v27, 0.0  ;;  %v3218_v45 = vsel %vm2682_vm0, %v9045_v11, 0.0  ;;  %v3568_v41 = vmul.f32 %v9068_v23, %v9068_v23 }
 0x223   :  { %v9047_v2 = vpop.f32.mrb[132].mxu0  ;;  %v9095_v39 = vadd.f32 %v8408_v58, %v8946_v18  ;;  %v3371_v19 = vsel %vm2682_vm0, %v3311_v61, 0.0  ;;  %v3312_v40 = vmul.f32 %v9078_v53, %v9078_v53  ;;  %v9104_v29 = vadd.f32 %v8408_v58, %v8977_v62 }
 0x224   :  { %v1894_v42 = vpop.f32.mrb[133].mxu0  ;;  %v9109_v15 = vadd.f32 %v3025_v3, %v8890_v56  ;;  %v3370_v6 = vadd.f32 %v3369_v38, %v3368_v9  ;;  %v9113_v0 = vadd.f32 %v8408_v58, %v8989_v52  ;;  %v2772_v61 = vsel %vm2682_vm0, %v9030_v51, 0.0 }
 0x225   :  { %v9059_v12 = vpop.f32.mrb[134].mxu0  ;;  %v3567_v42 = vmul.f32 %v9038_v27, %v9038_v27  ;;  %12145 = vst [vmem:[#allocation108_spill] sm:$0xff] %v9095_v39  ;;  %12146 = vst [vmem:[#allocation109_spill] sm:$0xff] %v9104_v29  ;;  %v2831_v62 = vmul.f32 %v9030_v51, %v9030_v51  ;;  %v3569_v52 = vmul.f32 %v9095_v39, %v9095_v39  ;;  %v3373_v11 = vsel %vm2682_vm0, %v3312_v40, 0.0 }
 0x226   :  { %v1897_v31 = vpop.f32.mrb[135].mxu0  ;;  %12147 = vst [vmem:[#allocation110_spill] sm:$0xff] %v9113_v0  ;;  %v3372_v9 = vadd.f32 %v3371_v19, %v3370_v6  ;;  %v9146_v19 = vadd.f32 %v8408_v58, %v9010_v16  ;;  %v9150_v40 = vadd.f32 %v2772_v61, %v9041_v26  ;;  %v3479_v16 = vsel %vm2682_vm0, %v9113_v0, 0.0  ;;  %v9163_v26 = vld [vmem:[%s11859_s8] ss:$0 sm:$0xff] }
 0x227   :  { %v3472_v31 = vadd.f32 %v3471_v35, %v3470_v33  ;;  %v3626_v50 = vsel %vm2682_vm0, %v3567_v42, 0.0  ;;  %v3475_v33 = vsel %vm2682_vm0, %v9068_v23, 0.0  ;;  %v9115_v42 = vpop.f32.mrb[136].mxu1  ;;  %v3219_v23 = vadd.f32 %v3218_v45, %v3217_v55 }
 0x228   :  { %v3627_v20 = vadd.f32 %v3626_v50, %v3625_v59  ;;  %v2558_v27 = vpop.f32.mrb[137].mxu1  ;;  %v3477_v50 = vsel %vm2682_vm0, %v9095_v39, 0.0  ;;  %v3313_v55 = vmul.f32 %v9104_v29, %v9104_v29  ;;  %v3570_v45 = vmul.f32 %v9113_v0, %v9113_v0  ;;  %12148 = vst [vmem:[#allocation111_spill] sm:$0xff] %v9146_v19 }
 0x229   :  { %v3474_v18 = vadd.f32 %v3473_v57, %v3472_v31  ;;  %v3628_v31 = vsel %vm2682_vm0, %v3568_v41, 0.0  ;;  %v9126_v38 = vpop.f32.mrb[138].mxu1  ;;  %v9136_v27 = vadd.f32 %v2922_v30, %v8927_v48  ;;  %v9142_v41 = vadd.f32 %v8408_v58, %v8998_v7 }
 0x22a   :  { %v2561_v59 = vpop.f32.mrb[139].mxu1  ;;  %v3027_v48 = vsel %vm2682_vm0, %v9083_v21, 0.0  ;;  %v3629_v30 = vadd.f32 %v3628_v31, %v3627_v20  ;;  %v3222_v7 = vsel %vm2682_vm0, %v9104_v29, 0.0  ;;  %v3375_v58 = vsel %vm2682_vm0, %v3313_v55, 0.0 }
 0x22b   :  { %v9106_v35 = vpop.f32.mrb[136].mxu0  ;;  %v3476_v3 = vadd.f32 %v3475_v33, %v3474_v18  ;;  %v3178_v33 = vsel %vm2682_vm0, %v3086_v32, 0.0  ;;  %v3374_v18 = vadd.f32 %v3373_v11, %v3372_v9  ;;  %v3630_v59 = vsel %vm2682_vm0, %v3569_v52, 0.0 }
 0x22c   :  { %v1902_v10 = vpop.f32.mrb[137].mxu0  ;;  %v3632_v32 = vsel %vm2682_vm0, %v3570_v45, 0.0  ;;  %v3314_v61 = vmul.f32 %v9142_v41, %v9142_v41  ;;  %v3571_v20 = vmul.f32 %v9146_v19, %v9146_v19  ;;  %v9178_v9 = vadd.f32 %v9163_v26, %v9052_v36 }
 0x22d   :  { %v9121_v56 = vpop.f32.mrb[138].mxu0  ;;  %v3220_v10 = vsel %vm2682_vm0, %v9078_v53, 0.0  ;;  %v2924_v52 = vsel %vm2682_vm0, %v2831_v62, 0.0  ;;  %v3376_v0 = vadd.f32 %v3375_v58, %v3374_v18  ;;  %v3224_v36 = vsel %vm2682_vm0, %v9142_v41, 0.0 }
 0x22e   :  { %v1905_v57 = vpop.f32.mrb[139].mxu0  ;;  %v3221_v6 = vadd.f32 %v3220_v10, %v3219_v23  ;;  %v9167_v23 = vadd.f32 %v9163_v26, %v9047_v2  ;;  %12149 = vst [vmem:[#allocation112_spill] sm:$0xff] %v9178_v9  ;;  %v3179_v2 = vadd.f32 %v3178_v33, %v8967_v25  ;;  %v3087_v10 = vmul.f32 %v9083_v21, %v9083_v21 }
 0x22f   :  { %v3478_v57 = vadd.f32 %v3477_v50, %v3476_v3  ;;  %v9180_v3 = vpop.f32.mrb[140].mxu1  ;;  %v3631_v50 = vadd.f32 %v3630_v59, %v3629_v30  ;;  %v3481_v25 = vsel %vm2682_vm0, %v9146_v19, 0.0  ;;  %v9198_v33 = vadd.f32 %v9163_v26, %v9059_v12 }
 0x230   :  { %v2566_v55 = vpop.f32.mrb[141].mxu1  ;;  %v3223_v39 = vadd.f32 %v3222_v7, %v3221_v6  ;;  %v3315_v62 = vmul.f32 %v9167_v23, %v9167_v23  ;;  %v3377_v6 = vsel %vm2682_vm0, %v3314_v61, 0.0  ;;  %v3634_v18 = vsel %vm2682_vm0, %v3571_v20, 0.0 }
 0x231   :  { %v3480_v29 = vadd.f32 %v3479_v16, %v3478_v57  ;;  %v9190_v53 = vpop.f32.mrb[142].mxu1  ;;  %v3633_v13 = vadd.f32 %v3632_v32, %v3631_v50  ;;  %v3572_v57 = vmul.f32 %v9178_v9, %v9178_v9  ;;  %v9206_v59 = vadd.f32 %v9163_v26, %v9070_v49 }
 0x232   :  { %v2569_v30 = vpop.f32.mrb[143].mxu1  ;;  %v9209_v7 = vadd.f32 %v3027_v48, %v9109_v15  ;;  %v3226_v58 = vsel %vm2682_vm0, %v9167_v23, 0.0  ;;  %v3483_v12 = vsel %vm2682_vm0, %v9178_v9, 0.0  ;;  %v9217_v16 = vadd.f32 %v9163_v26, %v9106_v35 }
 0x233   :  { %v9169_v11 = vpop.f32.mrb[140].mxu0  ;;  %12150 = vst [vmem:[#allocation113_spill] sm:$0xff] %v9206_v59  ;;  %v3180_v32 = vsel %vm2682_vm0, %v3087_v10, 0.0  ;;  %v3225_v61 = vadd.f32 %v3224_v36, %v3223_v39  ;;  %v3482_v20 = vadd.f32 %v3481_v25, %v3480_v29  ;;  %v9222_v49 = vadd.f32 %v9163_v26, %v9115_v42 }
 0x234   :  { %v1910_v31 = vpop.f32.mrb[141].mxu0  ;;  %12151 = vst [vmem:[#allocation114_spill] sm:$0xff] %v9217_v16  ;;  %v3378_v15 = vadd.f32 %v3377_v6, %v3376_v0  ;;  %v3635_v48 = vadd.f32 %v3634_v18, %v3633_v13  ;;  %v3379_v50 = vsel %vm2682_vm0, %v3315_v62, 0.0  ;;  %v3316_v55 = vmul.f32 %v9198_v33, %v9198_v33 }
 0x235   :  { %v9186_v45 = vpop.f32.mrb[142].mxu0  ;;  %12152 = vst [vmem:[#allocation115_spill] sm:$0xff] %v9222_v49  ;;  %v3227_v30 = vadd.f32 %v3226_v58, %v3225_v61  ;;  %v3484_v19 = vadd.f32 %v3483_v12, %v3482_v20  ;;  %v3636_v35 = vsel %vm2682_vm0, %v3572_v57, 0.0  ;;  %v3573_v39 = vmul.f32 %v9206_v59, %v9206_v59  ;;  %v2572_v29 = vpop.f32.mrb[144].mxu1 }
 0x236   :  { %v1913_v31 = vpop.f32.mrb[143].mxu0  ;;  %v3228_v42 = vsel %vm2682_vm0, %v9198_v33, 0.0  ;;  %v3485_v13 = vsel %vm2682_vm0, %v9206_v59, 0.0  ;;  %v3317_v0 = vmul.f32 %v9217_v16, %v9217_v16  ;;  %v9238_v36 = vadd.f32 %v9163_v26, %v9121_v56  ;;  %v2574_v25 = vpop.f32.mrb[145].mxu1 }
 0x237   :  { %v9243_v6 = vadd.f32 %v2924_v52, %v9136_v27  ;;  %v3380_v18 = vadd.f32 %v3379_v50, %v3378_v15  ;;  %v3574_v57 = vmul.f32 %v9222_v49, %v9222_v49  ;;  %v9249_v58 = vadd.f32 %v9163_v26, %v9126_v38  ;;  %v2575_v12 = vpop.f32.mrb[146].mxu1 }
 0x238   :  { %12153 = vst [vmem:[#allocation116_spill] sm:$0xff] %v9238_v36  ;;  %v9251_v20 = vadd.f32 %v3180_v32, %v3179_v2  ;;  %v9255_v56 = vadd.f32 %v9163_v26, %v8492_v44  ;;  %v3381_v27 = vsel %vm2682_vm0, %v3316_v55, 0.0  ;;  %v2577_v52 = vpop.f32.mrb[147].mxu1  ;;  %v3229_v15 = vadd.f32 %v3228_v42, %v3227_v30 }
 0x239   :  { %12154 = vst [vmem:[#allocation117_spill] sm:$0xff] %v9249_v58  ;;  %v3486_v50 = vadd.f32 %v3485_v13, %v3484_v19  ;;  %v3638_v25 = vsel %vm2682_vm0, %v3573_v39, 0.0  ;;  %v3230_v38 = vsel %vm2682_vm0, %v9217_v16, 0.0  ;;  %v3383_v59 = vsel %vm2682_vm0, %v3317_v0, 0.0 }
 0x23a   :  { %v3487_v2 = vsel %vm2682_vm0, %v9222_v49, 0.0  ;;  %v3318_v44 = vmul.f32 %v9238_v36, %v9238_v36  ;;  %v9268_v32 = vadd.f32 %v9163_v26, %v9169_v11  ;;  %v3640_v19 = vsel %vm2682_vm0, %v3574_v57, 0.0 }
 0x23b   :  { %v1916_v31 = vpop.f32.mrb[144].mxu0  ;;  %v3575_v55 = vmul.f32 %v9249_v58, %v9249_v58  ;;  %v9275_v30 = vadd.f32 %v9163_v26, %v9180_v3  ;;  %v9281_v39 = vadd.f32 %v9163_v26, %v8504_v47  ;;  %v3231_v11 = vadd.f32 %v3230_v38, %v3229_v15 }
 0x23c   :  { %v1918_v10 = vpop.f32.mrb[145].mxu0  ;;  %12155 = vst [vmem:[#allocation118_spill] sm:$0xff] %v9268_v32  ;;  %v3232_v57 = vsel %vm2682_vm0, %v9238_v36, 0.0  ;;  %v3489_v3 = vsel %vm2682_vm0, %v9249_v58, 0.0  ;;  %v3385_v49 = vsel %vm2682_vm0, %v3318_v44, 0.0  ;;  %v3319_v47 = vmul.f32 %v9268_v32, %v9268_v32 }
 0x23d   :  { %v9240_v62 = vpop.f32.mrb[146].mxu0  ;;  %v3637_v10 = vadd.f32 %v3636_v35, %v3635_v48  ;;  %v3382_v48 = vadd.f32 %v3381_v27, %v3380_v18  ;;  %12156 = vst [vmem:[#allocation119_spill] sm:$0xff] %v9275_v30  ;;  %v2774_v35 = vsel %vm2682_vm0, %v9255_v56, 0.0  ;;  %v3488_v18 = vadd.f32 %v3487_v2, %v3486_v50 }
 0x23e   :  { %v1921_v61 = vpop.f32.mrb[147].mxu0  ;;  %v3642_v50 = vsel %vm2682_vm0, %v3575_v55, 0.0  ;;  %v3576_v38 = vmul.f32 %v9275_v30, %v9275_v30  ;;  %v9305_v2 = vadd.f32 %v9163_v26, %v9190_v53  ;;  %v3491_v55 = vsel %vm2682_vm0, %v9275_v30, 0.0 }
 0x23f   :  { %v3639_v42 = vadd.f32 %v3638_v25, %v3637_v10  ;;  %v3384_v0 = vadd.f32 %v3383_v59, %v3382_v48  ;;  %v2580_v61 = vpop.f32.mrb[148].mxu1  ;;  %v9294_v10 = vadd.f32 %v9163_v26, %v9186_v45  ;;  %v3234_v25 = vsel %vm2682_vm0, %v9268_v32, 0.0 }
 0x240   :  { %v2582_v59 = vpop.f32.mrb[149].mxu1  ;;  %12158 = vst [vmem:[#allocation121_spill] sm:$0xff] %v9305_v2  ;;  %v2832_v45 = vmul.f32 %v9255_v56, %v9255_v56  ;;  %v3490_v58 = vadd.f32 %v3489_v3, %v3488_v18  ;;  %v9321_v9 = vadd.f32 %v9163_v26, %v2572_v29  ;;  %v2775_v3 = vadd.f32 %v2774_v35, %v9150_v40 }
 0x241   :  { %v3641_v52 = vadd.f32 %v3640_v19, %v3639_v42  ;;  %12157 = vst [vmem:[#allocation120_spill] sm:$0xff] %v9294_v10  ;;  %v9307_v44 = vpop.f32.mrb[150].mxu1  ;;  %v3233_v19 = vadd.f32 %v3232_v57, %v3231_v11  ;;  %v9314_v42 = vadd.f32 %v9163_v26, %v1916_v31  ;;  %v9318_v59 = vadd.f32 %v9163_v26, %v8513_v43 }
 0x242   :  { %v3386_v53 = vadd.f32 %v3385_v49, %v3384_v0  ;;  %12160 = vst [vmem:[#allocation123_spill] sm:$0xff] %v9321_v9  ;;  %v3387_v11 = vsel %vm2682_vm0, %v3319_v47, 0.0  ;;  %v3320_v57 = vmul.f32 %v9294_v10, %v9294_v10  ;;  %v3492_v30 = vadd.f32 %v3491_v55, %v3490_v58 }
 0x243   :  { %v9283_v13 = vpop.f32.mrb[148].mxu0  ;;  %12159 = vst [vmem:[#allocation122_spill] sm:$0xff] %v9314_v42  ;;  %v3235_v32 = vadd.f32 %v3234_v25, %v3233_v19  ;;  %v3644_v31 = vsel %vm2682_vm0, %v3576_v38, 0.0  ;;  %v3577_v43 = vmul.f32 %v9305_v2, %v9305_v2  ;;  %v3493_v49 = vsel %vm2682_vm0, %v9305_v2, 0.0 }
 0x244   :  { %v1926_v27 = vpop.f32.mrb[149].mxu0  ;;  %v3321_v29 = vmul.f32 %v9314_v42, %v9314_v42  ;;  %v9337_v0 = vadd.f32 %v9163_v26, %v9240_v62  ;;  %v9340_v58 = vadd.f32 %v9163_v26, %v2575_v12  ;;  %v3388_v47 = vadd.f32 %v3387_v11, %v3386_v53 }
 0x245   :  { %v9296_v15 = vpop.f32.mrb[150].mxu0  ;;  %v2585_v27 = vpop.f32.mrb[151].mxu1  ;;  %v3088_v19 = vmul.f32 %v9281_v39, %v9281_v39  ;;  %v9351_v62 = vadd.f32 %v9163_v26, %v8519_v37  ;;  %v3389_v55 = vsel %vm2682_vm0, %v3320_v57, 0.0  ;;  %v3646_v53 = vsel %vm2682_vm0, %v3577_v43, 0.0 }
 0x246   :  { %v1929_v48 = vpop.f32.mrb[151].mxu0  ;;  %v3236_v27 = vsel %vm2682_vm0, %v9294_v10, 0.0  ;;  %12161 = vst [vmem:[#allocation124_spill] sm:$0xff] %v9337_v0  ;;  %12162 = vst [vmem:[#allocation125_spill] sm:$0xff] %v9340_v58  ;;  %v2588_v25 = vpop.f32.mrb[152].mxu1  ;;  %v3494_v10 = vadd.f32 %v3493_v49, %v3492_v30  ;;  %v3238_v11 = vsel %vm2682_vm0, %v9314_v42, 0.0  ;;  %v3579_v57 = vmul.f32 %v9340_v58, %v9340_v58 }
 0x247   :  { %v3643_v48 = vadd.f32 %v3642_v50, %v3641_v52  ;;  %v3029_v52 = vsel %vm2682_vm0, %v9281_v39, 0.0  ;;  %v3578_v50 = vmul.f32 %v9321_v9, %v9321_v9  ;;  %v2590_v40 = vpop.f32.mrb[153].mxu1  ;;  %v3237_v2 = vadd.f32 %v3236_v27, %v3235_v32 }
 0x248   :  { %v3391_v16 = vsel %vm2682_vm0, %v3321_v29, 0.0  ;;  %v3495_v37 = vsel %vm2682_vm0, %v9321_v9, 0.0  ;;  %v3390_v30 = vadd.f32 %v3389_v55, %v3388_v47  ;;  %v9367_v27 = vadd.f32 %v9163_v26, %v9283_v13 }
 0x249   :  { %v3645_v12 = vadd.f32 %v3644_v31, %v3643_v48  ;;  %v3322_v48 = vmul.f32 %v9337_v0, %v9337_v0  ;;  %v3648_v31 = vsel %vm2682_vm0, %v3578_v50, 0.0  ;;  %v2926_v43 = vsel %vm2682_vm0, %v2832_v45, 0.0 }
 0x24a   :  { %12163 = vst [vmem:[#allocation126_spill] sm:$0xff] %v9367_v27  ;;  %v9374_v49 = vadd.f32 %v3029_v52, %v9209_v7  ;;  %v2776_v29 = vsel %vm2682_vm0, %v9318_v59, 0.0  ;;  %v3392_v47 = vadd.f32 %v3391_v16, %v3390_v30  ;;  %v3496_v55 = vadd.f32 %v3495_v37, %v3494_v10 }
 0x24b   :  { %v1932_v18 = vpop.f32.mrb[152].mxu0  ;;  %v3647_v40 = vadd.f32 %v3646_v53, %v3645_v12  ;;  %v3240_v50 = vsel %vm2682_vm0, %v9337_v0, 0.0  ;;  %v3393_v9 = vsel %vm2682_vm0, %v3322_v48, 0.0  ;;  %v3650_v45 = vsel %vm2682_vm0, %v3579_v57, 0.0 }
 0x24c   :  { %v1934_v38 = vpop.f32.mrb[153].mxu0  ;;  %v3323_v52 = vmul.f32 %v9367_v27, %v9367_v27  ;;  %v9390_v16 = vadd.f32 %v9163_v26, %v9296_v15  ;;  %v9394_v10 = vadd.f32 %v9163_v26, %v9307_v44  ;;  %v3182_v37 = vsel %vm2682_vm0, %v3088_v19, 0.0 }
 0x24d   :  { %v1935_v35 = vpop.f32.mrb[154].mxu0  ;;  %v2591_v38 = vpop.f32.mrb[154].mxu1  ;;  %v3649_v13 = vadd.f32 %v3648_v31, %v3647_v40  ;;  %v9400_v48 = vadd.f32 %v2776_v29, %v2775_v3  ;;  %v2833_v57 = vmul.f32 %v9318_v59, %v9318_v59  ;;  %v3242_v15 = vsel %vm2682_vm0, %v9367_v27, 0.0 }
 0x24e   :  { %v1937_v36 = vpop.f32.mrb[155].mxu0  ;;  %v2593_v32 = vpop.f32.mrb[155].mxu1  ;;  %12165 = vst [vmem:[#allocation128_spill] sm:$0xff] %v9390_v16  ;;  %12166 = vst [vmem:[#allocation129_spill] sm:$0xff] %v9394_v10  ;;  %v9409_v40 = vadd.f32 %v9163_v26, %v1932_v18  ;;  %v3394_v29 = vadd.f32 %v3393_v9, %v3392_v47  ;;  %v3395_v0 = vsel %vm2682_vm0, %v3323_v52, 0.0  ;;  %v3581_v18 = vmul.f32 %v9394_v10, %v9394_v10 }
 0x24f   :  { %v9370_v36 = vadd.f32 %v9163_v26, %v2580_v61  ;;  %v3239_v32 = vadd.f32 %v3238_v11, %v3237_v2  ;;  %v3497_v61 = vsel %vm2682_vm0, %v9340_v58, 0.0  ;;  %v2596_v12 = vpop.f32.mrb[156].mxu1  ;;  %v9397_v11 = vadd.f32 %v2926_v43, %v9243_v6 }
 0x250   :  { %v2598_v30 = vpop.f32.mrb[157].mxu1  ;;  %12167 = vst [vmem:[#allocation130_spill] sm:$0xff] %v9409_v40  ;;  %v9412_v6 = vadd.f32 %v9163_v26, %v2588_v25  ;;  %v3651_v58 = vadd.f32 %v3650_v45, %v3649_v13  ;;  %v9423_v9 = vadd.f32 %v9163_v26, %v1935_v35  ;;  %v3325_v47 = vmul.f32 %v9409_v40, %v9409_v40 }
 0x251   :  { %12164 = vst [vmem:[#allocation127_spill] sm:$0xff] %v9370_v36  ;;  %v3580_v2 = vmul.f32 %v9370_v36, %v9370_v36  ;;  %v3499_v44 = vsel %vm2682_vm0, %v9370_v36, 0.0  ;;  %v2599_v19 = vpop.f32.mrb[158].mxu1  ;;  %v3241_v43 = vadd.f32 %v3240_v50, %v3239_v32  ;;  %v3324_v36 = vmul.f32 %v9390_v16, %v9390_v16 }
 0x252   :  { %12168 = vst [vmem:[#allocation131_spill] sm:$0xff] %v9412_v6  ;;  %v2601_v30 = vpop.f32.mrb[159].mxu1  ;;  %v3501_v32 = vsel %vm2682_vm0, %v9394_v10, 0.0  ;;  %v9432_v50 = vadd.f32 %v9163_v26, %v2591_v38  ;;  %v9435_v13 = vadd.f32 %v3182_v37, %v9251_v20  ;;  %v3396_v35 = vadd.f32 %v3395_v0, %v3394_v29 }
 0x253   :  { %v1940_v7 = vpop.f32.mrb[156].mxu0  ;;  %v3652_v27 = vsel %vm2682_vm0, %v3580_v2, 0.0  ;;  %v3243_v42 = vadd.f32 %v3242_v15, %v3241_v43  ;;  %v3397_v2 = vsel %vm2682_vm0, %v3324_v36, 0.0  ;;  %v3654_v15 = vsel %vm2682_vm0, %v3581_v18, 0.0 }
 0x254   :  { %v1942_v53 = vpop.f32.mrb[157].mxu0  ;;  %12169 = vst [vmem:[#allocation132_spill] sm:$0xff] %v9432_v50  ;;  %v3653_v45 = vadd.f32 %v3652_v27, %v3651_v58  ;;  %v9444_v43 = vadd.f32 %v9163_v26, %v1940_v7  ;;  %v3503_v30 = vsel %vm2682_vm0, %v9412_v6, 0.0  ;;  %v3326_v0 = vmul.f32 %v9423_v9, %v9423_v9 }
 0x255   :  { %v1943_v31 = vpop.f32.mrb[158].mxu0  ;;  %v3498_v53 = vadd.f32 %v3497_v61, %v3496_v55  ;;  %v3582_v55 = vmul.f32 %v9412_v6, %v9412_v6  ;;  %v3031_v61 = vsel %vm2682_vm0, %v9351_v62, 0.0  ;;  %v3399_v36 = vsel %vm2682_vm0, %v3325_v47, 0.0 }
 0x256   :  { %v1945_v3 = vpop.f32.mrb[159].mxu0  ;;  %v2604_v38 = vpop.f32.mrb[160].mxu1  ;;  %v3583_v7 = vmul.f32 %v9432_v50, %v9432_v50  ;;  %v9455_v18 = vadd.f32 %v9163_v26, %v2596_v12  ;;  %v3248_v47 = vsel %vm2682_vm0, %v9423_v9, 0.0 }
 0x257   :  { %v3500_v25 = vadd.f32 %v3499_v44, %v3498_v53  ;;  %v3244_v3 = vsel %vm2682_vm0, %v9390_v16, 0.0  ;;  %v3246_v44 = vsel %vm2682_vm0, %v9409_v40, 0.0  ;;  %v2606_v58 = vpop.f32.mrb[161].mxu1  ;;  %v3656_v29 = vsel %vm2682_vm0, %v3582_v55, 0.0 }
 0x258   :  { %v3245_v20 = vadd.f32 %v3244_v3, %v3243_v42  ;;  %12170 = vst [vmem:[#allocation133_spill] sm:$0xff] %v9455_v18  ;;  %v2607_v42 = vpop.f32.mrb[162].mxu1  ;;  %v2928_v3 = vsel %vm2682_vm0, %v2833_v57, 0.0  ;;  %v3327_v55 = vmul.f32 %v9444_v43, %v9444_v43  ;;  %v9463_v40 = vadd.f32 %v9163_v26, %v1943_v31 }
 0x259   :  { %v3502_v37 = vadd.f32 %v3501_v32, %v3500_v25  ;;  %v3398_v32 = vadd.f32 %v3397_v2, %v3396_v35  ;;  %v2609_v10 = vpop.f32.mrb[163].mxu1  ;;  %v3505_v57 = vsel %vm2682_vm0, %v9432_v50, 0.0  ;;  %v3658_v35 = vsel %vm2682_vm0, %v3583_v7, 0.0 }
 0x25a   :  { %v3247_v6 = vadd.f32 %v3246_v44, %v3245_v20  ;;  %v3250_v10 = vsel %vm2682_vm0, %v9444_v43, 0.0  ;;  %v9474_v2 = vadd.f32 %v9163_v26, %v2599_v19  ;;  %v9477_v31 = vadd.f32 %v3031_v61, %v9374_v49 }
 0x25b   :  { %v1948_v52 = vpop.f32.mrb[160].mxu0  ;;  %v3504_v58 = vadd.f32 %v3503_v30, %v3502_v37  ;;  %v3400_v12 = vadd.f32 %v3399_v36, %v3398_v32  ;;  %v3507_v44 = vsel %vm2682_vm0, %v9455_v18, 0.0  ;;  %v3328_v36 = vmul.f32 %v9463_v40, %v9463_v40 }
 0x25c   :  { %v1950_v53 = vpop.f32.mrb[161].mxu0  ;;  %12171 = vst [vmem:[#allocation134_spill] sm:$0xff] %v9474_v2  ;;  %v9482_v20 = vadd.f32 %v9163_v26, %v1948_v52  ;;  %v9488_v19 = vadd.f32 %v9163_v26, %v2604_v38  ;;  %v3585_v38 = vmul.f32 %v9474_v2, %v9474_v2 }
 0x25d   :  { %v1951_v27 = vpop.f32.mrb[162].mxu0  ;;  %v3655_v53 = vadd.f32 %v3654_v15, %v3653_v45  ;;  %v3584_v45 = vmul.f32 %v9455_v18, %v9455_v18  ;;  %v3249_v15 = vadd.f32 %v3248_v47, %v3247_v6  ;;  %v3506_v30 = vadd.f32 %v3505_v57, %v3504_v58 }
 0x25e   :  { %v1953_v25 = vpop.f32.mrb[163].mxu0  ;;  %12172 = vst [vmem:[#allocation135_spill] sm:$0xff] %v9488_v19  ;;  %v3089_v6 = vmul.f32 %v9351_v62, %v9351_v62  ;;  %v3509_v18 = vsel %vm2682_vm0, %v9474_v2, 0.0 }
 0x25f   :  { %v3657_v16 = vadd.f32 %v3656_v29, %v3655_v53  ;;  %v3401_v25 = vsel %vm2682_vm0, %v3326_v0, 0.0  ;;  %v3403_v0 = vsel %vm2682_vm0, %v3327_v55, 0.0  ;;  %v2612_v29 = vpop.f32.mrb[164].mxu1  ;;  %v3251_v32 = vadd.f32 %v3250_v10, %v3249_v15 }
 0x260   :  { %v3402_v61 = vadd.f32 %v3401_v25, %v3400_v12  ;;  %v2614_v52 = vpop.f32.mrb[165].mxu1  ;;  %v3508_v47 = vadd.f32 %v3507_v44, %v3506_v30  ;;  %v3660_v58 = vsel %vm2682_vm0, %v3584_v45, 0.0  ;;  %v3252_v55 = vsel %vm2682_vm0, %v9463_v40, 0.0 }
 0x261   :  { %v3659_v7 = vadd.f32 %v3658_v35, %v3657_v16  ;;  %v2615_v57 = vpop.f32.mrb[166].mxu1  ;;  %v3329_v16 = vmul.f32 %v9482_v20, %v9482_v20  ;;  %v9502_v12 = vadd.f32 %v9163_v26, %v1951_v27  ;;  %v3405_v35 = vsel %vm2682_vm0, %v3328_v36, 0.0 }
 0x262   :  { %v2617_v25 = vpop.f32.mrb[167].mxu1  ;;  %v3254_v10 = vsel %vm2682_vm0, %v9482_v20, 0.0  ;;  %v3586_v45 = vmul.f32 %v9488_v19, %v9488_v19  ;;  %v9513_v15 = vadd.f32 %v2928_v3, %v9397_v11  ;;  %v3184_v44 = vsel %vm2682_vm0, %v3089_v6, 0.0 }
 0x263   :  { %v1956_v37 = vpop.f32.mrb[164].mxu0  ;;  %v3661_v30 = vadd.f32 %v3660_v58, %v3659_v7  ;;  %v3253_v27 = vadd.f32 %v3252_v55, %v3251_v32  ;;  %v3511_v36 = vsel %vm2682_vm0, %v9488_v19, 0.0  ;;  %v3256_v11 = vsel %vm2682_vm0, %v9502_v12, 0.0 }
 0x264   :  { %v1958_v49 = vpop.f32.mrb[165].mxu0  ;;  %v9520_v52 = vadd.f32 %v9163_v26, %v1956_v37  ;;  %v3664_v6 = vsel %vm2682_vm0, %v3586_v45, 0.0  ;;  %v9531_v32 = vadd.f32 %v9163_v26, %v2612_v29  ;;  %v9534_v58 = vadd.f32 %v3184_v44, %v9435_v13 }
 0x265   :  { %v1959_v53 = vpop.f32.mrb[166].mxu0  ;;  %v3404_v49 = vadd.f32 %v3403_v0, %v3402_v61  ;;  %v3510_v0 = vadd.f32 %v3509_v18, %v3508_v47  ;;  %v3662_v61 = vsel %vm2682_vm0, %v3585_v38, 0.0  ;;  %v3255_v2 = vadd.f32 %v3254_v10, %v3253_v27 }
 0x266   :  { %v1961_v50 = vpop.f32.mrb[167].mxu0  ;;  %12174 = vst [vmem:[#allocation137_spill] sm:$0xff] %v9520_v52  ;;  %v3330_v18 = vmul.f32 %v9502_v12, %v9502_v12  ;;  %12175 = vst [vmem:[#allocation138_spill] sm:$0xff] %v9531_v32  ;;  %v2620_v37 = vpop.f32.mrb[168].mxu1  ;;  %v9538_v55 = vadd.f32 %v9163_v26, %v8547_v5  ;;  %v3663_v38 = vadd.f32 %v3662_v61, %v3661_v30  ;;  %v3258_v45 = vsel %vm2682_vm0, %v9520_v52, 0.0 }
 0x267   :  { %v9510_v50 = vadd.f32 %v9163_v26, %v2607_v42  ;;  %v3406_v25 = vadd.f32 %v3405_v35, %v3404_v49  ;;  %v3407_v42 = vsel %vm2682_vm0, %v3329_v16, 0.0  ;;  %v3512_v49 = vadd.f32 %v3511_v36, %v3510_v0  ;;  %v2622_v16 = vpop.f32.mrb[169].mxu1 }
 0x268   :  { %v3331_v29 = vmul.f32 %v9520_v52, %v9520_v52  ;;  %v9545_v27 = vadd.f32 %v9163_v26, %v1959_v53  ;;  %v2623_v13 = vpop.f32.mrb[170].mxu1  ;;  %v3257_v19 = vadd.f32 %v3256_v11, %v3255_v2  ;;  %v9550_v30 = vadd.f32 %v9163_v26, %v2615_v57 }
 0x269   :  { %12173 = vst [vmem:[#allocation136_spill] sm:$0xff] %v9510_v50  ;;  %v3587_v7 = vmul.f32 %v9510_v50, %v9510_v50  ;;  %v3408_v10 = vadd.f32 %v3407_v42, %v3406_v25  ;;  %v3513_v5 = vsel %vm2682_vm0, %v9510_v50, 0.0  ;;  %v2625_v0 = vpop.f32.mrb[171].mxu1  ;;  %v3409_v61 = vsel %vm2682_vm0, %v3330_v18, 0.0 }
 0x26a   :  { %12176 = vst [vmem:[#allocation139_spill] sm:$0xff] %v9545_v27  ;;  %12177 = vst [vmem:[#allocation140_spill] sm:$0xff] %v9550_v30  ;;  %v3588_v25 = vmul.f32 %v9531_v32, %v9531_v32  ;;  %v2778_v2 = vsel %vm2682_vm0, %v9538_v55, 0.0  ;;  %v9563_v42 = vadd.f32 %v9163_v26, %v8550_v14  ;;  %v3259_v57 = vadd.f32 %v3258_v45, %v3257_v19 }
 0x26b   :  { %v1964_v3 = vpop.f32.mrb[168].mxu0  ;;  %v3666_v36 = vsel %vm2682_vm0, %v3587_v7, 0.0  ;;  %v3515_v11 = vsel %vm2682_vm0, %v9531_v32, 0.0  ;;  %v3260_v18 = vsel %vm2682_vm0, %v9545_v27, 0.0  ;;  %v9573_v7 = vadd.f32 %v9163_v26, %v2620_v37 }
 0x26c   :  { %v1966_v47 = vpop.f32.mrb[169].mxu0  ;;  %v9557_v53 = vadd.f32 %v9163_v26, %v1964_v3  ;;  %v3332_v3 = vmul.f32 %v9545_v27, %v9545_v27  ;;  %v3514_v16 = vadd.f32 %v3513_v5, %v3512_v49  ;;  %v3589_v14 = vmul.f32 %v9550_v30, %v9550_v30 }
 0x26d   :  { %v1967_v35 = vpop.f32.mrb[170].mxu0  ;;  %v3665_v47 = vadd.f32 %v3664_v6, %v3663_v38  ;;  %v3411_v6 = vsel %vm2682_vm0, %v3331_v29, 0.0  ;;  %12179 = vst [vmem:[#allocation142_spill] sm:$0xff] %v9573_v7  ;;  %v3410_v38 = vadd.f32 %v3409_v61, %v3408_v10  ;;  %v3668_v45 = vsel %vm2682_vm0, %v3588_v25, 0.0 }
 0x26e   :  { %v1969_v44 = vpop.f32.mrb[171].mxu0  ;;  %12178 = vst [vmem:[#allocation141_spill] sm:$0xff] %v9557_v53  ;;  %v3262_v29 = vsel %vm2682_vm0, %v9557_v53, 0.0  ;;  %v3333_v0 = vmul.f32 %v9557_v53, %v9557_v53  ;;  %v9583_v50 = vadd.f32 %v9163_v26, %v1967_v35  ;;  %v2628_v37 = vpop.f32.mrb[172].mxu1  ;;  %v3516_v49 = vadd.f32 %v3515_v11, %v3514_v16 }
 0x26f   :  { %v3667_v44 = vadd.f32 %v3666_v36, %v3665_v47  ;;  %v3412_v10 = vadd.f32 %v3411_v6, %v3410_v38  ;;  %v3261_v47 = vadd.f32 %v3260_v18, %v3259_v57  ;;  %v9586_v5 = vadd.f32 %v9163_v26, %v2623_v13  ;;  %v2630_v61 = vpop.f32.mrb[173].mxu1 }
 0x270   :  { %12180 = vst [vmem:[#allocation143_spill] sm:$0xff] %v9583_v50  ;;  %v3413_v25 = vsel %vm2682_vm0, %v3332_v3, 0.0  ;;  %v3517_v27 = vsel %vm2682_vm0, %v9550_v30, 0.0  ;;  %v3590_v53 = vmul.f32 %v9573_v7, %v9573_v7  ;;  %v3670_v57 = vsel %vm2682_vm0, %v3589_v14, 0.0 }
 0x271   :  { %12181 = vst [vmem:[#allocation144_spill] sm:$0xff] %v9586_v5  ;;  %v3669_v11 = vadd.f32 %v3668_v45, %v3667_v44  ;;  %v3263_v13 = vadd.f32 %v3262_v29, %v3261_v47  ;;  %v3519_v18 = vsel %vm2682_vm0, %v9573_v7, 0.0  ;;  %v3415_v3 = vsel %vm2682_vm0, %v3333_v0, 0.0 }
 0x272   :  { %v3264_v16 = vsel %vm2682_vm0, %v9583_v50, 0.0  ;;  %v3334_v61 = vmul.f32 %v9583_v50, %v9583_v50  ;;  %v2834_v44 = vmul.f32 %v9538_v55, %v9538_v55  ;;  %v3414_v14 = vadd.f32 %v3413_v25, %v3412_v10 }
 0x273   :  { %v1972_v19 = vpop.f32.mrb[172].mxu0  ;;  %v3518_v45 = vadd.f32 %v3517_v27, %v3516_v49  ;;  %v3591_v29 = vmul.f32 %v9586_v5, %v9586_v5  ;;  %v3672_v47 = vsel %vm2682_vm0, %v3590_v53, 0.0  ;;  %v3265_v50 = vadd.f32 %v3264_v16, %v3263_v13 }
 0x274   :  { %v1974_v32 = vpop.f32.mrb[173].mxu0  ;;  %v9594_v35 = vadd.f32 %v9163_v26, %v1972_v19  ;;  %v9605_v19 = vadd.f32 %v9163_v26, %v2628_v37  ;;  %v3671_v37 = vadd.f32 %v3670_v57, %v3669_v11  ;;  %v3416_v30 = vadd.f32 %v3415_v3, %v3414_v14 }
 0x275   :  { %v1975_v36 = vpop.f32.mrb[174].mxu0  ;;  %v2631_v32 = vpop.f32.mrb[174].mxu1  ;;  %v3520_v7 = vadd.f32 %v3519_v18, %v3518_v45  ;;  %v3417_v27 = vsel %vm2682_vm0, %v3334_v61, 0.0  ;;  %v3521_v49 = vsel %vm2682_vm0, %v9586_v5, 0.0  ;;  %v3674_v57 = vsel %vm2682_vm0, %v3591_v29, 0.0 }
 0x276   :  { %12182 = vst [vmem:[#allocation145_spill] sm:$0xff] %v9594_v35  ;;  %v1977_v6 = vpop.f32.mrb[175].mxu0  ;;  %v2633_v38 = vpop.f32.mrb[175].mxu1  ;;  %12183 = vst [vmem:[#allocation146_spill] sm:$0xff] %v9605_v19  ;;  %v3266_v0 = vsel %vm2682_vm0, %v9594_v35, 0.0  ;;  %v3592_v53 = vmul.f32 %v9605_v19, %v9605_v19  ;;  %v9625_v25 = vadd.f32 %v9163_v26, %v2631_v32  ;;  %v3673_v11 = vadd.f32 %v3672_v47, %v3671_v37 }
 0x277   :  { %v3335_v6 = vmul.f32 %v9594_v35, %v9594_v35  ;;  %v9617_v38 = vadd.f32 %v9163_v26, %v1975_v36  ;;  %v2636_v35 = vpop.f32.mrb[176].mxu1  ;;  %v9628_v36 = vadd.f32 %v2778_v2, %v9400_v48  ;;  %v3267_v13 = vadd.f32 %v3266_v0, %v3265_v50 }
 0x278   :  { %12185 = vst [vmem:[#allocation148_spill] sm:$0xff] %v9625_v25  ;;  %v2638_v18 = vpop.f32.mrb[177].mxu1  ;;  %v3523_v61 = vsel %vm2682_vm0, %v9605_v19, 0.0  ;;  %v3418_v2 = vadd.f32 %v3417_v27, %v3416_v30  ;;  %v3522_v45 = vadd.f32 %v3521_v49, %v3520_v7  ;;  %v9642_v29 = vadd.f32 %v9163_v26, %v2636_v35 }
 0x279   :  { %12184 = vst [vmem:[#allocation147_spill] sm:$0xff] %v9617_v38  ;;  %v3419_v16 = vsel %vm2682_vm0, %v3335_v6, 0.0  ;;  %v3268_v32 = vsel %vm2682_vm0, %v9617_v38, 0.0  ;;  %v3336_v50 = vmul.f32 %v9617_v38, %v9617_v38  ;;  %v3033_v0 = vsel %vm2682_vm0, %v9563_v42, 0.0 }
 0x27a   :  { %12187 = vst [vmem:[#allocation150_spill] sm:$0xff] %v9642_v29  ;;  %v3090_v6 = vmul.f32 %v9563_v42, %v9563_v42  ;;  %v3676_v37 = vsel %vm2682_vm0, %v3592_v53, 0.0  ;;  %v3675_v30 = vadd.f32 %v3674_v57, %v3673_v11  ;;  %v3420_v7 = vadd.f32 %v3419_v16, %v3418_v2 }
 0x27b   :  { %v1980_v10 = vpop.f32.mrb[176].mxu0  ;;  %v3524_v27 = vadd.f32 %v3523_v61, %v3522_v45  ;;  %v3269_v49 = vadd.f32 %v3268_v32, %v3267_v13  ;;  %v3525_v35 = vsel %vm2682_vm0, %v9625_v25, 0.0  ;;  %v3421_v5 = vsel %vm2682_vm0, %v3336_v50, 0.0 }
 0x27c   :  { %v1982_v52 = vpop.f32.mrb[177].mxu0  ;;  %v9637_v14 = vadd.f32 %v9163_v26, %v1980_v10  ;;  %v3593_v10 = vmul.f32 %v9625_v25, %v9625_v25  ;;  %v3677_v53 = vadd.f32 %v3676_v37, %v3675_v30  ;;  %v3594_v11 = vmul.f32 %v9642_v29, %v9642_v29 }
 0x27d   :  { %v1983_v3 = vpop.f32.mrb[178].mxu0  ;;  %v2639_v52 = vpop.f32.mrb[178].mxu1  ;;  %v9667_v16 = vsel %vm2682_vm0, %v2834_v44, 0.0  ;;  %v3527_v32 = vsel %vm2682_vm0, %v9642_v29, 0.0  ;;  %v9676_v50 = vadd.f32 %v3033_v0, %v9477_v31  ;;  %v3526_v37 = vadd.f32 %v3525_v35, %v3524_v27 }
 0x27e   :  { %12186 = vst [vmem:[#allocation149_spill] sm:$0xff] %v9637_v14  ;;  %v1985_v48 = vpop.f32.mrb[179].mxu0  ;;  %v2641_v47 = vpop.f32.mrb[179].mxu1  ;;  %v3270_v18 = vsel %vm2682_vm0, %v9637_v14, 0.0  ;;  %v9664_v57 = vadd.f32 %v9163_v26, %v2639_v52  ;;  %v3678_v61 = vsel %vm2682_vm0, %v3593_v10, 0.0  ;;  %v3422_v19 = vadd.f32 %v3421_v5, %v3420_v7 }
 0x27f   :  { %v3337_v48 = vmul.f32 %v9637_v14, %v9637_v14  ;;  %v9658_v47 = vadd.f32 %v9163_v26, %v1983_v3  ;;  %v2644_v2 = vpop.f32.mrb[180].mxu1  ;;  %v3271_v52 = vadd.f32 %v3270_v18, %v3269_v49  ;;  %v3679_v31 = vadd.f32 %v3678_v61, %v3677_v53 }
 0x280   :  { %12189 = vst [vmem:[#allocation152_spill] sm:$0xff] %v9664_v57  ;;  %v9679_v30 = vadd.f32 %v9163_v26, %v2644_v2  ;;  %v2646_v44 = vpop.f32.mrb[181].mxu1  ;;  %v3528_v0 = vadd.f32 %v3527_v32, %v3526_v37  ;;  %v3680_v27 = vsel %vm2682_vm0, %v3594_v11, 0.0  ;;  %v3595_v49 = vmul.f32 %v9664_v57, %v9664_v57 }
 0x281   :  { %12188 = vst [vmem:[#allocation151_spill] sm:$0xff] %v9658_v47  ;;  %v3423_v10 = vsel %vm2682_vm0, %v3337_v48, 0.0  ;;  %v3272_v29 = vsel %vm2682_vm0, %v9658_v47, 0.0  ;;  %v3529_v5 = vsel %vm2682_vm0, %v9664_v57, 0.0  ;;  %v2780_v32 = vrot.slane %v9628_v36, 4 }
 0x282   :  { %12191 = vst [vmem:[#allocation154_spill] sm:$0xff] %v9679_v30  ;;  %v3273_v53 = vadd.f32 %v3272_v29, %v3271_v52  ;;  %v3596_v11 = vmul.f32 %v9679_v30, %v9679_v30  ;;  %v3186_v2 = vsel %vm2682_vm0, %v3090_v6, 0.0  ;;  %v3681_v37 = vadd.f32 %v3680_v27, %v3679_v31 }
 0x283   :  { %v1988_v13 = vpop.f32.mrb[180].mxu0  ;;  %v3682_v57 = vsel %vm2682_vm0, %v3595_v49, 0.0 }
 0x284   :  { %v9673_v3 = vadd.f32 %v9163_v26, %v1988_v13  ;;  %v1990_v45 = vpop.f32.mrb[181].mxu0  ;;  %v3338_v13 = vmul.f32 %v9658_v47, %v9658_v47  ;;  %v3684_v27 = vsel %vm2682_vm0, %v3596_v11, 0.0 }
 0x285   :  { %v1991_v25 = vpop.f32.mrb[182].mxu0  ;;  %v2647_v45 = vpop.f32.mrb[182].mxu1 }
 0x286   :  { %12190 = vst [vmem:[#allocation153_spill] sm:$0xff] %v9673_v3  ;;  %v1993_v14 = vpop.f32.mrb[183].mxu0  ;;  %v2649_v35 = vpop.f32.mrb[183].mxu1  ;;  %v3274_v7 = vsel %vm2682_vm0, %v9673_v3, 0.0  ;;  %v3339_v18 = vmul.f32 %v9673_v3, %v9673_v3  ;;  %v9696_v48 = vadd.f32 %v9163_v26, %v1991_v25  ;;  %v9701_v61 = vadd.f32 %v9163_v26, %v2647_v45 }
 0x287   :  { %v3424_v14 = vadd.f32 %v3423_v10, %v3422_v19  ;;  %v3425_v44 = vsel %vm2682_vm0, %v3338_v13, 0.0  ;;  %v3530_v35 = vadd.f32 %v3529_v5, %v3528_v0  ;;  %v3275_v25 = vadd.f32 %v3274_v7, %v3273_v53  ;;  %v2652_v13 = vpop.f32.mrb[184].mxu1 }
 0x288   :  { %12192 = vst [vmem:[#allocation155_spill] sm:$0xff] %v9696_v48  ;;  %12193 = vst [vmem:[#allocation156_spill] sm:$0xff] %v9701_v61  ;;  %v3531_v19 = vsel %vm2682_vm0, %v9679_v30, 0.0  ;;  %v3427_v52 = vsel %vm2682_vm0, %v3339_v18, 0.0  ;;  %v3276_v10 = vsel %vm2682_vm0, %v9696_v48, 0.0  ;;  %v3340_v45 = vmul.f32 %v9696_v48, %v9696_v48  ;;  %v2654_v7 = vpop.f32.mrb[185].mxu1 }
 0x289   :  { %v3426_v0 = vadd.f32 %v3425_v44, %v3424_v14  ;;  %v3597_v49 = vmul.f32 %v9701_v61, %v9701_v61  ;;  %v9721_v5 = vadd.f32 %v9163_v26, %v2652_v13  ;;  %v3683_v53 = vadd.f32 %v3682_v57, %v3681_v37  ;;  %v2655_v14 = vpop.f32.mrb[186].mxu1 }
 0x28a   :  { %v3532_v48 = vadd.f32 %v3531_v19, %v3530_v35  ;;  %v3277_v3 = vadd.f32 %v3276_v10, %v3275_v25  ;;  %v3533_v13 = vsel %vm2682_vm0, %v9701_v61, 0.0  ;;  %v2657_v7 = vpop.f32.mrb[187].mxu1  ;;  %v3429_v57 = vsel %vm2682_vm0, %v3340_v45, 0.0 }
 0x28b   :  { %v1996_v29 = vpop.f32.mrb[184].mxu0  ;;  %12195 = vst [vmem:[#allocation158_spill] sm:$0xff] %v9721_v5  ;;  %v3428_v44 = vadd.f32 %v3427_v52, %v3426_v0  ;;  %v3685_v47 = vadd.f32 %v3684_v27, %v3683_v53  ;;  %v3598_v37 = vmul.f32 %v9721_v5, %v9721_v5  ;;  %v3035_v52 = vrot.slane %v9676_v50, 4 }
 0x28c   :  { %v9715_v6 = vadd.f32 %v9163_v26, %v1996_v29  ;;  %v1998_v31 = vpop.f32.mrb[185].mxu0  ;;  %v3686_v35 = vsel %vm2682_vm0, %v3597_v49, 0.0  ;;  %v9743_v19 = vadd.f32 %v3186_v2, %v9534_v58  ;;  %v3535_v45 = vsel %vm2682_vm0, %v9721_v5, 0.0 }
 0x28d   :  { %v1999_v18 = vpop.f32.mrb[186].mxu0  ;;  %v9751_v27 = vadd.f32 %v2780_v32, %v9628_v36  ;;  %v3688_v58 = vsel %vm2682_vm0, %v3598_v37, 0.0 }
 0x28e   :  { %12194 = vst [vmem:[#allocation157_spill] sm:$0xff] %v9715_v6  ;;  %v3278_v30 = vsel %vm2682_vm0, %v9715_v6, 0.0  ;;  %v3341_v29 = vmul.f32 %v9715_v6, %v9715_v6  ;;  %v9728_v31 = vadd.f32 %v9163_v26, %v1999_v18  ;;  %v2001_v11 = vpop.f32.mrb[187].mxu0  ;;  %v9736_v6 = vadd.f32 %v9163_v26, %v2655_v14 }
 0x28f   :  { %v2931_v18 = vadd.f32 %v9667_v16, %v9513_v15  ;;  %v3279_v25 = vadd.f32 %v3278_v30, %v3277_v3  ;;  %v3430_v15 = vadd.f32 %v3429_v57, %v3428_v44  ;;  %v3534_v16 = vadd.f32 %v3533_v13, %v3532_v48 }
 0x290   :  { %12196 = vst [vmem:[#allocation159_spill] sm:$0xff] %v9728_v31  ;;  %12197 = vst [vmem:[#allocation160_spill] sm:$0xff] %v9736_v6  ;;  %v3431_v10 = vsel %vm2682_vm0, %v3341_v29, 0.0  ;;  %v3280_v0 = vsel %vm2682_vm0, %v9728_v31, 0.0  ;;  %v3342_v49 = vmul.f32 %v9728_v31, %v9728_v31  ;;  %v3687_v30 = vadd.f32 %v3686_v35, %v3685_v47  ;;  %v2660_v29 = vpop.f32.mrb[188].mxu1 }
 0x291   :  { %v3599_v2 = vmul.f32 %v9736_v6, %v9736_v6  ;;  %v3432_v11 = vadd.f32 %v3431_v10, %v3430_v15  ;;  %v3536_v36 = vadd.f32 %v3535_v45, %v3534_v16  ;;  %v3281_v32 = vadd.f32 %v3280_v0, %v3279_v25  ;;  %v2662_v44 = vpop.f32.mrb[189].mxu1 }
 0x292   :  { %v9762_v48 = vadd.f32 %v9163_v26, %v2660_v29  ;;  %v3537_v47 = vsel %vm2682_vm0, %v9736_v6, 0.0  ;;  %v2663_v35 = vpop.f32.mrb[190].mxu1  ;;  %v3689_v25 = vadd.f32 %v3688_v58, %v3687_v30  ;;  %v3433_v45 = vsel %vm2682_vm0, %v3342_v49, 0.0 }
 0x293   :  { %v2004_v3 = vpop.f32.mrb[188].mxu0  ;;  %v9777_v15 = vadd.f32 %v9163_v26, %v2663_v35  ;;  %v2665_v16 = vpop.f32.mrb[191].mxu1  ;;  %v9780_v29 = vadd.f32 %v3035_v52, %v9676_v50  ;;  %v3538_v44 = vadd.f32 %v3537_v47, %v3536_v36  ;;  %v3434_v30 = vadd.f32 %v3433_v45, %v3432_v11 }
 0x294   :  { %v9759_v53 = vadd.f32 %v9163_v26, %v2004_v3  ;;  %v2006_v14 = vpop.f32.mrb[189].mxu0  ;;  %12199 = vst [vmem:[#allocation162_spill] sm:$0xff] %v9762_v48  ;;  %v3600_v0 = vmul.f32 %v9762_v48, %v9762_v48  ;;  %v2932_v3 = vrot.slane %v2931_v18, 4  ;;  %v3539_v49 = vsel %vm2682_vm0, %v9762_v48, 0.0 }
 0x295   :  { %v2007_v13 = vpop.f32.mrb[190].mxu0  ;;  %12201 = vst [vmem:[#allocation164_spill] sm:$0xff] %v9777_v15  ;;  %v3690_v14 = vsel %vm2682_vm0, %v3599_v2, 0.0  ;;  %v2782_v50 = vrot.slane %v9751_v27, 2  ;;  %v3188_v52 = vrot.slane %v9743_v19, 4  ;;  %v3601_v36 = vmul.f32 %v9777_v15, %v9777_v15 }
 0x296   :  { %12198 = vst [vmem:[#allocation161_spill] sm:$0xff] %v9759_v53  ;;  %v3282_v7 = vsel %vm2682_vm0, %v9759_v53, 0.0  ;;  %v3343_v57 = vmul.f32 %v9759_v53, %v9759_v53  ;;  %v9771_v37 = vadd.f32 %v9163_v26, %v2007_v13  ;;  %v2009_v10 = vpop.f32.mrb[191].mxu0  ;;  %v3692_v58 = vsel %vm2682_vm0, %v3600_v0, 0.0  ;;  %v2668_v0 = vpop.f32.mrb[192].mxu1 }
 0x297   :  { %v3283_v13 = vadd.f32 %v3282_v7, %v3281_v32  ;;  %v3691_v2 = vadd.f32 %v3690_v14, %v3689_v25  ;;  %v9795_v47 = vadd.f32 %v2932_v3, %v2931_v18  ;;  %v3540_v7 = vadd.f32 %v3539_v49, %v3538_v44  ;;  %v2670_v61 = vpop.f32.mrb[193].mxu1 }
 0x298   :  { %12200 = vst [vmem:[#allocation163_spill] sm:$0xff] %v9771_v37  ;;  %v3435_v10 = vsel %vm2682_vm0, %v3343_v57, 0.0  ;;  %v3284_v26 = vsel %vm2682_vm0, %v9771_v37, 0.0  ;;  %v3344_v35 = vmul.f32 %v9771_v37, %v9771_v37  ;;  %v6795_v57 = vld [vmem:[%s11859_s8] ss:$0 sm:$0xff]  ;;  %v3541_v25 = vsel %vm2682_vm0, %v9777_v15, 0.0 }
 0x299   :  { %v3436_v11 = vadd.f32 %v3435_v10, %v3434_v30  ;;  %v3693_v48 = vadd.f32 %v3692_v58, %v3691_v2  ;;  %v3285_v6 = vadd.f32 %v3284_v26, %v3283_v13  ;;  %v9804_v14 = vadd.f32 %v6795_v57, %v2668_v0  ;;  %v2671_v30 = vpop.f32.mrb[194].mxu1 }
 0x29a   :  { %v3437_v3 = vsel %vm2682_vm0, %v3344_v35, 0.0  ;;  %v3694_v13 = vsel %vm2682_vm0, %v3601_v36, 0.0  ;;  %v9818_v2 = vadd.f32 %v6795_v57, %v2671_v30  ;;  %v2673_v35 = vpop.f32.mrb[195].mxu1  ;;  %v3542_v0 = vadd.f32 %v3541_v25, %v3540_v7 }
 0x29b   :  { %v2012_v32 = vpop.f32.mrb[192].mxu0  ;;  %12203 = vst [vmem:[#allocation166_spill] sm:$0xff] %v9804_v14  ;;  %v3543_v26 = vsel %vm2682_vm0, %v9804_v14, 0.0  ;;  %v3602_v61 = vmul.f32 %v9804_v14, %v9804_v14  ;;  %v3438_v36 = vadd.f32 %v3437_v3, %v3436_v11  ;;  %v2783_v7 = vadd.f32 %v2782_v50, %v9751_v27 }
 0x29c   :  { %v9800_v45 = vadd.f32 %v6795_v57, %v2012_v32  ;;  %v2014_v16 = vpop.f32.mrb[193].mxu0  ;;  %12205 = vst [vmem:[#allocation168_spill] sm:$0xff] %v9818_v2  ;;  %v3037_v32 = vrot.slane %v9780_v29, 2  ;;  %v3544_v37 = vadd.f32 %v3543_v26, %v3542_v0  ;;  %v3603_v35 = vmul.f32 %v9818_v2, %v9818_v2 }
 0x29d   :  { %v2015_v18 = vpop.f32.mrb[194].mxu0  ;;  %v3696_v5 = vsel %vm2682_vm0, %v3602_v61, 0.0 }
 0x29e   :  { %12202 = vst [vmem:[#allocation165_spill] sm:$0xff] %v9800_v45  ;;  %v3286_v44 = vsel %vm2682_vm0, %v9800_v45, 0.0  ;;  %v3345_v10 = vmul.f32 %v9800_v45, %v9800_v45  ;;  %v9811_v49 = vadd.f32 %v6795_v57, %v2015_v18  ;;  %v2017_v58 = vpop.f32.mrb[195].mxu0  ;;  %v3695_v45 = vadd.f32 %v3694_v13, %v3693_v48  ;;  %v2676_v11 = vpop.f32.mrb[196].mxu1 }
 0x29f   :  { %v3189_v58 = vadd.f32 %v3188_v52, %v9743_v19  ;;  %v3287_v15 = vadd.f32 %v3286_v44, %v3285_v6  ;;  %v2934_v19 = vrot.slane %v9795_v47, 2  ;;  %v3698_v26 = vsel %vm2682_vm0, %v3603_v35, 0.0  ;;  %v2678_v27 = vpop.f32.mrb[197].mxu1 }
 0x2a0   :  { %12204 = vst [vmem:[#allocation167_spill] sm:$0xff] %v9811_v49  ;;  %v3439_v16 = vsel %vm2682_vm0, %v3345_v10, 0.0  ;;  %v3346_v18 = vmul.f32 %v9811_v49, %v9811_v49  ;;  %v3288_v30 = vsel %vm2682_vm0, %v9811_v49, 0.0  ;;  %v3545_v10 = vsel %vm2682_vm0, %v9818_v2, 0.0 }
 0x2a1   :  { %v3440_v25 = vadd.f32 %v3439_v16, %v3438_v36  ;;  %v3697_v6 = vadd.f32 %v3696_v5, %v3695_v45  ;;  %v3190_v44 = vrot.slane %v3189_v58, 2  ;;  %v3289_v13 = vadd.f32 %v3288_v30, %v3287_v15 }
 0x2a2   :  { %v3441_v52 = vsel %vm2682_vm0, %v3346_v18, 0.0  ;;  %v9838_v61 = vadd.f32 %v6795_v57, %v2676_v11  ;;  %v3038_v0 = vadd.f32 %v3037_v32, %v9780_v29  ;;  %v3546_v16 = vadd.f32 %v3545_v10, %v3544_v37 }
 0x2a3   :  { %v2020_v14 = vpop.f32.mrb[196].mxu0  ;;  %v3442_v36 = vadd.f32 %v3441_v52, %v3440_v25  ;;  %v2935_v29 = vadd.f32 %v2934_v19, %v9795_v47  ;;  %v3699_v37 = vadd.f32 %v3698_v26, %v3697_v6  ;;  %v3191_v10 = vadd.f32 %v3190_v44, %v3189_v58 }
 0x2a4   :  { %v9835_v48 = vadd.f32 %v6795_v57, %v2020_v14  ;;  %v2022_v3 = vpop.f32.mrb[197].mxu0  ;;  %v2679_v14 = vpop.f32.mrb[198].mxu1  ;;  %v3547_v15 = vsel %vm2682_vm0, %v9838_v61, 0.0  ;;  %v3604_v57 = vmul.f32 %v9838_v61, %v9838_v61 }
 0x2a5   :  { %v2023_v50 = vpop.f32.mrb[198].mxu0  ;;  %v2680_v30 = vpop.f32.mrb[199].mxu1  ;;  %v3548_v35 = vadd.f32 %v3547_v15, %v3546_v16  ;;  %v3192_v49 = vrot.slane %v3191_v10, 1 }
 0x2a6   :  { %12206 = vst [vmem:[#allocation169_spill] sm:$0xff] %v9835_v48  ;;  %v3290_v5 = vsel %vm2682_vm0, %v9835_v48, 0.0  ;;  %v3347_v45 = vmul.f32 %v9835_v48, %v9835_v48  ;;  %v2024_v18 = vpop.f32.mrb[199].mxu0  ;;  %v3700_v50 = vsel %vm2682_vm0, %v3604_v57, 0.0  ;;  %v2936_v30 = vrot.slane %v2935_v29, 1 }
 0x2a7   :  { %v3291_v3 = vadd.f32 %v3290_v5, %v3289_v13  ;;  %v3549_v25 = vrot.slane %v3548_v35, 4  ;;  %v3701_v52 = vadd.f32 %v3700_v50, %v3699_v37  ;;  %v2784_v13 = vrot.slane %v2783_v7, 1 }
 0x2a8   :  { %v3443_v32 = vsel %vm2682_vm0, %v3347_v45, 0.0  ;;  %v3039_v5 = vrot.slane %v3038_v0, 1  ;;  %v2937_v57 = vadd.f32 %v2936_v30, %v2935_v29  ;;  %v3193_v37 = vadd.f32 %v3192_v49, %v3191_v10 }
 0x2a9   :  { %v3292_v11 = vrot.slane %v3291_v3, 4  ;;  %v3444_v27 = vadd.f32 %v3443_v32, %v3442_v36  ;;  %v3550_v2 = vadd.f32 %v3549_v25, %v3548_v35  ;;  %v3702_v48 = vrot.slane %v3701_v52, 4 }
 0x2aa   :  { %v2785_v16 = vadd.f32 %v2784_v13, %v2783_v7  ;;  %v3040_v58 = vadd.f32 %v3039_v5, %v3038_v0  ;;  %v3194_v38 = vadd.f32 %v3193_v37, %v2937_v57  ;;  %v12209_v37 = vld [vmem:[#allocation5_spill] sm:$0xff] }
 0x2ab   :  { %v3293_v14 = vadd.f32 %v3292_v11, %v3291_v3  ;;  %v3445_v18 = vrot.slane %v3444_v27, 4  ;;  %v3551_v6 = vrot.slane %v3550_v2, 2  ;;  %v3703_v26 = vadd.f32 %v3702_v48, %v3701_v52 }
 0x2ac   :  { %v3041_v35 = vadd.f32 %v3040_v58, %v2785_v16  ;;  %v3717_v16 = vld [vmem:[%s11861_s10] sm:$0x1] }
 0x2ad   :  { %v3294_v47 = vrot.slane %v3293_v14, 2  ;;  %v3446_v19 = vadd.f32 %v3445_v18, %v3444_v27  ;;  %v3552_v36 = vadd.f32 %v3551_v6, %v3550_v2  ;;  %v3704_v15 = vrot.slane %v3703_v26, 2 }
 0x2af   :  { %v3295_v44 = vadd.f32 %v3294_v47, %v3293_v14  ;;  %v3447_v45 = vrot.slane %v3446_v19, 2  ;;  %v3553_v3 = vrot.slane %v3552_v36, 1  ;;  %v3705_v11 = vadd.f32 %v3704_v15, %v3703_v26  ;;  %v3713_v47 = vld [vmem:[%s11860_s9] sm:$0x1]  ;;  %v12208_v15 = vld [vmem:[#allocation7_spill] sm:$0xff] }
 0x2b0   :  { %v3721_v14 = vlaneseq }
 0x2b1   :  { %v3296_v32 = vrot.slane %v3295_v44, 1  ;;  %v3448_v50 = vadd.f32 %v3447_v45, %v3446_v19  ;;  %v3706_v31 = vrot.slane %v3705_v11, 1  ;;  %v3554_v48 = vadd.f32 %v3553_v3, %v3552_v36  ;;  %v12207_v45 = vld [vmem:[#allocation3_spill] sm:$0xff] }
 0x2b2   :  { %v3722_v30 = vshrl.u32 %v3721_v14, 7  ;;  %v12211_v3 = vld [vmem:[#allocation11_spill] sm:$0xff] }
 0x2b3   :  { %v3297_v25 = vadd.f32 %v3296_v32, %v3295_v44  ;;  %v3449_v53 = vrot.slane %v3448_v50, 1  ;;  %v3707_v52 = vadd.f32 %v3706_v31, %v3705_v11 }
 0x2b4   :  { %v3723_v19 = vsub.s32 0, %v3722_v30 }
 0x2b5   :  { %v3298_v27 = vadd.f32 %v3297_v25, %v3041_v35  ;;  %v3450_v18 = vadd.f32 %v3449_v53, %v3448_v50  ;;  %v12210_v50 = vld [vmem:[#allocation9_spill] sm:$0xff]  ;;  %v12212_v35 = vld [vmem:[#allocation14_spill] sm:$0xff] }
 0x2b7   :  { %v3451_v7 = vadd.f32 %v3450_v18, %v3194_v38  ;;  %v3555_v0 = vadd.f32 %v3554_v48, %v3298_v27  ;;  %v9883_v48 = vld [vmem:[%s11862_s11] ss:$0 sm:$0xff] }
 0x2b9   :  { %v3708_v13 = vadd.f32 %v3707_v52, %v3451_v7  ;;  %v3709_v2 = vmul.f32 0.0006377551, %v3555_v0 }
 0x2bb   :  { %v3710_v5 = vmul.f32 0.0006377551, %v3708_v13  ;;  %v3711_v29 = vmul.f32 %v3709_v2, %v3709_v2 }
 0x2bd   :  { %v3712_v49 = vsub.f32 %v3710_v5, %v3711_v29  ;;  %v12213_v29 = vld [vmem:[#allocation16_spill] sm:$0xff] }
 0x2bf   :  { %v3714_v10 = vadd.f32 1e-05, %v3712_v49 }
 0x2c1   :  { %6399 = vrsqrt.f32 %v3714_v10  ;;  %v12214_v10 = vld [vmem:[#allocation18_spill] sm:$0xff] }
 0x2cb   :  { %v6400_v6 = vpop.eup %6399 }
 0x2cc   :  { %v3716_v53 = vmul.f32 %v6400_v6, %v3713_v47 }
 0x2ce   :  { %v9855_v26 = vrot.slane %v3716_v53, %v3723_v19  ;;  %v3718_v31 = vmul.f32 %v3716_v53, %v3709_v2 }
 0x2d0   :  { %v9859_v38 = vmul.f32 %v9855_v26, %v9838_v61  ;;  %v3719_v58 = vsub.f32 %v3717_v16, %v3718_v31  ;;  %v3726_v36 = vmul.f32 %v9855_v26, %v12207_v45  ;;  %v3728_v57 = vmul.f32 %v9855_v26, %v12208_v15 }
 0x2d1   :  { %v3727_v32 = vmul.f32 %v9855_v26, %v12209_v37  ;;  %v3729_v61 = vmul.f32 %v9855_v26, %v12210_v50  ;;  %v3730_v11 = vmul.f32 %v9855_v26, %v12211_v3  ;;  %v3731_v25 = vmul.f32 %v9855_v26, %v12212_v35  ;;  %v12215_v37 = vld [vmem:[#allocation20_spill] sm:$0xff]  ;;  %v12216_v50 = vld [vmem:[#allocation22_spill] sm:$0xff] }
 0x2d2   :  { %v9864_v44 = vrot.slane %v3719_v58, %v3723_v19  ;;  %v3732_v49 = vmul.f32 %v9855_v26, %v12213_v29  ;;  %v3733_v14 = vmul.f32 %v9855_v26, %v12214_v10 }
 0x2d4   :  { %v3783_v27 = vadd.f32 %v9864_v44, %v3728_v57  ;;  %v3781_v18 = vadd.f32 %v9864_v44, %v3726_v36  ;;  %v3784_v7 = vadd.f32 %v9864_v44, %v3729_v61  ;;  %v3782_v0 = vadd.f32 %v9864_v44, %v3727_v32 }
 0x2d5   :  { %v3786_v52 = vadd.f32 %v9864_v44, %v3731_v25  ;;  %v3785_v13 = vadd.f32 %v9864_v44, %v3730_v11  ;;  %v3788_v16 = vadd.f32 %v9864_v44, %v3733_v14  ;;  %v3787_v58 = vadd.f32 %v9864_v44, %v3732_v49 }
 0x2d6   :  { %v3832_v2 = vmax.f32 %v3783_v27, 0.0  ;;  %v3830_v5 = vmax.f32 %v3781_v18, 0.0  ;;  %v3833_v30 = vmax.f32 %v3784_v7, 0.0  ;;  %v3831_v47 = vmax.f32 %v3782_v0, 0.0 }
 0x2d7   :  { %v3835_v53 = vmax.f32 %v3786_v52, 0.0  ;;  %v3834_v31 = vmax.f32 %v3785_v13, 0.0  ;;  %v3734_v32 = vmul.f32 %v9855_v26, %v12215_v37  ;;  %v3735_v61 = vmul.f32 %v9855_v26, %v12216_v50  ;;  %v12217_v52 = vld [vmem:[#allocation24_spill] sm:$0xff] }
 0x2d8   :  { %v3888_v19 = vmul.f32 %v9883_v48, %v3832_v2  ;;  %v3886_v6 = vmul.f32 %v9883_v48, %v3830_v5  ;;  %v3889_v15 = vmul.f32 %v9883_v48, %v3833_v30  ;;  %v3887_v57 = vmul.f32 %v9883_v48, %v3831_v47  ;;  %v12220_v50 = vld [vmem:[#allocation32_spill] sm:$0xff] }
 0x2d9   :  { %v3891_v3 = vmul.f32 %v9883_v48, %v3835_v53  ;;  %v3890_v11 = vmul.f32 %v9883_v48, %v3834_v31  ;;  %v3837_v35 = vmax.f32 %v3788_v16, 0.0  ;;  %v3836_v25 = vmax.f32 %v3787_v58, 0.0  ;;  %v12218_v53 = vld [vmem:[#allocation28_spill] sm:$0xff] }
 0x2da   :  { %v3941_v45 = vsel %vm2682_vm0, %v3888_v19, 0.0  ;;  %v3935_v36 = vsel %vm2682_vm0, %v3886_v6, 0.0  ;;  %v3944_v27 = vsel %vm2682_vm0, %v3889_v15, 0.0  ;;  %v3938_v18 = vsel %vm2682_vm0, %v3887_v57, 0.0 }
 0x2db   :  { %3942 = vadd.xlane.f32.xlu1 %v3941_v45  ;;  %3936 = vadd.xlane.f32.xlu0 %v3935_v36  ;;  %v3790_v7 = vadd.f32 %v9864_v44, %v3735_v61  ;;  %v3789_v0 = vadd.f32 %v9864_v44, %v3734_v32  ;;  %v3736_v13 = vmul.f32 %v9855_v26, %v12217_v52  ;;  %v3950_v5 = vsel %vm2682_vm0, %v3891_v3, 0.0  ;;  %v12221_v52 = vld [vmem:[#allocation34_spill] sm:$0xff] }
 0x2dc   :  { %v3737_v2 = vmul.f32 %v9855_v26, %v7941_v46  ;;  %v3947_v29 = vsel %vm2682_vm0, %v3890_v11, 0.0  ;;  %v3893_v49 = vmul.f32 %v9883_v48, %v3837_v35  ;;  %v3892_v10 = vmul.f32 %v9883_v48, %v3836_v25 }
 0x2dd   :  { %v3839_v14 = vmax.f32 %v3790_v7, 0.0  ;;  %v3838_v30 = vmax.f32 %v3789_v0, 0.0  ;;  %v3791_v19 = vadd.f32 %v9864_v44, %v3736_v13  ;;  %v3738_v6 = vmul.f32 %v9855_v26, %v7982_v34  ;;  %v12219_v34 = vld [vmem:[#allocation30_spill] sm:$0xff] }
 0x2de   :  { %v3792_v47 = vadd.f32 %v9864_v44, %v3737_v2  ;;  %v3739_v46 = vmul.f32 %v9855_v26, %v12218_v53  ;;  %v3956_v31 = vsel %vm2682_vm0, %v3893_v49, 0.0  ;;  %v3953_v16 = vsel %vm2682_vm0, %v3892_v10, 0.0  ;;  %v12222_v2 = vld [vmem:[#allocation36_spill] sm:$0xff]  ;;  %v12223_v53 = vld [vmem:[#allocation38_spill] sm:$0xff] }
 0x2df   :  { %3945 = vadd.xlane.f32.xlu1 %v3944_v27  ;;  %3939 = vadd.xlane.f32.xlu0 %v3938_v18  ;;  %v3793_v45 = vadd.f32 %v9864_v44, %v3738_v6  ;;  %v3895_v36 = vmul.f32 %v9883_v48, %v3839_v14  ;;  %v3894_v15 = vmul.f32 %v9883_v48, %v3838_v30  ;;  %v3840_v37 = vmax.f32 %v3791_v19, 0.0 }
 0x2e0   :  { %v3794_v58 = vadd.f32 %v9864_v44, %v3739_v46  ;;  %v3841_v57 = vmax.f32 %v3792_v47, 0.0  ;;  %v3740_v32 = vmul.f32 %v9855_v26, %v12219_v34  ;;  %v3741_v61 = vmul.f32 %v9855_v26, %v12220_v50  ;;  %v12225_v50 = vld [vmem:[#allocation42_spill] sm:$0xff] }
 0x2e1   :  { %v3842_v11 = vmax.f32 %v3793_v45, 0.0  ;;  %v3962_v27 = vsel %vm2682_vm0, %v3895_v36, 0.0  ;;  %v3959_v18 = vsel %vm2682_vm0, %v3894_v15, 0.0  ;;  %v3896_v0 = vmul.f32 %v9883_v48, %v3840_v37 }
 0x2e2   :  { %v3843_v3 = vmax.f32 %v3794_v58, 0.0  ;;  %v3796_v35 = vadd.f32 %v9864_v44, %v3741_v61  ;;  %v3795_v25 = vadd.f32 %v9864_v44, %v3740_v32  ;;  %v3897_v7 = vmul.f32 %v9883_v48, %v3841_v57 }
 0x2e3   :  { %3951 = vadd.xlane.f32.xlu1 %v3950_v5  ;;  %3948 = vadd.xlane.f32.xlu0 %v3947_v29  ;;  %v3742_v13 = vmul.f32 %v9855_v26, %v12221_v52  ;;  %v3743_v5 = vmul.f32 %v9855_v26, %v12222_v2  ;;  %v3898_v49 = vmul.f32 %v9883_v48, %v3842_v11  ;;  %v3965_v47 = vsel %vm2682_vm0, %v3896_v0, 0.0  ;;  %v12227_v2 = vld [vmem:[#allocation46_spill] sm:$0xff] }
 0x2e4   :  { %v3899_v29 = vmul.f32 %v9883_v48, %v3843_v3  ;;  %v3845_v10 = vmax.f32 %v3796_v35, 0.0  ;;  %v3844_v14 = vmax.f32 %v3795_v25, 0.0  ;;  %v3968_v30 = vsel %vm2682_vm0, %v3897_v7, 0.0  ;;  %v12226_v3 = vld [vmem:[#allocation44_spill] sm:$0xff] }
 0x2e5   :  { %v3798_v19 = vadd.f32 %v9864_v44, %v3743_v5  ;;  %v3797_v6 = vadd.f32 %v9864_v44, %v3742_v13  ;;  %v3744_v46 = vmul.f32 %v9855_v26, %v12223_v53  ;;  %v3971_v45 = vsel %vm2682_vm0, %v3898_v49, 0.0 }
 0x2e6   :  { %v3974_v58 = vsel %vm2682_vm0, %v3899_v29, 0.0  ;;  %v3901_v36 = vmul.f32 %v9883_v48, %v3845_v10  ;;  %v3900_v15 = vmul.f32 %v9883_v48, %v3844_v14  ;;  %v3746_v61 = vmul.f32 %v9855_v26, %v12225_v50  ;;  %v12228_v29 = vld [vmem:[#allocation48_spill] sm:$0xff] }
 0x2e7   :  { %3957 = vadd.xlane.f32.xlu1 %v3956_v31  ;;  %3954 = vadd.xlane.f32.xlu0 %v3953_v16  ;;  %v12224_v31 = vld [vmem:[#allocation40_spill] sm:$0xff]  ;;  %v3847_v57 = vmax.f32 %v3798_v19, 0.0  ;;  %v3846_v37 = vmax.f32 %v3797_v6, 0.0  ;;  %v3799_v32 = vadd.f32 %v9864_v44, %v3744_v46  ;;  %v3747_v11 = vmul.f32 %v9855_v26, %v12226_v3  ;;  %v12231_v3 = vld [vmem:[#allocation53_spill] sm:$0xff] }
 0x2e8   :  { %v3745_v16 = vmul.f32 %v9855_v26, %v12224_v31  ;;  %v3980_v35 = vsel %vm2682_vm0, %v3901_v36, 0.0  ;;  %v3977_v25 = vsel %vm2682_vm0, %v3900_v15, 0.0  ;;  %v3748_v5 = vmul.f32 %v9855_v26, %v12227_v2  ;;  %v12229_v31 = vld [vmem:[#allocation49_spill] sm:$0xff] }
 0x2e9   :  { %v3903_v7 = vmul.f32 %v9883_v48, %v3847_v57  ;;  %v3902_v0 = vmul.f32 %v9883_v48, %v3846_v37  ;;  %v3848_v13 = vmax.f32 %v3799_v32, 0.0  ;;  %v3749_v49 = vmul.f32 %v9855_v26, %v12228_v29 }
 0x2ea   :  { %v3800_v34 = vadd.f32 %v9864_v44, %v3745_v16  ;;  %v3750_v16 = vmul.f32 %v9855_v26, %v12229_v31 }
 0x2eb   :  { %3963 = vadd.xlane.f32.xlu1 %v3962_v27  ;;  %3960 = vadd.xlane.f32.xlu0 %v3959_v18  ;;  %v3802_v27 = vadd.f32 %v9864_v44, %v3747_v11  ;;  %v3801_v18 = vadd.f32 %v9864_v44, %v3746_v61  ;;  %v3986_v19 = vsel %vm2682_vm0, %v3903_v7, 0.0  ;;  %v3983_v6 = vsel %vm2682_vm0, %v3902_v0, 0.0 }
 0x2ec   :  { %v3849_v52 = vmax.f32 %v3800_v34, 0.0  ;;  %v3904_v46 = vmul.f32 %v9883_v48, %v3848_v13  ;;  %v3805_v61 = vadd.f32 %v9864_v44, %v3750_v16  ;;  %v3752_v11 = vmul.f32 %v9855_v26, %v12231_v3 }
 0x2ed   :  { %v3851_v10 = vmax.f32 %v3802_v27, 0.0  ;;  %v3850_v14 = vmax.f32 %v3801_v18, 0.0 }
 0x2ee   :  { %v3905_v53 = vmul.f32 %v9883_v48, %v3849_v52  ;;  %v3989_v32 = vsel %vm2682_vm0, %v3904_v46, 0.0  ;;  %v3854_v52 = vmax.f32 %v3805_v61, 0.0  ;;  %v3807_v2 = vadd.f32 %v9864_v44, %v3752_v11 }
 0x2ef   :  { %3969 = vadd.xlane.f32.xlu1 %v3968_v30  ;;  %3966 = vadd.xlane.f32.xlu0 %v3965_v47  ;;  %v3804_v30 = vadd.f32 %v9864_v44, %v3749_v49  ;;  %v3803_v47 = vadd.f32 %v9864_v44, %v3748_v5  ;;  %v3907_v36 = vmul.f32 %v9883_v48, %v3851_v10 }
 0x2f0   :  { %v3906_v15 = vmul.f32 %v9883_v48, %v3850_v14  ;;  %v3992_v34 = vsel %vm2682_vm0, %v3905_v53, 0.0  ;;  %v3754_v5 = vmul.f32 %v9855_v26, %v8420_v8  ;;  %v3756_v8 = vmul.f32 %v9855_v26, %v8461_v54 }
 0x2f1   :  { %v3853_v57 = vmax.f32 %v3804_v30, 0.0  ;;  %v3852_v37 = vmax.f32 %v3803_v47, 0.0  ;;  %v3910_v47 = vmul.f32 %v9883_v48, %v3854_v52  ;;  %v3758_v54 = vmul.f32 %v9855_v26, %v8511_v28  ;;  %v12233_v28 = vld [vmem:[#allocation63_spill] sm:$0xff] }
 0x2f2   :  { %v3995_v27 = vsel %vm2682_vm0, %v3906_v15, 0.0  ;;  %v3809_v14 = vadd.f32 %v9864_v44, %v3754_v5  ;;  %v3811_v16 = vadd.f32 %v9864_v44, %v3756_v8 }
 0x2f3   :  { %3975 = vadd.xlane.f32.xlu1 %v3974_v58  ;;  %3972 = vadd.xlane.f32.xlu0 %v3971_v45  ;;  %v12230_v58 = vld [vmem:[#allocation51_spill] sm:$0xff]  ;;  %v3909_v18 = vmul.f32 %v9883_v48, %v3853_v57  ;;  %v3908_v7 = vmul.f32 %v9883_v48, %v3852_v37 }
 0x2f4   :  { %v3751_v45 = vmul.f32 %v9855_v26, %v12230_v58  ;;  %v3858_v46 = vmax.f32 %v3809_v14, 0.0  ;;  %v12236_v14 = vld [vmem:[#allocation69_spill] sm:$0xff] }
 0x2f5   :  { %v4004_v29 = vsel %vm2682_vm0, %v3909_v18, 0.0  ;;  %v4001_v49 = vsel %vm2682_vm0, %v3908_v7, 0.0 }
 0x2f6   :  { %v3806_v50 = vadd.f32 %v9864_v44, %v3751_v45  ;;  %v4007_v45 = vsel %vm2682_vm0, %v3910_v47, 0.0 }
 0x2f7   :  { %3981 = vadd.xlane.f32.xlu1 %v3980_v35  ;;  %3978 = vadd.xlane.f32.xlu0 %v3977_v25  ;;  %v3753_v35 = vmul.f32 %v9855_v26, %v8393_v4  ;;  %v3998_v25 = vsel %vm2682_vm0, %v3907_v36, 0.0  ;;  %v3755_v4 = vmul.f32 %v9855_v26, %v8442_v1  ;;  %v3757_v1 = vmul.f32 %v9855_v26, %v8486_v63  ;;  %v12232_v63 = vld [vmem:[#allocation61_spill] sm:$0xff] }
 0x2f8   :  { %v3855_v0 = vmax.f32 %v3806_v50, 0.0  ;;  %v3759_v57 = vmul.f32 %v9855_v26, %v12232_v63  ;;  %v3860_v50 = vmax.f32 %v3811_v16, 0.0  ;;  %v12237_v16 = vld [vmem:[#allocation71_spill] sm:$0xff] }
 0x2f9   :  { %v3808_v13 = vadd.f32 %v9864_v44, %v3753_v35  ;;  %v3810_v10 = vadd.f32 %v9864_v44, %v3755_v4  ;;  %v3812_v31 = vadd.f32 %v9864_v44, %v3757_v1  ;;  %v3813_v35 = vadd.f32 %v9864_v44, %v3758_v54 }
 0x2fa   :  { %v3911_v30 = vmul.f32 %v9883_v48, %v3855_v0  ;;  %v3814_v11 = vadd.f32 %v9864_v44, %v3759_v57 }
 0x2fb   :  { %3987 = vadd.xlane.f32.xlu1 %v3986_v19  ;;  %3984 = vadd.xlane.f32.xlu0 %v3983_v6  ;;  %v3857_v19 = vmax.f32 %v3808_v13, 0.0  ;;  %v3856_v6 = vmax.f32 %v3807_v2, 0.0  ;;  %v3859_v53 = vmax.f32 %v3810_v10, 0.0  ;;  %v3916_v13 = vmul.f32 %v9883_v48, %v3860_v50 }
 0x2fc   :  { %v4010_v58 = vsel %vm2682_vm0, %v3911_v30, 0.0  ;;  %v3863_v2 = vmax.f32 %v3814_v11, 0.0  ;;  %v3862_v5 = vmax.f32 %v3813_v35, 0.0  ;;  %v3763_v30 = vmul.f32 %v9855_v26, %v12236_v14  ;;  %v12240_v11 = vld [vmem:[#allocation77_spill] sm:$0xff] }
 0x2fd   :  { %v3913_v36 = vmul.f32 %v9883_v48, %v3857_v19  ;;  %v3912_v15 = vmul.f32 %v9883_v48, %v3856_v6  ;;  %v3915_v37 = vmul.f32 %v9883_v48, %v3859_v53  ;;  %v4025_v19 = vsel %vm2682_vm0, %v3916_v13, 0.0 }
 0x2fe   :  { %v3818_v6 = vadd.f32 %v9864_v44, %v3763_v30  ;;  %v3919_v1 = vmul.f32 %v9883_v48, %v3863_v2  ;;  %v3918_v53 = vmul.f32 %v9883_v48, %v3862_v5  ;;  %v3767_v35 = vmul.f32 %v9855_v26, %v12240_v11  ;;  %v12241_v5 = vld [vmem:[#allocation79_spill] sm:$0xff] }
 0x2ff   :  { %3993 = vadd.xlane.f32.xlu1 %v3992_v34  ;;  %3990 = vadd.xlane.f32.xlu0 %v3989_v32  ;;  %v3914_v34 = vmul.f32 %v9883_v48, %v3858_v46  ;;  %v3861_v32 = vmax.f32 %v3812_v31, 0.0  ;;  %v4016_v61 = vsel %vm2682_vm0, %v3913_v36, 0.0  ;;  %v4013_v3 = vsel %vm2682_vm0, %v3912_v15, 0.0 }
 0x300   :  { %v4022_v7 = vsel %vm2682_vm0, %v3915_v37, 0.0  ;;  %v3867_v15 = vmax.f32 %v3818_v6, 0.0  ;;  %v4034_v37 = vsel %vm2682_vm0, %v3919_v1, 0.0  ;;  %v3822_v13 = vadd.f32 %v9864_v44, %v3767_v35 }
 0x301   :  { %v4019_v0 = vsel %vm2682_vm0, %v3914_v34, 0.0  ;;  %v3917_v52 = vmul.f32 %v9883_v48, %v3861_v32  ;;  %v4031_v34 = vsel %vm2682_vm0, %v3918_v53, 0.0  ;;  %v3770_v53 = vmul.f32 %v9855_v26, %v8971_v22 }
 0x302   :  { %v3772_v22 = vmul.f32 %v9855_v26, %v9255_v56  ;;  %v3774_v56 = vmul.f32 %v9855_v26, %v9538_v55  ;;  %v12244_v55 = vld [vmem:[#allocation6_spill] sm:$0xff] }
 0x303   :  { %3999 = vadd.xlane.f32.xlu1 %v3998_v25  ;;  %3996 = vadd.xlane.f32.xlu0 %v3995_v27  ;;  %v3760_v25 = vmul.f32 %v9855_v26, %v12233_v28  ;;  %v12234_v27 = vld [vmem:[#allocation65_spill] sm:$0xff]  ;;  %v4028_v47 = vsel %vm2682_vm0, %v3917_v52, 0.0  ;;  %v22_v28 = vstv %s11863_s12 }
 0x304   :  { %v3761_v18 = vmul.f32 %v9855_v26, %v12234_v27  ;;  %23 = vst [vmem:[#allocation2] sm:$0x1] %v22_v28 }
 0x306   :  { %v3816_v4 = vadd.f32 %v9864_v44, %v3761_v18 }
 0x307   :  { %4005 = vadd.xlane.f32.xlu1 %v4004_v29  ;;  %4002 = vadd.xlane.f32.xlu0 %v4001_v49  ;;  %v3815_v29 = vadd.f32 %v9864_v44, %v3760_v25  ;;  %v12235_v49 = vld [vmem:[#allocation67_spill] sm:$0xff]  ;;  %v3923_v25 = vmul.f32 %v9883_v48, %v3867_v15 }
 0x308   :  { %v3762_v10 = vmul.f32 %v9855_v26, %v12235_v49  ;;  %v3865_v46 = vmax.f32 %v3816_v4, 0.0  ;;  %v3768_v4 = vmul.f32 %v9855_v26, %v12241_v5  ;;  %v12245_v5 = vld [vmem:[#allocation8_spill] sm:$0xff] }
 0x309   :  { %v3864_v31 = vmax.f32 %v3815_v29, 0.0  ;;  %v12242_v29 = vld [vmem:[#allocation81_spill] sm:$0xff] }
 0x30a   :  { %v3817_v8 = vadd.f32 %v9864_v44, %v3762_v10  ;;  %v3921_v32 = vmul.f32 %v9883_v48, %v3865_v46  ;;  %v3769_v49 = vmul.f32 %v9855_v26, %v12242_v29  ;;  %v4046_v10 = vsel %vm2682_vm0, %v3923_v25, 0.0 }
 0x30b   :  { %4011 = vadd.xlane.f32.xlu1 %v4010_v58  ;;  %4008 = vadd.xlane.f32.xlu0 %v4007_v45  ;;  %v3764_v58 = vmul.f32 %v9855_v26, %v12237_v16  ;;  %v12238_v45 = vld [vmem:[#allocation73_spill] sm:$0xff]  ;;  %v3920_v50 = vmul.f32 %v9883_v48, %v3864_v31  ;;  %v3823_v1 = vadd.f32 %v9864_v44, %v3768_v4 }
 0x30c   :  { %v3765_v36 = vmul.f32 %v9855_v26, %v12238_v45  ;;  %v3866_v54 = vmax.f32 %v3817_v8, 0.0  ;;  %v3824_v8 = vadd.f32 %v9864_v44, %v3769_v49  ;;  %v3771_v46 = vmul.f32 %v9855_v26, %v9030_v51 }
 0x30d   :  { %v3819_v57 = vadd.f32 %v9864_v44, %v3764_v58  ;;  %v4037_v52 = vsel %vm2682_vm0, %v3920_v50, 0.0  ;;  %v3825_v45 = vadd.f32 %v9864_v44, %v3770_v53  ;;  %v3773_v51 = vmul.f32 %v9855_v26, %v9318_v59  ;;  %v12243_v59 = vld [vmem:[#allocation4_spill] sm:$0xff] }
 0x30e   :  { %v3820_v63 = vadd.f32 %v9864_v44, %v3765_v36  ;;  %v3922_v27 = vmul.f32 %v9883_v48, %v3866_v54  ;;  %v3826_v58 = vadd.f32 %v9864_v44, %v3771_v46  ;;  %v3873_v54 = vmax.f32 %v3824_v8, 0.0  ;;  %v12246_v8 = vld [vmem:[#allocation10_spill] sm:$0xff]  ;;  %v12247_v53 = vld [vmem:[#allocation12_spill] sm:$0xff] }
 0x30f   :  { %4017 = vadd.xlane.f32.xlu1 %v4016_v61  ;;  %4014 = vadd.xlane.f32.xlu0 %v4013_v3  ;;  %v12239_v61 = vld [vmem:[#allocation75_spill] sm:$0xff]  ;;  %v4237_v35 = vmul.f32 %v9855_v26, %v12243_v59  ;;  %v4239_v4 = vmul.f32 %v9855_v26, %v12245_v5  ;;  %v4241_v46 = vmul.f32 %v9855_v26, %v12247_v53 }
 0x310   :  { %v3766_v3 = vmul.f32 %v9855_v26, %v12239_v61  ;;  %v3869_v18 = vmax.f32 %v3820_v63, 0.0  ;;  %v4043_v14 = vsel %vm2682_vm0, %v3922_v27, 0.0  ;;  %v3872_v63 = vmax.f32 %v3823_v1, 0.0 }
 0x311   :  { %v4240_v1 = vmul.f32 %v9855_v26, %v12246_v8 }
 0x312   :  { %v3821_v2 = vadd.f32 %v9864_v44, %v3766_v3  ;;  %v3925_v30 = vmul.f32 %v9883_v48, %v3869_v18  ;;  %v3929_v3 = vmul.f32 %v9883_v48, %v3873_v54  ;;  %v3928_v11 = vmul.f32 %v9883_v48, %v3872_v63 }
 0x313   :  { %4023 = vadd.xlane.f32.xlu1 %v4022_v7  ;;  %4020 = vadd.xlane.f32.xlu0 %v4019_v0  ;;  %v3868_v7 = vmax.f32 %v3819_v57, 0.0  ;;  %v4040_v0 = vsel %vm2682_vm0, %v3921_v32, 0.0  ;;  %v3875_v57 = vmax.f32 %v3826_v58, 0.0  ;;  %v3827_v32 = vadd.f32 %v9864_v44, %v3772_v22  ;;  %v12248_v22 = vld [vmem:[#allocation15_spill] sm:$0xff] }
 0x314   :  { %v3870_v6 = vmax.f32 %v3821_v2, 0.0  ;;  %v4052_v31 = vsel %vm2682_vm0, %v3925_v30, 0.0  ;;  %v4238_v2 = vmul.f32 %v9855_v26, %v12244_v55  ;;  %v4290_v58 = vadd.f32 %v4241_v46, %v9864_v44  ;;  %v12254_v46 = vld [vmem:[#allocation26_spill] sm:$0xff] }
 0x315   :  { %v3931_v28 = vmul.f32 %v9883_v48, %v3875_v57  ;;  %v3876_v18 = vmax.f32 %v3827_v32, 0.0  ;;  %v12249_v57 = vld [vmem:[#allocation17_spill] sm:$0xff] }
 0x316   :  { %v3926_v15 = vmul.f32 %v9883_v48, %v3870_v6  ;;  %v4287_v6 = vadd.f32 %v4238_v2, %v9864_v44 }
 0x317   :  { %4029 = vadd.xlane.f32.xlu1 %v4028_v47  ;;  %4026 = vadd.xlane.f32.xlu0 %v4025_v19  ;;  %v3924_v47 = vmul.f32 %v9883_v48, %v3868_v7  ;;  %v3871_v19 = vmax.f32 %v3822_v13, 0.0  ;;  %v4064_v7 = vsel %vm2682_vm0, %v3929_v3, 0.0  ;;  %v3829_v13 = vadd.f32 %v9864_v44, %v3774_v56 }
 0x318   :  { %v4055_v61 = vsel %vm2682_vm0, %v3926_v15, 0.0  ;;  %v4070_v29 = vsel %vm2682_vm0, %v3931_v28, 0.0  ;;  %v4336_v63 = vmax.f32 %v4287_v6, 0.0 }
 0x319   :  { %v4049_v16 = vsel %vm2682_vm0, %v3924_v47, 0.0  ;;  %v3927_v36 = vmul.f32 %v9883_v48, %v3871_v19  ;;  %v3878_v47 = vmax.f32 %v3829_v13, 0.0  ;;  %v4288_v19 = vadd.f32 %v4239_v4, %v9864_v44  ;;  %v12252_v4 = vld [vmem:[#allocation23_spill] sm:$0xff] }
 0x31a   :  { %v4392_v59 = vmul.f32 %v9883_v48, %v4336_v63 }
 0x31b   :  { %4035 = vadd.xlane.f32.xlu1 %v4034_v37  ;;  %4032 = vadd.xlane.f32.xlu0 %v4031_v34  ;;  %v3874_v37 = vmax.f32 %v3825_v45, 0.0  ;;  %v3828_v34 = vadd.f32 %v9864_v44, %v3773_v51  ;;  %v4058_v50 = vsel %vm2682_vm0, %v3927_v36, 0.0  ;;  %v4289_v45 = vadd.f32 %v4240_v1, %v9864_v44 }
 0x31c   :  { %v3934_v15 = vmul.f32 %v9883_v48, %v3878_v47  ;;  %v4337_v54 = vmax.f32 %v4288_v19, 0.0  ;;  %v4242_v51 = vmul.f32 %v9855_v26, %v12248_v22  ;;  %v4443_v55 = vsel %vm2682_vm0, %v4392_v59, 0.0 }
 0x31d   :  { %v3930_v25 = vmul.f32 %v9883_v48, %v3874_v37  ;;  %v3877_v27 = vmax.f32 %v3828_v34, 0.0  ;;  %v4243_v37 = vmul.f32 %v9855_v26, %v12249_v57  ;;  %v4339_v34 = vmax.f32 %v4290_v58, 0.0 }
 0x31e   :  { %v4338_v32 = vmax.f32 %v4289_v45, 0.0  ;;  %v4393_v56 = vmul.f32 %v9883_v48, %v4337_v54 }
 0x31f   :  { %4041 = vadd.xlane.f32.xlu1 %v4040_v0  ;;  %4038 = vadd.xlane.f32.xlu0 %v4037_v52  ;;  %v4061_v0 = vsel %vm2682_vm0, %v3928_v11, 0.0  ;;  %v4286_v52 = vadd.f32 %v4237_v35, %v9864_v44  ;;  %v4067_v49 = vsel %vm2682_vm0, %v3930_v25, 0.0  ;;  %v4079_v11 = vsel %vm2682_vm0, %v3934_v15, 0.0  ;;  %v12250_v35 = vld [vmem:[#allocation19_spill] sm:$0xff]  ;;  %v12251_v25 = vld [vmem:[#allocation21_spill] sm:$0xff] }
 0x320   :  { %v4244_v28 = vmul.f32 %v9855_v26, %v12250_v35  ;;  %v4446_v13 = vsel %vm2682_vm0, %v4393_v56, 0.0 }
 0x321   :  { %v4335_v30 = vmax.f32 %v4286_v52, 0.0 }
 0x322   :  { %v4293_v5 = vadd.f32 %v4244_v28, %v9864_v44 }
 0x323   :  { %4047 = vadd.xlane.f32.xlu1 %v4046_v10  ;;  %4044 = vadd.xlane.f32.xlu0 %v4043_v14  ;;  %v3933_v10 = vmul.f32 %v9883_v48, %v3877_v27  ;;  %v3932_v14 = vmul.f32 %v9883_v48, %v3876_v18  ;;  %v4391_v36 = vmul.f32 %v9883_v48, %v4335_v30 }
 0x324   :  { %v4245_v27 = vmul.f32 %v9855_v26, %v12251_v25  ;;  %v4395_v18 = vmul.f32 %v9883_v48, %v4339_v34  ;;  %v4342_v8 = vmax.f32 %v4293_v5, 0.0 }
 0x325   :  { %v4440_v3 = vsel %vm2682_vm0, %v4391_v36, 0.0 }
 0x326   :  { %v4294_v2 = vadd.f32 %v4245_v27, %v9864_v44  ;;  %v4398_v22 = vmul.f32 %v9883_v48, %v4342_v8  ;;  %v12258_v27 = vld [vmem:[#allocation33_spill] sm:$0xff] }
 0x327   :  { %4053 = vadd.xlane.f32.xlu1 %v4052_v31  ;;  %4050 = vadd.xlane.f32.xlu0 %v4049_v16  ;;  %v4076_v31 = vsel %vm2682_vm0, %v3933_v10, 0.0  ;;  %v4073_v16 = vsel %vm2682_vm0, %v3932_v14, 0.0  ;;  %v4452_v14 = vsel %vm2682_vm0, %v4395_v18, 0.0  ;;  %v4252_v18 = vmul.f32 %v9855_v26, %v12258_v27 }
 0x328   :  { %v4343_v6 = vmax.f32 %v4294_v2, 0.0  ;;  %v4461_v35 = vsel %vm2682_vm0, %v4398_v22, 0.0 }
 0x32a   :  { %v4399_v63 = vmul.f32 %v9883_v48, %v4343_v6 }
 0x32b   :  { %4059 = vadd.xlane.f32.xlu1 %v4058_v50  ;;  %4056 = vadd.xlane.f32.xlu0 %v4055_v61  ;;  %v4292_v50 = vadd.f32 %v4243_v37, %v9864_v44  ;;  %v4291_v61 = vadd.f32 %v4242_v51, %v9864_v44  ;;  %v12256_v37 = vld [vmem:[#allocation29_spill] sm:$0xff] }
 0x32c   :  { %v4250_v34 = vmul.f32 %v9855_v26, %v12256_v37  ;;  %v4464_v59 = vsel %vm2682_vm0, %v4399_v63, 0.0 }
 0x32d   :  { %v4340_v52 = vmax.f32 %v4291_v61, 0.0 }
 0x32e   :  { %v4299_v56 = vadd.f32 %v4250_v34, %v9864_v44 }
 0x32f   :  { %4065 = vadd.xlane.f32.xlu1 %v4064_v7  ;;  %4062 = vadd.xlane.f32.xlu0 %v4061_v0  ;;  %v4394_v7 = vmul.f32 %v9883_v48, %v4338_v32  ;;  %v4341_v0 = vmax.f32 %v4292_v50, 0.0  ;;  %v4396_v19 = vmul.f32 %v9883_v48, %v4340_v52  ;;  %v12257_v32 = vld [vmem:[#allocation31_spill] sm:$0xff] }
 0x330   :  { %v4251_v50 = vmul.f32 %v9855_v26, %v12257_v32  ;;  %v4348_v2 = vmax.f32 %v4299_v56, 0.0 }
 0x331   :  { %v4449_v30 = vsel %vm2682_vm0, %v4394_v7, 0.0  ;;  %v4397_v47 = vmul.f32 %v9883_v48, %v4341_v0  ;;  %v4455_v36 = vsel %vm2682_vm0, %v4396_v19, 0.0  ;;  %v12259_v7 = vld [vmem:[#allocation35_spill] sm:$0xff] }
 0x332   :  { %v4253_v0 = vmul.f32 %v9855_v26, %v12259_v7 }
 0x333   :  { %4071 = vadd.xlane.f32.xlu1 %v4070_v29  ;;  %4068 = vadd.xlane.f32.xlu0 %v4067_v49  ;;  %v4246_v29 = vmul.f32 %v9855_v26, %v12252_v4  ;;  %v12253_v49 = vld [vmem:[#allocation25_spill] sm:$0xff]  ;;  %v4458_v45 = vsel %vm2682_vm0, %v4397_v47, 0.0 }
 0x334   :  { %v4247_v10 = vmul.f32 %v9855_v26, %v12253_v49  ;;  %v4301_v49 = vadd.f32 %v4252_v18, %v9864_v44 }
 0x335   :  { %v4295_v53 = vadd.f32 %v4246_v29, %v9864_v44  ;;  %v4302_v29 = vadd.f32 %v4253_v0, %v9864_v44  ;;  %v12266_v0 = vld [vmem:[#allocation13_spill] sm:$0xff] }
 0x336   :  { %v4296_v1 = vadd.f32 %v4247_v10, %v9864_v44  ;;  %v12260_v10 = vld [vmem:[#allocation37_spill] sm:$0xff] }
 0x337   :  { %4077 = vadd.xlane.f32.xlu1 %v4076_v31  ;;  %4074 = vadd.xlane.f32.xlu0 %v4073_v16  ;;  %v4248_v31 = vmul.f32 %v9855_v26, %v12254_v46  ;;  %v12255_v16 = vld [vmem:[#allocation27_spill] sm:$0xff]  ;;  %v4344_v57 = vmax.f32 %v4295_v53, 0.0  ;;  %v4351_v53 = vmax.f32 %v4302_v29, 0.0  ;;  %v4350_v46 = vmax.f32 %v4301_v49, 0.0 }
 0x338   :  { %v4249_v58 = vmul.f32 %v9855_v26, %v12255_v16  ;;  %v4345_v51 = vmax.f32 %v4296_v1, 0.0  ;;  %v4404_v1 = vmul.f32 %v9883_v48, %v4348_v2 }
 0x339   :  { %v4297_v54 = vadd.f32 %v4248_v31, %v9864_v44  ;;  %v4400_v25 = vmul.f32 %v9883_v48, %v4344_v57  ;;  %v4407_v57 = vmul.f32 %v9883_v48, %v4351_v53  ;;  %v4406_v37 = vmul.f32 %v9883_v48, %v4350_v46 }
 0x33a   :  { %v4298_v15 = vadd.f32 %v4249_v58, %v9864_v44  ;;  %v4401_v28 = vmul.f32 %v9883_v48, %v4345_v51  ;;  %v12262_v58 = vld [vmem:[#allocation41_spill] sm:$0xff]  ;;  %v4479_v63 = vsel %vm2682_vm0, %v4404_v1, 0.0 }
 0x33b   :  { %4441 = vadd.xlane.f32.xlu1 %v4440_v3  ;;  %4080 = vadd.xlane.f32.xlu0 %v4079_v11  ;;  %v4346_v3 = vmax.f32 %v4297_v54, 0.0  ;;  %v4300_v11 = vadd.f32 %v4251_v50, %v9864_v44  ;;  %v4467_v4 = vsel %vm2682_vm0, %v4400_v25, 0.0  ;;  %v12264_v50 = vld [vmem:[#allocation45_spill] sm:$0xff]  ;;  %v4488_v25 = vsel %vm2682_vm0, %v4407_v57, 0.0 }
 0x33c   :  { %v4347_v61 = vmax.f32 %v4298_v15, 0.0  ;;  %v4470_v5 = vsel %vm2682_vm0, %v4401_v28, 0.0  ;;  %v4485_v27 = vsel %vm2682_vm0, %v4406_v37, 0.0  ;;  %v12273_v37 = vld [vmem:[#allocation58_spill] sm:$0xff] }
 0x33e   :  { %v4403_v52 = vmul.f32 %v9883_v48, %v4347_v61  ;;  %v4258_v61 = vmul.f32 %v9855_v26, %v12264_v50 }
 0x33f   :  { %4447 = vadd.xlane.f32.xlu1 %v4446_v13  ;;  %4444 = vadd.xlane.f32.xlu0 %v4443_v55  ;;  %v4402_v13 = vmul.f32 %v9883_v48, %v4346_v3  ;;  %v4349_v55 = vmax.f32 %v4300_v11, 0.0  ;;  %v12265_v3 = vld [vmem:[#allocation47_spill] sm:$0xff] }
 0x340   :  { %v4476_v19 = vsel %vm2682_vm0, %v4403_v52, 0.0  ;;  %v4259_v11 = vmul.f32 %v9855_v26, %v12265_v3  ;;  %v4307_v28 = vadd.f32 %v4258_v61, %v9864_v44  ;;  %v4260_v52 = vmul.f32 %v9855_v26, %v12266_v0 }
 0x341   :  { %v4473_v6 = vsel %vm2682_vm0, %v4402_v13, 0.0  ;;  %v4405_v8 = vmul.f32 %v9883_v48, %v4349_v55  ;;  %v12267_v13 = vld [vmem:[#allocation50_spill] sm:$0xff] }
 0x342   :  { %v4261_v55 = vmul.f32 %v9855_v26, %v12267_v13  ;;  %v4356_v29 = vmax.f32 %v4307_v28, 0.0 }
 0x343   :  { %4453 = vadd.xlane.f32.xlu1 %v4452_v14  ;;  %4450 = vadd.xlane.f32.xlu0 %v4449_v30  ;;  %v4254_v14 = vmul.f32 %v9855_v26, %v12260_v10  ;;  %v12261_v30 = vld [vmem:[#allocation39_spill] sm:$0xff]  ;;  %v4482_v54 = vsel %vm2682_vm0, %v4405_v8, 0.0 }
 0x344   :  { %v4255_v47 = vmul.f32 %v9855_v26, %v12261_v30  ;;  %v4309_v30 = vadd.f32 %v4260_v52, %v9864_v44 }
 0x345   :  { %v4303_v16 = vadd.f32 %v4254_v14, %v9864_v44  ;;  %v4310_v14 = vadd.f32 %v4261_v55, %v9864_v44 }
 0x346   :  { %v4304_v31 = vadd.f32 %v4255_v47, %v9864_v44  ;;  %v12268_v47 = vld [vmem:[#allocation52_spill] sm:$0xff] }
 0x347   :  { %4459 = vadd.xlane.f32.xlu1 %v4458_v45  ;;  %4456 = vadd.xlane.f32.xlu0 %v4455_v36  ;;  %v4256_v45 = vmul.f32 %v9855_v26, %v12262_v58  ;;  %v12263_v36 = vld [vmem:[#allocation43_spill] sm:$0xff]  ;;  %v4352_v32 = vmax.f32 %v4303_v16, 0.0  ;;  %v4359_v16 = vmax.f32 %v4310_v14, 0.0  ;;  %v4358_v58 = vmax.f32 %v4309_v30, 0.0  ;;  %v12275_v14 = vld [vmem:[#allocation60_spill] sm:$0xff] }
 0x348   :  { %v4257_v15 = vmul.f32 %v9855_v26, %v12263_v36  ;;  %v4353_v34 = vmax.f32 %v4304_v31, 0.0  ;;  %v4412_v31 = vmul.f32 %v9883_v48, %v4356_v29  ;;  %v4269_v30 = vmul.f32 %v9855_v26, %v12275_v14 }
 0x349   :  { %v4305_v51 = vadd.f32 %v4256_v45, %v9864_v44  ;;  %v4408_v7 = vmul.f32 %v9883_v48, %v4352_v32 }
 0x34a   :  { %v4306_v22 = vadd.f32 %v4257_v15, %v9864_v44  ;;  %v4409_v18 = vmul.f32 %v9883_v48, %v4353_v34  ;;  %v12270_v15 = vld [vmem:[#allocation55_spill] sm:$0xff]  ;;  %v4267_v34 = vmul.f32 %v9855_v26, %v12273_v37  ;;  %v4503_v50 = vsel %vm2682_vm0, %v4412_v31, 0.0 }
 0x34b   :  { %4465 = vadd.xlane.f32.xlu1 %v4464_v59  ;;  %4462 = vadd.xlane.f32.xlu0 %v4461_v35  ;;  %v4354_v59 = vmax.f32 %v4305_v51, 0.0  ;;  %v4308_v35 = vadd.f32 %v4259_v11, %v9864_v44  ;;  %v4491_v10 = vsel %vm2682_vm0, %v4408_v7, 0.0  ;;  %v12272_v51 = vld [vmem:[#allocation57_spill] sm:$0xff]  ;;  %v10256_v11 = vld [vmem:[#allocation2] ss:$0 sm:$0xff] }
 0x34c   :  { %v4355_v56 = vmax.f32 %v4306_v22, 0.0  ;;  %v4494_v49 = vsel %vm2682_vm0, %v4409_v18, 0.0  ;;  %v4266_v57 = vmul.f32 %v9855_v26, %v12272_v51  ;;  %v4316_v18 = vadd.f32 %v4267_v34, %v9864_v44  ;;  %v12278_v51 = vld [vmem:[#allocation66_spill] sm:$0xff] }
 0x34e   :  { %v4411_v2 = vmul.f32 %v9883_v48, %v4355_v56  ;;  %v4415_v56 = vmul.f32 %v9883_v48, %v4359_v16  ;;  %v4315_v7 = vadd.f32 %v4266_v57, %v9864_v44  ;;  %v4272_v57 = vmul.f32 %v9855_v26, %v12278_v51 }
 0x34f   :  { %4471 = vadd.xlane.f32.xlu1 %v4470_v5  ;;  %4468 = vadd.xlane.f32.xlu0 %v4467_v4  ;;  %v4410_v5 = vmul.f32 %v9883_v48, %v4354_v59  ;;  %v4357_v4 = vmax.f32 %v4308_v35, 0.0  ;;  %v4414_v59 = vmul.f32 %v9883_v48, %v4358_v58 }
 0x350   :  { %v4500_v1 = vsel %vm2682_vm0, %v4411_v2, 0.0  ;;  %v4512_v2 = vsel %vm2682_vm0, %v4415_v56, 0.0 }
 0x351   :  { %v4497_v53 = vsel %vm2682_vm0, %v4410_v5, 0.0  ;;  %v4413_v46 = vmul.f32 %v9883_v48, %v4357_v4  ;;  %v4509_v5 = vsel %vm2682_vm0, %v4414_v59, 0.0 }
 0x353   :  { %4477 = vadd.xlane.f32.xlu1 %v4476_v19  ;;  %4474 = vadd.xlane.f32.xlu0 %v4473_v6  ;;  %v4262_v19 = vmul.f32 %v9855_v26, %v12268_v47  ;;  %v12269_v6 = vld [vmem:[#allocation54_spill] sm:$0xff]  ;;  %v4506_v32 = vsel %vm2682_vm0, %v4413_v46, 0.0 }
 0x354   :  { %v4263_v8 = vmul.f32 %v9855_v26, %v12269_v6  ;;  %v4365_v6 = vmax.f32 %v4316_v18, 0.0  ;;  %v12279_v18 = vld [vmem:[#allocation68_spill] sm:$0xff] }
 0x355   :  { %v4311_v36 = vadd.f32 %v4262_v19, %v9864_v44 }
 0x356   :  { %v4312_v45 = vadd.f32 %v4263_v8, %v9864_v44  ;;  %v4364_v8 = vmax.f32 %v4315_v7, 0.0  ;;  %v4273_v7 = vmul.f32 %v9855_v26, %v12279_v18 }
 0x357   :  { %4483 = vadd.xlane.f32.xlu1 %v4482_v54  ;;  %4480 = vadd.xlane.f32.xlu0 %v4479_v63  ;;  %v4264_v54 = vmul.f32 %v9855_v26, %v12270_v15  ;;  %v12271_v63 = vld [vmem:[#allocation56_spill] sm:$0xff]  ;;  %v4360_v28 = vmax.f32 %v4311_v36, 0.0  ;;  %v12276_v15 = vld [vmem:[#allocation62_spill] sm:$0xff] }
 0x358   :  { %v4265_v22 = vmul.f32 %v9855_v26, %v12271_v63  ;;  %v4361_v35 = vmax.f32 %v4312_v45, 0.0  ;;  %v4318_v45 = vadd.f32 %v4269_v30, %v9864_v44  ;;  %v12277_v63 = vld [vmem:[#allocation64_spill] sm:$0xff]  ;;  %v4322_v14 = vadd.f32 %v4273_v7, %v9864_v44 }
 0x359   :  { %v4313_v3 = vadd.f32 %v4264_v54, %v9864_v44  ;;  %v4416_v29 = vmul.f32 %v9883_v48, %v4360_v28  ;;  %v4270_v54 = vmul.f32 %v9855_v26, %v12276_v15  ;;  %v4321_v30 = vadd.f32 %v4272_v57, %v9864_v44 }
 0x35a   :  { %v4314_v61 = vadd.f32 %v4265_v22, %v9864_v44  ;;  %v4417_v4 = vmul.f32 %v9883_v48, %v4361_v35  ;;  %v4271_v22 = vmul.f32 %v9855_v26, %v12277_v63  ;;  %v4367_v35 = vmax.f32 %v4318_v45, 0.0 }
 0x35b   :  { %4489 = vadd.xlane.f32.xlu1 %v4488_v25  ;;  %4486 = vadd.xlane.f32.xlu0 %v4485_v27  ;;  %v4362_v55 = vmax.f32 %v4313_v3, 0.0  ;;  %v4515_v58 = vsel %vm2682_vm0, %v4416_v29, 0.0  ;;  %v4370_v63 = vmax.f32 %v4321_v30, 0.0 }
 0x35c   :  { %v4363_v13 = vmax.f32 %v4314_v61, 0.0  ;;  %v4518_v16 = vsel %vm2682_vm0, %v4417_v4, 0.0 }
 0x35d   :  { %v4418_v31 = vmul.f32 %v9883_v48, %v4362_v55 }
 0x35e   :  { %v4419_v46 = vmul.f32 %v9883_v48, %v4363_v13 }
 0x35f   :  { %4495 = vadd.xlane.f32.xlu1 %v4494_v49  ;;  %4492 = vadd.xlane.f32.xlu0 %v4491_v10  ;;  %v12274_v49 = vld [vmem:[#allocation59_spill] sm:$0xff]  ;;  %v4521_v59 = vsel %vm2682_vm0, %v4418_v31, 0.0 }
 0x360   :  { %v4268_v10 = vmul.f32 %v9855_v26, %v12274_v49  ;;  %v4524_v56 = vsel %vm2682_vm0, %v4419_v46, 0.0 }
 0x362   :  { %v4317_v36 = vadd.f32 %v4268_v10, %v9864_v44 }
 0x363   :  { %4501 = vadd.xlane.f32.xlu1 %v4500_v1  ;;  %4498 = vadd.xlane.f32.xlu0 %v4497_v53 }
 0x364   :  { %v4366_v28 = vmax.f32 %v4317_v36, 0.0 }
 0x367   :  { %4507 = vadd.xlane.f32.xlu1 %v4506_v32  ;;  %4504 = vadd.xlane.f32.xlu0 %v4503_v50  ;;  %v4421_v32 = vmul.f32 %v9883_v48, %v4365_v6  ;;  %v4420_v50 = vmul.f32 %v9883_v48, %v4364_v8 }
 0x368   :  { %v3943_v25 = vpop.xlane.xlu1 %3942  ;;  %v3937_v27 = vpop.xlane.xlu0 %3936 }
 0x369   :  { %v4091_v0 = vadd.f32 %v10256_v11, %v3943_v25  ;;  %v4089_v52 = vadd.f32 %v10256_v11, %v3937_v27  ;;  %v4320_v25 = vadd.f32 %v4271_v22, %v9864_v44  ;;  %v4319_v27 = vadd.f32 %v4270_v54, %v9864_v44 }
 0x36a   :  { %v4527_v4 = vsel %vm2682_vm0, %v4420_v50, 0.0  ;;  %v4371_v54 = vmax.f32 %v4322_v14, 0.0 }
 0x36b   :  { %6401 = vtanh.f32 %v4091_v0  ;;  %4513 = vadd.xlane.f32.xlu1 %v4512_v2  ;;  %4510 = vadd.xlane.f32.xlu0 %v4509_v5  ;;  %v12280_v0 = vld [vmem:[#allocation70_spill] sm:$0xff]  ;;  %v4530_v5 = vsel %vm2682_vm0, %v4421_v32, 0.0 }
 0x36c   :  { %6403 = vtanh.f32 %v4089_v52  ;;  %v3946_v47 = vpop.xlane.xlu1 %3945  ;;  %v3940_v19 = vpop.xlane.xlu0 %3939  ;;  %v4274_v48 = vmul.f32 %v9855_v26, %v12280_v0  ;;  %v12281_v52 = vld [vmem:[#allocation72_spill] sm:$0xff]  ;;  %v12282_v32 = vld [vmem:[#allocation74_spill] sm:$0xff] }
 0x36d   :  { %v4092_v1 = vadd.f32 %v10256_v11, %v3946_v47  ;;  %v4090_v53 = vadd.f32 %v10256_v11, %v3940_v19  ;;  %v4275_v13 = vmul.f32 %v9855_v26, %v12281_v52  ;;  %v10313_v19 = vld [vmem:[%s11862_s11] ss:$0 sm:$0xff]  ;;  %v4276_v50 = vmul.f32 %v9855_v26, %v12282_v32 }
 0x36e   :  { %v4423_v6 = vmul.f32 %v10313_v19, %v4367_v35  ;;  %v4422_v8 = vmul.f32 %v10313_v19, %v4366_v28  ;;  %v4427_v7 = vmul.f32 %v10313_v19, %v4371_v54  ;;  %v4426_v0 = vmul.f32 %v10313_v19, %v4370_v63 }
 0x36f   :  { %6405 = vtanh.f32 %v4092_v1  ;;  %4519 = vadd.xlane.f32.xlu1 %v4518_v16  ;;  %4516 = vadd.xlane.f32.xlu0 %v4515_v58  ;;  %v4369_v1 = vmax.f32 %v4320_v25, 0.0  ;;  %v4324_v16 = vadd.f32 %v4275_v13, %v9864_v44  ;;  %v4323_v58 = vadd.f32 %v4274_v48, %v9864_v44 }
 0x370   :  { %6407 = vtanh.f32 %v4090_v53  ;;  %v3952_v37 = vpop.xlane.xlu1 %3951  ;;  %v3949_v34 = vpop.xlane.xlu0 %3948  ;;  %v4368_v53 = vmax.f32 %v4319_v27, 0.0  ;;  %v4536_v51 = vsel %vm2682_vm0, %v4423_v6, 0.0  ;;  %v4533_v57 = vsel %vm2682_vm0, %v4422_v8, 0.0 }
 0x371   :  { %v4094_v61 = vadd.f32 %v10256_v11, %v3952_v37  ;;  %v4093_v3 = vadd.f32 %v10256_v11, %v3949_v34  ;;  %v4425_v37 = vmul.f32 %v10313_v19, %v4369_v1  ;;  %v4373_v35 = vmax.f32 %v4324_v16, 0.0 }
 0x372   :  { %v4424_v34 = vmul.f32 %v10313_v19, %v4368_v53  ;;  %v4372_v28 = vmax.f32 %v4323_v58, 0.0  ;;  %v4548_v53 = vsel %vm2682_vm0, %v4427_v7, 0.0  ;;  %v4281_v54 = vmul.f32 %v9855_v26, %v9004_v60 }
 0x373   :  { %6409 = vtanh.f32 %v4094_v61  ;;  %4525 = vadd.xlane.f32.xlu1 %v4524_v56  ;;  %4522 = vadd.xlane.f32.xlu0 %v4521_v59  ;;  %v12283_v61 = vld [vmem:[#allocation76_spill] sm:$0xff]  ;;  %v4542_v52 = vsel %vm2682_vm0, %v4425_v37, 0.0  ;;  %v4429_v30 = vmul.f32 %v10313_v19, %v4373_v35  ;;  %v4282_v63 = vmul.f32 %v9855_v26, %v9083_v21 }
 0x374   :  { %6411 = vtanh.f32 %v4093_v3  ;;  %v3958_v55 = vpop.xlane.xlu1 %3957  ;;  %v3955_v2 = vpop.xlane.xlu0 %3954  ;;  %v4277_v3 = vmul.f32 %v9855_v26, %v12283_v61  ;;  %v4539_v13 = vsel %vm2682_vm0, %v4424_v34, 0.0  ;;  %v4330_v32 = vadd.f32 %v4281_v54, %v9864_v44 }
 0x375   :  { %v6402_v29 = vpop.eup %6401  ;;  %v4096_v49 = vadd.f32 %v10256_v11, %v3958_v55  ;;  %v4095_v10 = vadd.f32 %v10256_v11, %v3955_v2  ;;  %v4325_v2 = vadd.f32 %v4276_v50, %v9864_v44 }
 0x376   :  { %v6404_v47 = vpop.eup %6403  ;;  %4190 = vst.msk [vmem:[%s11864_s13 + $0x10] sm:$0xff] %vm4187_vm1, %v6402_v29  ;;  %v4326_v55 = vadd.f32 %v4277_v3, %v9864_v44  ;;  %v12285_v29 = vld [vmem:[#allocation80_spill] sm:$0xff] }
 0x377   :  { %4188 = vst.msk [vmem:[%s11864_s13] sm:$0xff] %vm4187_vm1, %v6404_v47  ;;  %6413 = vtanh.f32 %v4096_v49  ;;  %4531 = vadd.xlane.f32.xlu1 %v4530_v5  ;;  %4528 = vadd.xlane.f32.xlu0 %v4527_v4  ;;  %v12284_v5 = vld [vmem:[#allocation78_spill] sm:$0xff]  ;;  %v4279_v49 = vmul.f32 %v9855_v26, %v12285_v29  ;;  %v4428_v47 = vmul.f32 %v10313_v19, %v4372_v28  ;;  %v4374_v58 = vmax.f32 %v4325_v2, 0.0 }
 0x378   :  { %6415 = vtanh.f32 %v4095_v10  ;;  %v3964_v46 = vpop.xlane.xlu1 %3963  ;;  %v3961_v31 = vpop.xlane.xlu0 %3960  ;;  %v4278_v4 = vmul.f32 %v9855_v26, %v12284_v5  ;;  %v4375_v16 = vmax.f32 %v4326_v55, 0.0  ;;  %v4284_v29 = vmul.f32 %v9855_v26, %v9351_v62 }
 0x379   :  { %v6406_v45 = vpop.eup %6405  ;;  %v4098_v36 = vadd.f32 %v10256_v11, %v3964_v46  ;;  %v4097_v15 = vadd.f32 %v10256_v11, %v3961_v31  ;;  %v4545_v46 = vsel %vm2682_vm0, %v4426_v0, 0.0  ;;  %v4551_v60 = vsel %vm2682_vm0, %v4428_v47, 0.0 }
 0x37a   :  { %v6408_v22 = vpop.eup %6407  ;;  %4191 = vst.msk [vmem:[%s11864_s13 + $0x18] sm:$0xff] %vm4187_vm1, %v6406_v45  ;;  %v4328_v45 = vadd.f32 %v4279_v49, %v9864_v44  ;;  %v4430_v3 = vmul.f32 %v10313_v19, %v4374_v58  ;;  %v4285_v49 = vmul.f32 %v9855_v26, %v9563_v42  ;;  %v4333_v58 = vadd.f32 %v4284_v29, %v9864_v44 }
 0x37b   :  { %4189 = vst.msk [vmem:[%s11864_s13 + $0x8] sm:$0xff] %vm4187_vm1, %v6408_v22  ;;  %6417 = vtanh.f32 %v4098_v36  ;;  %4537 = vadd.xlane.f32.xlu1 %v4536_v51  ;;  %4534 = vadd.xlane.f32.xlu0 %v4533_v57  ;;  %v4327_v36 = vadd.f32 %v4278_v4, %v9864_v44  ;;  %v4283_v22 = vmul.f32 %v9855_v26, %v9281_v39  ;;  %v4554_v57 = vsel %vm2682_vm0, %v4429_v30, 0.0 }
 0x37c   :  { %6419 = vtanh.f32 %v4097_v15  ;;  %v3970_v56 = vpop.xlane.xlu1 %3969  ;;  %v3967_v59 = vpop.xlane.xlu0 %3966  ;;  %v4280_v15 = vmul.f32 %v9855_v26, %v8785_v24  ;;  %v4431_v39 = vmul.f32 %v10313_v19, %v4375_v16  ;;  %v4557_v2 = vsel %vm2682_vm0, %v4430_v3, 0.0 }
 0x37d   :  { %v6410_v25 = vpop.eup %6409  ;;  %v4100_v27 = vadd.f32 %v10256_v11, %v3970_v56  ;;  %v4099_v18 = vadd.f32 %v10256_v11, %v3967_v59  ;;  %v4377_v56 = vmax.f32 %v4328_v45, 0.0  ;;  %v4376_v59 = vmax.f32 %v4327_v36, 0.0  ;;  %v12286_v45 = vld [vmem:[#allocation82_spill] sm:$0xff] }
 0x37e   :  { %v6412_v48 = vpop.eup %6411  ;;  %4193 = vst.msk [vmem:[%s11864_s13 + $0x28] sm:$0xff] %vm4187_vm1, %v6410_v25  ;;  %v4329_v50 = vadd.f32 %v4280_v15, %v9864_v44  ;;  %v4332_v25 = vadd.f32 %v4283_v22, %v9864_v44  ;;  %v4560_v55 = vsel %vm2682_vm0, %v4431_v39, 0.0  ;;  %v4334_v16 = vadd.f32 %v4285_v49, %v9864_v44  ;;  %v12287_v15 = vld [vmem:[#allocation84_spill] sm:$0xff] }
 0x37f   :  { %4192 = vst.msk [vmem:[%s11864_s13 + $0x20] sm:$0xff] %vm4187_vm1, %v6412_v48  ;;  %6421 = vtanh.f32 %v4100_v27  ;;  %4543 = vadd.xlane.f32.xlu1 %v4542_v52  ;;  %4540 = vadd.xlane.f32.xlu0 %v4539_v13  ;;  %v4331_v27 = vadd.f32 %v4282_v63, %v9864_v44  ;;  %v4379_v48 = vmax.f32 %v4330_v32, 0.0  ;;  %v4433_v5 = vmul.f32 %v10313_v19, %v4377_v56  ;;  %v12288_v56 = vld [vmem:[#allocation86_spill] sm:$0xff] }
 0x380   :  { %6423 = vtanh.f32 %v4099_v18  ;;  %v3976_v10 = vpop.xlane.xlu1 %3975  ;;  %v3973_v14 = vpop.xlane.xlu0 %3972  ;;  %v4378_v52 = vmax.f32 %v4329_v50, 0.0  ;;  %v4432_v4 = vmul.f32 %v10313_v19, %v4376_v59  ;;  %v4381_v30 = vmax.f32 %v4332_v25, 0.0 }
 0x381   :  { %v6414_v6 = vpop.eup %6413  ;;  %v4102_v8 = vadd.f32 %v10256_v11, %v3976_v10  ;;  %v4101_v1 = vadd.f32 %v10256_v11, %v3973_v14  ;;  %v4380_v47 = vmax.f32 %v4331_v27, 0.0  ;;  %v4566_v42 = vsel %vm2682_vm0, %v4433_v5, 0.0  ;;  %v12290_v27 = vld [vmem:[#allocation91_spill] sm:$0xff] }
 0x382   :  { %v6416_v31 = vpop.eup %6415  ;;  %4195 = vst.msk [vmem:[%s11864_s13 + $0x38] sm:$0xff] %vm4187_vm1, %v6414_v6  ;;  %v4741_v36 = vmul.f32 %v9855_v26, %v12286_v45  ;;  %v4742_v54 = vmul.f32 %v9855_v26, %v12287_v15  ;;  %v4383_v50 = vmax.f32 %v4334_v16, 0.0  ;;  %v4743_v59 = vmul.f32 %v9855_v26, %v12288_v56  ;;  %v12291_v15 = vld [vmem:[#allocation93_spill] sm:$0xff] }
 0x383   :  { %4194 = vst.msk [vmem:[%s11864_s13 + $0x30] sm:$0xff] %vm4187_vm1, %v6416_v31  ;;  %6425 = vtanh.f32 %v4102_v8  ;;  %4549 = vadd.xlane.f32.xlu1 %v4548_v53  ;;  %4546 = vadd.xlane.f32.xlu0 %v4545_v46  ;;  %v4434_v53 = vmul.f32 %v10313_v19, %v4378_v52  ;;  %v4563_v31 = vsel %vm2682_vm0, %v4432_v4, 0.0 }
 0x384   :  { %6427 = vtanh.f32 %v4101_v1  ;;  %v3982_v51 = vpop.xlane.xlu1 %3981  ;;  %v3979_v24 = vpop.xlane.xlu0 %3978  ;;  %v4435_v1 = vmul.f32 %v10313_v19, %v4379_v48  ;;  %v4791_v39 = vadd.f32 %v4742_v54, %v9864_v44  ;;  %v4790_v3 = vadd.f32 %v4741_v36, %v9864_v44 }
 0x385   :  { %v6418_v37 = vpop.eup %6417  ;;  %v4104_v21 = vadd.f32 %v10256_v11, %v3982_v51  ;;  %v4103_v34 = vadd.f32 %v10256_v11, %v3979_v24  ;;  %v4437_v51 = vmul.f32 %v10313_v19, %v4381_v30  ;;  %v4436_v24 = vmul.f32 %v10313_v19, %v4380_v47  ;;  %v10484_v30 = vld [vmem:[%s11862_s11] ss:$0 sm:$0xff] }
 0x386   :  { %v6420_v61 = vpop.eup %6419  ;;  %4197 = vst.msk [vmem:[%s11864_s13 + $0x48] sm:$0xff] %vm4187_vm1, %v6418_v37  ;;  %v4792_v5 = vadd.f32 %v4743_v59, %v9864_v44  ;;  %v4439_v29 = vmul.f32 %v10313_v19, %v4383_v50  ;;  %v4747_v54 = vmul.f32 %v9855_v26, %v12291_v15 }
 0x387   :  { %4196 = vst.msk [vmem:[%s11864_s13 + $0x40] sm:$0xff] %vm4187_vm1, %v6420_v61  ;;  %6429 = vtanh.f32 %v4104_v21  ;;  %4555 = vadd.xlane.f32.xlu1 %v4554_v57  ;;  %4552 = vadd.xlane.f32.xlu0 %v4551_v60  ;;  %v4572_v21 = vsel %vm2682_vm0, %v4435_v1, 0.0  ;;  %v4382_v61 = vmax.f32 %v4333_v58, 0.0  ;;  %v4578_v48 = vsel %vm2682_vm0, %v4437_v51, 0.0 }
 0x388   :  { %6431 = vtanh.f32 %v4103_v34  ;;  %v3988_v35 = vpop.xlane.xlu1 %3987  ;;  %v3985_v28 = vpop.xlane.xlu0 %3984  ;;  %v4569_v34 = vsel %vm2682_vm0, %v4434_v53, 0.0  ;;  %v4584_v16 = vsel %vm2682_vm0, %v4439_v29, 0.0  ;;  %v4796_v59 = vadd.f32 %v4747_v54, %v9864_v44 }
 0x389   :  { %v6422_v18 = vpop.eup %6421  ;;  %v4106_v7 = vadd.f32 %v10256_v11, %v3988_v35  ;;  %v4105_v0 = vadd.f32 %v10256_v11, %v3985_v28  ;;  %v4744_v35 = vmul.f32 %v9855_v26, %v8818_v17  ;;  %v12289_v28 = vld [vmem:[#allocation89_spill] sm:$0xff]  ;;  %v4575_v17 = vsel %vm2682_vm0, %v4436_v24, 0.0 }
 0x38a   :  { %v6424_v13 = vpop.eup %6423  ;;  %4199 = vst.msk [vmem:[%s11864_s13 + $0x58] sm:$0xff] %vm4187_vm1, %v6422_v18  ;;  %v4745_v25 = vmul.f32 %v9855_v26, %v12289_v28  ;;  %v4746_v18 = vmul.f32 %v9855_v26, %v12290_v27  ;;  %v4438_v49 = vmul.f32 %v10313_v19, %v4382_v61  ;;  %v4845_v29 = vmax.f32 %v4796_v59, 0.0 }
 0x38b   :  { %4198 = vst.msk [vmem:[%s11864_s13 + $0x50] sm:$0xff] %vm4187_vm1, %v6424_v13  ;;  %6433 = vtanh.f32 %v4106_v7  ;;  %4561 = vadd.xlane.f32.xlu1 %v4560_v55  ;;  %4558 = vadd.xlane.f32.xlu0 %v4557_v2  ;;  %v4793_v2 = vadd.f32 %v4744_v35, %v9864_v44  ;;  %v12293_v35 = vld [vmem:[#allocation97_spill] sm:$0xff] }
 0x38c   :  { %6435 = vtanh.f32 %v4105_v0  ;;  %v3994_v10 = vpop.xlane.xlu1 %3993  ;;  %v3991_v14 = vpop.xlane.xlu0 %3990  ;;  %v4795_v19 = vadd.f32 %v4746_v18, %v9864_v44  ;;  %v4581_v58 = vsel %vm2682_vm0, %v4438_v49, 0.0  ;;  %v4749_v28 = vmul.f32 %v9855_v26, %v12293_v35 }
 0x38d   :  { %v6426_v6 = vpop.eup %6425  ;;  %v4108_v8 = vadd.f32 %v10256_v11, %v3994_v10  ;;  %v4107_v62 = vadd.f32 %v10256_v11, %v3991_v14  ;;  %v4840_v10 = vmax.f32 %v4791_v39, 0.0  ;;  %v4839_v14 = vmax.f32 %v4790_v3, 0.0 }
 0x38e   :  { %v6428_v46 = vpop.eup %6427  ;;  %4201 = vst.msk [vmem:[%s11864_s13 + $0x68] sm:$0xff] %vm4187_vm1, %v6426_v6 }
 0x38f   :  { %4200 = vst.msk [vmem:[%s11864_s13 + $0x60] sm:$0xff] %vm4187_vm1, %v6428_v46  ;;  %6437 = vtanh.f32 %v4108_v8  ;;  %4567 = vadd.xlane.f32.xlu1 %v4566_v42  ;;  %4564 = vadd.xlane.f32.xlu0 %v4563_v31  ;;  %v4794_v8 = vadd.f32 %v4745_v25, %v9864_v44  ;;  %v4842_v46 = vmax.f32 %v4793_v2, 0.0  ;;  %v4841_v42 = vmax.f32 %v4792_v5, 0.0  ;;  %v12294_v25 = vld [vmem:[#allocation99_spill] sm:$0xff] }
 0x390   :  { %6439 = vtanh.f32 %v4107_v62  ;;  %v4000_v63 = vpop.xlane.xlu1 %3999  ;;  %v3997_v22 = vpop.xlane.xlu0 %3996  ;;  %v4896_v45 = vmul.f32 %v10484_v30, %v4840_v10  ;;  %v4895_v36 = vmul.f32 %v10484_v30, %v4839_v14  ;;  %v4750_v27 = vmul.f32 %v9855_v26, %v12294_v25  ;;  %v12295_v14 = vld [vmem:[#allocation101_spill] sm:$0xff] }
 0x391   :  { %v6430_v57 = vpop.eup %6429  ;;  %v4110_v60 = vadd.f32 %v10256_v11, %v4000_v63  ;;  %v4109_v37 = vadd.f32 %v10256_v11, %v3997_v22  ;;  %v12292_v63 = vld [vmem:[#allocation95_spill] sm:$0xff]  ;;  %v4897_v50 = vmul.f32 %v10484_v30, %v4841_v42  ;;  %v4798_v10 = vadd.f32 %v4749_v28, %v9864_v44 }
 0x392   :  { %v6432_v32 = vpop.eup %6431  ;;  %4203 = vst.msk [vmem:[%s11864_s13 + $0x78] sm:$0xff] %vm4187_vm1, %v6430_v57  ;;  %v4748_v22 = vmul.f32 %v9855_v26, %v12292_v63  ;;  %v4844_v57 = vmax.f32 %v4795_v19, 0.0  ;;  %v4947_v39 = vsel %vm2682_vm0, %v4896_v45, 0.0  ;;  %v4944_v3 = vsel %vm2682_vm0, %v4895_v36, 0.0 }
 0x393   :  { %4202 = vst.msk [vmem:[%s11864_s13 + $0x70] sm:$0xff] %vm4187_vm1, %v6432_v32  ;;  %6441 = vtanh.f32 %v4110_v60  ;;  %4573 = vadd.xlane.f32.xlu1 %v4572_v21  ;;  %4570 = vadd.xlane.f32.xlu0 %v4569_v34  ;;  %v4843_v60 = vmax.f32 %v4794_v8, 0.0  ;;  %v4898_v32 = vmul.f32 %v10484_v30, %v4842_v46  ;;  %v4950_v2 = vsel %vm2682_vm0, %v4897_v50, 0.0  ;;  %v12297_v8 = vld [vmem:[#allocation105_spill] sm:$0xff] }
 0x394   :  { %6443 = vtanh.f32 %v4109_v37  ;;  %v4006_v7 = vpop.xlane.xlu1 %4005  ;;  %v4003_v0 = vpop.xlane.xlu0 %4002  ;;  %v4797_v56 = vadd.f32 %v4748_v22, %v9864_v44  ;;  %v4799_v49 = vadd.f32 %v4750_v27, %v9864_v44  ;;  %v12299_v27 = vld [vmem:[#allocation109_spill] sm:$0xff] }
 0x395   :  { %v6434_v52 = vpop.eup %6433  ;;  %v4112_v13 = vadd.f32 %v10256_v11, %v4006_v7  ;;  %v4111_v55 = vadd.f32 %v10256_v11, %v4003_v0  ;;  %v4900_v0 = vmul.f32 %v10484_v30, %v4844_v57  ;;  %v4847_v57 = vmax.f32 %v4798_v10, 0.0 }
 0x396   :  { %v6436_v4 = vpop.eup %6435  ;;  %4205 = vst.msk [vmem:[%s11864_s13 + $0x88] sm:$0xff] %vm4187_vm1, %v6434_v52 }
 0x397   :  { %4204 = vst.msk [vmem:[%s11864_s13 + $0x80] sm:$0xff] %vm4187_vm1, %v6436_v4  ;;  %6445 = vtanh.f32 %v4112_v13  ;;  %4579 = vadd.xlane.f32.xlu1 %v4578_v48  ;;  %4576 = vadd.xlane.f32.xlu0 %v4575_v17  ;;  %v4899_v48 = vmul.f32 %v10484_v30, %v4843_v60  ;;  %v4846_v4 = vmax.f32 %v4797_v56, 0.0  ;;  %v4903_v25 = vmul.f32 %v10484_v30, %v4847_v57  ;;  %v12303_v57 = vld [vmem:[#allocation120_spill] sm:$0xff] }
 0x398   :  { %6447 = vtanh.f32 %v4111_v55  ;;  %v4012_v47 = vpop.xlane.xlu1 %4011  ;;  %v4009_v6 = vpop.xlane.xlu0 %4008  ;;  %v4953_v55 = vsel %vm2682_vm0, %v4898_v32, 0.0 }
 0x399   :  { %v6438_v62 = vpop.eup %6437  ;;  %v4114_v1 = vadd.f32 %v10256_v11, %v4012_v47  ;;  %v4113_v53 = vadd.f32 %v10256_v11, %v4009_v6  ;;  %v4751_v47 = vmul.f32 %v9855_v26, %v12295_v14  ;;  %v12296_v6 = vld [vmem:[#allocation103_spill] sm:$0xff]  ;;  %v4902_v22 = vmul.f32 %v10484_v30, %v4846_v4 }
 0x39a   :  { %v6440_v31 = vpop.eup %6439  ;;  %4207 = vst.msk [vmem:[%s11864_s13 + $0x98] sm:$0xff] %vm4187_vm1, %v6438_v62  ;;  %v4752_v19 = vmul.f32 %v9855_v26, %v12296_v6  ;;  %v4753_v62 = vmul.f32 %v9855_v26, %v12297_v8  ;;  %v4758_v6 = vmul.f32 %v9855_v26, %v9198_v33 }
 0x39b   :  { %4206 = vst.msk [vmem:[%s11864_s13 + $0x90] sm:$0xff] %vm4187_vm1, %v6440_v31  ;;  %6449 = vtanh.f32 %v4114_v1  ;;  %4585 = vadd.xlane.f32.xlu1 %v4584_v16  ;;  %4582 = vadd.xlane.f32.xlu0 %v4581_v58  ;;  %v12298_v1 = vld [vmem:[#allocation107_spill] sm:$0xff]  ;;  %v4959_v31 = vsel %vm2682_vm0, %v4900_v0, 0.0  ;;  %v4956_v16 = vsel %vm2682_vm0, %v4899_v48, 0.0  ;;  %v4800_v54 = vadd.f32 %v4751_v47, %v9864_v44 }
 0x39c   :  { %6451 = vtanh.f32 %v4113_v53  ;;  %v4018_v51 = vpop.xlane.xlu1 %4017  ;;  %v4015_v24 = vpop.xlane.xlu0 %4014  ;;  %v4754_v53 = vmul.f32 %v9855_v26, %v12298_v1  ;;  %v4801_v15 = vadd.f32 %v4752_v19, %v9864_v44  ;;  %v4965_v59 = vsel %vm2682_vm0, %v4902_v22, 0.0 }
 0x39d   :  { %v6442_v37 = vpop.eup %6441  ;;  %v4116_v21 = vadd.f32 %v10256_v11, %v4018_v51  ;;  %v4115_v34 = vadd.f32 %v10256_v11, %v4015_v24  ;;  %v4901_v51 = vmul.f32 %v10484_v30, %v4845_v29  ;;  %v4848_v24 = vmax.f32 %v4799_v49, 0.0 }
 0x39e   :  { %v6444_v61 = vpop.eup %6443  ;;  %4209 = vst.msk [vmem:[%s11864_s13 + $0xa8] sm:$0xff] %vm4187_vm1, %v6442_v37  ;;  %v4968_v49 = vsel %vm2682_vm0, %v4903_v25, 0.0  ;;  %v4757_v47 = vmul.f32 %v9855_v26, %v9167_v23 }
 0x39f   :  { %4208 = vst.msk [vmem:[%s11864_s13 + $0xa0] sm:$0xff] %vm4187_vm1, %v6444_v61  ;;  %6453 = vtanh.f32 %v4116_v21  ;;  %4948 = vadd.xlane.f32.xlu1 %v4947_v39  ;;  %4945 = vadd.xlane.f32.xlu0 %v4944_v3  ;;  %v4803_v21 = vadd.f32 %v4754_v53, %v9864_v44  ;;  %v4850_v39 = vmax.f32 %v4801_v15, 0.0  ;;  %v4849_v3 = vmax.f32 %v4800_v54, 0.0  ;;  %v12300_v15 = vld [vmem:[#allocation114_spill] sm:$0xff] }
 0x3a0   :  { %6455 = vtanh.f32 %v4115_v34  ;;  %v4024_v18 = vpop.xlane.xlu1 %4023  ;;  %v4021_v7 = vpop.xlane.xlu0 %4020  ;;  %v4802_v34 = vadd.f32 %v4753_v62, %v9864_v44  ;;  %v4962_v35 = vsel %vm2682_vm0, %v4901_v51, 0.0  ;;  %v4904_v28 = vmul.f32 %v10484_v30, %v4848_v24  ;;  %v12302_v51 = vld [vmem:[#allocation118_spill] sm:$0xff] }
 0x3a1   :  { %v6446_v17 = vpop.eup %6445  ;;  %v4118_v52 = vadd.f32 %v10256_v11, %v4024_v18  ;;  %v4117_v13 = vadd.f32 %v10256_v11, %v4021_v7  ;;  %v4755_v18 = vmul.f32 %v9855_v26, %v12299_v27  ;;  %v4756_v7 = vmul.f32 %v9855_v26, %v9142_v41 }
 0x3a2   :  { %v6448_v5 = vpop.eup %6447  ;;  %4211 = vst.msk [vmem:[%s11864_s13 + $0xb8] sm:$0xff] %vm4187_vm1, %v6446_v17  ;;  %v4852_v17 = vmax.f32 %v4803_v21, 0.0  ;;  %v4905_v4 = vmul.f32 %v10484_v30, %v4849_v3  ;;  %v4971_v41 = vsel %vm2682_vm0, %v4904_v28, 0.0  ;;  %v4759_v54 = vmul.f32 %v9855_v26, %v12300_v15  ;;  %v12306_v15 = vld [vmem:[#allocation126_spill] sm:$0xff] }
 0x3a3   :  { %4210 = vst.msk [vmem:[%s11864_s13 + $0xb0] sm:$0xff] %vm4187_vm1, %v6448_v5  ;;  %6457 = vtanh.f32 %v4118_v52  ;;  %4954 = vadd.xlane.f32.xlu1 %v4953_v55  ;;  %4951 = vadd.xlane.f32.xlu0 %v4950_v2  ;;  %v4851_v52 = vmax.f32 %v4802_v34, 0.0  ;;  %v4906_v5 = vmul.f32 %v10484_v30, %v4850_v39  ;;  %v4805_v10 = vadd.f32 %v4756_v7, %v9864_v44 }
 0x3a4   :  { %6459 = vtanh.f32 %v4117_v13  ;;  %v4030_v46 = vpop.xlane.xlu1 %4029  ;;  %v4027_v42 = vpop.xlane.xlu0 %4026  ;;  %v4804_v14 = vadd.f32 %v4755_v18, %v9864_v44  ;;  %v4908_v62 = vmul.f32 %v10484_v30, %v4852_v17  ;;  %v4761_v24 = vmul.f32 %v9855_v26, %v12302_v51 }
 0x3a5   :  { %v6450_v58 = vpop.eup %6449  ;;  %v4120_v45 = vadd.f32 %v10256_v11, %v4030_v46  ;;  %v4119_v36 = vadd.f32 %v10256_v11, %v4027_v42  ;;  %v4907_v1 = vmul.f32 %v10484_v30, %v4851_v52  ;;  %v4977_v42 = vsel %vm2682_vm0, %v4906_v5, 0.0 }
 0x3a6   :  { %v6452_v63 = vpop.eup %6451  ;;  %4213 = vst.msk [vmem:[%s11864_s13 + $0xc8] sm:$0xff] %vm4187_vm1, %v6450_v58  ;;  %v4854_v33 = vmax.f32 %v4805_v10, 0.0  ;;  %v4853_v58 = vmax.f32 %v4804_v14, 0.0  ;;  %v4983_v34 = vsel %vm2682_vm0, %v4908_v62, 0.0  ;;  %v12304_v10 = vld [vmem:[#allocation122_spill] sm:$0xff] }
 0x3a7   :  { %4212 = vst.msk [vmem:[%s11864_s13 + $0xc0] sm:$0xff] %vm4187_vm1, %v6452_v63  ;;  %6461 = vtanh.f32 %v4120_v45  ;;  %4960 = vadd.xlane.f32.xlu1 %v4959_v31  ;;  %4957 = vadd.xlane.f32.xlu0 %v4956_v16  ;;  %v4974_v31 = vsel %vm2682_vm0, %v4905_v4, 0.0  ;;  %v4807_v45 = vadd.f32 %v4758_v6, %v9864_v44  ;;  %v12301_v63 = vld [vmem:[#allocation116_spill] sm:$0xff]  ;;  %v4763_v14 = vmul.f32 %v9855_v26, %v12304_v10 }
 0x3a8   :  { %6463 = vtanh.f32 %v4119_v36  ;;  %v4036_v60 = vpop.xlane.xlu1 %4035  ;;  %v4033_v37 = vpop.xlane.xlu0 %4032  ;;  %v4806_v36 = vadd.f32 %v4757_v47, %v9864_v44  ;;  %v4760_v22 = vmul.f32 %v9855_v26, %v12301_v63  ;;  %v4909_v28 = vmul.f32 %v10484_v30, %v4853_v58  ;;  %v12305_v47 = vld [vmem:[#allocation124_spill] sm:$0xff] }
 0x3a9   :  { %v6454_v32 = vpop.eup %6453  ;;  %v4122_v50 = vadd.f32 %v10256_v11, %v4036_v60  ;;  %v4121_v61 = vadd.f32 %v10256_v11, %v4033_v37  ;;  %v4762_v60 = vmul.f32 %v9855_v26, %v12303_v57  ;;  %v4856_v25 = vmax.f32 %v4807_v45, 0.0  ;;  %v12307_v63 = vld [vmem:[#allocation128_spill] sm:$0xff] }
 0x3aa   :  { %v6456_v56 = vpop.eup %6455  ;;  %4215 = vst.msk [vmem:[%s11864_s13 + $0xd8] sm:$0xff] %vm4187_vm1, %v6454_v32  ;;  %v4980_v32 = vsel %vm2682_vm0, %v4907_v1, 0.0  ;;  %v4809_v3 = vadd.f32 %v4760_v22, %v9864_v44  ;;  %v4855_v27 = vmax.f32 %v4806_v36, 0.0  ;;  %v4764_v6 = vmul.f32 %v9855_v26, %v12305_v47 }
 0x3ab   :  { %4214 = vst.msk [vmem:[%s11864_s13 + $0xd0] sm:$0xff] %vm4187_vm1, %v6456_v56  ;;  %6465 = vtanh.f32 %v4122_v50  ;;  %4966 = vadd.xlane.f32.xlu1 %v4965_v59  ;;  %4963 = vadd.xlane.f32.xlu0 %v4962_v35  ;;  %v4808_v56 = vadd.f32 %v4759_v54, %v9864_v44  ;;  %v4910_v35 = vmul.f32 %v10484_v30, %v4854_v33 }
 0x3ac   :  { %6467 = vtanh.f32 %v4121_v61  ;;  %v4042_v0 = vpop.xlane.xlu1 %4041  ;;  %v4039_v48 = vpop.xlane.xlu0 %4038  ;;  %v4813_v45 = vadd.f32 %v4764_v6, %v9864_v44  ;;  %v4812_v36 = vadd.f32 %v4763_v14, %v9864_v44  ;;  %v4765_v54 = vmul.f32 %v9855_v26, %v12306_v15 }
 0x3ad   :  { %v6458_v13 = vpop.eup %6457  ;;  %v4124_v55 = vadd.f32 %v10256_v11, %v4042_v0  ;;  %v4123_v2 = vadd.f32 %v10256_v11, %v4039_v48  ;;  %v4811_v0 = vadd.f32 %v4762_v60, %v9864_v44  ;;  %v4810_v48 = vadd.f32 %v4761_v24, %v9864_v44 }
 0x3ae   :  { %v6460_v29 = vpop.eup %6459  ;;  %4217 = vst.msk [vmem:[%s11864_s13 + $0xe8] sm:$0xff] %vm4187_vm1, %v6458_v13  ;;  %v4989_v4 = vsel %vm2682_vm0, %v4910_v35, 0.0  ;;  %v4766_v22 = vmul.f32 %v9855_v26, %v12307_v63  ;;  %v12308_v35 = vld [vmem:[#allocation130_spill] sm:$0xff] }
 0x3af   :  { %4216 = vst.msk [vmem:[%s11864_s13 + $0xe0] sm:$0xff] %vm4187_vm1, %v6460_v29  ;;  %6469 = vtanh.f32 %v4124_v55  ;;  %4972 = vadd.xlane.f32.xlu1 %v4971_v41  ;;  %4969 = vadd.xlane.f32.xlu0 %v4968_v49  ;;  %v4858_v55 = vmax.f32 %v4809_v3, 0.0  ;;  %v4986_v29 = vsel %vm2682_vm0, %v4909_v28, 0.0  ;;  %v4912_v41 = vmul.f32 %v10484_v30, %v4856_v25 }
 0x3b0   :  { %6471 = vtanh.f32 %v4123_v2  ;;  %v4048_v19 = vpop.xlane.xlu1 %4047  ;;  %v4045_v8 = vpop.xlane.xlu0 %4044  ;;  %v4857_v2 = vmax.f32 %v4808_v56, 0.0  ;;  %v4911_v49 = vmul.f32 %v10484_v30, %v4855_v27  ;;  %v4860_v62 = vmax.f32 %v4811_v0, 0.0 }
 0x3b1   :  { %v6462_v53 = vpop.eup %6461  ;;  %v4126_v23 = vadd.f32 %v10256_v11, %v4048_v19  ;;  %v4125_v46 = vadd.f32 %v10256_v11, %v4045_v8  ;;  %v4859_v1 = vmax.f32 %v4810_v48, 0.0  ;;  %v4995_v33 = vsel %vm2682_vm0, %v4912_v41, 0.0 }
 0x3b2   :  { %v6464_v16 = vpop.eup %6463  ;;  %4219 = vst.msk [vmem:[%s11864_s13 + $0xf8] sm:$0xff] %vm4187_vm1, %v6462_v53  ;;  %v4992_v58 = vsel %vm2682_vm0, %v4911_v49, 0.0  ;;  %v4916_v57 = vmul.f32 %v10484_v30, %v4860_v62  ;;  %v4861_v3 = vmax.f32 %v4812_v36, 0.0  ;;  %v4815_v56 = vadd.f32 %v4766_v22, %v9864_v44 }
 0x3b3   :  { %4218 = vst.msk [vmem:[%s11864_s13 + $0xf0] sm:$0xff] %vm4187_vm1, %v6464_v16  ;;  %6473 = vtanh.f32 %v4126_v23  ;;  %4978 = vadd.xlane.f32.xlu1 %v4977_v42  ;;  %4975 = vadd.xlane.f32.xlu0 %v4974_v31  ;;  %v4914_v42 = vmul.f32 %v10484_v30, %v4858_v55  ;;  %v4913_v31 = vmul.f32 %v10484_v30, %v4857_v2 }
 0x3b4   :  { %6475 = vtanh.f32 %v4125_v46  ;;  %v4054_v37 = vpop.xlane.xlu1 %4053  ;;  %v4051_v21 = vpop.xlane.xlu0 %4050  ;;  %v4915_v60 = vmul.f32 %v10484_v30, %v4859_v1  ;;  %v4767_v28 = vmul.f32 %v9855_v26, %v12308_v35  ;;  %v4768_v25 = vmul.f32 %v9855_v26, %v9423_v9 }
 0x3b5   :  { %v6466_v50 = vpop.eup %6465  ;;  %v4128_v61 = vadd.f32 %v10256_v11, %v4054_v37  ;;  %v4127_v39 = vadd.f32 %v10256_v11, %v4051_v21  ;;  %v4769_v27 = vmul.f32 %v9855_v26, %v9444_v43  ;;  %v5007_v48 = vsel %vm2682_vm0, %v4916_v57, 0.0 }
 0x3b6   :  { %v6468_v59 = vpop.eup %6467  ;;  %4221 = vst.msk [vmem:[%s11864_s13 + $0x108] sm:$0xff] %vm4187_vm1, %v6466_v50  ;;  %v4998_v50 = vsel %vm2682_vm0, %v4913_v31, 0.0  ;;  %v5004_v9 = vsel %vm2682_vm0, %v4915_v60, 0.0  ;;  %v4817_v55 = vadd.f32 %v4768_v25, %v9864_v44  ;;  %v4816_v2 = vadd.f32 %v4767_v28, %v9864_v44 }
 0x3b7   :  { %4220 = vst.msk [vmem:[%s11864_s13 + $0x100] sm:$0xff] %vm4187_vm1, %v6468_v59  ;;  %6477 = vtanh.f32 %v4128_v61  ;;  %4984 = vadd.xlane.f32.xlu1 %v4983_v34  ;;  %4981 = vadd.xlane.f32.xlu0 %v4980_v32  ;;  %v5001_v32 = vsel %vm2682_vm0, %v4914_v42, 0.0  ;;  %v4814_v59 = vadd.f32 %v4765_v54, %v9864_v44  ;;  %v4818_v14 = vadd.f32 %v4769_v27, %v9864_v44 }
 0x3b8   :  { %6479 = vtanh.f32 %v4127_v39  ;;  %v4060_v18 = vpop.xlane.xlu1 %4059  ;;  %v4057_v7 = vpop.xlane.xlu0 %4056  ;;  %v4862_v39 = vmax.f32 %v4813_v45, 0.0  ;;  %v4865_v62 = vmax.f32 %v4816_v2, 0.0  ;;  %v4771_v31 = vmul.f32 %v9855_v26, %v9482_v20 }
 0x3b9   :  { %v6470_v17 = vpop.eup %6469  ;;  %v4130_v52 = vadd.f32 %v10256_v11, %v4060_v18  ;;  %v4129_v13 = vadd.f32 %v10256_v11, %v4057_v7  ;;  %v4770_v18 = vmul.f32 %v9855_v26, %v9463_v40  ;;  %v4867_v36 = vmax.f32 %v4818_v14, 0.0 }
 0x3ba   :  { %v6472_v5 = vpop.eup %6471  ;;  %4223 = vst.msk [vmem:[%s11864_s13 + $0x118] sm:$0xff] %vm4187_vm1, %v6470_v17  ;;  %v4918_v40 = vmul.f32 %v10484_v30, %v4862_v39  ;;  %v4921_v22 = vmul.f32 %v10484_v30, %v4865_v62  ;;  %v4820_v60 = vadd.f32 %v4771_v31, %v9864_v44 }
 0x3bb   :  { %4222 = vst.msk [vmem:[%s11864_s13 + $0x110] sm:$0xff] %vm4187_vm1, %v6472_v5  ;;  %6481 = vtanh.f32 %v4130_v52  ;;  %4990 = vadd.xlane.f32.xlu1 %v4989_v4  ;;  %4987 = vadd.xlane.f32.xlu0 %v4986_v29  ;;  %v10713_v52 = vld [vmem:[#allocation2] ss:$0 sm:$0xff]  ;;  %v4917_v4 = vmul.f32 %v10484_v30, %v4861_v3  ;;  %v4864_v29 = vmax.f32 %v4815_v56, 0.0  ;;  %v4819_v10 = vadd.f32 %v4770_v18, %v9864_v44 }
 0x3bc   :  { %6483 = vtanh.f32 %v4129_v13  ;;  %v4066_v19 = vpop.xlane.xlu1 %4065  ;;  %v4063_v8 = vpop.xlane.xlu0 %4062  ;;  %v4923_v3 = vmul.f32 %v10484_v30, %v4867_v36  ;;  %v5022_v25 = vsel %vm2682_vm0, %v4921_v22, 0.0 }
 0x3bd   :  { %v6474_v53 = vpop.eup %6473  ;;  %v4132_v23 = vadd.f32 %v10256_v11, %v4066_v19  ;;  %v4131_v46 = vadd.f32 %v10256_v11, %v4063_v8  ;;  %v4866_v8 = vmax.f32 %v4817_v55, 0.0  ;;  %v4868_v45 = vmax.f32 %v4819_v10, 0.0  ;;  %v12313_v55 = vld [vmem:[#allocation145_spill] sm:$0xff] }
 0x3be   :  { %v6476_v16 = vpop.eup %6475  ;;  %4225 = vst.msk [vmem:[%s11864_s13 + $0x128] sm:$0xff] %vm4187_vm1, %v6474_v53  ;;  %v5013_v53 = vsel %vm2682_vm0, %v4918_v40, 0.0  ;;  %v4777_v2 = vmul.f32 %v9855_v26, %v12313_v55 }
 0x3bf   :  { %4224 = vst.msk [vmem:[%s11864_s13 + $0x120] sm:$0xff] %vm4187_vm1, %v6476_v16  ;;  %6485 = vtanh.f32 %v4132_v23  ;;  %4996 = vadd.xlane.f32.xlu1 %v4995_v33  ;;  %4993 = vadd.xlane.f32.xlu0 %v4992_v58  ;;  %v5010_v23 = vsel %vm2682_vm0, %v4917_v4, 0.0  ;;  %v4772_v16 = vmul.f32 %v9855_v26, %v9502_v12  ;;  %v4922_v63 = vmul.f32 %v10484_v30, %v4866_v8 }
 0x3c0   :  { %6487 = vtanh.f32 %v4131_v46  ;;  %v4072_v51 = vpop.xlane.xlu1 %4071  ;;  %v4069_v24 = vpop.xlane.xlu0 %4068  ;;  %v4920_v46 = vmul.f32 %v10484_v30, %v4864_v29  ;;  %v4924_v39 = vmul.f32 %v10484_v30, %v4868_v45  ;;  %v4826_v31 = vadd.f32 %v4777_v2, %v9864_v44 }
 0x3c1   :  { %v6478_v37 = vpop.eup %6477  ;;  %v4134_v21 = vadd.f32 %v10256_v11, %v4072_v51  ;;  %v4133_v34 = vadd.f32 %v10256_v11, %v4069_v24  ;;  %v4821_v57 = vadd.f32 %v4772_v16, %v9864_v44  ;;  %v5025_v28 = vsel %vm2682_vm0, %v4922_v63, 0.0 }
 0x3c2   :  { %v6480_v61 = vpop.eup %6479  ;;  %4227 = vst.msk [vmem:[%s11864_s13 + $0x138] sm:$0xff] %vm4187_vm1, %v6478_v37  ;;  %v5019_v12 = vsel %vm2682_vm0, %v4920_v46, 0.0  ;;  %v12309_v37 = vld [vmem:[#allocation137_spill] sm:$0xff] }
 0x3c3   :  { %4226 = vst.msk [vmem:[%s11864_s13 + $0x130] sm:$0xff] %vm4187_vm1, %v6480_v61  ;;  %6489 = vtanh.f32 %v4134_v21  ;;  %5002 = vadd.xlane.f32.xlu1 %v5001_v32  ;;  %4999 = vadd.xlane.f32.xlu0 %v4998_v50  ;;  %v4773_v21 = vmul.f32 %v9855_v26, %v12309_v37  ;;  %v4870_v18 = vmax.f32 %v4821_v57, 0.0 }
 0x3c4   :  { %6491 = vtanh.f32 %v4133_v34  ;;  %v4078_v7 = vpop.xlane.xlu1 %4077  ;;  %v4075_v0 = vpop.xlane.xlu0 %4074  ;;  %v12310_v34 = vld [vmem:[#allocation139_spill] sm:$0xff] }
 0x3c5   :  { %v6482_v17 = vpop.eup %6481  ;;  %v4136_v43 = vadd.f32 %v10256_v11, %v4078_v7  ;;  %v4135_v13 = vadd.f32 %v10713_v52, %v4075_v0  ;;  %v4863_v11 = vmax.f32 %v4814_v59, 0.0  ;;  %v4774_v32 = vmul.f32 %v9855_v26, %v12310_v34 }
 0x3c6   :  { %v6484_v5 = vpop.eup %6483  ;;  %4229 = vst.msk [vmem:[%s11864_s13 + $0x148] sm:$0xff] %vm4187_vm1, %v6482_v17  ;;  %v4869_v7 = vmax.f32 %v4820_v60, 0.0  ;;  %v4926_v8 = vmul.f32 %v10484_v30, %v4870_v18  ;;  %v4875_v34 = vmax.f32 %v4826_v31, 0.0 }
 0x3c7   :  { %4228 = vst.msk [vmem:[%s11864_s13 + $0x140] sm:$0xff] %vm4187_vm1, %v6484_v5  ;;  %6493 = vtanh.f32 %v4136_v43  ;;  %5008 = vadd.xlane.f32.xlu1 %v5007_v48  ;;  %5005 = vadd.xlane.f32.xlu0 %v5004_v9  ;;  %v4919_v42 = vmul.f32 %v10484_v30, %v4863_v11  ;;  %v4823_v0 = vadd.f32 %v4774_v32, %v9864_v44  ;;  %v12311_v9 = vld [vmem:[#allocation141_spill] sm:$0xff]  ;;  %v12312_v43 = vld [vmem:[#allocation143_spill] sm:$0xff]  ;;  %v5031_v11 = vsel %vm2682_vm0, %v4924_v39, 0.0 }
 0x3c8   :  { %6495 = vtanh.f32 %v4135_v13  ;;  %v4442_v41 = vpop.xlane.xlu1 %4441  ;;  %v4081_v49 = vpop.xlane.xlu0 %4080  ;;  %v4822_v48 = vadd.f32 %v4773_v21, %v9864_v44  ;;  %v4775_v17 = vmul.f32 %v9855_v26, %v12311_v9  ;;  %v4776_v13 = vmul.f32 %v9855_v26, %v12312_v43  ;;  %v12314_v5 = vld [vmem:[#allocation147_spill] sm:$0xff] }
 0x3c9   :  { %v6486_v47 = vpop.eup %6485  ;;  %v4594_v6 = vadd.f32 %v10713_v52, %v4442_v41  ;;  %v4137_v19 = vadd.f32 %v10713_v52, %v4081_v49  ;;  %v5016_v24 = vsel %vm2682_vm0, %v4919_v42, 0.0  ;;  %v4778_v40 = vmul.f32 %v9855_v26, %v12314_v5 }
 0x3ca   :  { %v6488_v1 = vpop.eup %6487  ;;  %4231 = vst.msk [vmem:[%s11864_s13 + $0x158] sm:$0xff] %vm4187_vm1, %v6486_v47  ;;  %v5028_v41 = vsel %vm2682_vm0, %v4923_v3, 0.0  ;;  %v4825_v47 = vadd.f32 %v4776_v13, %v9864_v44  ;;  %v4925_v62 = vmul.f32 %v10484_v30, %v4869_v7  ;;  %v12318_v7 = vld [vmem:[#allocation155_spill] sm:$0xff]  ;;  %v4931_v43 = vmul.f32 %v10484_v30, %v4875_v34 }
 0x3cb   :  { %4230 = vst.msk [vmem:[%s11864_s13 + $0x150] sm:$0xff] %vm4187_vm1, %v6488_v1  ;;  %6497 = vtanh.f32 %v4594_v6  ;;  %5014 = vadd.xlane.f32.xlu1 %v5013_v53  ;;  %5011 = vadd.xlane.f32.xlu0 %v5010_v23  ;;  %v4824_v6 = vadd.f32 %v4775_v17, %v9864_v44  ;;  %v4872_v1 = vmax.f32 %v4823_v0, 0.0  ;;  %v4871_v53 = vmax.f32 %v4822_v48, 0.0 }
 0x3cc   :  { %6499 = vtanh.f32 %v4137_v19  ;;  %v4448_v33 = vpop.xlane.xlu1 %4447  ;;  %v4445_v58 = vpop.xlane.xlu0 %4444  ;;  %v4827_v42 = vadd.f32 %v4778_v40, %v9864_v44  ;;  %v4874_v45 = vmax.f32 %v4825_v47, 0.0  ;;  %v4782_v0 = vmul.f32 %v9855_v26, %v12318_v7  ;;  %v12320_v47 = vld [vmem:[#allocation159_spill] sm:$0xff] }
 0x3cd   :  { %v6490_v15 = vpop.eup %6489  ;;  %v4596_v54 = vadd.f32 %v10713_v52, %v4448_v33  ;;  %v4595_v20 = vadd.f32 %v10713_v52, %v4445_v58  ;;  %v4873_v36 = vmax.f32 %v4824_v6, 0.0  ;;  %v4928_v63 = vmul.f32 %v10484_v30, %v4872_v1 }
 0x3ce   :  { %v6492_v51 = vpop.eup %6491  ;;  %4233 = vst.msk [vmem:[%s11864_s13 + $0x168] sm:$0xff] %vm4187_vm1, %v6490_v15  ;;  %v4927_v22 = vmul.f32 %v10484_v30, %v4871_v53  ;;  %v4876_v21 = vmax.f32 %v4827_v42, 0.0  ;;  %v4930_v39 = vmul.f32 %v10484_v30, %v4874_v45  ;;  %v4784_v6 = vmul.f32 %v9855_v26, %v12320_v47 }
 0x3cf   :  { %4232 = vst.msk [vmem:[%s11864_s13 + $0x160] sm:$0xff] %vm4187_vm1, %v6492_v51  ;;  %6501 = vtanh.f32 %v4596_v54  ;;  %5020 = vadd.xlane.f32.xlu1 %v5019_v12  ;;  %5017 = vadd.xlane.f32.xlu0 %v5016_v24  ;;  %v5037_v54 = vsel %vm2682_vm0, %v4926_v8, 0.0  ;;  %v12315_v51 = vld [vmem:[#allocation149_spill] sm:$0xff]  ;;  %v12316_v24 = vld [vmem:[#allocation151_spill] sm:$0xff]  ;;  %v4929_v3 = vmul.f32 %v10484_v30, %v4873_v36  ;;  %v5052_v42 = vsel %vm2682_vm0, %v4931_v43, 0.0 }
 0x3d0   :  { %6503 = vtanh.f32 %v4595_v20  ;;  %v4454_v50 = vpop.xlane.xlu1 %4453  ;;  %v4451_v61 = vpop.xlane.xlu0 %4450  ;;  %v5034_v20 = vsel %vm2682_vm0, %v4925_v62, 0.0  ;;  %v4779_v12 = vmul.f32 %v9855_v26, %v12315_v51  ;;  %v4780_v57 = vmul.f32 %v9855_v26, %v12316_v24  ;;  %v12322_v62 = vld [vmem:[#allocation163_spill] sm:$0xff] }
 0x3d1   :  { %v6494_v56 = vpop.eup %6493  ;;  %v4598_v59 = vadd.f32 %v10713_v52, %v4454_v50  ;;  %v4597_v35 = vadd.f32 %v10713_v52, %v4451_v61  ;;  %v4932_v17 = vmul.f32 %v10484_v30, %v4876_v21  ;;  %v5049_v5 = vsel %vm2682_vm0, %v4930_v39, 0.0 }
 0x3d2   :  { %v6496_v27 = vpop.eup %6495  ;;  %4235 = vst.msk [vmem:[%s11864_s13 + $0x178] sm:$0xff] %vm4187_vm1, %v6494_v56  ;;  %v5046_v40 = vsel %vm2682_vm0, %v4929_v3, 0.0  ;;  %v4786_v1 = vmul.f32 %v9855_v26, %v12322_v62 }
 0x3d3   :  { %4234 = vst.msk [vmem:[%s11864_s13 + $0x170] sm:$0xff] %vm4187_vm1, %v6496_v27  ;;  %6505 = vtanh.f32 %v4598_v59  ;;  %5026 = vadd.xlane.f32.xlu1 %v5025_v28  ;;  %5023 = vadd.xlane.f32.xlu0 %v5022_v25  ;;  %v5043_v59 = vsel %vm2682_vm0, %v4928_v63, 0.0  ;;  %v4829_v28 = vadd.f32 %v4780_v57, %v9864_v44  ;;  %v4828_v25 = vadd.f32 %v4779_v12, %v9864_v44  ;;  %v12317_v27 = vld [vmem:[#allocation153_spill] sm:$0xff] }
 0x3d4   :  { %6507 = vtanh.f32 %v4597_v35  ;;  %v4460_v4 = vpop.xlane.xlu1 %4459  ;;  %v4457_v29 = vpop.xlane.xlu0 %4456  ;;  %v5040_v35 = vsel %vm2682_vm0, %v4927_v22, 0.0  ;;  %v4781_v18 = vmul.f32 %v9855_v26, %v12317_v27  ;;  %v4835_v12 = vadd.f32 %v4786_v1, %v9864_v44 }
 0x3d5   :  { %v6498_v49 = vpop.eup %6497  ;;  %v4600_v10 = vadd.f32 %v10713_v52, %v4460_v4  ;;  %v4599_v14 = vadd.f32 %v10713_v52, %v4457_v29  ;;  %v4878_v29 = vmax.f32 %v4829_v28, 0.0 }
 0x3d6   :  { %v6500_v19 = vpop.eup %6499  ;;  %4692 = vst.msk [vmem:[%s11865_s14] sm:$0xff] %vm4187_vm1, %v6498_v49  ;;  %v4830_v49 = vadd.f32 %v4781_v18, %v9864_v44  ;;  %v4884_v18 = vmax.f32 %v4835_v12, 0.0 }
 0x3d7   :  { %4236 = vst.msk [vmem:[%s11864_s13 + $0x180] sm:$0xff] %vm4187_vm1, %v6500_v19  ;;  %6509 = vtanh.f32 %v4600_v10  ;;  %5032 = vadd.xlane.f32.xlu1 %v5031_v11  ;;  %5029 = vadd.xlane.f32.xlu0 %v5028_v41  ;;  %v4877_v11 = vmax.f32 %v4828_v25, 0.0  ;;  %v4831_v41 = vadd.f32 %v4782_v0, %v9864_v44  ;;  %v12319_v10 = vld [vmem:[#allocation157_spill] sm:$0xff] }
 0x3d8   :  { %6511 = vtanh.f32 %v4599_v14  ;;  %v4466_v23 = vpop.xlane.xlu1 %4465  ;;  %v4463_v46 = vpop.xlane.xlu0 %4462  ;;  %v4783_v14 = vmul.f32 %v9855_v26, %v12319_v10  ;;  %v12321_v19 = vld [vmem:[#allocation161_spill] sm:$0xff]  ;;  %v4879_v63 = vmax.f32 %v4830_v49, 0.0  ;;  %v12327_v49 = vld [vmem:[#allocation87_spill] sm:$0xff] }
 0x3d9   :  { %v6502_v16 = vpop.eup %6501  ;;  %v4602_v33 = vadd.f32 %v10713_v52, %v4466_v23  ;;  %v4601_v58 = vadd.f32 %v10713_v52, %v4463_v46  ;;  %v4785_v8 = vmul.f32 %v9855_v26, %v12321_v19  ;;  %v5055_v46 = vsel %vm2682_vm0, %v4932_v17, 0.0 }
 0x3da   :  { %v6504_v15 = vpop.eup %6503  ;;  %4694 = vst.msk [vmem:[%s11865_s14 + $0x10] sm:$0xff] %vm4187_vm1, %v6502_v16  ;;  %v4832_v45 = vadd.f32 %v4783_v14, %v9864_v44  ;;  %v4935_v3 = vmul.f32 %v10484_v30, %v4879_v63  ;;  %v5247_v10 = vmul.f32 %v9855_v26, %v12327_v49 }
 0x3db   :  { %4693 = vst.msk [vmem:[%s11865_s14 + $0x8] sm:$0xff] %vm4187_vm1, %v6504_v15  ;;  %6513 = vtanh.f32 %v4602_v33  ;;  %5038 = vadd.xlane.f32.xlu1 %v5037_v54  ;;  %5035 = vadd.xlane.f32.xlu0 %v5034_v20  ;;  %v4934_v15 = vmul.f32 %v10484_v30, %v4878_v29  ;;  %v4933_v54 = vmul.f32 %v10484_v30, %v4877_v11  ;;  %v4880_v20 = vmax.f32 %v4831_v41, 0.0  ;;  %v12326_v11 = vld [vmem:[#allocation83_spill] sm:$0xff] }
 0x3dc   :  { %6515 = vtanh.f32 %v4601_v58  ;;  %v4472_v60 = vpop.xlane.xlu1 %4471  ;;  %v4469_v37 = vpop.xlane.xlu0 %4468  ;;  %v4833_v58 = vadd.f32 %v4784_v6, %v9864_v44  ;;  %v4834_v24 = vadd.f32 %v4785_v8, %v9864_v44  ;;  %v4881_v34 = vmax.f32 %v4832_v45, 0.0  ;;  %v12329_v45 = vld [vmem:[#allocation90_spill] sm:$0xff] }
 0x3dd   :  { %v6506_v32 = vpop.eup %6505  ;;  %v4604_v50 = vadd.f32 %v10713_v52, %v4472_v60  ;;  %v4603_v61 = vadd.f32 %v10713_v52, %v4469_v37  ;;  %v4936_v39 = vmul.f32 %v10484_v30, %v4880_v20  ;;  %v5245_v41 = vmul.f32 %v9855_v26, %v12326_v11 }
 0x3de   :  { %v6508_v56 = vpop.eup %6507  ;;  %4696 = vst.msk [vmem:[%s11865_s14 + $0x20] sm:$0xff] %vm4187_vm1, %v6506_v32  ;;  %v4882_v21 = vmax.f32 %v4833_v58, 0.0  ;;  %v4883_v7 = vmax.f32 %v4834_v24, 0.0  ;;  %v4937_v43 = vmul.f32 %v10484_v30, %v4881_v34  ;;  %v4940_v6 = vmul.f32 %v10484_v30, %v4884_v18 }
 0x3df   :  { %4695 = vst.msk [vmem:[%s11865_s14 + $0x18] sm:$0xff] %vm4187_vm1, %v6508_v56  ;;  %6517 = vtanh.f32 %v4604_v50  ;;  %5044 = vadd.xlane.f32.xlu1 %v5043_v59  ;;  %5041 = vadd.xlane.f32.xlu0 %v5040_v35  ;;  %v5061_v50 = vsel %vm2682_vm0, %v4934_v15, 0.0  ;;  %v12323_v56 = vld [vmem:[#allocation165_spill] sm:$0xff]  ;;  %v12324_v35 = vld [vmem:[#allocation167_spill] sm:$0xff]  ;;  %v5296_v63 = vadd.f32 %v5247_v10, %v9864_v44 }
 0x3e0   :  { %6519 = vtanh.f32 %v4603_v61  ;;  %v4478_v48 = vpop.xlane.xlu1 %4477  ;;  %v4475_v9 = vpop.xlane.xlu0 %4474  ;;  %v5058_v61 = vsel %vm2682_vm0, %v4933_v54, 0.0  ;;  %v4787_v59 = vmul.f32 %v9855_v26, %v12323_v56  ;;  %v4788_v28 = vmul.f32 %v9855_v26, %v12324_v35 }
 0x3e1   :  { %v6510_v13 = vpop.eup %6509  ;;  %v4606_v55 = vadd.f32 %v10713_v52, %v4478_v48  ;;  %v4605_v2 = vadd.f32 %v10713_v52, %v4475_v9  ;;  %v4938_v17 = vmul.f32 %v10484_v30, %v4882_v21  ;;  %v4939_v19 = vmul.f32 %v10484_v30, %v4883_v7 }
 0x3e2   :  { %v6512_v4 = vpop.eup %6511  ;;  %4698 = vst.msk [vmem:[%s11865_s14 + $0x30] sm:$0xff] %vm4187_vm1, %v6510_v13  ;;  %v5079_v20 = vsel %vm2682_vm0, %v4940_v6, 0.0 }
 0x3e3   :  { %4697 = vst.msk [vmem:[%s11865_s14 + $0x28] sm:$0xff] %vm4187_vm1, %v6512_v4  ;;  %6521 = vtanh.f32 %v4606_v55  ;;  %5050 = vadd.xlane.f32.xlu1 %v5049_v5  ;;  %5047 = vadd.xlane.f32.xlu0 %v5046_v40  ;;  %v5067_v55 = vsel %vm2682_vm0, %v4936_v39, 0.0  ;;  %v4837_v5 = vadd.f32 %v4788_v28, %v9864_v44  ;;  %v4836_v40 = vadd.f32 %v4787_v59, %v9864_v44  ;;  %v12325_v4 = vld [vmem:[#allocation169_spill] sm:$0xff] }
 0x3e4   :  { %6523 = vtanh.f32 %v4605_v2  ;;  %v4484_v53 = vpop.xlane.xlu1 %4483  ;;  %v4481_v23 = vpop.xlane.xlu0 %4480  ;;  %v5064_v2 = vsel %vm2682_vm0, %v4935_v3, 0.0  ;;  %v4789_v29 = vmul.f32 %v9855_v26, %v12325_v4  ;;  %v5076_v24 = vsel %vm2682_vm0, %v4939_v19, 0.0 }
 0x3e5   :  { %v6514_v31 = vpop.eup %6513  ;;  %v4608_v16 = vadd.f32 %v10713_v52, %v4484_v53  ;;  %v4607_v33 = vadd.f32 %v10713_v52, %v4481_v23  ;;  %v5073_v53 = vsel %vm2682_vm0, %v4938_v17, 0.0  ;;  %v5070_v23 = vsel %vm2682_vm0, %v4937_v43, 0.0 }
 0x3e6   :  { %v6516_v36 = vpop.eup %6515  ;;  %4700 = vst.msk [vmem:[%s11865_s14 + $0x40] sm:$0xff] %vm4187_vm1, %v6514_v31  ;;  %v4885_v31 = vmax.f32 %v4836_v40, 0.0  ;;  %v4838_v30 = vadd.f32 %v4789_v29, %v9864_v44  ;;  %v5345_v59 = vmax.f32 %v5296_v63, 0.0 }
 0x3e7   :  { %4699 = vst.msk [vmem:[%s11865_s14 + $0x38] sm:$0xff] %vm4187_vm1, %v6516_v36  ;;  %6525 = vtanh.f32 %v4608_v16  ;;  %5056 = vadd.xlane.f32.xlu1 %v5055_v46  ;;  %5053 = vadd.xlane.f32.xlu0 %v5052_v42  ;;  %v4886_v42 = vmax.f32 %v4837_v5, 0.0  ;;  %v5294_v16 = vadd.f32 %v5245_v41, %v9864_v44  ;;  %v5249_v36 = vmul.f32 %v9855_v26, %v12329_v45 }
 0x3e8   :  { %6527 = vtanh.f32 %v4607_v33  ;;  %v4490_v22 = vpop.xlane.xlu1 %4489  ;;  %v4487_v51 = vpop.xlane.xlu0 %4486  ;;  %v12328_v33 = vld [vmem:[#allocation85_spill] sm:$0xff] }
 0x3e9   :  { %v6518_v57 = vpop.eup %6517  ;;  %v4610_v60 = vadd.f32 %v10713_v52, %v4490_v22  ;;  %v4609_v37 = vadd.f32 %v10713_v52, %v4487_v51  ;;  %v5246_v58 = vmul.f32 %v9855_v26, %v12328_v33  ;;  %v5298_v35 = vadd.f32 %v5249_v36, %v9864_v44 }
 0x3ea   :  { %v6520_v32 = vpop.eup %6519  ;;  %4702 = vst.msk [vmem:[%s11865_s14 + $0x50] sm:$0xff] %vm4187_vm1, %v6518_v57 }
 0x3eb   :  { %4701 = vst.msk [vmem:[%s11865_s14 + $0x48] sm:$0xff] %vm4187_vm1, %v6520_v32  ;;  %6529 = vtanh.f32 %v4610_v60  ;;  %5062 = vadd.xlane.f32.xlu1 %v5061_v50  ;;  %5059 = vadd.xlane.f32.xlu0 %v5058_v61  ;;  %v5295_v57 = vadd.f32 %v5246_v58, %v9864_v44  ;;  %v5343_v32 = vmax.f32 %v5294_v16, 0.0  ;;  %v4887_v50 = vmax.f32 %v4838_v30, 0.0  ;;  %v12330_v61 = vld [vmem:[#allocation88_spill] sm:$0xff]  ;;  %v12336_v30 = vld [vmem:[#allocation102_spill] sm:$0xff] }
 0x3ec   :  { %6531 = vtanh.f32 %v4609_v37  ;;  %v4496_v25 = vpop.xlane.xlu1 %4495  ;;  %v4493_v27 = vpop.xlane.xlu0 %4492  ;;  %v10963_v37 = vld [vmem:[%s11862_s11] ss:$0 sm:$0xff]  ;;  %v5248_v39 = vmul.f32 %v9855_v26, %v12330_v61  ;;  %v5347_v11 = vmax.f32 %v5298_v35, 0.0  ;;  %v5255_v33 = vmul.f32 %v9855_v26, %v12336_v30 }
 0x3ed   :  { %v6522_v0 = vpop.eup %6521  ;;  %v4612_v48 = vadd.f32 %v10713_v52, %v4496_v25  ;;  %v4611_v9 = vadd.f32 %v10713_v52, %v4493_v27  ;;  %v4942_v21 = vmul.f32 %v10963_v37, %v4886_v42  ;;  %v4941_v34 = vmul.f32 %v10963_v37, %v4885_v31  ;;  %v12335_v31 = vld [vmem:[#allocation100_spill] sm:$0xff] }
 0x3ee   :  { %v6524_v13 = vpop.eup %6523  ;;  %4704 = vst.msk [vmem:[%s11865_s14 + $0x60] sm:$0xff] %vm4187_vm1, %v6522_v0  ;;  %v5344_v18 = vmax.f32 %v5295_v57, 0.0  ;;  %v5297_v7 = vadd.f32 %v5248_v39, %v9864_v44  ;;  %v5399_v17 = vmul.f32 %v10963_v37, %v5343_v32  ;;  %v4943_v43 = vmul.f32 %v10963_v37, %v4887_v50 }
 0x3ef   :  { %4703 = vst.msk [vmem:[%s11865_s14 + $0x58] sm:$0xff] %vm4187_vm1, %v6524_v13  ;;  %6533 = vtanh.f32 %v4612_v48  ;;  %5068 = vadd.xlane.f32.xlu1 %v5067_v55  ;;  %5065 = vadd.xlane.f32.xlu0 %v5064_v2  ;;  %v5085_v48 = vsel %vm2682_vm0, %v4942_v21, 0.0  ;;  %v12331_v13 = vld [vmem:[#allocation92_spill] sm:$0xff]  ;;  %v12332_v2 = vld [vmem:[#allocation94_spill] sm:$0xff]  ;;  %v5401_v29 = vmul.f32 %v10963_v37, %v5345_v59  ;;  %v5254_v16 = vmul.f32 %v9855_v26, %v12335_v31 }
 0x3f0   :  { %6535 = vtanh.f32 %v4611_v9  ;;  %v4502_v14 = vpop.xlane.xlu1 %4501  ;;  %v4499_v47 = vpop.xlane.xlu0 %4498  ;;  %v5082_v9 = vsel %vm2682_vm0, %v4941_v34, 0.0  ;;  %v5250_v55 = vmul.f32 %v9855_v26, %v12331_v13  ;;  %v5251_v5 = vmul.f32 %v9855_v26, %v12332_v2 }
 0x3f1   :  { %v6526_v8 = vpop.eup %6525  ;;  %v4614_v62 = vadd.f32 %v10713_v52, %v4502_v14  ;;  %v4613_v1 = vadd.f32 %v10713_v52, %v4499_v47  ;;  %v5400_v14 = vmul.f32 %v10963_v37, %v5344_v18  ;;  %v5346_v47 = vmax.f32 %v5297_v7, 0.0 }
 0x3f2   :  { %v6528_v46 = vpop.eup %6527  ;;  %4706 = vst.msk [vmem:[%s11865_s14 + $0x70] sm:$0xff] %vm4187_vm1, %v6526_v8  ;;  %v5448_v19 = vsel %vm2682_vm0, %v5399_v17, 0.0  ;;  %v5088_v8 = vsel %vm2682_vm0, %v4943_v43, 0.0  ;;  %v5454_v36 = vsel %vm2682_vm0, %v5401_v29, 0.0  ;;  %v5304_v50 = vadd.f32 %v5255_v33, %v9864_v44  ;;  %v12339_v43 = vld [vmem:[#allocation110_spill] sm:$0xff] }
 0x3f3   :  { %4705 = vst.msk [vmem:[%s11865_s14 + $0x68] sm:$0xff] %vm4187_vm1, %v6528_v46  ;;  %6537 = vtanh.f32 %v4614_v62  ;;  %5074 = vadd.xlane.f32.xlu1 %v5073_v53  ;;  %5071 = vadd.xlane.f32.xlu0 %v5070_v23  ;;  %v5300_v62 = vadd.f32 %v5251_v5, %v9864_v44  ;;  %v12333_v53 = vld [vmem:[#allocation96_spill] sm:$0xff]  ;;  %v12334_v46 = vld [vmem:[#allocation98_spill] sm:$0xff]  ;;  %v5303_v61 = vadd.f32 %v5254_v16, %v9864_v44 }
 0x3f4   :  { %6539 = vtanh.f32 %v4613_v1  ;;  %v4508_v15 = vpop.xlane.xlu1 %4507  ;;  %v4505_v54 = vpop.xlane.xlu0 %4504  ;;  %v5299_v1 = vadd.f32 %v5250_v55, %v9864_v44  ;;  %v5252_v23 = vmul.f32 %v9855_v26, %v12333_v53  ;;  %v5253_v42 = vmul.f32 %v9855_v26, %v12334_v46 }
 0x3f5   :  { %v6530_v22 = vpop.eup %6529  ;;  %v4616_v51 = vadd.f32 %v10713_v52, %v4508_v15  ;;  %v4615_v12 = vadd.f32 %v10713_v52, %v4505_v54  ;;  %v5403_v15 = vmul.f32 %v10963_v37, %v5347_v11  ;;  %v5349_v57 = vmax.f32 %v5300_v62, 0.0 }
 0x3f6   :  { %v6532_v60 = vpop.eup %6531  ;;  %4708 = vst.msk [vmem:[%s11865_s14 + $0x80] sm:$0xff] %vm4187_vm1, %v6530_v22  ;;  %v5451_v22 = vsel %vm2682_vm0, %v5400_v14, 0.0  ;;  %v5301_v21 = vadd.f32 %v5252_v23, %v9864_v44  ;;  %v5259_v13 = vmul.f32 %v9855_v26, %v12339_v43  ;;  %v5353_v5 = vmax.f32 %v5304_v50, 0.0 }
 0x3f7   :  { %4707 = vst.msk [vmem:[%s11865_s14 + $0x78] sm:$0xff] %vm4187_vm1, %v6532_v60  ;;  %6541 = vtanh.f32 %v4616_v51  ;;  %5080 = vadd.xlane.f32.xlu1 %v5079_v20  ;;  %5077 = vadd.xlane.f32.xlu0 %v5076_v24  ;;  %v5302_v51 = vadd.f32 %v5253_v42, %v9864_v44  ;;  %v5402_v24 = vmul.f32 %v10963_v37, %v5346_v47  ;;  %v5348_v60 = vmax.f32 %v5299_v1, 0.0  ;;  %v12341_v1 = vld [vmem:[#allocation112_spill] sm:$0xff] }
 0x3f8   :  { %6543 = vtanh.f32 %v4615_v12  ;;  %v4514_v3 = vpop.xlane.xlu1 %4513  ;;  %v4511_v56 = vpop.xlane.xlu0 %4510  ;;  %v5460_v59 = vsel %vm2682_vm0, %v5403_v15, 0.0  ;;  %v5350_v7 = vmax.f32 %v5301_v21, 0.0  ;;  %v5261_v53 = vmul.f32 %v9855_v26, %v12341_v1 }
 0x3f9   :  { %v6534_v28 = vpop.eup %6533  ;;  %v4618_v25 = vadd.f32 %v10713_v52, %v4514_v3  ;;  %v4617_v27 = vadd.f32 %v10713_v52, %v4511_v56  ;;  %v5351_v35 = vmax.f32 %v5302_v51, 0.0  ;;  %v5404_v18 = vmul.f32 %v10963_v37, %v5348_v60 }
 0x3fa   :  { %v6536_v0 = vpop.eup %6535  ;;  %4710 = vst.msk [vmem:[%s11865_s14 + $0x90] sm:$0xff] %vm4187_vm1, %v6534_v28  ;;  %v5409_v42 = vmul.f32 %v10963_v37, %v5353_v5  ;;  %v5308_v31 = vadd.f32 %v5259_v13, %v9864_v44  ;;  %v5310_v60 = vadd.f32 %v5261_v53, %v9864_v44 }
 0x3fb   :  { %4709 = vst.msk [vmem:[%s11865_s14 + $0x88] sm:$0xff] %vm4187_vm1, %v6536_v0  ;;  %6545 = vtanh.f32 %v4618_v25  ;;  %5086 = vadd.xlane.f32.xlu1 %v5085_v48  ;;  %5083 = vadd.xlane.f32.xlu0 %v5082_v9  ;;  %v5457_v25 = vsel %vm2682_vm0, %v5402_v24, 0.0  ;;  %v12337_v0 = vld [vmem:[#allocation104_spill] sm:$0xff]  ;;  %v12338_v9 = vld [vmem:[#allocation106_spill] sm:$0xff]  ;;  %v5463_v47 = vsel %vm2682_vm0, %v5404_v18, 0.0 }
 0x3fc   :  { %6547 = vtanh.f32 %v4617_v27  ;;  %v4520_v40 = vpop.xlane.xlu1 %4519  ;;  %v4517_v4 = vpop.xlane.xlu0 %4516  ;;  %v5405_v27 = vmul.f32 %v10963_v37, %v5349_v57  ;;  %v5256_v48 = vmul.f32 %v9855_v26, %v12337_v0  ;;  %v5257_v17 = vmul.f32 %v9855_v26, %v12338_v9 }
 0x3fd   :  { %v6538_v41 = vpop.eup %6537  ;;  %v4620_v49 = vadd.f32 %v10713_v52, %v4520_v40  ;;  %v4619_v10 = vadd.f32 %v10713_v52, %v4517_v4  ;;  %v5352_v40 = vmax.f32 %v5303_v61, 0.0  ;;  %v5357_v57 = vmax.f32 %v5308_v31, 0.0 }
 0x3fe   :  { %v6540_v6 = vpop.eup %6539  ;;  %4712 = vst.msk [vmem:[%s11865_s14 + $0xa0] sm:$0xff] %vm4187_vm1, %v6538_v41  ;;  %v5407_v41 = vmul.f32 %v10963_v37, %v5351_v35  ;;  %v5466_v14 = vsel %vm2682_vm0, %v5405_v27, 0.0  ;;  %v5478_v50 = vsel %vm2682_vm0, %v5409_v42, 0.0  ;;  %v12344_v27 = vld [vmem:[#allocation113_spill] sm:$0xff]  ;;  %v5359_v9 = vmax.f32 %v5310_v60, 0.0 }
 0x3ff   :  { %4711 = vst.msk [vmem:[%s11865_s14 + $0x98] sm:$0xff] %vm4187_vm1, %v6540_v6  ;;  %6549 = vtanh.f32 %v4620_v49  ;;  %5449 = vadd.xlane.f32.xlu1 %v5448_v19  ;;  %5089 = vadd.xlane.f32.xlu0 %v5088_v8  ;;  %v5306_v49 = vadd.f32 %v5257_v17, %v9864_v44  ;;  %v5406_v6 = vmul.f32 %v10963_v37, %v5350_v7  ;;  %v12340_v8 = vld [vmem:[#allocation108_spill] sm:$0xff] }
 0x400   :  { %6551 = vtanh.f32 %v4619_v10  ;;  %v4526_v58 = vpop.xlane.xlu1 %4525  ;;  %v4523_v45 = vpop.xlane.xlu0 %4522  ;;  %v5305_v19 = vadd.f32 %v5256_v48, %v9864_v44  ;;  %v5258_v62 = vmul.f32 %v9855_v26, %v12340_v8  ;;  %v5262_v18 = vmul.f32 %v9855_v26, %v12344_v27 }
 0x401   :  { %v6542_v54 = vpop.eup %6541  ;;  %v4622_v20 = vadd.f32 %v10713_v52, %v4526_v58  ;;  %v4621_v63 = vadd.f32 %v10713_v52, %v4523_v45  ;;  %v5472_v58 = vsel %vm2682_vm0, %v5407_v41, 0.0  ;;  %v5355_v45 = vmax.f32 %v5306_v49, 0.0  ;;  %v12345_v41 = vld [vmem:[#allocation117_spill] sm:$0xff] }
 0x402   :  { %v6544_v12 = vpop.eup %6543  ;;  %4714 = vst.msk [vmem:[%s11865_s14 + $0xb0] sm:$0xff] %vm4187_vm1, %v6542_v54  ;;  %v5469_v15 = vsel %vm2682_vm0, %v5406_v6, 0.0  ;;  %v5408_v54 = vmul.f32 %v10963_v37, %v5352_v40  ;;  %v5413_v48 = vmul.f32 %v10963_v37, %v5357_v57  ;;  %v5264_v49 = vmul.f32 %v9855_v26, %v12345_v41 }
 0x403   :  { %4713 = vst.msk [vmem:[%s11865_s14 + $0xa8] sm:$0xff] %vm4187_vm1, %v6544_v12  ;;  %6553 = vtanh.f32 %v4622_v20  ;;  %5455 = vadd.xlane.f32.xlu1 %v5454_v36  ;;  %5452 = vadd.xlane.f32.xlu0 %v5451_v22  ;;  %v5354_v20 = vmax.f32 %v5305_v19, 0.0  ;;  %v12342_v22 = vld [vmem:[#allocation111_spill] sm:$0xff]  ;;  %v5411_v61 = vmul.f32 %v10963_v37, %v5355_v45  ;;  %v5415_v1 = vmul.f32 %v10963_v37, %v5359_v9 }
 0x404   :  { %6555 = vtanh.f32 %v4621_v63  ;;  %v4532_v34 = vpop.xlane.xlu1 %4531  ;;  %v4529_v32 = vpop.xlane.xlu0 %4528  ;;  %v5307_v63 = vadd.f32 %v5258_v62, %v9864_v44  ;;  %v5260_v51 = vmul.f32 %v9855_v26, %v12342_v22  ;;  %v5490_v62 = vsel %vm2682_vm0, %v5413_v48, 0.0 }
 0x405   :  { %v6546_v39 = vpop.eup %6545  ;;  %v4624_v3 = vadd.f32 %v10713_v52, %v4532_v34  ;;  %v4623_v56 = vadd.f32 %v10713_v52, %v4529_v32  ;;  %v5313_v45 = vadd.f32 %v5264_v49, %v9864_v44 }
 0x406   :  { %v6548_v28 = vpop.eup %6547  ;;  %4716 = vst.msk [vmem:[%s11865_s14 + $0xc0] sm:$0xff] %vm4187_vm1, %v6546_v39  ;;  %v5309_v35 = vadd.f32 %v5260_v51, %v9864_v44  ;;  %v5496_v51 = vsel %vm2682_vm0, %v5415_v1, 0.0 }
 0x407   :  { %4715 = vst.msk [vmem:[%s11865_s14 + $0xb8] sm:$0xff] %vm4187_vm1, %v6548_v28  ;;  %6557 = vtanh.f32 %v4624_v3  ;;  %5461 = vadd.xlane.f32.xlu1 %v5460_v59  ;;  %5458 = vadd.xlane.f32.xlu0 %v5457_v25  ;;  %v5475_v3 = vsel %vm2682_vm0, %v5408_v54, 0.0  ;;  %v5356_v59 = vmax.f32 %v5307_v63, 0.0  ;;  %v12343_v28 = vld [vmem:[#allocation115_spill] sm:$0xff] }
 0x408   :  { %6559 = vtanh.f32 %v4623_v56  ;;  %v4538_v55 = vpop.xlane.xlu1 %4537  ;;  %v4535_v2 = vpop.xlane.xlu0 %4534  ;;  %v5410_v56 = vmul.f32 %v10963_v37, %v5354_v20  ;;  %v5263_v25 = vmul.f32 %v9855_v26, %v12343_v28  ;;  %v12349_v54 = vld [vmem:[#allocation127_spill] sm:$0xff] }
 0x409   :  { %v6550_v4 = vpop.eup %6549  ;;  %v4626_v29 = vadd.f32 %v10713_v52, %v4538_v55  ;;  %v4625_v11 = vadd.f32 %v10713_v52, %v4535_v2  ;;  %v5484_v55 = vsel %vm2682_vm0, %v5411_v61, 0.0  ;;  %v5269_v20 = vmul.f32 %v9855_v26, %v12349_v54 }
 0x40a   :  { %v6552_v10 = vpop.eup %6551  ;;  %4718 = vst.msk [vmem:[%s11865_s14 + $0xd0] sm:$0xff] %vm4187_vm1, %v6550_v4  ;;  %v5312_v2 = vadd.f32 %v5263_v25, %v9864_v44  ;;  %v5481_v40 = vsel %vm2682_vm0, %v5410_v56, 0.0  ;;  %v5412_v4 = vmul.f32 %v10963_v37, %v5356_v59  ;;  %v12350_v56 = vld [vmem:[#allocation125_spill] sm:$0xff] }
 0x40b   :  { %4717 = vst.msk [vmem:[%s11865_s14 + $0xc8] sm:$0xff] %vm4187_vm1, %v6552_v10  ;;  %6561 = vtanh.f32 %v4626_v29  ;;  %5467 = vadd.xlane.f32.xlu1 %v5466_v14  ;;  %5464 = vadd.xlane.f32.xlu0 %v5463_v47  ;;  %v5358_v29 = vmax.f32 %v5309_v35, 0.0  ;;  %v12346_v10 = vld [vmem:[#allocation119_spill] sm:$0xff]  ;;  %v5268_v59 = vmul.f32 %v9855_v26, %v12350_v56  ;;  %v5318_v27 = vadd.f32 %v5269_v20, %v9864_v44 }
 0x40c   :  { %6563 = vtanh.f32 %v4625_v11  ;;  %v4544_v23 = vpop.xlane.xlu1 %4543  ;;  %v4541_v46 = vpop.xlane.xlu0 %4540  ;;  %v5311_v11 = vadd.f32 %v5262_v18, %v9864_v44  ;;  %v5265_v14 = vmul.f32 %v9855_v26, %v12346_v10  ;;  %v12347_v47 = vld [vmem:[#allocation123_spill] sm:$0xff]  ;;  %v5361_v42 = vmax.f32 %v5312_v2, 0.0 }
 0x40d   :  { %v6554_v16 = vpop.eup %6553  ;;  %v4628_v30 = vadd.f32 %v10713_v52, %v4544_v23  ;;  %v4627_v33 = vadd.f32 %v10713_v52, %v4541_v46  ;;  %v5267_v6 = vmul.f32 %v9855_v26, %v12347_v47  ;;  %v5317_v2 = vadd.f32 %v5268_v59, %v9864_v44 }
 0x40e   :  { %v6556_v36 = vpop.eup %6555  ;;  %4720 = vst.msk [vmem:[%s11865_s14 + $0xe0] sm:$0xff] %vm4187_vm1, %v6554_v16  ;;  %v5314_v31 = vadd.f32 %v5265_v14, %v9864_v44  ;;  %v5367_v14 = vmax.f32 %v5318_v27, 0.0 }
 0x40f   :  { %4719 = vst.msk [vmem:[%s11865_s14 + $0xd8] sm:$0xff] %vm4187_vm1, %v6556_v36  ;;  %6565 = vtanh.f32 %v4628_v30  ;;  %5473 = vadd.xlane.f32.xlu1 %v5472_v58  ;;  %5470 = vadd.xlane.f32.xlu0 %v5469_v15  ;;  %v5487_v30 = vsel %vm2682_vm0, %v5412_v4, 0.0  ;;  %v5360_v58 = vmax.f32 %v5311_v11, 0.0  ;;  %v12348_v36 = vld [vmem:[#allocation121_spill] sm:$0xff] }
 0x410   :  { %6567 = vtanh.f32 %v4627_v33  ;;  %v4550_v12 = vpop.xlane.xlu1 %4549  ;;  %v4547_v24 = vpop.xlane.xlu0 %4546  ;;  %v5414_v33 = vmul.f32 %v10963_v37, %v5358_v29  ;;  %v5266_v15 = vmul.f32 %v9855_v26, %v12348_v36  ;;  %v12353_v29 = vld [vmem:[#allocation133_spill] sm:$0xff] }
 0x411   :  { %v6558_v21 = vpop.eup %6557  ;;  %v4630_v34 = vadd.f32 %v10713_v52, %v4550_v12  ;;  %v4629_v32 = vadd.f32 %v10713_v52, %v4547_v24  ;;  %v5316_v12 = vadd.f32 %v5267_v6, %v9864_v44  ;;  %v5416_v61 = vmul.f32 %v10963_v37, %v5360_v58  ;;  %v6799_v6 = vld [vmem:[#allocation2] ss:$0 sm:$0xff] }
 0x412   :  { %v6560_v39 = vpop.eup %6559  ;;  %4722 = vst.msk [vmem:[%s11865_s14 + $0xf0] sm:$0xff] %vm4187_vm1, %v6558_v21  ;;  %v5417_v21 = vmul.f32 %v10963_v37, %v5361_v42  ;;  %v5273_v11 = vmul.f32 %v9855_v26, %v12353_v29  ;;  %v5366_v42 = vmax.f32 %v5317_v2, 0.0 }
 0x413   :  { %4721 = vst.msk [vmem:[%s11865_s14 + $0xe8] sm:$0xff] %vm4187_vm1, %v6560_v39  ;;  %6569 = vtanh.f32 %v4630_v34  ;;  %5479 = vadd.xlane.f32.xlu1 %v5478_v50  ;;  %5476 = vadd.xlane.f32.xlu0 %v5475_v3  ;;  %v5363_v34 = vmax.f32 %v5314_v31, 0.0  ;;  %v5493_v50 = vsel %vm2682_vm0, %v5414_v33, 0.0  ;;  %v5362_v39 = vmax.f32 %v5313_v45, 0.0 }
 0x414   :  { %6571 = vtanh.f32 %v4629_v32  ;;  %v4556_v7 = vpop.xlane.xlu1 %4555  ;;  %v4553_v0 = vpop.xlane.xlu0 %4552  ;;  %v5315_v3 = vadd.f32 %v5266_v15, %v9864_v44  ;;  %v5365_v25 = vmax.f32 %v5316_v12, 0.0  ;;  %v5502_v48 = vsel %vm2682_vm0, %v5417_v21, 0.0 }
 0x415   :  { %v6562_v17 = vpop.eup %6561  ;;  %v4632_v43 = vadd.f32 %v10713_v52, %v4556_v7  ;;  %v4631_v13 = vadd.f32 %v10713_v52, %v4553_v0  ;;  %v5419_v9 = vmul.f32 %v10963_v37, %v5363_v34  ;;  %v5423_v45 = vmul.f32 %v10963_v37, %v5367_v14  ;;  %v12355_v34 = vld [vmem:[#allocation134_spill] sm:$0xff] }
 0x416   :  { %v6564_v5 = vpop.eup %6563  ;;  %4724 = vst.msk [vmem:[%s11865_s14 + $0x100] sm:$0xff] %vm4187_vm1, %v6562_v17  ;;  %v5421_v10 = vmul.f32 %v10963_v37, %v5365_v25  ;;  %v5322_v36 = vadd.f32 %v5273_v11, %v9864_v44 }
 0x417   :  { %4723 = vst.msk [vmem:[%s11865_s14 + $0xf8] sm:$0xff] %vm4187_vm1, %v6564_v5  ;;  %6573 = vtanh.f32 %v4632_v43  ;;  %5485 = vadd.xlane.f32.xlu1 %v5484_v55  ;;  %5482 = vadd.xlane.f32.xlu0 %v5481_v40  ;;  %v5499_v43 = vsel %vm2682_vm0, %v5416_v61, 0.0  ;;  %v5364_v55 = vmax.f32 %v5315_v3, 0.0  ;;  %v12351_v5 = vld [vmem:[#allocation129_spill] sm:$0xff]  ;;  %v12352_v40 = vld [vmem:[#allocation131_spill] sm:$0xff] }
 0x418   :  { %6575 = vtanh.f32 %v4631_v13  ;;  %v4562_v19 = vpop.xlane.xlu1 %4561  ;;  %v4559_v8 = vpop.xlane.xlu0 %4558  ;;  %v5418_v13 = vmul.f32 %v10963_v37, %v5362_v39  ;;  %v5271_v4 = vmul.f32 %v9855_v26, %v12352_v40  ;;  %v12357_v39 = vld [vmem:[#allocation138_spill] sm:$0xff] }
 0x419   :  { %v6566_v53 = vpop.eup %6565  ;;  %v4634_v23 = vadd.f32 %v10713_v52, %v4562_v19  ;;  %v4633_v46 = vadd.f32 %v10713_v52, %v4559_v8  ;;  %v5277_v3 = vmul.f32 %v9855_v26, %v12357_v39 }
 0x41a   :  { %v6568_v16 = vpop.eup %6567  ;;  %4726 = vst.msk [vmem:[%s11865_s14 + $0x110] sm:$0xff] %vm4187_vm1, %v6566_v53  ;;  %v5320_v1 = vadd.f32 %v5271_v4, %v9864_v44 }
 0x41b   :  { %4725 = vst.msk [vmem:[%s11865_s14 + $0x108] sm:$0xff] %vm4187_vm1, %v6568_v16  ;;  %6577 = vtanh.f32 %v4634_v23  ;;  %5491 = vadd.xlane.f32.xlu1 %v5490_v62  ;;  %5488 = vadd.xlane.f32.xlu0 %v5487_v30  ;;  %v5508_v62 = vsel %vm2682_vm0, %v5419_v9, 0.0  ;;  %v5505_v23 = vsel %vm2682_vm0, %v5418_v13, 0.0  ;;  %v12354_v16 = vld [vmem:[#allocation132_spill] sm:$0xff]  ;;  %v5326_v11 = vadd.f32 %v5277_v3, %v9864_v44 }
 0x41c   :  { %6579 = vtanh.f32 %v4633_v46  ;;  %v4568_v63 = vpop.xlane.xlu1 %4567  ;;  %v4565_v22 = vpop.xlane.xlu0 %4564  ;;  %v5420_v46 = vmul.f32 %v10963_v37, %v5364_v55  ;;  %v5272_v30 = vmul.f32 %v9855_v26, %v12354_v16  ;;  %v12358_v55 = vld [vmem:[#allocation136_spill] sm:$0xff] }
 0x41d   :  { %v6570_v24 = vpop.eup %6569  ;;  %v4636_v57 = vadd.f32 %v10713_v52, %v4568_v63  ;;  %v4635_v60 = vadd.f32 %v10713_v52, %v4565_v22  ;;  %v5514_v63 = vsel %vm2682_vm0, %v5421_v10, 0.0  ;;  %v5369_v22 = vmax.f32 %v5320_v1, 0.0 }
 0x41e   :  { %v6572_v32 = vpop.eup %6571  ;;  %4728 = vst.msk [vmem:[%s11865_s14 + $0x120] sm:$0xff] %vm4187_vm1, %v6570_v24  ;;  %v5511_v12 = vsel %vm2682_vm0, %v5420_v46, 0.0  ;;  %v11219_v24 = vld [vmem:[#allocation2] ss:$0 sm:$0xff]  ;;  %v5321_v21 = vadd.f32 %v5272_v30, %v9864_v44  ;;  %v5276_v2 = vmul.f32 %v9855_v26, %v12358_v55 }
 0x41f   :  { %4727 = vst.msk [vmem:[%s11865_s14 + $0x118] sm:$0xff] %vm4187_vm1, %v6572_v32  ;;  %6581 = vtanh.f32 %v4636_v57  ;;  %5497 = vadd.xlane.f32.xlu1 %v5496_v51  ;;  %5494 = vadd.xlane.f32.xlu0 %v5493_v50  ;;  %v5422_v57 = vmul.f32 %v10963_v37, %v5366_v42  ;;  %v5274_v32 = vmul.f32 %v9855_v26, %v12355_v34  ;;  %v12356_v50 = vld [vmem:[#allocation135_spill] sm:$0xff] }
 0x420   :  { %6583 = vtanh.f32 %v4635_v60  ;;  %v4574_v35 = vpop.xlane.xlu1 %4573  ;;  %v4571_v28 = vpop.xlane.xlu0 %4570  ;;  %v5275_v61 = vmul.f32 %v9855_v26, %v12356_v50  ;;  %v5325_v1 = vadd.f32 %v5276_v2, %v9864_v44 }
 0x421   :  { %v6574_v18 = vpop.eup %6573  ;;  %v4638_v7 = vadd.f32 %v10713_v52, %v4574_v35  ;;  %v4637_v0 = vadd.f32 %v10713_v52, %v4571_v28  ;;  %v5270_v52 = vmul.f32 %v9855_v26, %v12351_v5  ;;  %v5520_v35 = vsel %vm2682_vm0, %v5423_v45, 0.0  ;;  %v12359_v5 = vld [vmem:[#allocation142_spill] sm:$0xff] }
 0x422   :  { %v6576_v17 = vpop.eup %6575  ;;  %4730 = vst.msk [vmem:[%s11865_s14 + $0x130] sm:$0xff] %vm4187_vm1, %v6574_v18  ;;  %v5371_v28 = vmax.f32 %v5322_v36, 0.0  ;;  %v5517_v9 = vsel %vm2682_vm0, %v5422_v57, 0.0  ;;  %v5323_v13 = vadd.f32 %v5274_v32, %v9864_v44  ;;  %v12362_v57 = vld [vmem:[#allocation144_spill] sm:$0xff] }
 0x423   :  { %4729 = vst.msk [vmem:[%s11865_s14 + $0x128] sm:$0xff] %vm4187_vm1, %v6576_v17  ;;  %6585 = vtanh.f32 %v4638_v7  ;;  %5503 = vadd.xlane.f32.xlu1 %v5502_v48  ;;  %5500 = vadd.xlane.f32.xlu0 %v5499_v43  ;;  %v5319_v31 = vadd.f32 %v5270_v52, %v9864_v44  ;;  %v5425_v7 = vmul.f32 %v10963_v37, %v5369_v22  ;;  %v5370_v43 = vmax.f32 %v5321_v21, 0.0 }
 0x424   :  { %6587 = vtanh.f32 %v4637_v0  ;;  %v4580_v41 = vpop.xlane.xlu1 %4579  ;;  %v4577_v49 = vpop.xlane.xlu0 %4576  ;;  %v5324_v0 = vadd.f32 %v5275_v61, %v9864_v44  ;;  %v5279_v52 = vmul.f32 %v9855_v26, %v12359_v5  ;;  %v5427_v29 = vmul.f32 %v10963_v37, %v5371_v28 }
 0x425   :  { %v6578_v47 = vpop.eup %6577  ;;  %v4640_v19 = vadd.f32 %v6799_v6, %v4580_v41  ;;  %v4639_v8 = vadd.f32 %v6799_v6, %v4577_v49  ;;  %v5368_v60 = vmax.f32 %v5319_v31, 0.0  ;;  %v5526_v14 = vsel %vm2682_vm0, %v5425_v7, 0.0  ;;  %v12363_v7 = vld [vmem:[#allocation148_spill] sm:$0xff] }
 0x426   :  { %v6580_v53 = vpop.eup %6579  ;;  %4732 = vst.msk [vmem:[%s11865_s14 + $0x140] sm:$0xff] %vm4187_vm1, %v6578_v47  ;;  %v5373_v47 = vmax.f32 %v5324_v0, 0.0  ;;  %v5375_v31 = vmax.f32 %v5326_v11, 0.0  ;;  %v5328_v16 = vadd.f32 %v5279_v52, %v9864_v44  ;;  %v5532_v45 = vsel %vm2682_vm0, %v5427_v29, 0.0 }
 0x427   :  { %4731 = vst.msk [vmem:[%s11865_s14 + $0x138] sm:$0xff] %vm4187_vm1, %v6580_v53  ;;  %6589 = vtanh.f32 %v4640_v19  ;;  %5509 = vadd.xlane.f32.xlu1 %v5508_v62  ;;  %5506 = vadd.xlane.f32.xlu0 %v5505_v23  ;;  %v5424_v17 = vmul.f32 %v10963_v37, %v5368_v60  ;;  %v5372_v62 = vmax.f32 %v5323_v13, 0.0  ;;  %v12360_v53 = vld [vmem:[#allocation140_spill] sm:$0xff]  ;;  %v5280_v60 = vmul.f32 %v9855_v26, %v12362_v57 }
 0x428   :  { %6591 = vtanh.f32 %v4639_v8  ;;  %v4586_v33 = vpop.xlane.xlu1 %4585  ;;  %v4583_v58 = vpop.xlane.xlu0 %4582  ;;  %v5426_v8 = vmul.f32 %v10963_v37, %v5370_v43  ;;  %v5278_v23 = vmul.f32 %v9855_v26, %v12360_v53  ;;  %v5429_v36 = vmul.f32 %v10963_v37, %v5373_v47 }
 0x429   :  { %v6582_v15 = vpop.eup %6581  ;;  %v4642_v54 = vadd.f32 %v6799_v6, %v4586_v33  ;;  %v4641_v20 = vadd.f32 %v6799_v6, %v4583_v58  ;;  %v5523_v19 = vsel %vm2682_vm0, %v5424_v17, 0.0  ;;  %v5431_v32 = vmul.f32 %v10963_v37, %v5375_v31  ;;  %v12365_v17 = vld [vmem:[#allocation154_spill] sm:$0xff] }
 0x42a   :  { %v6584_v51 = vpop.eup %6583  ;;  %4734 = vst.msk [vmem:[%s11865_s14 + $0x150] sm:$0xff] %vm4187_vm1, %v6582_v15  ;;  %v5327_v22 = vadd.f32 %v5278_v23, %v9864_v44  ;;  %v5377_v50 = vmax.f32 %v5328_v16, 0.0  ;;  %v5282_v0 = vmul.f32 %v9855_v26, %v12363_v7  ;;  %v5285_v43 = vmul.f32 %v9855_v26, %v12365_v17 }
 0x42b   :  { %4733 = vst.msk [vmem:[%s11865_s14 + $0x148] sm:$0xff] %vm4187_vm1, %v6584_v51  ;;  %6593 = vtanh.f32 %v4642_v54  ;;  %5515 = vadd.xlane.f32.xlu1 %v5514_v63  ;;  %5512 = vadd.xlane.f32.xlu0 %v5511_v12  ;;  %v5529_v54 = vsel %vm2682_vm0, %v5426_v8, 0.0  ;;  %v5374_v63 = vmax.f32 %v5325_v1, 0.0  ;;  %v12361_v51 = vld [vmem:[#allocation146_spill] sm:$0xff]  ;;  %v5544_v2 = vsel %vm2682_vm0, %v5431_v32, 0.0 }
 0x42c   :  { %6595 = vtanh.f32 %v4641_v20  ;;  %v4949_v56 = vpop.xlane.xlu1 %4948  ;;  %v4946_v59 = vpop.xlane.xlu0 %4945  ;;  %v5428_v20 = vmul.f32 %v10963_v37, %v5372_v62  ;;  %v5281_v12 = vmul.f32 %v9855_v26, %v12361_v51  ;;  %v5433_v5 = vmul.f32 %v10963_v37, %v5377_v50  ;;  %v12367_v8 = vld [vmem:[#allocation158_spill] sm:$0xff] }
 0x42d   :  { %v6586_v25 = vpop.eup %6585  ;;  %v5099_v27 = vadd.f32 %v11219_v24, %v4949_v56  ;;  %v5098_v18 = vadd.f32 %v11219_v24, %v4946_v59  ;;  %v5538_v56 = vsel %vm2682_vm0, %v5429_v36, 0.0  ;;  %v5331_v47 = vadd.f32 %v5282_v0, %v9864_v44 }
 0x42e   :  { %v6588_v48 = vpop.eup %6587  ;;  %4736 = vst.msk [vmem:[%s11865_s14 + $0x160] sm:$0xff] %vm4187_vm1, %v6586_v25  ;;  %v5330_v59 = vadd.f32 %v5281_v12, %v9864_v44  ;;  %v5535_v28 = vsel %vm2682_vm0, %v5428_v20, 0.0  ;;  %v5430_v25 = vmul.f32 %v10963_v37, %v5374_v63  ;;  %v5287_v62 = vmul.f32 %v9855_v26, %v12367_v8  ;;  %v12368_v20 = vld [vmem:[#allocation156_spill] sm:$0xff] }
 0x42f   :  { %4735 = vst.msk [vmem:[%s11865_s14 + $0x158] sm:$0xff] %vm4187_vm1, %v6588_v48  ;;  %6597 = vtanh.f32 %v5099_v27  ;;  %5521 = vadd.xlane.f32.xlu1 %v5520_v35  ;;  %5518 = vadd.xlane.f32.xlu0 %v5517_v9  ;;  %v5376_v27 = vmax.f32 %v5327_v22, 0.0  ;;  %v12364_v48 = vld [vmem:[#allocation150_spill] sm:$0xff]  ;;  %v5550_v23 = vsel %vm2682_vm0, %v5433_v5, 0.0  ;;  %v5286_v63 = vmul.f32 %v9855_v26, %v12368_v20 }
 0x430   :  { %6599 = vtanh.f32 %v5098_v18  ;;  %v4955_v40 = vpop.xlane.xlu1 %4954  ;;  %v4952_v4 = vpop.xlane.xlu0 %4951  ;;  %v5329_v18 = vadd.f32 %v5280_v60, %v9864_v44  ;;  %v5283_v9 = vmul.f32 %v9855_v26, %v12364_v48  ;;  %v5379_v29 = vmax.f32 %v5330_v59, 0.0 }
 0x431   :  { %v6590_v41 = vpop.eup %6589  ;;  %v5101_v49 = vadd.f32 %v11219_v24, %v4955_v40  ;;  %v5100_v10 = vadd.f32 %v11219_v24, %v4952_v4  ;;  %v5336_v57 = vadd.f32 %v5287_v62, %v9864_v44  ;;  %v5335_v59 = vadd.f32 %v5286_v63, %v9864_v44 }
 0x432   :  { %v6592_v6 = vpop.eup %6591  ;;  %4738 = vst.msk [vmem:[%s11865_s14 + $0x170] sm:$0xff] %vm4187_vm1, %v6590_v41  ;;  %v5332_v11 = vadd.f32 %v5283_v9, %v9864_v44 }
 0x433   :  { %4737 = vst.msk [vmem:[%s11865_s14 + $0x168] sm:$0xff] %vm4187_vm1, %v6592_v6  ;;  %6601 = vtanh.f32 %v5101_v49  ;;  %5527 = vadd.xlane.f32.xlu1 %v5526_v14  ;;  %5524 = vadd.xlane.f32.xlu0 %v5523_v19  ;;  %v5541_v49 = vsel %vm2682_vm0, %v5430_v25, 0.0  ;;  %v5378_v14 = vmax.f32 %v5329_v18, 0.0  ;;  %v12366_v6 = vld [vmem:[#allocation152_spill] sm:$0xff]  ;;  %v12370_v25 = vld [vmem:[#allocation162_spill] sm:$0xff]  ;;  %v5385_v17 = vmax.f32 %v5336_v57, 0.0 }
 0x434   :  { %6603 = vtanh.f32 %v5100_v10  ;;  %v4961_v46 = vpop.xlane.xlu1 %4960  ;;  %v4958_v42 = vpop.xlane.xlu0 %4957  ;;  %v5432_v10 = vmul.f32 %v10963_v37, %v5376_v27  ;;  %v5284_v19 = vmul.f32 %v9855_v26, %v12366_v6  ;;  %v5289_v27 = vmul.f32 %v9855_v26, %v12370_v25  ;;  %v12371_v18 = vld [vmem:[#allocation166_spill] sm:$0xff] }
 0x435   :  { %v6594_v30 = vpop.eup %6593  ;;  %v5103_v33 = vadd.f32 %v11219_v24, %v4961_v46  ;;  %v5102_v58 = vadd.f32 %v11219_v24, %v4958_v42  ;;  %v5334_v46 = vadd.f32 %v5285_v43, %v9864_v44  ;;  %v5434_v36 = vmul.f32 %v10963_v37, %v5378_v14 }
 0x436   :  { %v6596_v15 = vpop.eup %6595  ;;  %4740 = vst.msk [vmem:[%s11865_s14 + $0x180] sm:$0xff] %vm4187_vm1, %v6594_v30  ;;  %v5435_v30 = vmul.f32 %v10963_v37, %v5379_v29  ;;  %v5291_v7 = vmul.f32 %v9855_v26, %v12371_v18 }
 0x437   :  { %4739 = vst.msk [vmem:[%s11865_s14 + $0x178] sm:$0xff] %vm4187_vm1, %v6596_v15  ;;  %6605 = vtanh.f32 %v5103_v33  ;;  %5533 = vadd.xlane.f32.xlu1 %v5532_v45  ;;  %5530 = vadd.xlane.f32.xlu0 %v5529_v54  ;;  %v5381_v33 = vmax.f32 %v5332_v11, 0.0  ;;  %v5547_v45 = vsel %vm2682_vm0, %v5432_v10, 0.0  ;;  %v5380_v15 = vmax.f32 %v5331_v47, 0.0 }
 0x438   :  { %6607 = vtanh.f32 %v5102_v58  ;;  %v4967_v21 = vpop.xlane.xlu1 %4966  ;;  %v4964_v34 = vpop.xlane.xlu0 %4963  ;;  %v5333_v54 = vadd.f32 %v5284_v19, %v9864_v44  ;;  %v5383_v12 = vmax.f32 %v5334_v46, 0.0  ;;  %v5556_v32 = vsel %vm2682_vm0, %v5435_v30, 0.0  ;;  %v12373_v30 = vld [vmem:[#allocation168_spill] sm:$0xff] }
 0x439   :  { %v6598_v61 = vpop.eup %6597  ;;  %v5105_v39 = vadd.f32 %v11219_v24, %v4967_v21  ;;  %v5104_v3 = vadd.f32 %v11219_v24, %v4964_v34  ;;  %v5437_v50 = vmul.f32 %v10963_v37, %v5381_v33  ;;  %v5384_v11 = vmax.f32 %v5335_v59, 0.0 }
 0x43a   :  { %v6600_v35 = vpop.eup %6599  ;;  %5197 = vst.msk [vmem:[%s11866_s15 + $0x8] sm:$0xff] %vm4187_vm1, %v6598_v61  ;;  %v5439_v9 = vmul.f32 %v10963_v37, %v5383_v12  ;;  %v5441_v47 = vmul.f32 %v10963_v37, %v5385_v17  ;;  %v5340_v6 = vadd.f32 %v5291_v7, %v9864_v44  ;;  %v5292_v33 = vmul.f32 %v9855_v26, %v12373_v30 }
 0x43b   :  { %5196 = vst.msk [vmem:[%s11866_s15] sm:$0xff] %vm4187_vm1, %v6600_v35  ;;  %6609 = vtanh.f32 %v5105_v39  ;;  %5539 = vadd.xlane.f32.xlu1 %v5538_v56  ;;  %5536 = vadd.xlane.f32.xlu0 %v5535_v28  ;;  %v5553_v39 = vsel %vm2682_vm0, %v5434_v36, 0.0  ;;  %v5382_v56 = vmax.f32 %v5333_v54, 0.0  ;;  %v12369_v35 = vld [vmem:[#allocation160_spill] sm:$0xff] }
 0x43c   :  { %6611 = vtanh.f32 %v5104_v3  ;;  %v4973_v13 = vpop.xlane.xlu1 %4972  ;;  %v4970_v55 = vpop.xlane.xlu0 %4969  ;;  %v5436_v3 = vmul.f32 %v10963_v37, %v5380_v15  ;;  %v5288_v28 = vmul.f32 %v9855_v26, %v12369_v35  ;;  %v5568_v46 = vsel %vm2682_vm0, %v5439_v9, 0.0 }
 0x43d   :  { %v6602_v52 = vpop.eup %6601  ;;  %v5107_v40 = vadd.f32 %v11219_v24, %v4973_v13  ;;  %v5106_v4 = vadd.f32 %v11219_v24, %v4970_v55  ;;  %v5438_v29 = vmul.f32 %v10963_v37, %v5382_v56  ;;  %v5574_v36 = vsel %vm2682_vm0, %v5441_v47, 0.0 }
 0x43e   :  { %v6604_v41 = vpop.eup %6603  ;;  %5199 = vst.msk [vmem:[%s11866_s15 + $0x18] sm:$0xff] %vm4187_vm1, %v6602_v52  ;;  %v5337_v5 = vadd.f32 %v5288_v28, %v9864_v44  ;;  %v5389_v15 = vmax.f32 %v5340_v6, 0.0 }
 0x43f   :  { %5198 = vst.msk [vmem:[%s11866_s15 + $0x10] sm:$0xff] %vm4187_vm1, %v6604_v41  ;;  %6613 = vtanh.f32 %v5107_v40  ;;  %5545 = vadd.xlane.f32.xlu1 %v5544_v2  ;;  %5542 = vadd.xlane.f32.xlu0 %v5541_v49  ;;  %v5338_v2 = vadd.f32 %v5289_v27, %v9864_v44  ;;  %v5562_v40 = vsel %vm2682_vm0, %v5437_v50, 0.0  ;;  %v12372_v41 = vld [vmem:[#allocation164_spill] sm:$0xff] }
 0x440   :  { %6615 = vtanh.f32 %v5106_v4  ;;  %v4979_v1 = vpop.xlane.xlu1 %4978  ;;  %v4976_v53 = vpop.xlane.xlu0 %4975  ;;  %v5559_v4 = vsel %vm2682_vm0, %v5436_v3, 0.0  ;;  %v5290_v49 = vmul.f32 %v9855_v26, %v12372_v41 }
 0x441   :  { %v6606_v42 = vpop.eup %6605  ;;  %v5109_v31 = vadd.f32 %v11219_v24, %v4979_v1  ;;  %v5108_v16 = vadd.f32 %v11219_v24, %v4976_v53  ;;  %v5387_v1 = vmax.f32 %v5338_v2, 0.0  ;;  %v5386_v53 = vmax.f32 %v5337_v5, 0.0 }
 0x442   :  { %v6608_v58 = vpop.eup %6607  ;;  %5201 = vst.msk [vmem:[%s11866_s15 + $0x28] sm:$0xff] %vm4187_vm1, %v6606_v42  ;;  %v5565_v42 = vsel %vm2682_vm0, %v5438_v29, 0.0 }
 0x443   :  { %5200 = vst.msk [vmem:[%s11866_s15 + $0x20] sm:$0xff] %vm4187_vm1, %v6608_v58  ;;  %6617 = vtanh.f32 %v5109_v31  ;;  %5551 = vadd.xlane.f32.xlu1 %v5550_v23  ;;  %5548 = vadd.xlane.f32.xlu0 %v5547_v45  ;;  %v5440_v31 = vmul.f32 %v10963_v37, %v5384_v11 }
 0x444   :  { %6619 = vtanh.f32 %v5108_v16  ;;  %v4985_v22 = vpop.xlane.xlu1 %4984  ;;  %v4982_v51 = vpop.xlane.xlu0 %4981  ;;  %v5339_v16 = vadd.f32 %v5290_v49, %v9864_v44 }
 0x445   :  { %v6610_v60 = vpop.eup %6609  ;;  %v5111_v21 = vadd.f32 %v11219_v24, %v4985_v22  ;;  %v5110_v34 = vadd.f32 %v11219_v24, %v4982_v51  ;;  %v5443_v22 = vmul.f32 %v10963_v37, %v5387_v1  ;;  %v5442_v51 = vmul.f32 %v10963_v37, %v5386_v53 }
 0x446   :  { %v6612_v61 = vpop.eup %6611  ;;  %5203 = vst.msk [vmem:[%s11866_s15 + $0x38] sm:$0xff] %vm4187_vm1, %v6610_v60  ;;  %v5571_v26 = vsel %vm2682_vm0, %v5440_v31, 0.0  ;;  %v5388_v57 = vmax.f32 %v5339_v16, 0.0  ;;  %v5342_v60 = vadd.f32 %v9859_v38, %v9864_v44 }
 0x447   :  { %5202 = vst.msk [vmem:[%s11866_s15 + $0x30] sm:$0xff] %vm4187_vm1, %v6612_v61  ;;  %6621 = vtanh.f32 %v5111_v21  ;;  %5557 = vadd.xlane.f32.xlu1 %v5556_v32  ;;  %5554 = vadd.xlane.f32.xlu0 %v5553_v39  ;;  %v5341_v21 = vadd.f32 %v5292_v33, %v9864_v44  ;;  %v5580_v38 = vsel %vm2682_vm0, %v5443_v22, 0.0  ;;  %v6800_v44 = vld [vmem:[%s11862_s11] ss:$0 sm:$0xff]  ;;  %v5577_v56 = vsel %vm2682_vm0, %v5442_v51, 0.0 }
 0x448   :  { %6623 = vtanh.f32 %v5110_v34  ;;  %v4991_v0 = vpop.xlane.xlu1 %4990  ;;  %v4988_v48 = vpop.xlane.xlu0 %4987  ;;  %v5445_v39 = vmul.f32 %v6800_v44, %v5389_v15  ;;  %v5444_v59 = vmul.f32 %v6800_v44, %v5388_v57  ;;  %v5391_v35 = vmax.f32 %v5342_v60, 0.0 }
 0x449   :  { %v6614_v43 = vpop.eup %6613  ;;  %v5113_v13 = vadd.f32 %v11219_v24, %v4991_v0  ;;  %v5112_v55 = vadd.f32 %v11219_v24, %v4988_v48  ;;  %v5390_v28 = vmax.f32 %v5341_v21, 0.0 }
 0x44a   :  { %v6616_v52 = vpop.eup %6615  ;;  %5205 = vst.msk [vmem:[%s11866_s15 + $0x48] sm:$0xff] %vm4187_vm1, %v6614_v43  ;;  %v5586_v9 = vsel %vm2682_vm0, %v5445_v39, 0.0  ;;  %v5583_v17 = vsel %vm2682_vm0, %v5444_v59, 0.0  ;;  %v5447_v43 = vmul.f32 %v6800_v44, %v5391_v35 }
 0x44b   :  { %5204 = vst.msk [vmem:[%s11866_s15 + $0x40] sm:$0xff] %vm4187_vm1, %v6616_v52  ;;  %6625 = vtanh.f32 %v5113_v13  ;;  %5563 = vadd.xlane.f32.xlu1 %v5562_v40  ;;  %5560 = vadd.xlane.f32.xlu0 %v5559_v4  ;;  %v5446_v13 = vmul.f32 %v6800_v44, %v5390_v28 }
 0x44c   :  { %6627 = vtanh.f32 %v5112_v55  ;;  %v4997_v10 = vpop.xlane.xlu1 %4996  ;;  %v4994_v14 = vpop.xlane.xlu0 %4993  ;;  %v5592_v29 = vsel %vm2682_vm0, %v5447_v43, 0.0 }
 0x44d   :  { %v6618_v19 = vpop.eup %6617  ;;  %v5115_v8 = vadd.f32 %v11219_v24, %v4997_v10  ;;  %v5114_v62 = vadd.f32 %v11219_v24, %v4994_v14  ;;  %v5589_v11 = vsel %vm2682_vm0, %v5446_v13, 0.0 }
 0x44e   :  { %v6620_v23 = vpop.eup %6619  ;;  %5207 = vst.msk [vmem:[%s11866_s15 + $0x58] sm:$0xff] %vm4187_vm1, %v6618_v19 }
 0x44f   :  { %5206 = vst.msk [vmem:[%s11866_s15 + $0x50] sm:$0xff] %vm4187_vm1, %v6620_v23  ;;  %6629 = vtanh.f32 %v5115_v8  ;;  %5569 = vadd.xlane.f32.xlu1 %v5568_v46  ;;  %5566 = vadd.xlane.f32.xlu0 %v5565_v42 }
 0x450   :  { %6631 = vtanh.f32 %v5114_v62  ;;  %v5003_v58 = vpop.xlane.xlu1 %5002  ;;  %v5000_v45 = vpop.xlane.xlu0 %4999 }
 0x451   :  { %v6622_v54 = vpop.eup %6621  ;;  %v5117_v20 = vadd.f32 %v11219_v24, %v5003_v58  ;;  %v5116_v63 = vadd.f32 %v11219_v24, %v5000_v45 }
 0x452   :  { %v6624_v12 = vpop.eup %6623  ;;  %5209 = vst.msk [vmem:[%s11866_s15 + $0x68] sm:$0xff] %vm4187_vm1, %v6622_v54 }
 0x453   :  { %5208 = vst.msk [vmem:[%s11866_s15 + $0x60] sm:$0xff] %vm4187_vm1, %v6624_v12  ;;  %6633 = vtanh.f32 %v5117_v20  ;;  %5575 = vadd.xlane.f32.xlu1 %v5574_v36  ;;  %5572 = vadd.xlane.f32.xlu0 %v5571_v26 }
 0x454   :  { %6635 = vtanh.f32 %v5116_v63  ;;  %v5009_v37 = vpop.xlane.xlu1 %5008  ;;  %v5006_v34 = vpop.xlane.xlu0 %5005 }
 0x455   :  { %v6626_v32 = vpop.eup %6625  ;;  %v5119_v50 = vadd.f32 %v11219_v24, %v5009_v37  ;;  %v5118_v61 = vadd.f32 %v11219_v24, %v5006_v34 }
 0x456   :  { %v6628_v3 = vpop.eup %6627  ;;  %5211 = vst.msk [vmem:[%s11866_s15 + $0x78] sm:$0xff] %vm4187_vm1, %v6626_v32 }
 0x457   :  { %5210 = vst.msk [vmem:[%s11866_s15 + $0x70] sm:$0xff] %vm4187_vm1, %v6628_v3  ;;  %6637 = vtanh.f32 %v5119_v50  ;;  %5581 = vadd.xlane.f32.xlu1 %v5580_v38  ;;  %5578 = vadd.xlane.f32.xlu0 %v5577_v56 }
 0x458   :  { %6639 = vtanh.f32 %v5118_v61  ;;  %v5015_v25 = vpop.xlane.xlu1 %5014  ;;  %v5012_v27 = vpop.xlane.xlu0 %5011 }
 0x459   :  { %v6630_v18 = vpop.eup %6629  ;;  %v5121_v7 = vadd.f32 %v11219_v24, %v5015_v25  ;;  %v5120_v0 = vadd.f32 %v11219_v24, %v5012_v27 }
 0x45a   :  { %v6632_v48 = vpop.eup %6631  ;;  %5213 = vst.msk [vmem:[%s11866_s15 + $0x88] sm:$0xff] %vm4187_vm1, %v6630_v18 }
 0x45b   :  { %5212 = vst.msk [vmem:[%s11866_s15 + $0x80] sm:$0xff] %vm4187_vm1, %v6632_v48  ;;  %6641 = vtanh.f32 %v5121_v7  ;;  %5587 = vadd.xlane.f32.xlu1 %v5586_v9  ;;  %5584 = vadd.xlane.f32.xlu0 %v5583_v17 }
 0x45c   :  { %6643 = vtanh.f32 %v5120_v0  ;;  %v5021_v55 = vpop.xlane.xlu1 %5020  ;;  %v5018_v2 = vpop.xlane.xlu0 %5017 }
 0x45d   :  { %v6634_v5 = vpop.eup %6633  ;;  %v5123_v52 = vadd.f32 %v11219_v24, %v5021_v55  ;;  %v5122_v40 = vadd.f32 %v11219_v24, %v5018_v2 }
 0x45e   :  { %v6636_v4 = vpop.eup %6635  ;;  %5215 = vst.msk [vmem:[%s11866_s15 + $0x98] sm:$0xff] %vm4187_vm1, %v6634_v5 }
 0x45f   :  { %5214 = vst.msk [vmem:[%s11866_s15 + $0x90] sm:$0xff] %vm4187_vm1, %v6636_v4  ;;  %6645 = vtanh.f32 %v5123_v52  ;;  %5593 = vadd.xlane.f32.xlu1 %v5592_v29  ;;  %5590 = vadd.xlane.f32.xlu0 %v5589_v11 }
 0x460   :  { %6647 = vtanh.f32 %v5122_v40  ;;  %v5027_v41 = vpop.xlane.xlu1 %5026  ;;  %v5024_v49 = vpop.xlane.xlu0 %5023 }
 0x461   :  { %v6638_v10 = vpop.eup %6637  ;;  %v5125_v14 = vadd.f32 %v11219_v24, %v5027_v41  ;;  %v5124_v47 = vadd.f32 %v11219_v24, %v5024_v49 }
 0x462   :  { %v6640_v6 = vpop.eup %6639  ;;  %5217 = vst.msk [vmem:[%s11866_s15 + $0xa8] sm:$0xff] %vm4187_vm1, %v6638_v10 }
 0x463   :  { %5216 = vst.msk [vmem:[%s11866_s15 + $0xa0] sm:$0xff] %vm4187_vm1, %v6640_v6  ;;  %6649 = vtanh.f32 %v5125_v14 }
 0x464   :  { %6651 = vtanh.f32 %v5124_v47  ;;  %v5033_v19 = vpop.xlane.xlu1 %5032  ;;  %v5030_v8 = vpop.xlane.xlu0 %5029 }
 0x465   :  { %v6642_v62 = vpop.eup %6641  ;;  %v5127_v1 = vadd.f32 %v11219_v24, %v5033_v19  ;;  %v5126_v53 = vadd.f32 %v11219_v24, %v5030_v8 }
 0x466   :  { %v6644_v23 = vpop.eup %6643  ;;  %5219 = vst.msk [vmem:[%s11866_s15 + $0xb8] sm:$0xff] %vm4187_vm1, %v6642_v62 }
 0x467   :  { %5218 = vst.msk [vmem:[%s11866_s15 + $0xb0] sm:$0xff] %vm4187_vm1, %v6644_v23  ;;  %6653 = vtanh.f32 %v5127_v1 }
 0x468   :  { %6655 = vtanh.f32 %v5126_v53  ;;  %v5039_v46 = vpop.xlane.xlu1 %5038  ;;  %v5036_v42 = vpop.xlane.xlu0 %5035 }
 0x469   :  { %v6646_v31 = vpop.eup %6645  ;;  %v5129_v16 = vadd.f32 %v11219_v24, %v5039_v46  ;;  %v5128_v30 = vadd.f32 %v11219_v24, %v5036_v42 }
 0x46a   :  { %v6648_v33 = vpop.eup %6647  ;;  %5221 = vst.msk [vmem:[%s11866_s15 + $0xc8] sm:$0xff] %vm4187_vm1, %v6646_v31 }
 0x46b   :  { %5220 = vst.msk [vmem:[%s11866_s15 + $0xc0] sm:$0xff] %vm4187_vm1, %v6648_v33  ;;  %6657 = vtanh.f32 %v5129_v16 }
 0x46c   :  { %6659 = vtanh.f32 %v5128_v30  ;;  %v5045_v58 = vpop.xlane.xlu1 %5044  ;;  %v5042_v45 = vpop.xlane.xlu0 %5041 }
 0x46d   :  { %v6650_v36 = vpop.eup %6649  ;;  %v5131_v15 = vadd.f32 %v11219_v24, %v5045_v58  ;;  %v5130_v54 = vadd.f32 %v11219_v24, %v5042_v45 }
 0x46e   :  { %v6652_v20 = vpop.eup %6651  ;;  %5223 = vst.msk [vmem:[%s11866_s15 + $0xd8] sm:$0xff] %vm4187_vm1, %v6650_v36 }
 0x46f   :  { %5222 = vst.msk [vmem:[%s11866_s15 + $0xd0] sm:$0xff] %vm4187_vm1, %v6652_v20  ;;  %6661 = vtanh.f32 %v5131_v15 }
 0x470   :  { %6663 = vtanh.f32 %v5130_v54  ;;  %v5051_v63 = vpop.xlane.xlu1 %5050  ;;  %v5048_v22 = vpop.xlane.xlu0 %5047 }
 0x471   :  { %v6654_v51 = vpop.eup %6653  ;;  %v5133_v12 = vadd.f32 %v11219_v24, %v5051_v63  ;;  %v5132_v26 = vadd.f32 %v11219_v24, %v5048_v22 }
 0x472   :  { %v6656_v57 = vpop.eup %6655  ;;  %5225 = vst.msk [vmem:[%s11866_s15 + $0xe8] sm:$0xff] %vm4187_vm1, %v6654_v51 }
 0x473   :  { %5224 = vst.msk [vmem:[%s11866_s15 + $0xe0] sm:$0xff] %vm4187_vm1, %v6656_v57  ;;  %6665 = vtanh.f32 %v5133_v12 }
 0x474   :  { %6667 = vtanh.f32 %v5132_v26  ;;  %v5057_v60 = vpop.xlane.xlu1 %5056  ;;  %v5054_v21 = vpop.xlane.xlu0 %5053 }
 0x475   :  { %v6658_v37 = vpop.eup %6657  ;;  %v5135_v34 = vadd.f32 %v11219_v24, %v5057_v60  ;;  %v5134_v32 = vadd.f32 %v11219_v24, %v5054_v21 }
 0x476   :  { %v6660_v50 = vpop.eup %6659  ;;  %5227 = vst.msk [vmem:[%s11866_s15 + $0xf8] sm:$0xff] %vm4187_vm1, %v6658_v37 }
 0x477   :  { %5226 = vst.msk [vmem:[%s11866_s15 + $0xf0] sm:$0xff] %vm4187_vm1, %v6660_v50  ;;  %6669 = vtanh.f32 %v5135_v34 }
 0x478   :  { %6671 = vtanh.f32 %v5134_v32  ;;  %v5063_v61 = vpop.xlane.xlu1 %5062  ;;  %v5060_v38 = vpop.xlane.xlu0 %5059 }
 0x479   :  { %v6662_v44 = vpop.eup %6661  ;;  %v5137_v39 = vadd.f32 %v11219_v24, %v5063_v61  ;;  %v5136_v3 = vadd.f32 %v11219_v24, %v5060_v38 }
 0x47a   :  { %v6664_v56 = vpop.eup %6663  ;;  %5229 = vst.msk [vmem:[%s11866_s15 + $0x108] sm:$0xff] %vm4187_vm1, %v6662_v44 }
 0x47b   :  { %5228 = vst.msk [vmem:[%s11866_s15 + $0x100] sm:$0xff] %vm4187_vm1, %v6664_v56  ;;  %6673 = vtanh.f32 %v5137_v39 }
 0x47c   :  { %6675 = vtanh.f32 %v5136_v3  ;;  %v5069_v59 = vpop.xlane.xlu1 %5068  ;;  %v5066_v35 = vpop.xlane.xlu0 %5065 }
 0x47d   :  { %v6666_v28 = vpop.eup %6665  ;;  %v5139_v25 = vadd.f32 %v11219_v24, %v5069_v59  ;;  %v5138_v27 = vadd.f32 %v11219_v24, %v5066_v35 }
 0x47e   :  { %v6668_v18 = vpop.eup %6667  ;;  %5231 = vst.msk [vmem:[%s11866_s15 + $0x118] sm:$0xff] %vm4187_vm1, %v6666_v28 }
 0x47f   :  { %5230 = vst.msk [vmem:[%s11866_s15 + $0x110] sm:$0xff] %vm4187_vm1, %v6668_v18  ;;  %6677 = vtanh.f32 %v5139_v25 }
 0x480   :  { %6679 = vtanh.f32 %v5138_v27  ;;  %v5075_v7 = vpop.xlane.xlu1 %5074  ;;  %v5072_v0 = vpop.xlane.xlu0 %5071 }
 0x481   :  { %v6670_v48 = vpop.eup %6669  ;;  %v5141_v9 = vadd.f32 %v11219_v24, %v5075_v7  ;;  %v5140_v17 = vadd.f32 %v11219_v24, %v5072_v0 }
 0x482   :  { %v6672_v43 = vpop.eup %6671  ;;  %5233 = vst.msk [vmem:[%s11866_s15 + $0x128] sm:$0xff] %vm4187_vm1, %v6670_v48 }
 0x483   :  { %5232 = vst.msk [vmem:[%s11866_s15 + $0x120] sm:$0xff] %vm4187_vm1, %v6672_v43  ;;  %6681 = vtanh.f32 %v5141_v9 }
 0x484   :  { %6683 = vtanh.f32 %v5140_v17  ;;  %v5081_v13 = vpop.xlane.xlu1 %5080  ;;  %v5078_v55 = vpop.xlane.xlu0 %5077 }
 0x485   :  { %v6674_v2 = vpop.eup %6673  ;;  %v5143_v5 = vadd.f32 %v11219_v24, %v5081_v13  ;;  %v5142_v52 = vadd.f32 %v11219_v24, %v5078_v55 }
 0x486   :  { %v6676_v40 = vpop.eup %6675  ;;  %5235 = vst.msk [vmem:[%s11866_s15 + $0x138] sm:$0xff] %vm4187_vm1, %v6674_v2 }
 0x487   :  { %5234 = vst.msk [vmem:[%s11866_s15 + $0x130] sm:$0xff] %vm4187_vm1, %v6676_v40  ;;  %6685 = vtanh.f32 %v5143_v5 }
 0x488   :  { %6687 = vtanh.f32 %v5142_v52  ;;  %v5087_v4 = vpop.xlane.xlu1 %5086  ;;  %v5084_v29 = vpop.xlane.xlu0 %5083 }
 0x489   :  { %v6678_v11 = vpop.eup %6677  ;;  %v5145_v41 = vadd.f32 %v11219_v24, %v5087_v4  ;;  %v5144_v49 = vadd.f32 %v11219_v24, %v5084_v29 }
 0x48a   :  { %v6680_v10 = vpop.eup %6679  ;;  %5237 = vst.msk [vmem:[%s11866_s15 + $0x148] sm:$0xff] %vm4187_vm1, %v6678_v11 }
 0x48b   :  { %5236 = vst.msk [vmem:[%s11866_s15 + $0x140] sm:$0xff] %vm4187_vm1, %v6680_v10  ;;  %6689 = vtanh.f32 %v5145_v41 }
 0x48c   :  { %6691 = vtanh.f32 %v5144_v49  ;;  %v5450_v14 = vpop.xlane.xlu1 %5449  ;;  %v5090_v47 = vpop.xlane.xlu0 %5089 }
 0x48d   :  { %v6682_v6 = vpop.eup %6681  ;;  %v5602_v19 = vadd.f32 %v11219_v24, %v5450_v14  ;;  %v5146_v8 = vadd.f32 %v11219_v24, %v5090_v47 }
 0x48e   :  { %v6684_v62 = vpop.eup %6683  ;;  %5239 = vst.msk [vmem:[%s11866_s15 + $0x158] sm:$0xff] %vm4187_vm1, %v6682_v6 }
 0x48f   :  { %5238 = vst.msk [vmem:[%s11866_s15 + $0x150] sm:$0xff] %vm4187_vm1, %v6684_v62  ;;  %6693 = vtanh.f32 %v5602_v19 }
 0x490   :  { %6695 = vtanh.f32 %v5146_v8  ;;  %v5456_v1 = vpop.xlane.xlu1 %5455  ;;  %v5453_v53 = vpop.xlane.xlu0 %5452 }
 0x491   :  { %v6686_v23 = vpop.eup %6685  ;;  %v5604_v46 = vadd.f32 %v11219_v24, %v5456_v1  ;;  %v5603_v42 = vadd.f32 %v11219_v24, %v5453_v53 }
 0x492   :  { %v6688_v31 = vpop.eup %6687  ;;  %5241 = vst.msk [vmem:[%s11866_s15 + $0x168] sm:$0xff] %vm4187_vm1, %v6686_v23 }
 0x493   :  { %5240 = vst.msk [vmem:[%s11866_s15 + $0x160] sm:$0xff] %vm4187_vm1, %v6688_v31  ;;  %6697 = vtanh.f32 %v5604_v46 }
 0x494   :  { %6699 = vtanh.f32 %v5603_v42  ;;  %v5462_v16 = vpop.xlane.xlu1 %5461  ;;  %v5459_v30 = vpop.xlane.xlu0 %5458 }
 0x495   :  { %v6690_v33 = vpop.eup %6689  ;;  %v5606_v58 = vadd.f32 %v11219_v24, %v5462_v16  ;;  %v5605_v45 = vadd.f32 %v11219_v24, %v5459_v30  ;;  %v11696_v30 = vld [vmem:[#allocation2] ss:$0 sm:$0xff] }
 0x496   :  { %v6692_v36 = vpop.eup %6691  ;;  %5243 = vst.msk [vmem:[%s11866_s15 + $0x178] sm:$0xff] %vm4187_vm1, %v6690_v33 }
 0x497   :  { %5242 = vst.msk [vmem:[%s11866_s15 + $0x170] sm:$0xff] %vm4187_vm1, %v6692_v36  ;;  %6701 = vtanh.f32 %v5606_v58 }
 0x498   :  { %6703 = vtanh.f32 %v5605_v45  ;;  %v5468_v15 = vpop.xlane.xlu1 %5467  ;;  %v5465_v54 = vpop.xlane.xlu0 %5464 }
 0x499   :  { %v6694_v20 = vpop.eup %6693  ;;  %v5608_v63 = vadd.f32 %v11219_v24, %v5468_v15  ;;  %v5607_v22 = vadd.f32 %v11219_v24, %v5465_v54 }
 0x49a   :  { %v6696_v51 = vpop.eup %6695  ;;  %5700 = vst.msk [vmem:[%s11867_s16] sm:$0xff] %vm4187_vm1, %v6694_v20 }
 0x49b   :  { %5244 = vst.msk [vmem:[%s11866_s15 + $0x180] sm:$0xff] %vm4187_vm1, %v6696_v51  ;;  %6705 = vtanh.f32 %v5608_v63 }
 0x49c   :  { %6707 = vtanh.f32 %v5607_v22  ;;  %v5474_v12 = vpop.xlane.xlu1 %5473  ;;  %v5471_v26 = vpop.xlane.xlu0 %5470 }
 0x49d   :  { %v6698_v57 = vpop.eup %6697  ;;  %v5610_v60 = vadd.f32 %v11219_v24, %v5474_v12  ;;  %v5609_v21 = vadd.f32 %v11219_v24, %v5471_v26 }
 0x49e   :  { %v6700_v37 = vpop.eup %6699  ;;  %5702 = vst.msk [vmem:[%s11867_s16 + $0x10] sm:$0xff] %vm4187_vm1, %v6698_v57 }
 0x49f   :  { %5701 = vst.msk [vmem:[%s11867_s16 + $0x8] sm:$0xff] %vm4187_vm1, %v6700_v37  ;;  %6709 = vtanh.f32 %v5610_v60 }
 0x4a0   :  { %6711 = vtanh.f32 %v5609_v21  ;;  %v5480_v34 = vpop.xlane.xlu1 %5479  ;;  %v5477_v32 = vpop.xlane.xlu0 %5476 }
 0x4a1   :  { %v6702_v50 = vpop.eup %6701  ;;  %v5612_v61 = vadd.f32 %v11219_v24, %v5480_v34  ;;  %v5611_v38 = vadd.f32 %v11219_v24, %v5477_v32 }
 0x4a2   :  { %v6704_v44 = vpop.eup %6703  ;;  %5704 = vst.msk [vmem:[%s11867_s16 + $0x20] sm:$0xff] %vm4187_vm1, %v6702_v50 }
 0x4a3   :  { %5703 = vst.msk [vmem:[%s11867_s16 + $0x18] sm:$0xff] %vm4187_vm1, %v6704_v44  ;;  %6713 = vtanh.f32 %v5612_v61 }
 0x4a4   :  { %6715 = vtanh.f32 %v5611_v38  ;;  %v5486_v39 = vpop.xlane.xlu1 %5485  ;;  %v5483_v3 = vpop.xlane.xlu0 %5482 }
 0x4a5   :  { %v6706_v56 = vpop.eup %6705  ;;  %v5614_v59 = vadd.f32 %v11219_v24, %v5486_v39  ;;  %v5613_v35 = vadd.f32 %v11219_v24, %v5483_v3 }
 0x4a6   :  { %v6708_v28 = vpop.eup %6707  ;;  %5706 = vst.msk [vmem:[%s11867_s16 + $0x30] sm:$0xff] %vm4187_vm1, %v6706_v56 }
 0x4a7   :  { %5705 = vst.msk [vmem:[%s11867_s16 + $0x28] sm:$0xff] %vm4187_vm1, %v6708_v28  ;;  %6717 = vtanh.f32 %v5614_v59 }
 0x4a8   :  { %6719 = vtanh.f32 %v5613_v35  ;;  %v5492_v25 = vpop.xlane.xlu1 %5491  ;;  %v5489_v27 = vpop.xlane.xlu0 %5488 }
 0x4a9   :  { %v6710_v18 = vpop.eup %6709  ;;  %v5616_v7 = vadd.f32 %v11219_v24, %v5492_v25  ;;  %v5615_v0 = vadd.f32 %v11219_v24, %v5489_v27 }
 0x4aa   :  { %v6712_v48 = vpop.eup %6711  ;;  %5708 = vst.msk [vmem:[%s11867_s16 + $0x40] sm:$0xff] %vm4187_vm1, %v6710_v18 }
 0x4ab   :  { %5707 = vst.msk [vmem:[%s11867_s16 + $0x38] sm:$0xff] %vm4187_vm1, %v6712_v48  ;;  %6721 = vtanh.f32 %v5616_v7 }
 0x4ac   :  { %6723 = vtanh.f32 %v5615_v0  ;;  %v5498_v9 = vpop.xlane.xlu1 %5497  ;;  %v5495_v17 = vpop.xlane.xlu0 %5494 }
 0x4ad   :  { %v6714_v43 = vpop.eup %6713  ;;  %v5618_v13 = vadd.f32 %v11219_v24, %v5498_v9  ;;  %v5617_v55 = vadd.f32 %v11219_v24, %v5495_v17 }
 0x4ae   :  { %v6716_v2 = vpop.eup %6715  ;;  %5710 = vst.msk [vmem:[%s11867_s16 + $0x50] sm:$0xff] %vm4187_vm1, %v6714_v43 }
 0x4af   :  { %5709 = vst.msk [vmem:[%s11867_s16 + $0x48] sm:$0xff] %vm4187_vm1, %v6716_v2  ;;  %6725 = vtanh.f32 %v5618_v13 }
 0x4b0   :  { %6727 = vtanh.f32 %v5617_v55  ;;  %v5504_v5 = vpop.xlane.xlu1 %5503  ;;  %v5501_v52 = vpop.xlane.xlu0 %5500 }
 0x4b1   :  { %v6718_v40 = vpop.eup %6717  ;;  %v5620_v4 = vadd.f32 %v11219_v24, %v5504_v5  ;;  %v5619_v29 = vadd.f32 %v11219_v24, %v5501_v52 }
 0x4b2   :  { %v6720_v11 = vpop.eup %6719  ;;  %5712 = vst.msk [vmem:[%s11867_s16 + $0x60] sm:$0xff] %vm4187_vm1, %v6718_v40 }
 0x4b3   :  { %5711 = vst.msk [vmem:[%s11867_s16 + $0x58] sm:$0xff] %vm4187_vm1, %v6720_v11  ;;  %6729 = vtanh.f32 %v5620_v4 }
 0x4b4   :  { %6731 = vtanh.f32 %v5619_v29  ;;  %v5510_v41 = vpop.xlane.xlu1 %5509  ;;  %v5507_v49 = vpop.xlane.xlu0 %5506 }
 0x4b5   :  { %v6722_v10 = vpop.eup %6721  ;;  %v5622_v14 = vadd.f32 %v11219_v24, %v5510_v41  ;;  %v5621_v47 = vadd.f32 %v11219_v24, %v5507_v49 }
 0x4b6   :  { %v6724_v6 = vpop.eup %6723  ;;  %5714 = vst.msk [vmem:[%s11867_s16 + $0x70] sm:$0xff] %vm4187_vm1, %v6722_v10 }
 0x4b7   :  { %5713 = vst.msk [vmem:[%s11867_s16 + $0x68] sm:$0xff] %vm4187_vm1, %v6724_v6  ;;  %6733 = vtanh.f32 %v5622_v14 }
 0x4b8   :  { %6735 = vtanh.f32 %v5621_v47  ;;  %v5516_v19 = vpop.xlane.xlu1 %5515  ;;  %v5513_v8 = vpop.xlane.xlu0 %5512 }
 0x4b9   :  { %v6726_v62 = vpop.eup %6725  ;;  %v5624_v1 = vadd.f32 %v11219_v24, %v5516_v19  ;;  %v5623_v53 = vadd.f32 %v11219_v24, %v5513_v8 }
 0x4ba   :  { %v6728_v23 = vpop.eup %6727  ;;  %5716 = vst.msk [vmem:[%s11867_s16 + $0x80] sm:$0xff] %vm4187_vm1, %v6726_v62 }
 0x4bb   :  { %5715 = vst.msk [vmem:[%s11867_s16 + $0x78] sm:$0xff] %vm4187_vm1, %v6728_v23  ;;  %6737 = vtanh.f32 %v5624_v1 }
 0x4bc   :  { %6739 = vtanh.f32 %v5623_v53  ;;  %v5522_v46 = vpop.xlane.xlu1 %5521  ;;  %v5519_v42 = vpop.xlane.xlu0 %5518 }
 0x4bd   :  { %v6730_v31 = vpop.eup %6729  ;;  %v5626_v16 = vadd.f32 %v11219_v24, %v5522_v46  ;;  %v5625_v33 = vadd.f32 %v11696_v30, %v5519_v42 }
 0x4be   :  { %v6732_v58 = vpop.eup %6731  ;;  %5718 = vst.msk [vmem:[%s11867_s16 + $0x90] sm:$0xff] %vm4187_vm1, %v6730_v31 }
 0x4bf   :  { %5717 = vst.msk [vmem:[%s11867_s16 + $0x88] sm:$0xff] %vm4187_vm1, %v6732_v58  ;;  %6741 = vtanh.f32 %v5626_v16 }
 0x4c0   :  { %6743 = vtanh.f32 %v5625_v33  ;;  %v5528_v45 = vpop.xlane.xlu1 %5527  ;;  %v5525_v36 = vpop.xlane.xlu0 %5524 }
 0x4c1   :  { %v6734_v24 = vpop.eup %6733  ;;  %v5628_v15 = vadd.f32 %v11696_v30, %v5528_v45  ;;  %v5627_v54 = vadd.f32 %v11696_v30, %v5525_v36 }
 0x4c2   :  { %v6736_v20 = vpop.eup %6735  ;;  %5720 = vst.msk [vmem:[%s11867_s16 + $0xa0] sm:$0xff] %vm4187_vm1, %v6734_v24 }
 0x4c3   :  { %5719 = vst.msk [vmem:[%s11867_s16 + $0x98] sm:$0xff] %vm4187_vm1, %v6736_v20  ;;  %6745 = vtanh.f32 %v5628_v15 }
 0x4c4   :  { %6747 = vtanh.f32 %v5627_v54  ;;  %v5534_v63 = vpop.xlane.xlu1 %5533  ;;  %v5531_v22 = vpop.xlane.xlu0 %5530 }
 0x4c5   :  { %v6738_v51 = vpop.eup %6737  ;;  %v5630_v12 = vadd.f32 %v11696_v30, %v5534_v63  ;;  %v5629_v26 = vadd.f32 %v11696_v30, %v5531_v22 }
 0x4c6   :  { %v6740_v57 = vpop.eup %6739  ;;  %5722 = vst.msk [vmem:[%s11867_s16 + $0xb0] sm:$0xff] %vm4187_vm1, %v6738_v51 }
 0x4c7   :  { %5721 = vst.msk [vmem:[%s11867_s16 + $0xa8] sm:$0xff] %vm4187_vm1, %v6740_v57  ;;  %6749 = vtanh.f32 %v5630_v12 }
 0x4c8   :  { %6751 = vtanh.f32 %v5629_v26  ;;  %v5540_v60 = vpop.xlane.xlu1 %5539  ;;  %v5537_v21 = vpop.xlane.xlu0 %5536 }
 0x4c9   :  { %v6742_v37 = vpop.eup %6741  ;;  %v5632_v34 = vadd.f32 %v11696_v30, %v5540_v60  ;;  %v5631_v32 = vadd.f32 %v11696_v30, %v5537_v21 }
 0x4ca   :  { %v6744_v50 = vpop.eup %6743  ;;  %5724 = vst.msk [vmem:[%s11867_s16 + $0xc0] sm:$0xff] %vm4187_vm1, %v6742_v37 }
 0x4cb   :  { %5723 = vst.msk [vmem:[%s11867_s16 + $0xb8] sm:$0xff] %vm4187_vm1, %v6744_v50  ;;  %6753 = vtanh.f32 %v5632_v34 }
 0x4cc   :  { %6755 = vtanh.f32 %v5631_v32  ;;  %v5546_v61 = vpop.xlane.xlu1 %5545  ;;  %v5543_v38 = vpop.xlane.xlu0 %5542 }
 0x4cd   :  { %v6746_v44 = vpop.eup %6745  ;;  %v5634_v39 = vadd.f32 %v11696_v30, %v5546_v61  ;;  %v5633_v3 = vadd.f32 %v11696_v30, %v5543_v38 }
 0x4ce   :  { %v6748_v56 = vpop.eup %6747  ;;  %5726 = vst.msk [vmem:[%s11867_s16 + $0xd0] sm:$0xff] %vm4187_vm1, %v6746_v44 }
 0x4cf   :  { %5725 = vst.msk [vmem:[%s11867_s16 + $0xc8] sm:$0xff] %vm4187_vm1, %v6748_v56  ;;  %6757 = vtanh.f32 %v5634_v39 }
 0x4d0   :  { %6759 = vtanh.f32 %v5633_v3  ;;  %v5552_v59 = vpop.xlane.xlu1 %5551  ;;  %v5549_v35 = vpop.xlane.xlu0 %5548 }
 0x4d1   :  { %v6750_v28 = vpop.eup %6749  ;;  %v5636_v25 = vadd.f32 %v11696_v30, %v5552_v59  ;;  %v5635_v27 = vadd.f32 %v11696_v30, %v5549_v35 }
 0x4d2   :  { %v6752_v18 = vpop.eup %6751  ;;  %5728 = vst.msk [vmem:[%s11867_s16 + $0xe0] sm:$0xff] %vm4187_vm1, %v6750_v28 }
 0x4d3   :  { %5727 = vst.msk [vmem:[%s11867_s16 + $0xd8] sm:$0xff] %vm4187_vm1, %v6752_v18  ;;  %6761 = vtanh.f32 %v5636_v25 }
 0x4d4   :  { %6763 = vtanh.f32 %v5635_v27  ;;  %v5558_v7 = vpop.xlane.xlu1 %5557  ;;  %v5555_v0 = vpop.xlane.xlu0 %5554 }
 0x4d5   :  { %v6754_v48 = vpop.eup %6753  ;;  %v5638_v9 = vadd.f32 %v11696_v30, %v5558_v7  ;;  %v5637_v17 = vadd.f32 %v11696_v30, %v5555_v0 }
 0x4d6   :  { %v6756_v43 = vpop.eup %6755  ;;  %5730 = vst.msk [vmem:[%s11867_s16 + $0xf0] sm:$0xff] %vm4187_vm1, %v6754_v48 }
 0x4d7   :  { %5729 = vst.msk [vmem:[%s11867_s16 + $0xe8] sm:$0xff] %vm4187_vm1, %v6756_v43  ;;  %6765 = vtanh.f32 %v5638_v9 }
 0x4d8   :  { %6767 = vtanh.f32 %v5637_v17  ;;  %v5564_v13 = vpop.xlane.xlu1 %5563  ;;  %v5561_v55 = vpop.xlane.xlu0 %5560 }
 0x4d9   :  { %v6758_v2 = vpop.eup %6757  ;;  %v5640_v5 = vadd.f32 %v11696_v30, %v5564_v13  ;;  %v5639_v52 = vadd.f32 %v11696_v30, %v5561_v55 }
 0x4da   :  { %v6760_v40 = vpop.eup %6759  ;;  %5732 = vst.msk [vmem:[%s11867_s16 + $0x100] sm:$0xff] %vm4187_vm1, %v6758_v2 }
 0x4db   :  { %5731 = vst.msk [vmem:[%s11867_s16 + $0xf8] sm:$0xff] %vm4187_vm1, %v6760_v40  ;;  %6769 = vtanh.f32 %v5640_v5 }
 0x4dc   :  { %6771 = vtanh.f32 %v5639_v52  ;;  %v5570_v4 = vpop.xlane.xlu1 %5569  ;;  %v5567_v29 = vpop.xlane.xlu0 %5566 }
 0x4dd   :  { %v6762_v11 = vpop.eup %6761  ;;  %v5642_v41 = vadd.f32 %v11696_v30, %v5570_v4  ;;  %v5641_v49 = vadd.f32 %v11696_v30, %v5567_v29 }
 0x4de   :  { %v6764_v10 = vpop.eup %6763  ;;  %5734 = vst.msk [vmem:[%s11867_s16 + $0x110] sm:$0xff] %vm4187_vm1, %v6762_v11 }
 0x4df   :  { %5733 = vst.msk [vmem:[%s11867_s16 + $0x108] sm:$0xff] %vm4187_vm1, %v6764_v10  ;;  %6773 = vtanh.f32 %v5642_v41 }
 0x4e0   :  { %6775 = vtanh.f32 %v5641_v49  ;;  %v5576_v14 = vpop.xlane.xlu1 %5575  ;;  %v5573_v47 = vpop.xlane.xlu0 %5572 }
 0x4e1   :  { %v6766_v6 = vpop.eup %6765  ;;  %v5644_v19 = vadd.f32 %v11696_v30, %v5576_v14  ;;  %v5643_v8 = vadd.f32 %v11696_v30, %v5573_v47 }
 0x4e2   :  { %v6768_v62 = vpop.eup %6767  ;;  %5736 = vst.msk [vmem:[%s11867_s16 + $0x120] sm:$0xff] %vm4187_vm1, %v6766_v6 }
 0x4e3   :  { %5735 = vst.msk [vmem:[%s11867_s16 + $0x118] sm:$0xff] %vm4187_vm1, %v6768_v62  ;;  %6777 = vtanh.f32 %v5644_v19 }
 0x4e4   :  { %6779 = vtanh.f32 %v5643_v8  ;;  %v5582_v1 = vpop.xlane.xlu1 %5581  ;;  %v5579_v53 = vpop.xlane.xlu0 %5578 }
 0x4e5   :  { %v6770_v23 = vpop.eup %6769  ;;  %v5646_v46 = vadd.f32 %v11696_v30, %v5582_v1  ;;  %v5645_v42 = vadd.f32 %v11696_v30, %v5579_v53 }
 0x4e6   :  { %v6772_v31 = vpop.eup %6771  ;;  %5738 = vst.msk [vmem:[%s11867_s16 + $0x130] sm:$0xff] %vm4187_vm1, %v6770_v23 }
 0x4e7   :  { %5737 = vst.msk [vmem:[%s11867_s16 + $0x128] sm:$0xff] %vm4187_vm1, %v6772_v31  ;;  %6781 = vtanh.f32 %v5646_v46 }
 0x4e8   :  { %6783 = vtanh.f32 %v5645_v42  ;;  %v5588_v16 = vpop.xlane.xlu1 %5587  ;;  %v5585_v33 = vpop.xlane.xlu0 %5584 }
 0x4e9   :  { %v6774_v58 = vpop.eup %6773  ;;  %v5648_v45 = vadd.f32 %v11696_v30, %v5588_v16  ;;  %v5647_v36 = vadd.f32 %v11696_v30, %v5585_v33 }
 0x4ea   :  { %v6776_v24 = vpop.eup %6775  ;;  %5740 = vst.msk [vmem:[%s11867_s16 + $0x140] sm:$0xff] %vm4187_vm1, %v6774_v58 }
 0x4eb   :  { %5739 = vst.msk [vmem:[%s11867_s16 + $0x138] sm:$0xff] %vm4187_vm1, %v6776_v24  ;;  %6785 = vtanh.f32 %v5648_v45 }
 0x4ec   :  { %6787 = vtanh.f32 %v5647_v36  ;;  %v5594_v15 = vpop.xlane.xlu1 %5593  ;;  %v5591_v54 = vpop.xlane.xlu0 %5590 }
 0x4ed   :  { %v6778_v20 = vpop.eup %6777  ;;  %v5650_v63 = vadd.f32 %v11696_v30, %v5594_v15  ;;  %v5649_v22 = vadd.f32 %v11696_v30, %v5591_v54 }
 0x4ee   :  { %v6780_v51 = vpop.eup %6779  ;;  %5742 = vst.msk [vmem:[%s11867_s16 + $0x150] sm:$0xff] %vm4187_vm1, %v6778_v20 }
 0x4ef   :  { %5741 = vst.msk [vmem:[%s11867_s16 + $0x148] sm:$0xff] %vm4187_vm1, %v6780_v51  ;;  %6789 = vtanh.f32 %v5650_v63 }
 0x4f0   :  { %6791 = vtanh.f32 %v5649_v22 }
 0x4f1   :  { %v6782_v12 = vpop.eup %6781 }
 0x4f2   :  { %v6784_v26 = vpop.eup %6783  ;;  %5744 = vst.msk [vmem:[%s11867_s16 + $0x160] sm:$0xff] %vm4187_vm1, %v6782_v12 }
 0x4f3   :  { %5743 = vst.msk [vmem:[%s11867_s16 + $0x158] sm:$0xff] %vm4187_vm1, %v6784_v26 }
 0x4f5   :  { %v6786_v30 = vpop.eup %6785 }
 0x4f6   :  { %v6788_v57 = vpop.eup %6787  ;;  %5746 = vst.msk [vmem:[%s11867_s16 + $0x170] sm:$0xff] %vm4187_vm1, %v6786_v30 }
 0x4f7   :  { %5745 = vst.msk [vmem:[%s11867_s16 + $0x168] sm:$0xff] %vm4187_vm1, %v6788_v57 }
 0x4f9   :  { %v6790_v60 = vpop.eup %6789 }
 0x4fa   :  { %v6792_v21 = vpop.eup %6791  ;;  %5748 = vst.msk [vmem:[%s11867_s16 + $0x180] sm:$0xff] %vm4187_vm1, %v6790_v60 }
 0x4fb   :  { %5747 = vst.msk [vmem:[%s11867_s16 + $0x178] sm:$0xff] %vm4187_vm1, %v6792_v21 }

</bundles_post_ra>
